<compile_context>
chip_gen: v7x
topology: tpu7x:2x2x1
jax: 0.10.0
libtpu: 0.0.40
codegen_flags: <defaults>
</compile_context>

<pallas_src>
import jax
import jax.numpy as jnp
from jax.experimental import pallas as pl
from jax.experimental.pallas import tpu as pltpu


def _make_encoder_kernel(num_layers, seq_len, batch, hidden):
    """Build the fused multi-layer LSTM encoder kernel (layer/time wavefront).

    Positional refs:
      x_ref                     (T*B, E_pad) bf16  embedded (dropout=identity) input
      [wih_l, whh_l, b_l] * L   bf16/bf16/f32      per-layer weights (resident in VMEM)
      h_out_ref, c_out_ref      (L, B, H)    f32   final hidden / cell states
      gates0_scr                (T*B, 4H)    f32   hoisted layer-0 input projection
    """
    T, B, H, L = seq_len, batch, hidden, num_layers

    def lstm_cell(gates, c_prev):
        # PyTorch gate order: i, f, g, o  (H multiple of 128 -> lane-aligned slices)
        i_g = jax.nn.sigmoid(gates[:, 0 * H:1 * H])
        f_g = jax.nn.sigmoid(gates[:, 1 * H:2 * H])
        g_g = jnp.tanh(gates[:, 2 * H:3 * H])
        o_g = jax.nn.sigmoid(gates[:, 3 * H:4 * H])
        c_new = f_g * c_prev + i_g * g_g
        h_new = o_g * jnp.tanh(c_new)
        return h_new, c_new

    def kernel(*refs):
        x_ref = refs[0]
        layer_refs = [refs[1 + 3 * l: 1 + 3 * (l + 1)] for l in range(L)]
        h_out_ref = refs[1 + 3 * L]
        c_out_ref = refs[2 + 3 * L]
        gates0_scr = refs[3 + 3 * L]

        wih0_ref, _, b0_ref = layer_refs[0]

        # ---- hoisted layer-0 input projection: ONE big (T*B, E) x (E, 4H) MXU matmul ----
        gates0_scr[...] = (
            jnp.dot(x_ref[...], wih0_ref[...], preferred_element_type=jnp.float32)
            + b0_ref[...])

        # ---- SSA recurrent carries: live in vregs, never round-trip through VMEM ----
        h = [jnp.zeros((B, H), jnp.float32) for _ in range(L)]
        c = [jnp.zeros((B, H), jnp.float32) for _ in range(L)]
        h_bf = [jnp.zeros((B, H), jnp.bfloat16) for _ in range(L)]   # matmul-side copies

        # ---- layer/time wavefront: step s advances layer l through time t = s - l ----
        # Within a wavefront step every active layer reads only start-of-step values, so
        # the L matmul chains are independent and can overlap in the MXU pipeline.
        for s in range(T + L - 1):
            new_h, new_c, new_hbf = list(h), list(c), list(h_bf)
            for l in range(L):
                t = s - l
                if not (0 <= t < T):
                    continue
                whh_ref = layer_refs[l][1]
                if l == 0:
                    gates = (gates0_scr[t * B:(t + 1) * B, :]
                             + jnp.dot(h_bf[0], whh_ref[...],
                                       preferred_element_type=jnp.float32))
                else:
                    wih_ref, _, b_ref = layer_refs[l]
                    # Rolling per-step input projection from the layer below (in vregs).
                    gates = (jnp.dot(h_bf[l - 1], wih_ref[...],
                                     preferred_element_type=jnp.float32)
                             + jnp.dot(h_bf[l], whh_ref[...],
                                       preferred_element_type=jnp.float32)
                             + b_ref[...])
                h_new, c_new = lstm_cell(gates, c[l])
                new_h[l], new_c[l] = h_new, c_new
                new_hbf[l] = h_new.astype(jnp.bfloat16)
            h, c, h_bf = new_h, new_c, new_hbf

        # ---- single writeback of the final states ----
        for l in range(L):
            h_out_ref[l] = h[l]
            c_out_ref[l] = c[l]

    return kernel


def encoder_forward(params, tokens):
    """tokens: (T, B) int32 -> (hidden, cell), each (num_layers, B, H) float32."""
    layers = params["lstm"]
    L = len(layers)
    T, B = tokens.shape
    H = layers[0]["whh_t"].shape[0]

    # Embedding gather (bf16 table -> bf16 x) + dropout(identity) as plain-JAX glue.
    x = jnp.take(params["embedding"], tokens.reshape(T * B), axis=0)   # (T*B, E_pad) bf16

    inputs = [x]
    for layer in layers:
        inputs += [layer["wih_t"], layer["whh_t"], layer["bias"]]

    kernel = _make_encoder_kernel(L, T, B, H)
    vmem = lambda: pl.BlockSpec(memory_space=pltpu.MemorySpace.VMEM)

    h_n, c_n = pl.pallas_call(
        kernel,
        out_shape=(
            jax.ShapeDtypeStruct((L, B, H), jnp.float32),
            jax.ShapeDtypeStruct((L, B, H), jnp.float32),
        ),
        in_specs=[vmem() for _ in inputs],
        out_specs=(vmem(), vmem()),
        scratch_shapes=[
            pltpu.VMEM((T * B, 4 * H), jnp.float32),   # hoisted layer-0 gate buffer
        ],
    )(*inputs)
    return h_n, c_n


def init_encoder_params(key, input_size, embedding_size, hidden_size, num_layers):
    """PyTorch-shaped params; LSTM weights U(-1/sqrt(H), 1/sqrt(H)).

    Weights stored transposed + bf16 (MXU-native); embedding stored bf16; embedding dim
    zero-padded to a multiple of 128 for lane-dense layer-0 tiles (numerically identical).
    """
    keys = jax.random.split(key, 1 + 4 * num_layers)
    e_pad = ((embedding_size + 127) // 128) * 128
    emb = jax.random.normal(keys[0], (input_size, embedding_size), jnp.float32)
    emb = jnp.pad(emb, ((0, 0), (0, e_pad - embedding_size))).astype(jnp.bfloat16)

    k = 1.0 / jnp.sqrt(jnp.float32(hidden_size))
    layers = []
    for li in range(num_layers):
        in_dim = embedding_size if li == 0 else hidden_size
        k0, k1, k2, k3 = keys[1 + 4 * li: 1 + 4 * (li + 1)]
        w_ih = jax.random.uniform(k0, (4 * hidden_size, in_dim), jnp.float32, -k, k)
        w_hh = jax.random.uniform(k1, (4 * hidden_size, hidden_size), jnp.float32, -k, k)
        b_ih = jax.random.uniform(k2, (4 * hidden_size,), jnp.float32, -k, k)
        b_hh = jax.random.uniform(k3, (4 * hidden_size,), jnp.float32, -k, k)
        wih_t = w_ih.T                                               # (in_dim, 4H)
        if li == 0 and e_pad != embedding_size:
            wih_t = jnp.pad(wih_t, ((0, e_pad - embedding_size), (0, 0)))
        layers.append({
            "wih_t": wih_t.astype(jnp.bfloat16),                     # (E_pad|H, 4H)
            "whh_t": w_hh.T.astype(jnp.bfloat16),                    # (H, 4H)
            "bias": (b_ih + b_hh).reshape(1, 4 * hidden_size),       # f32, fused biases
        })
    return {"embedding": emb, "lstm": layers}


def _reference_forward(params, tokens):
    """Pure-JAX f32 reference (lax.scan LSTM) using the same (bf16-rounded) weights."""
    x = jnp.take(params["embedding"], tokens, axis=0).astype(jnp.float32)  # (T, B, E_pad)
    hs, cs = [], []
    for layer in params["lstm"]:
        wih = layer["wih_t"].astype(jnp.float32)
        whh = layer["whh_t"].astype(jnp.float32)
        b = layer["bias"]
        B = x.shape[1]
        H = whh.shape[0]

        def step(carry, x_t, wih=wih, whh=whh, b=b, H=H):
            h, c = carry
            gates = x_t @ wih + h @ whh + b
            i = jax.nn.sigmoid(gates[:, 0 * H:1 * H])
            f = jax.nn.sigmoid(gates[:, 1 * H:2 * H])
            g = jnp.tanh(gates[:, 2 * H:3 * H])
            o = jax.nn.sigmoid(gates[:, 3 * H:4 * H])
            c_new = f * c + i * g
            h_new = o * jnp.tanh(c_new)
            return (h_new, c_new), h_new

        init = (jnp.zeros((B, H), jnp.float32), jnp.zeros((B, H), jnp.float32))
        (h_n, c_n), out = jax.lax.scan(step, init, x)
        x = out
        hs.append(h_n)
        cs.append(c_n)
    return jnp.stack(hs, 0), jnp.stack(cs, 0)


if __name__ == "__main__":
    # Small, lane-friendly shapes consistent with the module's forward.
    input_size = 50        # vocab
    embedding_size = 64    # padded to 128 internally
    hidden_size = 128
    num_layers = 3
    seq_len = 8
    batch = 8

    key = jax.random.PRNGKey(0)
    k_params, k_tokens = jax.random.split(key)
    params = init_encoder_params(k_params, input_size, embedding_size,
                                 hidden_size, num_layers)
    tokens = jax.random.randint(k_tokens, (seq_len, batch), 0, input_size,
                                dtype=jnp.int32)

    hidden, cell = jax.jit(encoder_forward)(params, tokens)
    hidden = jax.block_until_ready(hidden)
    cell = jax.block_until_ready(cell)

    assert hidden.shape == (num_layers, batch, hidden_size)
    assert cell.shape == (num_layers, batch, hidden_size)

    # Sanity check against a pure-JAX f32 LSTM reference (bf16 matmuls -> loosened tolerance).
    h_ref, c_ref = _reference_forward(params, tokens)
    assert jnp.allclose(hidden, h_ref, atol=3e-2, rtol=3e-2)
    assert jnp.allclose(cell, c_ref, atol=3e-2, rtol=3e-2)

    print("KERNEL_OK")
</pallas_src>

<mosaic_0001>
module attributes {stable_mosaic.version = 11 : i64} {
  func.func @kernel(%arg0: memref<64x128xbf16, #tpu.memory_space<vmem>>, %arg1: memref<128x512xbf16, #tpu.memory_space<vmem>>, %arg2: memref<128x512xbf16, #tpu.memory_space<vmem>>, %arg3: memref<1x512xf32, #tpu.memory_space<vmem>>, %arg4: memref<128x512xbf16, #tpu.memory_space<vmem>>, %arg5: memref<128x512xbf16, #tpu.memory_space<vmem>>, %arg6: memref<1x512xf32, #tpu.memory_space<vmem>>, %arg7: memref<128x512xbf16, #tpu.memory_space<vmem>>, %arg8: memref<128x512xbf16, #tpu.memory_space<vmem>>, %arg9: memref<1x512xf32, #tpu.memory_space<vmem>>, %arg10: memref<3x8x128xf32, #tpu.memory_space<vmem>>, %arg11: memref<3x8x128xf32, #tpu.memory_space<vmem>>, %arg12: memref<64x512xf32, #tpu.memory_space<vmem>>) attributes {dimension_semantics = [], scalar_prefetch = 0 : i64, scratch_operands = 1 : i64, tpu.core_type = #tpu.core_type<tc>} {
    %c0 = arith.constant 0 : index
    %c0_0 = arith.constant 0 : index
    %0 = vector.load %arg0[%c0, %c0_0] : memref<64x128xbf16, #tpu.memory_space<vmem>>, vector<64x128xbf16>
    %c0_1 = arith.constant 0 : index
    %c0_2 = arith.constant 0 : index
    %1 = vector.load %arg1[%c0_1, %c0_2] : memref<128x512xbf16, #tpu.memory_space<vmem>>, vector<128x512xbf16>
    %cst = arith.constant dense<0.000000e+00> : vector<64x512xf32>
    %2 = tpu.matmul %0, %1, %cst {dimension_numbers = #tpu.dot_dimension_numbers<[1], [0], [0], [1], [0, 0, 1, 1], [], []>} : vector<64x128xbf16>, vector<128x512xbf16>, vector<64x512xf32> -> vector<64x512xf32>
    %c0_3 = arith.constant 0 : index
    %c0_4 = arith.constant 0 : index
    %3 = vector.load %arg3[%c0_3, %c0_4] : memref<1x512xf32, #tpu.memory_space<vmem>>, vector<1x512xf32>
    %4 = vector.broadcast %3 : vector<1x512xf32> to vector<64x512xf32>
    %5 = arith.addf %2, %4 : vector<64x512xf32>
    %c0_5 = arith.constant 0 : index
    %c0_6 = arith.constant 0 : index
    %6 = vector.load %arg12[%c0_5, %c0_6] : memref<64x512xf32, #tpu.memory_space<vmem>>, vector<64x512xf32>
    tpu.vector_store %arg12[%c0_5, %c0_6], %5 {strides = array<i32>} : memref<64x512xf32, #tpu.memory_space<vmem>>, vector<64x512xf32>,
    %cst_7 = arith.constant 0.000000e+00 : f32
    %7 = vector.broadcast %cst_7 : f32 to vector<8x128xf32>
    %cst_8 = arith.constant 0.000000e+00 : f32
    %8 = vector.broadcast %cst_8 : f32 to vector<8x128xf32>
    %cst_9 = arith.constant 0.000000e+00 : f32
    %9 = vector.broadcast %cst_9 : f32 to vector<8x128xf32>
    %cst_10 = arith.constant 0.000000e+00 : bf16
    %10 = vector.broadcast %cst_10 : bf16 to vector<8x128xbf16>
    %cst_11 = arith.constant 0.000000e+00 : bf16
    %11 = vector.broadcast %cst_11 : bf16 to vector<8x128xbf16>
    %cst_12 = arith.constant 0.000000e+00 : bf16
    %12 = vector.broadcast %cst_12 : bf16 to vector<8x128xbf16>
    %c0_13 = arith.constant 0 : index
    %c0_14 = arith.constant 0 : index
    %13 = vector.load %arg12[%c0_13, %c0_14] : memref<64x512xf32, #tpu.memory_space<vmem>>, vector<8x512xf32>
    %c0_15 = arith.constant 0 : index
    %c0_16 = arith.constant 0 : index
    %14 = vector.load %arg2[%c0_15, %c0_16] : memref<128x512xbf16, #tpu.memory_space<vmem>>, vector<128x512xbf16>
    %cst_17 = arith.constant dense<0.000000e+00> : vector<8x512xf32>
    %15 = tpu.matmul %10, %14, %cst_17 {dimension_numbers = #tpu.dot_dimension_numbers<[1], [0], [0], [1], [0, 0, 1, 1], [], []>} : vector<8x128xbf16>, vector<128x512xbf16>, vector<8x512xf32> -> vector<8x512xf32>
    %16 = arith.addf %13, %15 : vector<8x512xf32>
    %17 = vector.extract_strided_slice %16 {offsets = [0, 0], sizes = [8, 128], strides = [1, 1]} : vector<8x512xf32> to vector<8x128xf32>
    %18 = arith.negf %17 : vector<8x128xf32>
    %19 = math.exp %18 : vector<8x128xf32>
    %cst_18 = arith.constant 1.000000e+00 : f32
    %20 = vector.broadcast %cst_18 : f32 to vector<8x128xf32>
    %21 = arith.addf %20, %19 : vector<8x128xf32>
    %22 = arith.divf %20, %21 : vector<8x128xf32>
    %23 = vector.extract_strided_slice %16 {offsets = [0, 128], sizes = [8, 128], strides = [1, 1]} : vector<8x512xf32> to vector<8x128xf32>
    %24 = arith.negf %23 : vector<8x128xf32>
    %25 = math.exp %24 : vector<8x128xf32>
    %cst_19 = arith.constant 1.000000e+00 : f32
    %26 = vector.broadcast %cst_19 : f32 to vector<8x128xf32>
    %27 = arith.addf %26, %25 : vector<8x128xf32>
    %28 = arith.divf %26, %27 : vector<8x128xf32>
    %29 = vector.extract_strided_slice %16 {offsets = [0, 256], sizes = [8, 128], strides = [1, 1]} : vector<8x512xf32> to vector<8x128xf32>
    %30 = math.tanh %29 : vector<8x128xf32>
    %31 = vector.extract_strided_slice %16 {offsets = [0, 384], sizes = [8, 128], strides = [1, 1]} : vector<8x512xf32> to vector<8x128xf32>
    %32 = arith.negf %31 : vector<8x128xf32>
    %33 = math.exp %32 : vector<8x128xf32>
    %cst_20 = arith.constant 1.000000e+00 : f32
    %34 = vector.broadcast %cst_20 : f32 to vector<8x128xf32>
    %35 = arith.addf %34, %33 : vector<8x128xf32>
    %36 = arith.divf %34, %35 : vector<8x128xf32>
    %37 = arith.mulf %28, %7 : vector<8x128xf32>
    %38 = arith.mulf %22, %30 : vector<8x128xf32>
    %39 = arith.addf %37, %38 : vector<8x128xf32>
    %40 = math.tanh %39 : vector<8x128xf32>
    %41 = arith.mulf %36, %40 : vector<8x128xf32>
    %42 = arith.truncf %41 : vector<8x128xf32> to vector<8x128xbf16>
    %c8 = arith.constant 8 : index
    %c0_21 = arith.constant 0 : index
    %43 = vector.load %arg12[%c8, %c0_21] : memref<64x512xf32, #tpu.memory_space<vmem>>, vector<8x512xf32>
    %c0_22 = arith.constant 0 : index
    %c0_23 = arith.constant 0 : index
    %44 = vector.load %arg2[%c0_22, %c0_23] : memref<128x512xbf16, #tpu.memory_space<vmem>>, vector<128x512xbf16>
    %cst_24 = arith.constant dense<0.000000e+00> : vector<8x512xf32>
    %45 = tpu.matmul %42, %44, %cst_24 {dimension_numbers = #tpu.dot_dimension_numbers<[1], [0], [0], [1], [0, 0, 1, 1], [], []>} : vector<8x128xbf16>, vector<128x512xbf16>, vector<8x512xf32> -> vector<8x512xf32>
    %46 = arith.addf %43, %45 : vector<8x512xf32>
    %47 = vector.extract_strided_slice %46 {offsets = [0, 0], sizes = [8, 128], strides = [1, 1]} : vector<8x512xf32> to vector<8x128xf32>
    %48 = arith.negf %47 : vector<8x128xf32>
    %49 = math.exp %48 : vector<8x128xf32>
    %cst_25 = arith.constant 1.000000e+00 : f32
    %50 = vector.broadcast %cst_25 : f32 to vector<8x128xf32>
    %51 = arith.addf %50, %49 : vector<8x128xf32>
    %52 = arith.divf %50, %51 : vector<8x128xf32>
    %53 = vector.extract_strided_slice %46 {offsets = [0, 128], sizes = [8, 128], strides = [1, 1]} : vector<8x512xf32> to vector<8x128xf32>
    %54 = arith.negf %53 : vector<8x128xf32>
    %55 = math.exp %54 : vector<8x128xf32>
    %cst_26 = arith.constant 1.000000e+00 : f32
    %56 = vector.broadcast %cst_26 : f32 to vector<8x128xf32>
    %57 = arith.addf %56, %55 : vector<8x128xf32>
    %58 = arith.divf %56, %57 : vector<8x128xf32>
    %59 = vector.extract_strided_slice %46 {offsets = [0, 256], sizes = [8, 128], strides = [1, 1]} : vector<8x512xf32> to vector<8x128xf32>
    %60 = math.tanh %59 : vector<8x128xf32>
    %61 = vector.extract_strided_slice %46 {offsets = [0, 384], sizes = [8, 128], strides = [1, 1]} : vector<8x512xf32> to vector<8x128xf32>
    %62 = arith.negf %61 : vector<8x128xf32>
    %63 = math.exp %62 : vector<8x128xf32>
    %cst_27 = arith.constant 1.000000e+00 : f32
    %64 = vector.broadcast %cst_27 : f32 to vector<8x128xf32>
    %65 = arith.addf %64, %63 : vector<8x128xf32>
    %66 = arith.divf %64, %65 : vector<8x128xf32>
    %67 = arith.mulf %58, %39 : vector<8x128xf32>
    %68 = arith.mulf %52, %60 : vector<8x128xf32>
    %69 = arith.addf %67, %68 : vector<8x128xf32>
    %70 = math.tanh %69 : vector<8x128xf32>
    %71 = arith.mulf %66, %70 : vector<8x128xf32>
    %72 = arith.truncf %71 : vector<8x128xf32> to vector<8x128xbf16>
    %c0_28 = arith.constant 0 : index
    %c0_29 = arith.constant 0 : index
    %73 = vector.load %arg4[%c0_28, %c0_29] : memref<128x512xbf16, #tpu.memory_space<vmem>>, vector<128x512xbf16>
    %cst_30 = arith.constant dense<0.000000e+00> : vector<8x512xf32>
    %74 = tpu.matmul %42, %73, %cst_30 {dimension_numbers = #tpu.dot_dimension_numbers<[1], [0], [0], [1], [0, 0, 1, 1], [], []>} : vector<8x128xbf16>, vector<128x512xbf16>, vector<8x512xf32> -> vector<8x512xf32>
    %c0_31 = arith.constant 0 : index
    %c0_32 = arith.constant 0 : index
    %75 = vector.load %arg5[%c0_31, %c0_32] : memref<128x512xbf16, #tpu.memory_space<vmem>>, vector<128x512xbf16>
    %cst_33 = arith.constant dense<0.000000e+00> : vector<8x512xf32>
    %76 = tpu.matmul %11, %75, %cst_33 {dimension_numbers = #tpu.dot_dimension_numbers<[1], [0], [0], [1], [0, 0, 1, 1], [], []>} : vector<8x128xbf16>, vector<128x512xbf16>, vector<8x512xf32> -> vector<8x512xf32>
    %77 = arith.addf %74, %76 : vector<8x512xf32>
    %c0_34 = arith.constant 0 : index
    %c0_35 = arith.constant 0 : index
    %78 = vector.load %arg6[%c0_34, %c0_35] : memref<1x512xf32, #tpu.memory_space<vmem>>, vector<1x512xf32>
    %79 = vector.broadcast %78 : vector<1x512xf32> to vector<8x512xf32>
    %80 = arith.addf %77, %79 : vector<8x512xf32>
    %81 = vector.extract_strided_slice %80 {offsets = [0, 0], sizes = [8, 128], strides = [1, 1]} : vector<8x512xf32> to vector<8x128xf32>
    %82 = arith.negf %81 : vector<8x128xf32>
    %83 = math.exp %82 : vector<8x128xf32>
    %cst_36 = arith.constant 1.000000e+00 : f32
    %84 = vector.broadcast %cst_36 : f32 to vector<8x128xf32>
    %85 = arith.addf %84, %83 : vector<8x128xf32>
    %86 = arith.divf %84, %85 : vector<8x128xf32>
    %87 = vector.extract_strided_slice %80 {offsets = [0, 128], sizes = [8, 128], strides = [1, 1]} : vector<8x512xf32> to vector<8x128xf32>
    %88 = arith.negf %87 : vector<8x128xf32>
    %89 = math.exp %88 : vector<8x128xf32>
    %cst_37 = arith.constant 1.000000e+00 : f32
    %90 = vector.broadcast %cst_37 : f32 to vector<8x128xf32>
    %91 = arith.addf %90, %89 : vector<8x128xf32>
    %92 = arith.divf %90, %91 : vector<8x128xf32>
    %93 = vector.extract_strided_slice %80 {offsets = [0, 256], sizes = [8, 128], strides = [1, 1]} : vector<8x512xf32> to vector<8x128xf32>
    %94 = math.tanh %93 : vector<8x128xf32>
    %95 = vector.extract_strided_slice %80 {offsets = [0, 384], sizes = [8, 128], strides = [1, 1]} : vector<8x512xf32> to vector<8x128xf32>
    %96 = arith.negf %95 : vector<8x128xf32>
    %97 = math.exp %96 : vector<8x128xf32>
    %cst_38 = arith.constant 1.000000e+00 : f32
    %98 = vector.broadcast %cst_38 : f32 to vector<8x128xf32>
    %99 = arith.addf %98, %97 : vector<8x128xf32>
    %100 = arith.divf %98, %99 : vector<8x128xf32>
    %101 = arith.mulf %92, %8 : vector<8x128xf32>
    %102 = arith.mulf %86, %94 : vector<8x128xf32>
    %103 = arith.addf %101, %102 : vector<8x128xf32>
    %104 = math.tanh %103 : vector<8x128xf32>
    %105 = arith.mulf %100, %104 : vector<8x128xf32>
    %106 = arith.truncf %105 : vector<8x128xf32> to vector<8x128xbf16>
    %c16 = arith.constant 16 : index
    %c0_39 = arith.constant 0 : index
    %107 = vector.load %arg12[%c16, %c0_39] : memref<64x512xf32, #tpu.memory_space<vmem>>, vector<8x512xf32>
    %c0_40 = arith.constant 0 : index
    %c0_41 = arith.constant 0 : index
    %108 = vector.load %arg2[%c0_40, %c0_41] : memref<128x512xbf16, #tpu.memory_space<vmem>>, vector<128x512xbf16>
    %cst_42 = arith.constant dense<0.000000e+00> : vector<8x512xf32>
    %109 = tpu.matmul %72, %108, %cst_42 {dimension_numbers = #tpu.dot_dimension_numbers<[1], [0], [0], [1], [0, 0, 1, 1], [], []>} : vector<8x128xbf16>, vector<128x512xbf16>, vector<8x512xf32> -> vector<8x512xf32>
    %110 = arith.addf %107, %109 : vector<8x512xf32>
    %111 = vector.extract_strided_slice %110 {offsets = [0, 0], sizes = [8, 128], strides = [1, 1]} : vector<8x512xf32> to vector<8x128xf32>
    %112 = arith.negf %111 : vector<8x128xf32>
    %113 = math.exp %112 : vector<8x128xf32>
    %cst_43 = arith.constant 1.000000e+00 : f32
    %114 = vector.broadcast %cst_43 : f32 to vector<8x128xf32>
    %115 = arith.addf %114, %113 : vector<8x128xf32>
    %116 = arith.divf %114, %115 : vector<8x128xf32>
    %117 = vector.extract_strided_slice %110 {offsets = [0, 128], sizes = [8, 128], strides = [1, 1]} : vector<8x512xf32> to vector<8x128xf32>
    %118 = arith.negf %117 : vector<8x128xf32>
    %119 = math.exp %118 : vector<8x128xf32>
    %cst_44 = arith.constant 1.000000e+00 : f32
    %120 = vector.broadcast %cst_44 : f32 to vector<8x128xf32>
    %121 = arith.addf %120, %119 : vector<8x128xf32>
    %122 = arith.divf %120, %121 : vector<8x128xf32>
    %123 = vector.extract_strided_slice %110 {offsets = [0, 256], sizes = [8, 128], strides = [1, 1]} : vector<8x512xf32> to vector<8x128xf32>
    %124 = math.tanh %123 : vector<8x128xf32>
    %125 = vector.extract_strided_slice %110 {offsets = [0, 384], sizes = [8, 128], strides = [1, 1]} : vector<8x512xf32> to vector<8x128xf32>
    %126 = arith.negf %125 : vector<8x128xf32>
    %127 = math.exp %126 : vector<8x128xf32>
    %cst_45 = arith.constant 1.000000e+00 : f32
    %128 = vector.broadcast %cst_45 : f32 to vector<8x128xf32>
    %129 = arith.addf %128, %127 : vector<8x128xf32>
    %130 = arith.divf %128, %129 : vector<8x128xf32>
    %131 = arith.mulf %122, %69 : vector<8x128xf32>
    %132 = arith.mulf %116, %124 : vector<8x128xf32>
    %133 = arith.addf %131, %132 : vector<8x128xf32>
    %134 = math.tanh %133 : vector<8x128xf32>
    %135 = arith.mulf %130, %134 : vector<8x128xf32>
    %136 = arith.truncf %135 : vector<8x128xf32> to vector<8x128xbf16>
    %c0_46 = arith.constant 0 : index
    %c0_47 = arith.constant 0 : index
    %137 = vector.load %arg4[%c0_46, %c0_47] : memref<128x512xbf16, #tpu.memory_space<vmem>>, vector<128x512xbf16>
    %cst_48 = arith.constant dense<0.000000e+00> : vector<8x512xf32>
    %138 = tpu.matmul %72, %137, %cst_48 {dimension_numbers = #tpu.dot_dimension_numbers<[1], [0], [0], [1], [0, 0, 1, 1], [], []>} : vector<8x128xbf16>, vector<128x512xbf16>, vector<8x512xf32> -> vector<8x512xf32>
    %c0_49 = arith.constant 0 : index
    %c0_50 = arith.constant 0 : index
    %139 = vector.load %arg5[%c0_49, %c0_50] : memref<128x512xbf16, #tpu.memory_space<vmem>>, vector<128x512xbf16>
    %cst_51 = arith.constant dense<0.000000e+00> : vector<8x512xf32>
    %140 = tpu.matmul %106, %139, %cst_51 {dimension_numbers = #tpu.dot_dimension_numbers<[1], [0], [0], [1], [0, 0, 1, 1], [], []>} : vector<8x128xbf16>, vector<128x512xbf16>, vector<8x512xf32> -> vector<8x512xf32>
    %141 = arith.addf %138, %140 : vector<8x512xf32>
    %c0_52 = arith.constant 0 : index
    %c0_53 = arith.constant 0 : index
    %142 = vector.load %arg6[%c0_52, %c0_53] : memref<1x512xf32, #tpu.memory_space<vmem>>, vector<1x512xf32>
    %143 = vector.broadcast %142 : vector<1x512xf32> to vector<8x512xf32>
    %144 = arith.addf %141, %143 : vector<8x512xf32>
    %145 = vector.extract_strided_slice %144 {offsets = [0, 0], sizes = [8, 128], strides = [1, 1]} : vector<8x512xf32> to vector<8x128xf32>
    %146 = arith.negf %145 : vector<8x128xf32>
    %147 = math.exp %146 : vector<8x128xf32>
    %cst_54 = arith.constant 1.000000e+00 : f32
    %148 = vector.broadcast %cst_54 : f32 to vector<8x128xf32>
    %149 = arith.addf %148, %147 : vector<8x128xf32>
    %150 = arith.divf %148, %149 : vector<8x128xf32>
    %151 = vector.extract_strided_slice %144 {offsets = [0, 128], sizes = [8, 128], strides = [1, 1]} : vector<8x512xf32> to vector<8x128xf32>
    %152 = arith.negf %151 : vector<8x128xf32>
    %153 = math.exp %152 : vector<8x128xf32>
    %cst_55 = arith.constant 1.000000e+00 : f32
    %154 = vector.broadcast %cst_55 : f32 to vector<8x128xf32>
    %155 = arith.addf %154, %153 : vector<8x128xf32>
    %156 = arith.divf %154, %155 : vector<8x128xf32>
    %157 = vector.extract_strided_slice %144 {offsets = [0, 256], sizes = [8, 128], strides = [1, 1]} : vector<8x512xf32> to vector<8x128xf32>
    %158 = math.tanh %157 : vector<8x128xf32>
    %159 = vector.extract_strided_slice %144 {offsets = [0, 384], sizes = [8, 128], strides = [1, 1]} : vector<8x512xf32> to vector<8x128xf32>
    %160 = arith.negf %159 : vector<8x128xf32>
    %161 = math.exp %160 : vector<8x128xf32>
    %cst_56 = arith.constant 1.000000e+00 : f32
    %162 = vector.broadcast %cst_56 : f32 to vector<8x128xf32>
    %163 = arith.addf %162, %161 : vector<8x128xf32>
    %164 = arith.divf %162, %163 : vector<8x128xf32>
    %165 = arith.mulf %156, %103 : vector<8x128xf32>
    %166 = arith.mulf %150, %158 : vector<8x128xf32>
    %167 = arith.addf %165, %166 : vector<8x128xf32>
    %168 = math.tanh %167 : vector<8x128xf32>
    %169 = arith.mulf %164, %168 : vector<8x128xf32>
    %170 = arith.truncf %169 : vector<8x128xf32> to vector<8x128xbf16>
    %c0_57 = arith.constant 0 : index
    %c0_58 = arith.constant 0 : index
    %171 = vector.load %arg7[%c0_57, %c0_58] : memref<128x512xbf16, #tpu.memory_space<vmem>>, vector<128x512xbf16>
    %cst_59 = arith.constant dense<0.000000e+00> : vector<8x512xf32>
    %172 = tpu.matmul %106, %171, %cst_59 {dimension_numbers = #tpu.dot_dimension_numbers<[1], [0], [0], [1], [0, 0, 1, 1], [], []>} : vector<8x128xbf16>, vector<128x512xbf16>, vector<8x512xf32> -> vector<8x512xf32>
    %c0_60 = arith.constant 0 : index
    %c0_61 = arith.constant 0 : index
    %173 = vector.load %arg8[%c0_60, %c0_61] : memref<128x512xbf16, #tpu.memory_space<vmem>>, vector<128x512xbf16>
    %cst_62 = arith.constant dense<0.000000e+00> : vector<8x512xf32>
    %174 = tpu.matmul %12, %173, %cst_62 {dimension_numbers = #tpu.dot_dimension_numbers<[1], [0], [0], [1], [0, 0, 1, 1], [], []>} : vector<8x128xbf16>, vector<128x512xbf16>, vector<8x512xf32> -> vector<8x512xf32>
    %175 = arith.addf %172, %174 : vector<8x512xf32>
    %c0_63 = arith.constant 0 : index
    %c0_64 = arith.constant 0 : index
    %176 = vector.load %arg9[%c0_63, %c0_64] : memref<1x512xf32, #tpu.memory_space<vmem>>, vector<1x512xf32>
    %177 = vector.broadcast %176 : vector<1x512xf32> to vector<8x512xf32>
    %178 = arith.addf %175, %177 : vector<8x512xf32>
    %179 = vector.extract_strided_slice %178 {offsets = [0, 0], sizes = [8, 128], strides = [1, 1]} : vector<8x512xf32> to vector<8x128xf32>
    %180 = arith.negf %179 : vector<8x128xf32>
    %181 = math.exp %180 : vector<8x128xf32>
    %cst_65 = arith.constant 1.000000e+00 : f32
    %182 = vector.broadcast %cst_65 : f32 to vector<8x128xf32>
    %183 = arith.addf %182, %181 : vector<8x128xf32>
    %184 = arith.divf %182, %183 : vector<8x128xf32>
    %185 = vector.extract_strided_slice %178 {offsets = [0, 128], sizes = [8, 128], strides = [1, 1]} : vector<8x512xf32> to vector<8x128xf32>
    %186 = arith.negf %185 : vector<8x128xf32>
    %187 = math.exp %186 : vector<8x128xf32>
    %cst_66 = arith.constant 1.000000e+00 : f32
    %188 = vector.broadcast %cst_66 : f32 to vector<8x128xf32>
    %189 = arith.addf %188, %187 : vector<8x128xf32>
    %190 = arith.divf %188, %189 : vector<8x128xf32>
    %191 = vector.extract_strided_slice %178 {offsets = [0, 256], sizes = [8, 128], strides = [1, 1]} : vector<8x512xf32> to vector<8x128xf32>
    %192 = math.tanh %191 : vector<8x128xf32>
    %193 = vector.extract_strided_slice %178 {offsets = [0, 384], sizes = [8, 128], strides = [1, 1]} : vector<8x512xf32> to vector<8x128xf32>
    %194 = arith.negf %193 : vector<8x128xf32>
    %195 = math.exp %194 : vector<8x128xf32>
    %cst_67 = arith.constant 1.000000e+00 : f32
    %196 = vector.broadcast %cst_67 : f32 to vector<8x128xf32>
    %197 = arith.addf %196, %195 : vector<8x128xf32>
    %198 = arith.divf %196, %197 : vector<8x128xf32>
    %199 = arith.mulf %190, %9 : vector<8x128xf32>
    %200 = arith.mulf %184, %192 : vector<8x128xf32>
    %201 = arith.addf %199, %200 : vector<8x128xf32>
    %202 = math.tanh %201 : vector<8x128xf32>
    %203 = arith.mulf %198, %202 : vector<8x128xf32>
    %204 = arith.truncf %203 : vector<8x128xf32> to vector<8x128xbf16>
    %c24 = arith.constant 24 : index
    %c0_68 = arith.constant 0 : index
    %205 = vector.load %arg12[%c24, %c0_68] : memref<64x512xf32, #tpu.memory_space<vmem>>, vector<8x512xf32>
    %c0_69 = arith.constant 0 : index
    %c0_70 = arith.constant 0 : index
    %206 = vector.load %arg2[%c0_69, %c0_70] : memref<128x512xbf16, #tpu.memory_space<vmem>>, vector<128x512xbf16>
    %cst_71 = arith.constant dense<0.000000e+00> : vector<8x512xf32>
    %207 = tpu.matmul %136, %206, %cst_71 {dimension_numbers = #tpu.dot_dimension_numbers<[1], [0], [0], [1], [0, 0, 1, 1], [], []>} : vector<8x128xbf16>, vector<128x512xbf16>, vector<8x512xf32> -> vector<8x512xf32>
    %208 = arith.addf %205, %207 : vector<8x512xf32>
    %209 = vector.extract_strided_slice %208 {offsets = [0, 0], sizes = [8, 128], strides = [1, 1]} : vector<8x512xf32> to vector<8x128xf32>
    %210 = arith.negf %209 : vector<8x128xf32>
    %211 = math.exp %210 : vector<8x128xf32>
    %cst_72 = arith.constant 1.000000e+00 : f32
    %212 = vector.broadcast %cst_72 : f32 to vector<8x128xf32>
    %213 = arith.addf %212, %211 : vector<8x128xf32>
    %214 = arith.divf %212, %213 : vector<8x128xf32>
    %215 = vector.extract_strided_slice %208 {offsets = [0, 128], sizes = [8, 128], strides = [1, 1]} : vector<8x512xf32> to vector<8x128xf32>
    %216 = arith.negf %215 : vector<8x128xf32>
    %217 = math.exp %216 : vector<8x128xf32>
    %cst_73 = arith.constant 1.000000e+00 : f32
    %218 = vector.broadcast %cst_73 : f32 to vector<8x128xf32>
    %219 = arith.addf %218, %217 : vector<8x128xf32>
    %220 = arith.divf %218, %219 : vector<8x128xf32>
    %221 = vector.extract_strided_slice %208 {offsets = [0, 256], sizes = [8, 128], strides = [1, 1]} : vector<8x512xf32> to vector<8x128xf32>
    %222 = math.tanh %221 : vector<8x128xf32>
    %223 = vector.extract_strided_slice %208 {offsets = [0, 384], sizes = [8, 128], strides = [1, 1]} : vector<8x512xf32> to vector<8x128xf32>
    %224 = arith.negf %223 : vector<8x128xf32>
    %225 = math.exp %224 : vector<8x128xf32>
    %cst_74 = arith.constant 1.000000e+00 : f32
    %226 = vector.broadcast %cst_74 : f32 to vector<8x128xf32>
    %227 = arith.addf %226, %225 : vector<8x128xf32>
    %228 = arith.divf %226, %227 : vector<8x128xf32>
    %229 = arith.mulf %220, %133 : vector<8x128xf32>
    %230 = arith.mulf %214, %222 : vector<8x128xf32>
    %231 = arith.addf %229, %230 : vector<8x128xf32>
    %232 = math.tanh %231 : vector<8x128xf32>
    %233 = arith.mulf %228, %232 : vector<8x128xf32>
    %234 = arith.truncf %233 : vector<8x128xf32> to vector<8x128xbf16>
    %c0_75 = arith.constant 0 : index
    %c0_76 = arith.constant 0 : index
    %235 = vector.load %arg4[%c0_75, %c0_76] : memref<128x512xbf16, #tpu.memory_space<vmem>>, vector<128x512xbf16>
    %cst_77 = arith.constant dense<0.000000e+00> : vector<8x512xf32>
    %236 = tpu.matmul %136, %235, %cst_77 {dimension_numbers = #tpu.dot_dimension_numbers<[1], [0], [0], [1], [0, 0, 1, 1], [], []>} : vector<8x128xbf16>, vector<128x512xbf16>, vector<8x512xf32> -> vector<8x512xf32>
    %c0_78 = arith.constant 0 : index
    %c0_79 = arith.constant 0 : index
    %237 = vector.load %arg5[%c0_78, %c0_79] : memref<128x512xbf16, #tpu.memory_space<vmem>>, vector<128x512xbf16>
    %cst_80 = arith.constant dense<0.000000e+00> : vector<8x512xf32>
    %238 = tpu.matmul %170, %237, %cst_80 {dimension_numbers = #tpu.dot_dimension_numbers<[1], [0], [0], [1], [0, 0, 1, 1], [], []>} : vector<8x128xbf16>, vector<128x512xbf16>, vector<8x512xf32> -> vector<8x512xf32>
    %239 = arith.addf %236, %238 : vector<8x512xf32>
    %c0_81 = arith.constant 0 : index
    %c0_82 = arith.constant 0 : index
    %240 = vector.load %arg6[%c0_81, %c0_82] : memref<1x512xf32, #tpu.memory_space<vmem>>, vector<1x512xf32>
    %241 = vector.broadcast %240 : vector<1x512xf32> to vector<8x512xf32>
    %242 = arith.addf %239, %241 : vector<8x512xf32>
    %243 = vector.extract_strided_slice %242 {offsets = [0, 0], sizes = [8, 128], strides = [1, 1]} : vector<8x512xf32> to vector<8x128xf32>
    %244 = arith.negf %243 : vector<8x128xf32>
    %245 = math.exp %244 : vector<8x128xf32>
    %cst_83 = arith.constant 1.000000e+00 : f32
    %246 = vector.broadcast %cst_83 : f32 to vector<8x128xf32>
    %247 = arith.addf %246, %245 : vector<8x128xf32>
    %248 = arith.divf %246, %247 : vector<8x128xf32>
    %249 = vector.extract_strided_slice %242 {offsets = [0, 128], sizes = [8, 128], strides = [1, 1]} : vector<8x512xf32> to vector<8x128xf32>
    %250 = arith.negf %249 : vector<8x128xf32>
    %251 = math.exp %250 : vector<8x128xf32>
    %cst_84 = arith.constant 1.000000e+00 : f32
    %252 = vector.broadcast %cst_84 : f32 to vector<8x128xf32>
    %253 = arith.addf %252, %251 : vector<8x128xf32>
    %254 = arith.divf %252, %253 : vector<8x128xf32>
    %255 = vector.extract_strided_slice %242 {offsets = [0, 256], sizes = [8, 128], strides = [1, 1]} : vector<8x512xf32> to vector<8x128xf32>
    %256 = math.tanh %255 : vector<8x128xf32>
    %257 = vector.extract_strided_slice %242 {offsets = [0, 384], sizes = [8, 128], strides = [1, 1]} : vector<8x512xf32> to vector<8x128xf32>
    %258 = arith.negf %257 : vector<8x128xf32>
    %259 = math.exp %258 : vector<8x128xf32>
    %cst_85 = arith.constant 1.000000e+00 : f32
    %260 = vector.broadcast %cst_85 : f32 to vector<8x128xf32>
    %261 = arith.addf %260, %259 : vector<8x128xf32>
    %262 = arith.divf %260, %261 : vector<8x128xf32>
    %263 = arith.mulf %254, %167 : vector<8x128xf32>
    %264 = arith.mulf %248, %256 : vector<8x128xf32>
    %265 = arith.addf %263, %264 : vector<8x128xf32>
    %266 = math.tanh %265 : vector<8x128xf32>
    %267 = arith.mulf %262, %266 : vector<8x128xf32>
    %268 = arith.truncf %267 : vector<8x128xf32> to vector<8x128xbf16>
    %c0_86 = arith.constant 0 : index
    %c0_87 = arith.constant 0 : index
    %269 = vector.load %arg7[%c0_86, %c0_87] : memref<128x512xbf16, #tpu.memory_space<vmem>>, vector<128x512xbf16>
    %cst_88 = arith.constant dense<0.000000e+00> : vector<8x512xf32>
    %270 = tpu.matmul %170, %269, %cst_88 {dimension_numbers = #tpu.dot_dimension_numbers<[1], [0], [0], [1], [0, 0, 1, 1], [], []>} : vector<8x128xbf16>, vector<128x512xbf16>, vector<8x512xf32> -> vector<8x512xf32>
    %c0_89 = arith.constant 0 : index
    %c0_90 = arith.constant 0 : index
    %271 = vector.load %arg8[%c0_89, %c0_90] : memref<128x512xbf16, #tpu.memory_space<vmem>>, vector<128x512xbf16>
    %cst_91 = arith.constant dense<0.000000e+00> : vector<8x512xf32>
    %272 = tpu.matmul %204, %271, %cst_91 {dimension_numbers = #tpu.dot_dimension_numbers<[1], [0], [0], [1], [0, 0, 1, 1], [], []>} : vector<8x128xbf16>, vector<128x512xbf16>, vector<8x512xf32> -> vector<8x512xf32>
    %273 = arith.addf %270, %272 : vector<8x512xf32>
    %c0_92 = arith.constant 0 : index
    %c0_93 = arith.constant 0 : index
    %274 = vector.load %arg9[%c0_92, %c0_93] : memref<1x512xf32, #tpu.memory_space<vmem>>, vector<1x512xf32>
    %275 = vector.broadcast %274 : vector<1x512xf32> to vector<8x512xf32>
    %276 = arith.addf %273, %275 : vector<8x512xf32>
    %277 = vector.extract_strided_slice %276 {offsets = [0, 0], sizes = [8, 128], strides = [1, 1]} : vector<8x512xf32> to vector<8x128xf32>
    %278 = arith.negf %277 : vector<8x128xf32>
    %279 = math.exp %278 : vector<8x128xf32>
    %cst_94 = arith.constant 1.000000e+00 : f32
    %280 = vector.broadcast %cst_94 : f32 to vector<8x128xf32>
    %281 = arith.addf %280, %279 : vector<8x128xf32>
    %282 = arith.divf %280, %281 : vector<8x128xf32>
    %283 = vector.extract_strided_slice %276 {offsets = [0, 128], sizes = [8, 128], strides = [1, 1]} : vector<8x512xf32> to vector<8x128xf32>
    %284 = arith.negf %283 : vector<8x128xf32>
    %285 = math.exp %284 : vector<8x128xf32>
    %cst_95 = arith.constant 1.000000e+00 : f32
    %286 = vector.broadcast %cst_95 : f32 to vector<8x128xf32>
    %287 = arith.addf %286, %285 : vector<8x128xf32>
    %288 = arith.divf %286, %287 : vector<8x128xf32>
    %289 = vector.extract_strided_slice %276 {offsets = [0, 256], sizes = [8, 128], strides = [1, 1]} : vector<8x512xf32> to vector<8x128xf32>
    %290 = math.tanh %289 : vector<8x128xf32>
    %291 = vector.extract_strided_slice %276 {offsets = [0, 384], sizes = [8, 128], strides = [1, 1]} : vector<8x512xf32> to vector<8x128xf32>
    %292 = arith.negf %291 : vector<8x128xf32>
    %293 = math.exp %292 : vector<8x128xf32>
    %cst_96 = arith.constant 1.000000e+00 : f32
    %294 = vector.broadcast %cst_96 : f32 to vector<8x128xf32>
    %295 = arith.addf %294, %293 : vector<8x128xf32>
    %296 = arith.divf %294, %295 : vector<8x128xf32>
    %297 = arith.mulf %288, %201 : vector<8x128xf32>
    %298 = arith.mulf %282, %290 : vector<8x128xf32>
    %299 = arith.addf %297, %298 : vector<8x128xf32>
    %300 = math.tanh %299 : vector<8x128xf32>
    %301 = arith.mulf %296, %300 : vector<8x128xf32>
    %302 = arith.truncf %301 : vector<8x128xf32> to vector<8x128xbf16>
    %c32 = arith.constant 32 : index
    %c0_97 = arith.constant 0 : index
    %303 = vector.load %arg12[%c32, %c0_97] : memref<64x512xf32, #tpu.memory_space<vmem>>, vector<8x512xf32>
    %c0_98 = arith.constant 0 : index
    %c0_99 = arith.constant 0 : index
    %304 = vector.load %arg2[%c0_98, %c0_99] : memref<128x512xbf16, #tpu.memory_space<vmem>>, vector<128x512xbf16>
    %cst_100 = arith.constant dense<0.000000e+00> : vector<8x512xf32>
    %305 = tpu.matmul %234, %304, %cst_100 {dimension_numbers = #tpu.dot_dimension_numbers<[1], [0], [0], [1], [0, 0, 1, 1], [], []>} : vector<8x128xbf16>, vector<128x512xbf16>, vector<8x512xf32> -> vector<8x512xf32>
    %306 = arith.addf %303, %305 : vector<8x512xf32>
    %307 = vector.extract_strided_slice %306 {offsets = [0, 0], sizes = [8, 128], strides = [1, 1]} : vector<8x512xf32> to vector<8x128xf32>
    %308 = arith.negf %307 : vector<8x128xf32>
    %309 = math.exp %308 : vector<8x128xf32>
    %cst_101 = arith.constant 1.000000e+00 : f32
    %310 = vector.broadcast %cst_101 : f32 to vector<8x128xf32>
    %311 = arith.addf %310, %309 : vector<8x128xf32>
    %312 = arith.divf %310, %311 : vector<8x128xf32>
    %313 = vector.extract_strided_slice %306 {offsets = [0, 128], sizes = [8, 128], strides = [1, 1]} : vector<8x512xf32> to vector<8x128xf32>
    %314 = arith.negf %313 : vector<8x128xf32>
    %315 = math.exp %314 : vector<8x128xf32>
    %cst_102 = arith.constant 1.000000e+00 : f32
    %316 = vector.broadcast %cst_102 : f32 to vector<8x128xf32>
    %317 = arith.addf %316, %315 : vector<8x128xf32>
    %318 = arith.divf %316, %317 : vector<8x128xf32>
    %319 = vector.extract_strided_slice %306 {offsets = [0, 256], sizes = [8, 128], strides = [1, 1]} : vector<8x512xf32> to vector<8x128xf32>
    %320 = math.tanh %319 : vector<8x128xf32>
    %321 = vector.extract_strided_slice %306 {offsets = [0, 384], sizes = [8, 128], strides = [1, 1]} : vector<8x512xf32> to vector<8x128xf32>
    %322 = arith.negf %321 : vector<8x128xf32>
    %323 = math.exp %322 : vector<8x128xf32>
    %cst_103 = arith.constant 1.000000e+00 : f32
    %324 = vector.broadcast %cst_103 : f32 to vector<8x128xf32>
    %325 = arith.addf %324, %323 : vector<8x128xf32>
    %326 = arith.divf %324, %325 : vector<8x128xf32>
    %327 = arith.mulf %318, %231 : vector<8x128xf32>
    %328 = arith.mulf %312, %320 : vector<8x128xf32>
    %329 = arith.addf %327, %328 : vector<8x128xf32>
    %330 = math.tanh %329 : vector<8x128xf32>
    %331 = arith.mulf %326, %330 : vector<8x128xf32>
    %332 = arith.truncf %331 : vector<8x128xf32> to vector<8x128xbf16>
    %c0_104 = arith.constant 0 : index
    %c0_105 = arith.constant 0 : index
    %333 = vector.load %arg4[%c0_104, %c0_105] : memref<128x512xbf16, #tpu.memory_space<vmem>>, vector<128x512xbf16>
    %cst_106 = arith.constant dense<0.000000e+00> : vector<8x512xf32>
    %334 = tpu.matmul %234, %333, %cst_106 {dimension_numbers = #tpu.dot_dimension_numbers<[1], [0], [0], [1], [0, 0, 1, 1], [], []>} : vector<8x128xbf16>, vector<128x512xbf16>, vector<8x512xf32> -> vector<8x512xf32>
    %c0_107 = arith.constant 0 : index
    %c0_108 = arith.constant 0 : index
    %335 = vector.load %arg5[%c0_107, %c0_108] : memref<128x512xbf16, #tpu.memory_space<vmem>>, vector<128x512xbf16>
    %cst_109 = arith.constant dense<0.000000e+00> : vector<8x512xf32>
    %336 = tpu.matmul %268, %335, %cst_109 {dimension_numbers = #tpu.dot_dimension_numbers<[1], [0], [0], [1], [0, 0, 1, 1], [], []>} : vector<8x128xbf16>, vector<128x512xbf16>, vector<8x512xf32> -> vector<8x512xf32>
    %337 = arith.addf %334, %336 : vector<8x512xf32>
    %c0_110 = arith.constant 0 : index
    %c0_111 = arith.constant 0 : index
    %338 = vector.load %arg6[%c0_110, %c0_111] : memref<1x512xf32, #tpu.memory_space<vmem>>, vector<1x512xf32>
    %339 = vector.broadcast %338 : vector<1x512xf32> to vector<8x512xf32>
    %340 = arith.addf %337, %339 : vector<8x512xf32>
    %341 = vector.extract_strided_slice %340 {offsets = [0, 0], sizes = [8, 128], strides = [1, 1]} : vector<8x512xf32> to vector<8x128xf32>
    %342 = arith.negf %341 : vector<8x128xf32>
    %343 = math.exp %342 : vector<8x128xf32>
    %cst_112 = arith.constant 1.000000e+00 : f32
    %344 = vector.broadcast %cst_112 : f32 to vector<8x128xf32>
    %345 = arith.addf %344, %343 : vector<8x128xf32>
    %346 = arith.divf %344, %345 : vector<8x128xf32>
    %347 = vector.extract_strided_slice %340 {offsets = [0, 128], sizes = [8, 128], strides = [1, 1]} : vector<8x512xf32> to vector<8x128xf32>
    %348 = arith.negf %347 : vector<8x128xf32>
    %349 = math.exp %348 : vector<8x128xf32>
    %cst_113 = arith.constant 1.000000e+00 : f32
    %350 = vector.broadcast %cst_113 : f32 to vector<8x128xf32>
    %351 = arith.addf %350, %349 : vector<8x128xf32>
    %352 = arith.divf %350, %351 : vector<8x128xf32>
    %353 = vector.extract_strided_slice %340 {offsets = [0, 256], sizes = [8, 128], strides = [1, 1]} : vector<8x512xf32> to vector<8x128xf32>
    %354 = math.tanh %353 : vector<8x128xf32>
    %355 = vector.extract_strided_slice %340 {offsets = [0, 384], sizes = [8, 128], strides = [1, 1]} : vector<8x512xf32> to vector<8x128xf32>
    %356 = arith.negf %355 : vector<8x128xf32>
    %357 = math.exp %356 : vector<8x128xf32>
    %cst_114 = arith.constant 1.000000e+00 : f32
    %358 = vector.broadcast %cst_114 : f32 to vector<8x128xf32>
    %359 = arith.addf %358, %357 : vector<8x128xf32>
    %360 = arith.divf %358, %359 : vector<8x128xf32>
    %361 = arith.mulf %352, %265 : vector<8x128xf32>
    %362 = arith.mulf %346, %354 : vector<8x128xf32>
    %363 = arith.addf %361, %362 : vector<8x128xf32>
    %364 = math.tanh %363 : vector<8x128xf32>
    %365 = arith.mulf %360, %364 : vector<8x128xf32>
    %366 = arith.truncf %365 : vector<8x128xf32> to vector<8x128xbf16>
    %c0_115 = arith.constant 0 : index
    %c0_116 = arith.constant 0 : index
    %367 = vector.load %arg7[%c0_115, %c0_116] : memref<128x512xbf16, #tpu.memory_space<vmem>>, vector<128x512xbf16>
    %cst_117 = arith.constant dense<0.000000e+00> : vector<8x512xf32>
    %368 = tpu.matmul %268, %367, %cst_117 {dimension_numbers = #tpu.dot_dimension_numbers<[1], [0], [0], [1], [0, 0, 1, 1], [], []>} : vector<8x128xbf16>, vector<128x512xbf16>, vector<8x512xf32> -> vector<8x512xf32>
    %c0_118 = arith.constant 0 : index
    %c0_119 = arith.constant 0 : index
    %369 = vector.load %arg8[%c0_118, %c0_119] : memref<128x512xbf16, #tpu.memory_space<vmem>>, vector<128x512xbf16>
    %cst_120 = arith.constant dense<0.000000e+00> : vector<8x512xf32>
    %370 = tpu.matmul %302, %369, %cst_120 {dimension_numbers = #tpu.dot_dimension_numbers<[1], [0], [0], [1], [0, 0, 1, 1], [], []>} : vector<8x128xbf16>, vector<128x512xbf16>, vector<8x512xf32> -> vector<8x512xf32>
    %371 = arith.addf %368, %370 : vector<8x512xf32>
    %c0_121 = arith.constant 0 : index
    %c0_122 = arith.constant 0 : index
    %372 = vector.load %arg9[%c0_121, %c0_122] : memref<1x512xf32, #tpu.memory_space<vmem>>, vector<1x512xf32>
    %373 = vector.broadcast %372 : vector<1x512xf32> to vector<8x512xf32>
    %374 = arith.addf %371, %373 : vector<8x512xf32>
    %375 = vector.extract_strided_slice %374 {offsets = [0, 0], sizes = [8, 128], strides = [1, 1]} : vector<8x512xf32> to vector<8x128xf32>
    %376 = arith.negf %375 : vector<8x128xf32>
    %377 = math.exp %376 : vector<8x128xf32>
    %cst_123 = arith.constant 1.000000e+00 : f32
    %378 = vector.broadcast %cst_123 : f32 to vector<8x128xf32>
    %379 = arith.addf %378, %377 : vector<8x128xf32>
    %380 = arith.divf %378, %379 : vector<8x128xf32>
    %381 = vector.extract_strided_slice %374 {offsets = [0, 128], sizes = [8, 128], strides = [1, 1]} : vector<8x512xf32> to vector<8x128xf32>
    %382 = arith.negf %381 : vector<8x128xf32>
    %383 = math.exp %382 : vector<8x128xf32>
    %cst_124 = arith.constant 1.000000e+00 : f32
    %384 = vector.broadcast %cst_124 : f32 to vector<8x128xf32>
    %385 = arith.addf %384, %383 : vector<8x128xf32>
    %386 = arith.divf %384, %385 : vector<8x128xf32>
    %387 = vector.extract_strided_slice %374 {offsets = [0, 256], sizes = [8, 128], strides = [1, 1]} : vector<8x512xf32> to vector<8x128xf32>
    %388 = math.tanh %387 : vector<8x128xf32>
    %389 = vector.extract_strided_slice %374 {offsets = [0, 384], sizes = [8, 128], strides = [1, 1]} : vector<8x512xf32> to vector<8x128xf32>
    %390 = arith.negf %389 : vector<8x128xf32>
    %391 = math.exp %390 : vector<8x128xf32>
    %cst_125 = arith.constant 1.000000e+00 : f32
    %392 = vector.broadcast %cst_125 : f32 to vector<8x128xf32>
    %393 = arith.addf %392, %391 : vector<8x128xf32>
    %394 = arith.divf %392, %393 : vector<8x128xf32>
    %395 = arith.mulf %386, %299 : vector<8x128xf32>
    %396 = arith.mulf %380, %388 : vector<8x128xf32>
    %397 = arith.addf %395, %396 : vector<8x128xf32>
    %398 = math.tanh %397 : vector<8x128xf32>
    %399 = arith.mulf %394, %398 : vector<8x128xf32>
    %400 = arith.truncf %399 : vector<8x128xf32> to vector<8x128xbf16>
    %c40 = arith.constant 40 : index
    %c0_126 = arith.constant 0 : index
    %401 = vector.load %arg12[%c40, %c0_126] : memref<64x512xf32, #tpu.memory_space<vmem>>, vector<8x512xf32>
    %c0_127 = arith.constant 0 : index
    %c0_128 = arith.constant 0 : index
    %402 = vector.load %arg2[%c0_127, %c0_128] : memref<128x512xbf16, #tpu.memory_space<vmem>>, vector<128x512xbf16>
    %cst_129 = arith.constant dense<0.000000e+00> : vector<8x512xf32>
    %403 = tpu.matmul %332, %402, %cst_129 {dimension_numbers = #tpu.dot_dimension_numbers<[1], [0], [0], [1], [0, 0, 1, 1], [], []>} : vector<8x128xbf16>, vector<128x512xbf16>, vector<8x512xf32> -> vector<8x512xf32>
    %404 = arith.addf %401, %403 : vector<8x512xf32>
    %405 = vector.extract_strided_slice %404 {offsets = [0, 0], sizes = [8, 128], strides = [1, 1]} : vector<8x512xf32> to vector<8x128xf32>
    %406 = arith.negf %405 : vector<8x128xf32>
    %407 = math.exp %406 : vector<8x128xf32>
    %cst_130 = arith.constant 1.000000e+00 : f32
    %408 = vector.broadcast %cst_130 : f32 to vector<8x128xf32>
    %409 = arith.addf %408, %407 : vector<8x128xf32>
    %410 = arith.divf %408, %409 : vector<8x128xf32>
    %411 = vector.extract_strided_slice %404 {offsets = [0, 128], sizes = [8, 128], strides = [1, 1]} : vector<8x512xf32> to vector<8x128xf32>
    %412 = arith.negf %411 : vector<8x128xf32>
    %413 = math.exp %412 : vector<8x128xf32>
    %cst_131 = arith.constant 1.000000e+00 : f32
    %414 = vector.broadcast %cst_131 : f32 to vector<8x128xf32>
    %415 = arith.addf %414, %413 : vector<8x128xf32>
    %416 = arith.divf %414, %415 : vector<8x128xf32>
    %417 = vector.extract_strided_slice %404 {offsets = [0, 256], sizes = [8, 128], strides = [1, 1]} : vector<8x512xf32> to vector<8x128xf32>
    %418 = math.tanh %417 : vector<8x128xf32>
    %419 = vector.extract_strided_slice %404 {offsets = [0, 384], sizes = [8, 128], strides = [1, 1]} : vector<8x512xf32> to vector<8x128xf32>
    %420 = arith.negf %419 : vector<8x128xf32>
    %421 = math.exp %420 : vector<8x128xf32>
    %cst_132 = arith.constant 1.000000e+00 : f32
    %422 = vector.broadcast %cst_132 : f32 to vector<8x128xf32>
    %423 = arith.addf %422, %421 : vector<8x128xf32>
    %424 = arith.divf %422, %423 : vector<8x128xf32>
    %425 = arith.mulf %416, %329 : vector<8x128xf32>
    %426 = arith.mulf %410, %418 : vector<8x128xf32>
    %427 = arith.addf %425, %426 : vector<8x128xf32>
    %428 = math.tanh %427 : vector<8x128xf32>
    %429 = arith.mulf %424, %428 : vector<8x128xf32>
    %430 = arith.truncf %429 : vector<8x128xf32> to vector<8x128xbf16>
    %c0_133 = arith.constant 0 : index
    %c0_134 = arith.constant 0 : index
    %431 = vector.load %arg4[%c0_133, %c0_134] : memref<128x512xbf16, #tpu.memory_space<vmem>>, vector<128x512xbf16>
    %cst_135 = arith.constant dense<0.000000e+00> : vector<8x512xf32>
    %432 = tpu.matmul %332, %431, %cst_135 {dimension_numbers = #tpu.dot_dimension_numbers<[1], [0], [0], [1], [0, 0, 1, 1], [], []>} : vector<8x128xbf16>, vector<128x512xbf16>, vector<8x512xf32> -> vector<8x512xf32>
    %c0_136 = arith.constant 0 : index
    %c0_137 = arith.constant 0 : index
    %433 = vector.load %arg5[%c0_136, %c0_137] : memref<128x512xbf16, #tpu.memory_space<vmem>>, vector<128x512xbf16>
    %cst_138 = arith.constant dense<0.000000e+00> : vector<8x512xf32>
    %434 = tpu.matmul %366, %433, %cst_138 {dimension_numbers = #tpu.dot_dimension_numbers<[1], [0], [0], [1], [0, 0, 1, 1], [], []>} : vector<8x128xbf16>, vector<128x512xbf16>, vector<8x512xf32> -> vector<8x512xf32>
    %435 = arith.addf %432, %434 : vector<8x512xf32>
    %c0_139 = arith.constant 0 : index
    %c0_140 = arith.constant 0 : index
    %436 = vector.load %arg6[%c0_139, %c0_140] : memref<1x512xf32, #tpu.memory_space<vmem>>, vector<1x512xf32>
    %437 = vector.broadcast %436 : vector<1x512xf32> to vector<8x512xf32>
    %438 = arith.addf %435, %437 : vector<8x512xf32>
    %439 = vector.extract_strided_slice %438 {offsets = [0, 0], sizes = [8, 128], strides = [1, 1]} : vector<8x512xf32> to vector<8x128xf32>
    %440 = arith.negf %439 : vector<8x128xf32>
    %441 = math.exp %440 : vector<8x128xf32>
    %cst_141 = arith.constant 1.000000e+00 : f32
    %442 = vector.broadcast %cst_141 : f32 to vector<8x128xf32>
    %443 = arith.addf %442, %441 : vector<8x128xf32>
    %444 = arith.divf %442, %443 : vector<8x128xf32>
    %445 = vector.extract_strided_slice %438 {offsets = [0, 128], sizes = [8, 128], strides = [1, 1]} : vector<8x512xf32> to vector<8x128xf32>
    %446 = arith.negf %445 : vector<8x128xf32>
    %447 = math.exp %446 : vector<8x128xf32>
    %cst_142 = arith.constant 1.000000e+00 : f32
    %448 = vector.broadcast %cst_142 : f32 to vector<8x128xf32>
    %449 = arith.addf %448, %447 : vector<8x128xf32>
    %450 = arith.divf %448, %449 : vector<8x128xf32>
    %451 = vector.extract_strided_slice %438 {offsets = [0, 256], sizes = [8, 128], strides = [1, 1]} : vector<8x512xf32> to vector<8x128xf32>
    %452 = math.tanh %451 : vector<8x128xf32>
    %453 = vector.extract_strided_slice %438 {offsets = [0, 384], sizes = [8, 128], strides = [1, 1]} : vector<8x512xf32> to vector<8x128xf32>
    %454 = arith.negf %453 : vector<8x128xf32>
    %455 = math.exp %454 : vector<8x128xf32>
    %cst_143 = arith.constant 1.000000e+00 : f32
    %456 = vector.broadcast %cst_143 : f32 to vector<8x128xf32>
    %457 = arith.addf %456, %455 : vector<8x128xf32>
    %458 = arith.divf %456, %457 : vector<8x128xf32>
    %459 = arith.mulf %450, %363 : vector<8x128xf32>
    %460 = arith.mulf %444, %452 : vector<8x128xf32>
    %461 = arith.addf %459, %460 : vector<8x128xf32>
    %462 = math.tanh %461 : vector<8x128xf32>
    %463 = arith.mulf %458, %462 : vector<8x128xf32>
    %464 = arith.truncf %463 : vector<8x128xf32> to vector<8x128xbf16>
    %c0_144 = arith.constant 0 : index
    %c0_145 = arith.constant 0 : index
    %465 = vector.load %arg7[%c0_144, %c0_145] : memref<128x512xbf16, #tpu.memory_space<vmem>>, vector<128x512xbf16>
    %cst_146 = arith.constant dense<0.000000e+00> : vector<8x512xf32>
    %466 = tpu.matmul %366, %465, %cst_146 {dimension_numbers = #tpu.dot_dimension_numbers<[1], [0], [0], [1], [0, 0, 1, 1], [], []>} : vector<8x128xbf16>, vector<128x512xbf16>, vector<8x512xf32> -> vector<8x512xf32>
    %c0_147 = arith.constant 0 : index
    %c0_148 = arith.constant 0 : index
    %467 = vector.load %arg8[%c0_147, %c0_148] : memref<128x512xbf16, #tpu.memory_space<vmem>>, vector<128x512xbf16>
    %cst_149 = arith.constant dense<0.000000e+00> : vector<8x512xf32>
    %468 = tpu.matmul %400, %467, %cst_149 {dimension_numbers = #tpu.dot_dimension_numbers<[1], [0], [0], [1], [0, 0, 1, 1], [], []>} : vector<8x128xbf16>, vector<128x512xbf16>, vector<8x512xf32> -> vector<8x512xf32>
    %469 = arith.addf %466, %468 : vector<8x512xf32>
    %c0_150 = arith.constant 0 : index
    %c0_151 = arith.constant 0 : index
    %470 = vector.load %arg9[%c0_150, %c0_151] : memref<1x512xf32, #tpu.memory_space<vmem>>, vector<1x512xf32>
    %471 = vector.broadcast %470 : vector<1x512xf32> to vector<8x512xf32>
    %472 = arith.addf %469, %471 : vector<8x512xf32>
    %473 = vector.extract_strided_slice %472 {offsets = [0, 0], sizes = [8, 128], strides = [1, 1]} : vector<8x512xf32> to vector<8x128xf32>
    %474 = arith.negf %473 : vector<8x128xf32>
    %475 = math.exp %474 : vector<8x128xf32>
    %cst_152 = arith.constant 1.000000e+00 : f32
    %476 = vector.broadcast %cst_152 : f32 to vector<8x128xf32>
    %477 = arith.addf %476, %475 : vector<8x128xf32>
    %478 = arith.divf %476, %477 : vector<8x128xf32>
    %479 = vector.extract_strided_slice %472 {offsets = [0, 128], sizes = [8, 128], strides = [1, 1]} : vector<8x512xf32> to vector<8x128xf32>
    %480 = arith.negf %479 : vector<8x128xf32>
    %481 = math.exp %480 : vector<8x128xf32>
    %cst_153 = arith.constant 1.000000e+00 : f32
    %482 = vector.broadcast %cst_153 : f32 to vector<8x128xf32>
    %483 = arith.addf %482, %481 : vector<8x128xf32>
    %484 = arith.divf %482, %483 : vector<8x128xf32>
    %485 = vector.extract_strided_slice %472 {offsets = [0, 256], sizes = [8, 128], strides = [1, 1]} : vector<8x512xf32> to vector<8x128xf32>
    %486 = math.tanh %485 : vector<8x128xf32>
    %487 = vector.extract_strided_slice %472 {offsets = [0, 384], sizes = [8, 128], strides = [1, 1]} : vector<8x512xf32> to vector<8x128xf32>
    %488 = arith.negf %487 : vector<8x128xf32>
    %489 = math.exp %488 : vector<8x128xf32>
    %cst_154 = arith.constant 1.000000e+00 : f32
    %490 = vector.broadcast %cst_154 : f32 to vector<8x128xf32>
    %491 = arith.addf %490, %489 : vector<8x128xf32>
    %492 = arith.divf %490, %491 : vector<8x128xf32>
    %493 = arith.mulf %484, %397 : vector<8x128xf32>
    %494 = arith.mulf %478, %486 : vector<8x128xf32>
    %495 = arith.addf %493, %494 : vector<8x128xf32>
    %496 = math.tanh %495 : vector<8x128xf32>
    %497 = arith.mulf %492, %496 : vector<8x128xf32>
    %498 = arith.truncf %497 : vector<8x128xf32> to vector<8x128xbf16>
    %c48 = arith.constant 48 : index
    %c0_155 = arith.constant 0 : index
    %499 = vector.load %arg12[%c48, %c0_155] : memref<64x512xf32, #tpu.memory_space<vmem>>, vector<8x512xf32>
    %c0_156 = arith.constant 0 : index
    %c0_157 = arith.constant 0 : index
    %500 = vector.load %arg2[%c0_156, %c0_157] : memref<128x512xbf16, #tpu.memory_space<vmem>>, vector<128x512xbf16>
    %cst_158 = arith.constant dense<0.000000e+00> : vector<8x512xf32>
    %501 = tpu.matmul %430, %500, %cst_158 {dimension_numbers = #tpu.dot_dimension_numbers<[1], [0], [0], [1], [0, 0, 1, 1], [], []>} : vector<8x128xbf16>, vector<128x512xbf16>, vector<8x512xf32> -> vector<8x512xf32>
    %502 = arith.addf %499, %501 : vector<8x512xf32>
    %503 = vector.extract_strided_slice %502 {offsets = [0, 0], sizes = [8, 128], strides = [1, 1]} : vector<8x512xf32> to vector<8x128xf32>
    %504 = arith.negf %503 : vector<8x128xf32>
    %505 = math.exp %504 : vector<8x128xf32>
    %cst_159 = arith.constant 1.000000e+00 : f32
    %506 = vector.broadcast %cst_159 : f32 to vector<8x128xf32>
    %507 = arith.addf %506, %505 : vector<8x128xf32>
    %508 = arith.divf %506, %507 : vector<8x128xf32>
    %509 = vector.extract_strided_slice %502 {offsets = [0, 128], sizes = [8, 128], strides = [1, 1]} : vector<8x512xf32> to vector<8x128xf32>
    %510 = arith.negf %509 : vector<8x128xf32>
    %511 = math.exp %510 : vector<8x128xf32>
    %cst_160 = arith.constant 1.000000e+00 : f32
    %512 = vector.broadcast %cst_160 : f32 to vector<8x128xf32>
    %513 = arith.addf %512, %511 : vector<8x128xf32>
    %514 = arith.divf %512, %513 : vector<8x128xf32>
    %515 = vector.extract_strided_slice %502 {offsets = [0, 256], sizes = [8, 128], strides = [1, 1]} : vector<8x512xf32> to vector<8x128xf32>
    %516 = math.tanh %515 : vector<8x128xf32>
    %517 = vector.extract_strided_slice %502 {offsets = [0, 384], sizes = [8, 128], strides = [1, 1]} : vector<8x512xf32> to vector<8x128xf32>
    %518 = arith.negf %517 : vector<8x128xf32>
    %519 = math.exp %518 : vector<8x128xf32>
    %cst_161 = arith.constant 1.000000e+00 : f32
    %520 = vector.broadcast %cst_161 : f32 to vector<8x128xf32>
    %521 = arith.addf %520, %519 : vector<8x128xf32>
    %522 = arith.divf %520, %521 : vector<8x128xf32>
    %523 = arith.mulf %514, %427 : vector<8x128xf32>
    %524 = arith.mulf %508, %516 : vector<8x128xf32>
    %525 = arith.addf %523, %524 : vector<8x128xf32>
    %526 = math.tanh %525 : vector<8x128xf32>
    %527 = arith.mulf %522, %526 : vector<8x128xf32>
    %528 = arith.truncf %527 : vector<8x128xf32> to vector<8x128xbf16>
    %c0_162 = arith.constant 0 : index
    %c0_163 = arith.constant 0 : index
    %529 = vector.load %arg4[%c0_162, %c0_163] : memref<128x512xbf16, #tpu.memory_space<vmem>>, vector<128x512xbf16>
    %cst_164 = arith.constant dense<0.000000e+00> : vector<8x512xf32>
    %530 = tpu.matmul %430, %529, %cst_164 {dimension_numbers = #tpu.dot_dimension_numbers<[1], [0], [0], [1], [0, 0, 1, 1], [], []>} : vector<8x128xbf16>, vector<128x512xbf16>, vector<8x512xf32> -> vector<8x512xf32>
    %c0_165 = arith.constant 0 : index
    %c0_166 = arith.constant 0 : index
    %531 = vector.load %arg5[%c0_165, %c0_166] : memref<128x512xbf16, #tpu.memory_space<vmem>>, vector<128x512xbf16>
    %cst_167 = arith.constant dense<0.000000e+00> : vector<8x512xf32>
    %532 = tpu.matmul %464, %531, %cst_167 {dimension_numbers = #tpu.dot_dimension_numbers<[1], [0], [0], [1], [0, 0, 1, 1], [], []>} : vector<8x128xbf16>, vector<128x512xbf16>, vector<8x512xf32> -> vector<8x512xf32>
    %533 = arith.addf %530, %532 : vector<8x512xf32>
    %c0_168 = arith.constant 0 : index
    %c0_169 = arith.constant 0 : index
    %534 = vector.load %arg6[%c0_168, %c0_169] : memref<1x512xf32, #tpu.memory_space<vmem>>, vector<1x512xf32>
    %535 = vector.broadcast %534 : vector<1x512xf32> to vector<8x512xf32>
    %536 = arith.addf %533, %535 : vector<8x512xf32>
    %537 = vector.extract_strided_slice %536 {offsets = [0, 0], sizes = [8, 128], strides = [1, 1]} : vector<8x512xf32> to vector<8x128xf32>
    %538 = arith.negf %537 : vector<8x128xf32>
    %539 = math.exp %538 : vector<8x128xf32>
    %cst_170 = arith.constant 1.000000e+00 : f32
    %540 = vector.broadcast %cst_170 : f32 to vector<8x128xf32>
    %541 = arith.addf %540, %539 : vector<8x128xf32>
    %542 = arith.divf %540, %541 : vector<8x128xf32>
    %543 = vector.extract_strided_slice %536 {offsets = [0, 128], sizes = [8, 128], strides = [1, 1]} : vector<8x512xf32> to vector<8x128xf32>
    %544 = arith.negf %543 : vector<8x128xf32>
    %545 = math.exp %544 : vector<8x128xf32>
    %cst_171 = arith.constant 1.000000e+00 : f32
    %546 = vector.broadcast %cst_171 : f32 to vector<8x128xf32>
    %547 = arith.addf %546, %545 : vector<8x128xf32>
    %548 = arith.divf %546, %547 : vector<8x128xf32>
    %549 = vector.extract_strided_slice %536 {offsets = [0, 256], sizes = [8, 128], strides = [1, 1]} : vector<8x512xf32> to vector<8x128xf32>
    %550 = math.tanh %549 : vector<8x128xf32>
    %551 = vector.extract_strided_slice %536 {offsets = [0, 384], sizes = [8, 128], strides = [1, 1]} : vector<8x512xf32> to vector<8x128xf32>
    %552 = arith.negf %551 : vector<8x128xf32>
    %553 = math.exp %552 : vector<8x128xf32>
    %cst_172 = arith.constant 1.000000e+00 : f32
    %554 = vector.broadcast %cst_172 : f32 to vector<8x128xf32>
    %555 = arith.addf %554, %553 : vector<8x128xf32>
    %556 = arith.divf %554, %555 : vector<8x128xf32>
    %557 = arith.mulf %548, %461 : vector<8x128xf32>
    %558 = arith.mulf %542, %550 : vector<8x128xf32>
    %559 = arith.addf %557, %558 : vector<8x128xf32>
    %560 = math.tanh %559 : vector<8x128xf32>
    %561 = arith.mulf %556, %560 : vector<8x128xf32>
    %562 = arith.truncf %561 : vector<8x128xf32> to vector<8x128xbf16>
    %c0_173 = arith.constant 0 : index
    %c0_174 = arith.constant 0 : index
    %563 = vector.load %arg7[%c0_173, %c0_174] : memref<128x512xbf16, #tpu.memory_space<vmem>>, vector<128x512xbf16>
    %cst_175 = arith.constant dense<0.000000e+00> : vector<8x512xf32>
    %564 = tpu.matmul %464, %563, %cst_175 {dimension_numbers = #tpu.dot_dimension_numbers<[1], [0], [0], [1], [0, 0, 1, 1], [], []>} : vector<8x128xbf16>, vector<128x512xbf16>, vector<8x512xf32> -> vector<8x512xf32>
    %c0_176 = arith.constant 0 : index
    %c0_177 = arith.constant 0 : index
    %565 = vector.load %arg8[%c0_176, %c0_177] : memref<128x512xbf16, #tpu.memory_space<vmem>>, vector<128x512xbf16>
    %cst_178 = arith.constant dense<0.000000e+00> : vector<8x512xf32>
    %566 = tpu.matmul %498, %565, %cst_178 {dimension_numbers = #tpu.dot_dimension_numbers<[1], [0], [0], [1], [0, 0, 1, 1], [], []>} : vector<8x128xbf16>, vector<128x512xbf16>, vector<8x512xf32> -> vector<8x512xf32>
    %567 = arith.addf %564, %566 : vector<8x512xf32>
    %c0_179 = arith.constant 0 : index
    %c0_180 = arith.constant 0 : index
    %568 = vector.load %arg9[%c0_179, %c0_180] : memref<1x512xf32, #tpu.memory_space<vmem>>, vector<1x512xf32>
    %569 = vector.broadcast %568 : vector<1x512xf32> to vector<8x512xf32>
    %570 = arith.addf %567, %569 : vector<8x512xf32>
    %571 = vector.extract_strided_slice %570 {offsets = [0, 0], sizes = [8, 128], strides = [1, 1]} : vector<8x512xf32> to vector<8x128xf32>
    %572 = arith.negf %571 : vector<8x128xf32>
    %573 = math.exp %572 : vector<8x128xf32>
    %cst_181 = arith.constant 1.000000e+00 : f32
    %574 = vector.broadcast %cst_181 : f32 to vector<8x128xf32>
    %575 = arith.addf %574, %573 : vector<8x128xf32>
    %576 = arith.divf %574, %575 : vector<8x128xf32>
    %577 = vector.extract_strided_slice %570 {offsets = [0, 128], sizes = [8, 128], strides = [1, 1]} : vector<8x512xf32> to vector<8x128xf32>
    %578 = arith.negf %577 : vector<8x128xf32>
    %579 = math.exp %578 : vector<8x128xf32>
    %cst_182 = arith.constant 1.000000e+00 : f32
    %580 = vector.broadcast %cst_182 : f32 to vector<8x128xf32>
    %581 = arith.addf %580, %579 : vector<8x128xf32>
    %582 = arith.divf %580, %581 : vector<8x128xf32>
    %583 = vector.extract_strided_slice %570 {offsets = [0, 256], sizes = [8, 128], strides = [1, 1]} : vector<8x512xf32> to vector<8x128xf32>
    %584 = math.tanh %583 : vector<8x128xf32>
    %585 = vector.extract_strided_slice %570 {offsets = [0, 384], sizes = [8, 128], strides = [1, 1]} : vector<8x512xf32> to vector<8x128xf32>
    %586 = arith.negf %585 : vector<8x128xf32>
    %587 = math.exp %586 : vector<8x128xf32>
    %cst_183 = arith.constant 1.000000e+00 : f32
    %588 = vector.broadcast %cst_183 : f32 to vector<8x128xf32>
    %589 = arith.addf %588, %587 : vector<8x128xf32>
    %590 = arith.divf %588, %589 : vector<8x128xf32>
    %591 = arith.mulf %582, %495 : vector<8x128xf32>
    %592 = arith.mulf %576, %584 : vector<8x128xf32>
    %593 = arith.addf %591, %592 : vector<8x128xf32>
    %594 = math.tanh %593 : vector<8x128xf32>
    %595 = arith.mulf %590, %594 : vector<8x128xf32>
    %596 = arith.truncf %595 : vector<8x128xf32> to vector<8x128xbf16>
    %c56 = arith.constant 56 : index
    %c0_184 = arith.constant 0 : index
    %597 = vector.load %arg12[%c56, %c0_184] : memref<64x512xf32, #tpu.memory_space<vmem>>, vector<8x512xf32>
    %c0_185 = arith.constant 0 : index
    %c0_186 = arith.constant 0 : index
    %598 = vector.load %arg2[%c0_185, %c0_186] : memref<128x512xbf16, #tpu.memory_space<vmem>>, vector<128x512xbf16>
    %cst_187 = arith.constant dense<0.000000e+00> : vector<8x512xf32>
    %599 = tpu.matmul %528, %598, %cst_187 {dimension_numbers = #tpu.dot_dimension_numbers<[1], [0], [0], [1], [0, 0, 1, 1], [], []>} : vector<8x128xbf16>, vector<128x512xbf16>, vector<8x512xf32> -> vector<8x512xf32>
    %600 = arith.addf %597, %599 : vector<8x512xf32>
    %601 = vector.extract_strided_slice %600 {offsets = [0, 0], sizes = [8, 128], strides = [1, 1]} : vector<8x512xf32> to vector<8x128xf32>
    %602 = arith.negf %601 : vector<8x128xf32>
    %603 = math.exp %602 : vector<8x128xf32>
    %cst_188 = arith.constant 1.000000e+00 : f32
    %604 = vector.broadcast %cst_188 : f32 to vector<8x128xf32>
    %605 = arith.addf %604, %603 : vector<8x128xf32>
    %606 = arith.divf %604, %605 : vector<8x128xf32>
    %607 = vector.extract_strided_slice %600 {offsets = [0, 128], sizes = [8, 128], strides = [1, 1]} : vector<8x512xf32> to vector<8x128xf32>
    %608 = arith.negf %607 : vector<8x128xf32>
    %609 = math.exp %608 : vector<8x128xf32>
    %cst_189 = arith.constant 1.000000e+00 : f32
    %610 = vector.broadcast %cst_189 : f32 to vector<8x128xf32>
    %611 = arith.addf %610, %609 : vector<8x128xf32>
    %612 = arith.divf %610, %611 : vector<8x128xf32>
    %613 = vector.extract_strided_slice %600 {offsets = [0, 256], sizes = [8, 128], strides = [1, 1]} : vector<8x512xf32> to vector<8x128xf32>
    %614 = math.tanh %613 : vector<8x128xf32>
    %615 = vector.extract_strided_slice %600 {offsets = [0, 384], sizes = [8, 128], strides = [1, 1]} : vector<8x512xf32> to vector<8x128xf32>
    %616 = arith.negf %615 : vector<8x128xf32>
    %617 = math.exp %616 : vector<8x128xf32>
    %cst_190 = arith.constant 1.000000e+00 : f32
    %618 = vector.broadcast %cst_190 : f32 to vector<8x128xf32>
    %619 = arith.addf %618, %617 : vector<8x128xf32>
    %620 = arith.divf %618, %619 : vector<8x128xf32>
    %621 = arith.mulf %612, %525 : vector<8x128xf32>
    %622 = arith.mulf %606, %614 : vector<8x128xf32>
    %623 = arith.addf %621, %622 : vector<8x128xf32>
    %624 = math.tanh %623 : vector<8x128xf32>
    %625 = arith.mulf %620, %624 : vector<8x128xf32>
    %626 = arith.truncf %625 : vector<8x128xf32> to vector<8x128xbf16>
    %c0_191 = arith.constant 0 : index
    %c0_192 = arith.constant 0 : index
    %627 = vector.load %arg4[%c0_191, %c0_192] : memref<128x512xbf16, #tpu.memory_space<vmem>>, vector<128x512xbf16>
    %cst_193 = arith.constant dense<0.000000e+00> : vector<8x512xf32>
    %628 = tpu.matmul %528, %627, %cst_193 {dimension_numbers = #tpu.dot_dimension_numbers<[1], [0], [0], [1], [0, 0, 1, 1], [], []>} : vector<8x128xbf16>, vector<128x512xbf16>, vector<8x512xf32> -> vector<8x512xf32>
    %c0_194 = arith.constant 0 : index
    %c0_195 = arith.constant 0 : index
    %629 = vector.load %arg5[%c0_194, %c0_195] : memref<128x512xbf16, #tpu.memory_space<vmem>>, vector<128x512xbf16>
    %cst_196 = arith.constant dense<0.000000e+00> : vector<8x512xf32>
    %630 = tpu.matmul %562, %629, %cst_196 {dimension_numbers = #tpu.dot_dimension_numbers<[1], [0], [0], [1], [0, 0, 1, 1], [], []>} : vector<8x128xbf16>, vector<128x512xbf16>, vector<8x512xf32> -> vector<8x512xf32>
    %631 = arith.addf %628, %630 : vector<8x512xf32>
    %c0_197 = arith.constant 0 : index
    %c0_198 = arith.constant 0 : index
    %632 = vector.load %arg6[%c0_197, %c0_198] : memref<1x512xf32, #tpu.memory_space<vmem>>, vector<1x512xf32>
    %633 = vector.broadcast %632 : vector<1x512xf32> to vector<8x512xf32>
    %634 = arith.addf %631, %633 : vector<8x512xf32>
    %635 = vector.extract_strided_slice %634 {offsets = [0, 0], sizes = [8, 128], strides = [1, 1]} : vector<8x512xf32> to vector<8x128xf32>
    %636 = arith.negf %635 : vector<8x128xf32>
    %637 = math.exp %636 : vector<8x128xf32>
    %cst_199 = arith.constant 1.000000e+00 : f32
    %638 = vector.broadcast %cst_199 : f32 to vector<8x128xf32>
    %639 = arith.addf %638, %637 : vector<8x128xf32>
    %640 = arith.divf %638, %639 : vector<8x128xf32>
    %641 = vector.extract_strided_slice %634 {offsets = [0, 128], sizes = [8, 128], strides = [1, 1]} : vector<8x512xf32> to vector<8x128xf32>
    %642 = arith.negf %641 : vector<8x128xf32>
    %643 = math.exp %642 : vector<8x128xf32>
    %cst_200 = arith.constant 1.000000e+00 : f32
    %644 = vector.broadcast %cst_200 : f32 to vector<8x128xf32>
    %645 = arith.addf %644, %643 : vector<8x128xf32>
    %646 = arith.divf %644, %645 : vector<8x128xf32>
    %647 = vector.extract_strided_slice %634 {offsets = [0, 256], sizes = [8, 128], strides = [1, 1]} : vector<8x512xf32> to vector<8x128xf32>
    %648 = math.tanh %647 : vector<8x128xf32>
    %649 = vector.extract_strided_slice %634 {offsets = [0, 384], sizes = [8, 128], strides = [1, 1]} : vector<8x512xf32> to vector<8x128xf32>
    %650 = arith.negf %649 : vector<8x128xf32>
    %651 = math.exp %650 : vector<8x128xf32>
    %cst_201 = arith.constant 1.000000e+00 : f32
    %652 = vector.broadcast %cst_201 : f32 to vector<8x128xf32>
    %653 = arith.addf %652, %651 : vector<8x128xf32>
    %654 = arith.divf %652, %653 : vector<8x128xf32>
    %655 = arith.mulf %646, %559 : vector<8x128xf32>
    %656 = arith.mulf %640, %648 : vector<8x128xf32>
    %657 = arith.addf %655, %656 : vector<8x128xf32>
    %658 = math.tanh %657 : vector<8x128xf32>
    %659 = arith.mulf %654, %658 : vector<8x128xf32>
    %660 = arith.truncf %659 : vector<8x128xf32> to vector<8x128xbf16>
    %c0_202 = arith.constant 0 : index
    %c0_203 = arith.constant 0 : index
    %661 = vector.load %arg7[%c0_202, %c0_203] : memref<128x512xbf16, #tpu.memory_space<vmem>>, vector<128x512xbf16>
    %cst_204 = arith.constant dense<0.000000e+00> : vector<8x512xf32>
    %662 = tpu.matmul %562, %661, %cst_204 {dimension_numbers = #tpu.dot_dimension_numbers<[1], [0], [0], [1], [0, 0, 1, 1], [], []>} : vector<8x128xbf16>, vector<128x512xbf16>, vector<8x512xf32> -> vector<8x512xf32>
    %c0_205 = arith.constant 0 : index
    %c0_206 = arith.constant 0 : index
    %663 = vector.load %arg8[%c0_205, %c0_206] : memref<128x512xbf16, #tpu.memory_space<vmem>>, vector<128x512xbf16>
    %cst_207 = arith.constant dense<0.000000e+00> : vector<8x512xf32>
    %664 = tpu.matmul %596, %663, %cst_207 {dimension_numbers = #tpu.dot_dimension_numbers<[1], [0], [0], [1], [0, 0, 1, 1], [], []>} : vector<8x128xbf16>, vector<128x512xbf16>, vector<8x512xf32> -> vector<8x512xf32>
    %665 = arith.addf %662, %664 : vector<8x512xf32>
    %c0_208 = arith.constant 0 : index
    %c0_209 = arith.constant 0 : index
    %666 = vector.load %arg9[%c0_208, %c0_209] : memref<1x512xf32, #tpu.memory_space<vmem>>, vector<1x512xf32>
    %667 = vector.broadcast %666 : vector<1x512xf32> to vector<8x512xf32>
    %668 = arith.addf %665, %667 : vector<8x512xf32>
    %669 = vector.extract_strided_slice %668 {offsets = [0, 0], sizes = [8, 128], strides = [1, 1]} : vector<8x512xf32> to vector<8x128xf32>
    %670 = arith.negf %669 : vector<8x128xf32>
    %671 = math.exp %670 : vector<8x128xf32>
    %cst_210 = arith.constant 1.000000e+00 : f32
    %672 = vector.broadcast %cst_210 : f32 to vector<8x128xf32>
    %673 = arith.addf %672, %671 : vector<8x128xf32>
    %674 = arith.divf %672, %673 : vector<8x128xf32>
    %675 = vector.extract_strided_slice %668 {offsets = [0, 128], sizes = [8, 128], strides = [1, 1]} : vector<8x512xf32> to vector<8x128xf32>
    %676 = arith.negf %675 : vector<8x128xf32>
    %677 = math.exp %676 : vector<8x128xf32>
    %cst_211 = arith.constant 1.000000e+00 : f32
    %678 = vector.broadcast %cst_211 : f32 to vector<8x128xf32>
    %679 = arith.addf %678, %677 : vector<8x128xf32>
    %680 = arith.divf %678, %679 : vector<8x128xf32>
    %681 = vector.extract_strided_slice %668 {offsets = [0, 256], sizes = [8, 128], strides = [1, 1]} : vector<8x512xf32> to vector<8x128xf32>
    %682 = math.tanh %681 : vector<8x128xf32>
    %683 = vector.extract_strided_slice %668 {offsets = [0, 384], sizes = [8, 128], strides = [1, 1]} : vector<8x512xf32> to vector<8x128xf32>
    %684 = arith.negf %683 : vector<8x128xf32>
    %685 = math.exp %684 : vector<8x128xf32>
    %cst_212 = arith.constant 1.000000e+00 : f32
    %686 = vector.broadcast %cst_212 : f32 to vector<8x128xf32>
    %687 = arith.addf %686, %685 : vector<8x128xf32>
    %688 = arith.divf %686, %687 : vector<8x128xf32>
    %689 = arith.mulf %680, %593 : vector<8x128xf32>
    %690 = arith.mulf %674, %682 : vector<8x128xf32>
    %691 = arith.addf %689, %690 : vector<8x128xf32>
    %692 = math.tanh %691 : vector<8x128xf32>
    %693 = arith.mulf %688, %692 : vector<8x128xf32>
    %694 = arith.truncf %693 : vector<8x128xf32> to vector<8x128xbf16>
    %c0_213 = arith.constant 0 : index
    %c0_214 = arith.constant 0 : index
    %695 = vector.load %arg4[%c0_213, %c0_214] : memref<128x512xbf16, #tpu.memory_space<vmem>>, vector<128x512xbf16>
    %cst_215 = arith.constant dense<0.000000e+00> : vector<8x512xf32>
    %696 = tpu.matmul %626, %695, %cst_215 {dimension_numbers = #tpu.dot_dimension_numbers<[1], [0], [0], [1], [0, 0, 1, 1], [], []>} : vector<8x128xbf16>, vector<128x512xbf16>, vector<8x512xf32> -> vector<8x512xf32>
    %c0_216 = arith.constant 0 : index
    %c0_217 = arith.constant 0 : index
    %697 = vector.load %arg5[%c0_216, %c0_217] : memref<128x512xbf16, #tpu.memory_space<vmem>>, vector<128x512xbf16>
    %cst_218 = arith.constant dense<0.000000e+00> : vector<8x512xf32>
    %698 = tpu.matmul %660, %697, %cst_218 {dimension_numbers = #tpu.dot_dimension_numbers<[1], [0], [0], [1], [0, 0, 1, 1], [], []>} : vector<8x128xbf16>, vector<128x512xbf16>, vector<8x512xf32> -> vector<8x512xf32>
    %699 = arith.addf %696, %698 : vector<8x512xf32>
    %c0_219 = arith.constant 0 : index
    %c0_220 = arith.constant 0 : index
    %700 = vector.load %arg6[%c0_219, %c0_220] : memref<1x512xf32, #tpu.memory_space<vmem>>, vector<1x512xf32>
    %701 = vector.broadcast %700 : vector<1x512xf32> to vector<8x512xf32>
    %702 = arith.addf %699, %701 : vector<8x512xf32>
    %703 = vector.extract_strided_slice %702 {offsets = [0, 0], sizes = [8, 128], strides = [1, 1]} : vector<8x512xf32> to vector<8x128xf32>
    %704 = arith.negf %703 : vector<8x128xf32>
    %705 = math.exp %704 : vector<8x128xf32>
    %cst_221 = arith.constant 1.000000e+00 : f32
    %706 = vector.broadcast %cst_221 : f32 to vector<8x128xf32>
    %707 = arith.addf %706, %705 : vector<8x128xf32>
    %708 = arith.divf %706, %707 : vector<8x128xf32>
    %709 = vector.extract_strided_slice %702 {offsets = [0, 128], sizes = [8, 128], strides = [1, 1]} : vector<8x512xf32> to vector<8x128xf32>
    %710 = arith.negf %709 : vector<8x128xf32>
    %711 = math.exp %710 : vector<8x128xf32>
    %cst_222 = arith.constant 1.000000e+00 : f32
    %712 = vector.broadcast %cst_222 : f32 to vector<8x128xf32>
    %713 = arith.addf %712, %711 : vector<8x128xf32>
    %714 = arith.divf %712, %713 : vector<8x128xf32>
    %715 = vector.extract_strided_slice %702 {offsets = [0, 256], sizes = [8, 128], strides = [1, 1]} : vector<8x512xf32> to vector<8x128xf32>
    %716 = math.tanh %715 : vector<8x128xf32>
    %717 = vector.extract_strided_slice %702 {offsets = [0, 384], sizes = [8, 128], strides = [1, 1]} : vector<8x512xf32> to vector<8x128xf32>
    %718 = arith.negf %717 : vector<8x128xf32>
    %719 = math.exp %718 : vector<8x128xf32>
    %cst_223 = arith.constant 1.000000e+00 : f32
    %720 = vector.broadcast %cst_223 : f32 to vector<8x128xf32>
    %721 = arith.addf %720, %719 : vector<8x128xf32>
    %722 = arith.divf %720, %721 : vector<8x128xf32>
    %723 = arith.mulf %714, %657 : vector<8x128xf32>
    %724 = arith.mulf %708, %716 : vector<8x128xf32>
    %725 = arith.addf %723, %724 : vector<8x128xf32>
    %726 = math.tanh %725 : vector<8x128xf32>
    %727 = arith.mulf %722, %726 : vector<8x128xf32>
    %728 = arith.truncf %727 : vector<8x128xf32> to vector<8x128xbf16>
    %c0_224 = arith.constant 0 : index
    %c0_225 = arith.constant 0 : index
    %729 = vector.load %arg7[%c0_224, %c0_225] : memref<128x512xbf16, #tpu.memory_space<vmem>>, vector<128x512xbf16>
    %cst_226 = arith.constant dense<0.000000e+00> : vector<8x512xf32>
    %730 = tpu.matmul %660, %729, %cst_226 {dimension_numbers = #tpu.dot_dimension_numbers<[1], [0], [0], [1], [0, 0, 1, 1], [], []>} : vector<8x128xbf16>, vector<128x512xbf16>, vector<8x512xf32> -> vector<8x512xf32>
    %c0_227 = arith.constant 0 : index
    %c0_228 = arith.constant 0 : index
    %731 = vector.load %arg8[%c0_227, %c0_228] : memref<128x512xbf16, #tpu.memory_space<vmem>>, vector<128x512xbf16>
    %cst_229 = arith.constant dense<0.000000e+00> : vector<8x512xf32>
    %732 = tpu.matmul %694, %731, %cst_229 {dimension_numbers = #tpu.dot_dimension_numbers<[1], [0], [0], [1], [0, 0, 1, 1], [], []>} : vector<8x128xbf16>, vector<128x512xbf16>, vector<8x512xf32> -> vector<8x512xf32>
    %733 = arith.addf %730, %732 : vector<8x512xf32>
    %c0_230 = arith.constant 0 : index
    %c0_231 = arith.constant 0 : index
    %734 = vector.load %arg9[%c0_230, %c0_231] : memref<1x512xf32, #tpu.memory_space<vmem>>, vector<1x512xf32>
    %735 = vector.broadcast %734 : vector<1x512xf32> to vector<8x512xf32>
    %736 = arith.addf %733, %735 : vector<8x512xf32>
    %737 = vector.extract_strided_slice %736 {offsets = [0, 0], sizes = [8, 128], strides = [1, 1]} : vector<8x512xf32> to vector<8x128xf32>
    %738 = arith.negf %737 : vector<8x128xf32>
    %739 = math.exp %738 : vector<8x128xf32>
    %cst_232 = arith.constant 1.000000e+00 : f32
    %740 = vector.broadcast %cst_232 : f32 to vector<8x128xf32>
    %741 = arith.addf %740, %739 : vector<8x128xf32>
    %742 = arith.divf %740, %741 : vector<8x128xf32>
    %743 = vector.extract_strided_slice %736 {offsets = [0, 128], sizes = [8, 128], strides = [1, 1]} : vector<8x512xf32> to vector<8x128xf32>
    %744 = arith.negf %743 : vector<8x128xf32>
    %745 = math.exp %744 : vector<8x128xf32>
    %cst_233 = arith.constant 1.000000e+00 : f32
    %746 = vector.broadcast %cst_233 : f32 to vector<8x128xf32>
    %747 = arith.addf %746, %745 : vector<8x128xf32>
    %748 = arith.divf %746, %747 : vector<8x128xf32>
    %749 = vector.extract_strided_slice %736 {offsets = [0, 256], sizes = [8, 128], strides = [1, 1]} : vector<8x512xf32> to vector<8x128xf32>
    %750 = math.tanh %749 : vector<8x128xf32>
    %751 = vector.extract_strided_slice %736 {offsets = [0, 384], sizes = [8, 128], strides = [1, 1]} : vector<8x512xf32> to vector<8x128xf32>
    %752 = arith.negf %751 : vector<8x128xf32>
    %753 = math.exp %752 : vector<8x128xf32>
    %cst_234 = arith.constant 1.000000e+00 : f32
    %754 = vector.broadcast %cst_234 : f32 to vector<8x128xf32>
    %755 = arith.addf %754, %753 : vector<8x128xf32>
    %756 = arith.divf %754, %755 : vector<8x128xf32>
    %757 = arith.mulf %748, %691 : vector<8x128xf32>
    %758 = arith.mulf %742, %750 : vector<8x128xf32>
    %759 = arith.addf %757, %758 : vector<8x128xf32>
    %760 = math.tanh %759 : vector<8x128xf32>
    %761 = arith.mulf %756, %760 : vector<8x128xf32>
    %762 = arith.truncf %761 : vector<8x128xf32> to vector<8x128xbf16>
    %c0_235 = arith.constant 0 : index
    %c0_236 = arith.constant 0 : index
    %763 = vector.load %arg7[%c0_235, %c0_236] : memref<128x512xbf16, #tpu.memory_space<vmem>>, vector<128x512xbf16>
    %cst_237 = arith.constant dense<0.000000e+00> : vector<8x512xf32>
    %764 = tpu.matmul %728, %763, %cst_237 {dimension_numbers = #tpu.dot_dimension_numbers<[1], [0], [0], [1], [0, 0, 1, 1], [], []>} : vector<8x128xbf16>, vector<128x512xbf16>, vector<8x512xf32> -> vector<8x512xf32>
    %c0_238 = arith.constant 0 : index
    %c0_239 = arith.constant 0 : index
    %765 = vector.load %arg8[%c0_238, %c0_239] : memref<128x512xbf16, #tpu.memory_space<vmem>>, vector<128x512xbf16>
    %cst_240 = arith.constant dense<0.000000e+00> : vector<8x512xf32>
    %766 = tpu.matmul %762, %765, %cst_240 {dimension_numbers = #tpu.dot_dimension_numbers<[1], [0], [0], [1], [0, 0, 1, 1], [], []>} : vector<8x128xbf16>, vector<128x512xbf16>, vector<8x512xf32> -> vector<8x512xf32>
    %767 = arith.addf %764, %766 : vector<8x512xf32>
    %c0_241 = arith.constant 0 : index
    %c0_242 = arith.constant 0 : index
    %768 = vector.load %arg9[%c0_241, %c0_242] : memref<1x512xf32, #tpu.memory_space<vmem>>, vector<1x512xf32>
    %769 = vector.broadcast %768 : vector<1x512xf32> to vector<8x512xf32>
    %770 = arith.addf %767, %769 : vector<8x512xf32>
    %771 = vector.extract_strided_slice %770 {offsets = [0, 0], sizes = [8, 128], strides = [1, 1]} : vector<8x512xf32> to vector<8x128xf32>
    %772 = arith.negf %771 : vector<8x128xf32>
    %773 = math.exp %772 : vector<8x128xf32>
    %cst_243 = arith.constant 1.000000e+00 : f32
    %774 = vector.broadcast %cst_243 : f32 to vector<8x128xf32>
    %775 = arith.addf %774, %773 : vector<8x128xf32>
    %776 = arith.divf %774, %775 : vector<8x128xf32>
    %777 = vector.extract_strided_slice %770 {offsets = [0, 128], sizes = [8, 128], strides = [1, 1]} : vector<8x512xf32> to vector<8x128xf32>
    %778 = arith.negf %777 : vector<8x128xf32>
    %779 = math.exp %778 : vector<8x128xf32>
    %cst_244 = arith.constant 1.000000e+00 : f32
    %780 = vector.broadcast %cst_244 : f32 to vector<8x128xf32>
    %781 = arith.addf %780, %779 : vector<8x128xf32>
    %782 = arith.divf %780, %781 : vector<8x128xf32>
    %783 = vector.extract_strided_slice %770 {offsets = [0, 256], sizes = [8, 128], strides = [1, 1]} : vector<8x512xf32> to vector<8x128xf32>
    %784 = math.tanh %783 : vector<8x128xf32>
    %785 = vector.extract_strided_slice %770 {offsets = [0, 384], sizes = [8, 128], strides = [1, 1]} : vector<8x512xf32> to vector<8x128xf32>
    %786 = arith.negf %785 : vector<8x128xf32>
    %787 = math.exp %786 : vector<8x128xf32>
    %cst_245 = arith.constant 1.000000e+00 : f32
    %788 = vector.broadcast %cst_245 : f32 to vector<8x128xf32>
    %789 = arith.addf %788, %787 : vector<8x128xf32>
    %790 = arith.divf %788, %789 : vector<8x128xf32>
    %791 = arith.mulf %782, %759 : vector<8x128xf32>
    %792 = arith.mulf %776, %784 : vector<8x128xf32>
    %793 = arith.addf %791, %792 : vector<8x128xf32>
    %794 = math.tanh %793 : vector<8x128xf32>
    %795 = arith.mulf %790, %794 : vector<8x128xf32>
    %c0_246 = arith.constant 0 : index
    %c0_247 = arith.constant 0 : index
    %c0_248 = arith.constant 0 : index
    %796 = vector.load %arg10[%c0_246, %c0_247, %c0_248] : memref<3x8x128xf32, #tpu.memory_space<vmem>>, vector<1x8x128xf32>
    %797 = vector.shape_cast %796 : vector<1x8x128xf32> to vector<8x128xf32>
    %798 = vector.shape_cast %625 : vector<8x128xf32> to vector<1x8x128xf32>
    tpu.vector_store %arg10[%c0_246, %c0_247, %c0_248], %798 {strides = array<i32>} : memref<3x8x128xf32, #tpu.memory_space<vmem>>, vector<1x8x128xf32>,
    %c0_249 = arith.constant 0 : index
    %c0_250 = arith.constant 0 : index
    %c0_251 = arith.constant 0 : index
    %799 = vector.load %arg11[%c0_249, %c0_250, %c0_251] : memref<3x8x128xf32, #tpu.memory_space<vmem>>, vector<1x8x128xf32>
    %800 = vector.shape_cast %799 : vector<1x8x128xf32> to vector<8x128xf32>
    %801 = vector.shape_cast %623 : vector<8x128xf32> to vector<1x8x128xf32>
    tpu.vector_store %arg11[%c0_249, %c0_250, %c0_251], %801 {strides = array<i32>} : memref<3x8x128xf32, #tpu.memory_space<vmem>>, vector<1x8x128xf32>,
    %c1 = arith.constant 1 : index
    %c0_252 = arith.constant 0 : index
    %c0_253 = arith.constant 0 : index
    %802 = vector.load %arg10[%c1, %c0_252, %c0_253] : memref<3x8x128xf32, #tpu.memory_space<vmem>>, vector<1x8x128xf32>
    %803 = vector.shape_cast %802 : vector<1x8x128xf32> to vector<8x128xf32>
    %804 = vector.shape_cast %727 : vector<8x128xf32> to vector<1x8x128xf32>
    tpu.vector_store %arg10[%c1, %c0_252, %c0_253], %804 {strides = array<i32>} : memref<3x8x128xf32, #tpu.memory_space<vmem>>, vector<1x8x128xf32>,
    %c1_254 = arith.constant 1 : index
    %c0_255 = arith.constant 0 : index
    %c0_256 = arith.constant 0 : index
    %805 = vector.load %arg11[%c1_254, %c0_255, %c0_256] : memref<3x8x128xf32, #tpu.memory_space<vmem>>, vector<1x8x128xf32>
    %806 = vector.shape_cast %805 : vector<1x8x128xf32> to vector<8x128xf32>
    %807 = vector.shape_cast %725 : vector<8x128xf32> to vector<1x8x128xf32>
    tpu.vector_store %arg11[%c1_254, %c0_255, %c0_256], %807 {strides = array<i32>} : memref<3x8x128xf32, #tpu.memory_space<vmem>>, vector<1x8x128xf32>,
    %c2 = arith.constant 2 : index
    %c0_257 = arith.constant 0 : index
    %c0_258 = arith.constant 0 : index
    %808 = vector.load %arg10[%c2, %c0_257, %c0_258] : memref<3x8x128xf32, #tpu.memory_space<vmem>>, vector<1x8x128xf32>
    %809 = vector.shape_cast %808 : vector<1x8x128xf32> to vector<8x128xf32>
    %810 = vector.shape_cast %795 : vector<8x128xf32> to vector<1x8x128xf32>
    tpu.vector_store %arg10[%c2, %c0_257, %c0_258], %810 {strides = array<i32>} : memref<3x8x128xf32, #tpu.memory_space<vmem>>, vector<1x8x128xf32>,
    %c2_259 = arith.constant 2 : index
    %c0_260 = arith.constant 0 : index
    %c0_261 = arith.constant 0 : index
    %811 = vector.load %arg11[%c2_259, %c0_260, %c0_261] : memref<3x8x128xf32, #tpu.memory_space<vmem>>, vector<1x8x128xf32>
    %812 = vector.shape_cast %811 : vector<1x8x128xf32> to vector<8x128xf32>
    %813 = vector.shape_cast %793 : vector<8x128xf32> to vector<1x8x128xf32>
    tpu.vector_store %arg11[%c2_259, %c0_260, %c0_261], %813 {strides = array<i32>} : memref<3x8x128xf32, #tpu.memory_space<vmem>>, vector<1x8x128xf32>,
    return
  }
}

</mosaic_0001>

<bundles_post_ra>
// kernel: encoder_forward.1
= control target key start
LH: loop header
LB: loop body
LE: loop exit
PB: predicated region body
PF: predicated region fallthrough
CT: control target
= control target key end

     0   :  { %17 = vsyncpa [#allocation4], 0  ;;  %s10463_s0 = inlined_call_operand.vmem [shape: bf16[64,128], index: 0, kind: input, shape index: {}]   ;;  %s10464_s1 = inlined_call_operand.vmem [shape: bf16[128,512], index: 1, kind: input, shape index: {}]   ;;  %s10465_s2 = inlined_call_operand.hbm [shape: bf16[128,512], index: 2, kind: input, shape index: {}]   ;;  %s10466_s3 = inlined_call_operand.vmem [shape: f32[1,512], index: 3, kind: input, shape index: {}]   ;;  %s10467_s4 = inlined_call_operand.hbm [shape: bf16[128,512], index: 4, kind: input, shape index: {}]   ;;  %s10468_s5 = inlined_call_operand.hbm [shape: bf16[128,512], index: 5, kind: input, shape index: {}]   ;;  %s10469_s6 = inlined_call_operand.vmem [shape: f32[1,512], index: 6, kind: input, shape index: {}]   ;;  %s10470_s7 = inlined_call_operand.hbm [shape: bf16[128,512], index: 7, kind: input, shape index: {}]   ;;  %s10471_s8 = inlined_call_operand.hbm [shape: bf16[128,512], index: 8, kind: input, shape index: {}]   ;;  %s10472_s9 = inlined_call_operand.vmem [shape: f32[1,512], index: 9, kind: input, shape index: {}]   ;;  %s10473_s10 = inlined_call_operand.hbm [shape: f32[3,8,128], index: 10, kind: output, shape index: {0}]   ;;  %s10474_s11 = inlined_call_operand.hbm [shape: f32[3,8,128], index: 11, kind: output, shape index: {1}]  }
   0x1   :  { %18 = vsyncpa [#allocation7], 0 }
   0x2   :  { %19 = vsyncpa [#allocation10], 0 }
   0x3   :  { %20 = vsyncpa [#allocation5], 0 }
   0x4   :  { %21 = vsyncpa [#allocation14], 0  ;;  %s7188_s17 = smov [#allocation6]   ;;  %s7189_s19 = smov [#allocation9]  }
   0x5   :  { %s45_s18 = sshll.u32 %s7188_s17, 4  ;;  %s71_s20 = sshll.u32 %s7189_s19, 4  ;;  %s46_s18 = int_to_ptr.vmem [resolvable:$true] %s45_s18  ;;  %s7260_s20 = int_to_ptr.vmem [resolvable:$true] %s71_s20 }
   0x6   :  { %s7024_s23 = scalar_lea.hbm %s10467_s4, 4096 }
   0x7   :  { %p7025_p0 = scmp.ne.s32.totalorder %s10467_s4, %s7024_s23  ;;  %p7028_p1 = scmp.lt.u32.totalorder %s7024_s23, %s10467_s4 }
   0x9   :  { %p7030_p2 = pnand %p7028_p1, %p7025_p0 }
   0xb   :  { %7033 = shalt.err (!%p7030_p2)
}
   0xc   :  { %s7034_s28 = scalar_lea.vmem %s46_s18, 4096  ;;  %p7039_p4 = scmp.lt.s32.totalorder %s46_s18, %s46_s18 }
   0xd   :  { %p7035_p3 = scmp.ne.s32.totalorder %s46_s18, %s7034_s28  ;;  %p7040_p5 = scmp.lt.s32.totalorder %s7034_s28, %s7034_s28 }
   0xf   :  { %p7041_p6 = por %p7040_p5, %p7039_p4 }
  0x11   :  { %p7042_p7 = pnand %p7041_p6, %p7035_p3 }
  0x13   :  { %7045 = shalt.err (!%p7042_p7)
}
  0x14   :  { %s7190_s29 = smov 256   ;;  %s7191_s30 = smov 16  }
  0x15   :  { %51 = dma.hbm_to_vmem [thread:$0]  %s10467_s4, 4096, %s46_s18, [#allocation7], %s7190_s29, %s7190_s29, %s7191_s30  }
  0x16   :  { %s7046_s16 = scalar_lea.hbm %s10470_s7, 4096 }
  0x17   :  { %p7047_p8 = scmp.ne.s32.totalorder %s10470_s7, %s7046_s16  ;;  %p7050_p9 = scmp.lt.u32.totalorder %s7046_s16, %s10470_s7 }
  0x19   :  { %p7052_p10 = pnand %p7050_p9, %p7047_p8 }
  0x1b   :  { %7055 = shalt.err (!%p7052_p10)
}
  0x1c   :  { %s7056_s23 = scalar_lea.vmem %s7260_s20, 4096  ;;  %p7061_p12 = scmp.lt.s32.totalorder %s7260_s20, %s7260_s20 }
  0x1d   :  { %p7057_p11 = scmp.ne.s32.totalorder %s7260_s20, %s7056_s23  ;;  %p7062_p13 = scmp.lt.s32.totalorder %s7056_s23, %s7056_s23 }
  0x1f   :  { %p7063_p0 = por %p7062_p13, %p7061_p12 }
  0x21   :  { %p7064_p1 = pnand %p7063_p0, %p7057_p11 }
  0x23   :  { %7067 = shalt.err (!%p7064_p1)
}
  0x24   :  { %77 = dma.hbm_to_vmem [thread:$0]  %s10470_s7, 4096, %s7260_s20, [#allocation10], %s7190_s29, %s7190_s29, %s7191_s30  }
  0x25   :  { %s7192_s24 = smov [#allocation3]   ;;  %s7193_s26 = smov [#allocation8]  }
  0x26   :  { %s31_s25 = sshll.u32 %s7192_s24, 4  ;;  %s57_s27 = sshll.u32 %s7193_s26, 4  ;;  %s32_s25 = int_to_ptr.vmem [resolvable:$true] %s31_s25  ;;  %s7297_s27 = int_to_ptr.vmem [resolvable:$true] %s57_s27 }
  0x27   :  { %s7068_s13 = scalar_lea.hbm %s10465_s2, 4096 }
  0x28   :  { %p7069_p2 = scmp.ne.s32.totalorder %s10465_s2, %s7068_s13  ;;  %p7072_p3 = scmp.lt.u32.totalorder %s7068_s13, %s10465_s2 }
  0x2a   :  { %p7074_p4 = pnand %p7072_p3, %p7069_p2 }
  0x2c   :  { %7077 = shalt.err (!%p7074_p4)
}
  0x2d   :  { %s7078_s7 = scalar_lea.vmem %s32_s25, 4096  ;;  %p7083_p6 = scmp.lt.s32.totalorder %s32_s25, %s32_s25 }
  0x2e   :  { %p7079_p5 = scmp.ne.s32.totalorder %s32_s25, %s7078_s7  ;;  %p7084_p7 = scmp.lt.s32.totalorder %s7078_s7, %s7078_s7 }
  0x30   :  { %p7085_p8 = por %p7084_p7, %p7083_p6 }
  0x32   :  { %p7086_p9 = pnand %p7085_p8, %p7079_p5 }
  0x34   :  { %7089 = shalt.err (!%p7086_p9)
}
  0x35   :  { %37 = dma.hbm_to_vmem [thread:$0]  %s10465_s2, 4096, %s32_s25, [#allocation4], %s7190_s29, %s7190_s29, %s7191_s30  }
  0x36   :  { %s7090_s23 = scalar_lea.hbm %s10468_s5, 4096 }
  0x37   :  { %p7091_p10 = scmp.ne.s32.totalorder %s10468_s5, %s7090_s23  ;;  %p7094_p11 = scmp.lt.u32.totalorder %s7090_s23, %s10468_s5 }
  0x39   :  { %p7096_p12 = pnand %p7094_p11, %p7091_p10 }
  0x3b   :  { %7099 = shalt.err (!%p7096_p12)
}
  0x3c   :  { %s7100_s28 = scalar_lea.vmem %s7297_s27, 4096  ;;  %p7105_p0 = scmp.lt.s32.totalorder %s7297_s27, %s7297_s27 }
  0x3d   :  { %p7101_p13 = scmp.ne.s32.totalorder %s7297_s27, %s7100_s28  ;;  %p7106_p1 = scmp.lt.s32.totalorder %s7100_s28, %s7100_s28 }
  0x3f   :  { %p7107_p2 = por %p7106_p1, %p7105_p0 }
  0x41   :  { %p7108_p3 = pnand %p7107_p2, %p7101_p13 }
  0x43   :  { %7111 = shalt.err (!%p7108_p3)
}
  0x44   :  { %63 = dma.hbm_to_vmem [thread:$0]  %s10468_s5, 4096, %s7297_s27, [#allocation7], %s7190_s29, %s7190_s29, %s7191_s30  }
  0x45   :  { %s7194_s12 = smov [#allocation11]   ;;  %s7112_s16 = scalar_lea.hbm %s10471_s8, 4096 }
  0x46   :  { %s83_s13 = sshll.u32 %s7194_s12, 4  ;;  %p7113_p4 = scmp.ne.s32.totalorder %s10471_s8, %s7112_s16  ;;  %s84_s13 = int_to_ptr.vmem [resolvable:$true] %s83_s13 }
  0x47   :  { %p7116_p5 = scmp.lt.u32.totalorder %s7112_s16, %s10471_s8 }
  0x49   :  { %p7118_p6 = pnand %p7116_p5, %p7113_p4 }
  0x4b   :  { %7121 = shalt.err (!%p7118_p6)
}
  0x4c   :  { %s7122_s21 = scalar_lea.vmem %s84_s13, 4096  ;;  %p7127_p8 = scmp.lt.s32.totalorder %s84_s13, %s84_s13 }
  0x4d   :  { %p7123_p7 = scmp.ne.s32.totalorder %s84_s13, %s7122_s21  ;;  %p7128_p9 = scmp.lt.s32.totalorder %s7122_s21, %s7122_s21 }
  0x4f   :  { %p7129_p10 = por %p7128_p9, %p7127_p8 }
  0x51   :  { %p7130_p11 = pnand %p7129_p10, %p7123_p7 }
  0x53   :  { %7133 = shalt.err (!%p7130_p11)
}
  0x54   :  { %89 = dma.hbm_to_vmem [thread:$0]  %s10471_s8, 4096, %s84_s13, [#allocation10], %s7190_s29, %s7190_s29, %s7191_s30  }
  0x55   :  { %7178 = dma.done.wait [#allocation4], 4096  }
  0x56   :  { %7179 = vsyncadd [#allocation4], 4294963200 }
  0x57   :  { %7180 = dma.done.wait [#allocation7], 8192  }
  0x58   :  { %7181 = vsyncadd [#allocation7], 4294959104 }
  0x59   :  { %7182 = dma.done.wait [#allocation10], 8192  }
  0x5a   :  { %7183 = vsyncadd [#allocation10], 4294959104  ;;  %v10475_v0 = vmov 0   ;;  %v5868_v1 = vld [vmem:[%s10464_s1 + $0x4] ss:$16 sps:$4 sm:$0xff]   ;;  %v5929_v44 = vld [vmem:[%s10463_s0 + $0x8] sm:$0xff]  }
  0x5b   :  { %386 = vmatprep.mubr.bf16.mxu0 %v10475_v0  ;;  %459 = vmatprep.mubr.bf16.mxu1 %v10475_v0  ;;  %v5870_v2 = vld [vmem:[%s10464_s1 + $0xc] ss:$16 sps:$4 sm:$0xff]   ;;  %v5872_v3 = vld [vmem:[%s10464_s1] ss:$16 sps:$4 sm:$0xff]   ;;  %v5873_v4 = vld [vmem:[%s10464_s1 + $0x8] ss:$16 sps:$4 sm:$0xff]  }
  0x5c   :  { %354 = vmatprep.subr.bf16.mxu0 %v5868_v1  ;;  %427 = vmatprep.subr.bf16.mxu1 %v5870_v2  ;;  %v5874_v5 = vld [vmem:[%s10464_s1 + $0x24] ss:$16 sps:$4 sm:$0xff]   ;;  %v5876_v6 = vld [vmem:[%s10464_s1 + $0x2c] ss:$16 sps:$4 sm:$0xff]   ;;  %v5878_v7 = vld [vmem:[%s10464_s1 + $0x20] ss:$16 sps:$4 sm:$0xff]  }
  0x5d   :  { %355 = vmatpush1.bf16.msra.mxu0 %v5872_v3  ;;  %428 = vmatpush1.bf16.msra.mxu1 %v5873_v4  ;;  %v5879_v8 = vld [vmem:[%s10464_s1 + $0x28] ss:$16 sps:$4 sm:$0xff]   ;;  %v5880_v9 = vld [vmem:[%s10464_s1 + $0x44] ss:$16 sps:$4 sm:$0xff]   ;;  %v5882_v10 = vld [vmem:[%s10464_s1 + $0x4c] ss:$16 sps:$4 sm:$0xff]  }
  0x5e   :  { %356 = vmatprep.subr.bf16.mxu0 %v5874_v5  ;;  %429 = vmatprep.subr.bf16.mxu1 %v5876_v6  ;;  %v5884_v11 = vld [vmem:[%s10464_s1 + $0x40] ss:$16 sps:$4 sm:$0xff]   ;;  %v5885_v12 = vld [vmem:[%s10464_s1 + $0x48] ss:$16 sps:$4 sm:$0xff]   ;;  %v5886_v13 = vld [vmem:[%s10464_s1 + $0x64] ss:$16 sps:$4 sm:$0xff]  }
  0x5f   :  { %v5888_v14 = vld [vmem:[%s10464_s1 + $0x6c] ss:$16 sps:$4 sm:$0xff]   ;;  %v5890_v15 = vld [vmem:[%s10464_s1 + $0x60] ss:$16 sps:$4 sm:$0xff]   ;;  %v5891_v16 = vld [vmem:[%s10464_s1 + $0x68] ss:$16 sps:$4 sm:$0xff]  }
  0x60   :  { %v5892_v17 = vld [vmem:[%s10464_s1 + $0x84] ss:$16 sps:$4 sm:$0xff]   ;;  %v5894_v18 = vld [vmem:[%s10464_s1 + $0x8c] ss:$16 sps:$4 sm:$0xff]   ;;  %v5896_v19 = vld [vmem:[%s10464_s1 + $0x80] ss:$16 sps:$4 sm:$0xff]  }
  0x61   :  { %357 = vmatpush1.bf16.msra.mxu0 %v5878_v7  ;;  %430 = vmatpush1.bf16.msra.mxu1 %v5879_v8  ;;  %v5897_v20 = vld [vmem:[%s10464_s1 + $0x88] ss:$16 sps:$4 sm:$0xff]   ;;  %v5898_v21 = vld [vmem:[%s10464_s1 + $0xa4] ss:$16 sps:$4 sm:$0xff]   ;;  %v5900_v22 = vld [vmem:[%s10464_s1 + $0xac] ss:$16 sps:$4 sm:$0xff]   ;;  %v150_v8 = vlaneseq }
  0x62   :  { %358 = vmatprep.subr.bf16.mxu0 %v5880_v9  ;;  %431 = vmatprep.subr.bf16.mxu1 %v5882_v10  ;;  %v5902_v23 = vld [vmem:[%s10464_s1 + $0xa0] ss:$16 sps:$4 sm:$0xff]   ;;  %v5903_v24 = vld [vmem:[%s10464_s1 + $0xa8] ss:$16 sps:$4 sm:$0xff]   ;;  %v5904_v25 = vld [vmem:[%s10464_s1 + $0xc4] ss:$16 sps:$4 sm:$0xff]  }
  0x63   :  { %v5906_v26 = vld [vmem:[%s10464_s1 + $0xcc] ss:$16 sps:$4 sm:$0xff]   ;;  %v5908_v27 = vld [vmem:[%s10464_s1 + $0xc0] ss:$16 sps:$4 sm:$0xff]   ;;  %v5909_v28 = vld [vmem:[%s10464_s1 + $0xc8] ss:$16 sps:$4 sm:$0xff]  }
  0x64   :  { %v5910_v29 = vld [vmem:[%s10464_s1 + $0xe4] ss:$16 sps:$4 sm:$0xff]   ;;  %v5912_v30 = vld [vmem:[%s10464_s1 + $0xec] ss:$16 sps:$4 sm:$0xff]   ;;  %v5914_v31 = vld [vmem:[%s10464_s1 + $0xe0] ss:$16 sps:$4 sm:$0xff]  }
  0x65   :  { %359 = vmatpush1.bf16.msra.mxu0 %v5884_v11  ;;  %432 = vmatpush1.bf16.msra.mxu1 %v5885_v12  ;;  %v5915_v32 = vld [vmem:[%s10464_s1 + $0xe8] ss:$16 sps:$4 sm:$0xff]   ;;  %v7447_v33 = vld [vmem:[#allocation3 + $0x4] ss:$16 sps:$4 sm:$0xff]   ;;  %v7449_v34 = vld [vmem:[#allocation3 + $0xc] ss:$16 sps:$4 sm:$0xff]  }
  0x66   :  { %360 = vmatprep.subr.bf16.mxu0 %v5886_v13  ;;  %433 = vmatprep.subr.bf16.mxu1 %v5888_v14  ;;  %v5916_v35 = vld [vmem:[%s10463_s0] sm:$0xff]   ;;  %v7456_v37 = vld [vmem:[#allocation3 + $0x8] ss:$16 sps:$4 sm:$0xff]   ;;  %v7462_v39 = vld [vmem:[#allocation3 + $0x2c] ss:$16 sps:$4 sm:$0xff]   ;;  %v151_v9 = vshrl.u32 %v150_v8, 7 }
  0x67   :  { %v7454_v36 = vld [vmem:[#allocation3] ss:$16 sps:$4 sm:$0xff]   ;;  %v7460_v38 = vld [vmem:[#allocation3 + $0x24] ss:$16 sps:$4 sm:$0xff]   ;;  %v7468_v41 = vld [vmem:[#allocation3 + $0x28] ss:$16 sps:$4 sm:$0xff]  }
  0x68   :  { %v7464_v40 = vld [vmem:[#allocation3 + $0x20] ss:$16 sps:$4 sm:$0xff]   ;;  %v7472_v42 = vld [vmem:[#allocation3 + $0x44] ss:$16 sps:$4 sm:$0xff]   ;;  %v7474_v43 = vld [vmem:[#allocation3 + $0x4c] ss:$16 sps:$4 sm:$0xff]  }
  0x69   :  { %361 = vmatpush1.bf16.msra.mxu0 %v5890_v15  ;;  %434 = vmatpush1.bf16.msra.mxu1 %v5891_v16  ;;  %v7481_v45 = vld [vmem:[#allocation3 + $0x40] ss:$16 sps:$4 sm:$0xff]   ;;  %v7483_v46 = vld [vmem:[#allocation3 + $0x48] ss:$16 sps:$4 sm:$0xff]   ;;  %v7487_v47 = vld [vmem:[#allocation3 + $0x64] ss:$16 sps:$4 sm:$0xff]  }
  0x6a   :  { %362 = vmatprep.subr.bf16.mxu0 %v5892_v17  ;;  %435 = vmatprep.subr.bf16.mxu1 %v5894_v18  ;;  %v7491_v48 = vld [vmem:[#allocation3 + $0x6c] ss:$16 sps:$4 sm:$0xff]   ;;  %v7493_v49 = vld [vmem:[#allocation3 + $0x60] ss:$16 sps:$4 sm:$0xff]   ;;  %v7495_v50 = vld [vmem:[#allocation3 + $0x68] ss:$16 sps:$4 sm:$0xff]  }
  0x6b   :  { %v7499_v51 = vld [vmem:[#allocation3 + $0x84] ss:$16 sps:$4 sm:$0xff]   ;;  %v7503_v52 = vld [vmem:[#allocation3 + $0x8c] ss:$16 sps:$4 sm:$0xff]   ;;  %v7510_v54 = vld [vmem:[#allocation3 + $0x80] ss:$16 sps:$4 sm:$0xff]  }
  0x6c   :  { %v5942_v53 = vld [vmem:[%s10463_s0 + $0x10] sm:$0xff]   ;;  %v7512_v55 = vld [vmem:[#allocation3 + $0x88] ss:$16 sps:$4 sm:$0xff]   ;;  %v7516_v57 = vld [vmem:[#allocation3 + $0xac] ss:$16 sps:$4 sm:$0xff]   ;;  %v7605_v10 = vsub.s32 2, %v151_v9 }
  0x6d   :  { %363 = vmatpush1.bf16.msra.mxu0 %v5896_v19  ;;  %436 = vmatpush1.bf16.msra.mxu1 %v5897_v20  ;;  %v7514_v56 = vld [vmem:[#allocation3 + $0xa4] ss:$16 sps:$4 sm:$0xff]   ;;  %v7522_v58 = vld [vmem:[#allocation3 + $0xa0] ss:$16 sps:$4 sm:$0xff]   ;;  %v7524_v59 = vld [vmem:[#allocation3 + $0xa8] ss:$16 sps:$4 sm:$0xff]  }
  0x6e   :  { %364 = vmatprep.subr.bf16.mxu0 %v5898_v21  ;;  %437 = vmatprep.subr.bf16.mxu1 %v5900_v22  ;;  %v7526_v60 = vld [vmem:[#allocation3 + $0xc4] ss:$16 sps:$4 sm:$0xff]   ;;  %v7528_v61 = vld [vmem:[#allocation3 + $0xcc] ss:$16 sps:$4 sm:$0xff]   ;;  %v7539_v63 = vld [vmem:[#allocation3 + $0xc0] ss:$16 sps:$4 sm:$0xff]  }
  0x6f   :  { %v5955_v62 = vld [vmem:[%s10463_s0 + $0x18] sm:$0xff]   ;;  %v7543_v2 = vld [vmem:[#allocation3 + $0xe4] ss:$16 sps:$4 sm:$0xff]   ;;  %v7551_v4 = vld [vmem:[#allocation3 + $0xe0] ss:$16 sps:$4 sm:$0xff]   ;;  %10837 = vst [vmem:[#allocation20_spill] sm:$0xff] %v7605_v10 }
  0x70   :  { %v7541_v1 = vld [vmem:[#allocation3 + $0xc8] ss:$16 sps:$4 sm:$0xff]   ;;  %v7545_v3 = vld [vmem:[#allocation3 + $0xec] ss:$16 sps:$4 sm:$0xff]   ;;  %v7599_v6 = vld [vmem:[#allocation8 + $0x4] ss:$16 sps:$4 sm:$0xff]  }
  0x71   :  { %365 = vmatpush1.bf16.msra.mxu0 %v5902_v23  ;;  %438 = vmatpush1.bf16.msra.mxu1 %v5903_v24  ;;  %v7553_v5 = vld [vmem:[#allocation3 + $0xe8] ss:$16 sps:$4 sm:$0xff]   ;;  %v7601_v7 = vld [vmem:[#allocation8 + $0xc] ss:$16 sps:$4 sm:$0xff]   ;;  %v7607_v11 = vsub.s32 3, %v151_v9  ;;  %v7609_v12 = vsub.s32 0, %v151_v9 }
  0x72   :  { %366 = vmatprep.subr.bf16.mxu0 %v5904_v25  ;;  %439 = vmatprep.subr.bf16.mxu1 %v5906_v26  ;;  %v148_v13 = vld [vmem:[%s10466_s3] sm:$0xf]  ;;  %v7614_v14 = vsub.s32 1, %v151_v9 }
  0x73   :  { %10838 = vst [vmem:[#allocation21_spill] sm:$0xff] %v7607_v11  ;;  %v7617_v15 = vrot.slane %v148_v13, %v7605_v10  ;;  %v7624_v18 = vrot.slane %v148_v13, %v7607_v11  ;;  %v153_v19 = vrot.slane %v148_v13, %v7609_v12  ;;  %v7787_v10 = vld [vmem:[#allocation8 + $0xe4] ss:$16 sps:$4 sm:$0xff]   ;;  %v7789_v11 = vld [vmem:[#allocation8 + $0xec] ss:$16 sps:$4 sm:$0xff]  }
  0x74   :  { %v157_v22 = vrot.slane %v148_v13, %v7614_v14  ;;  %10871 = vst [vmem:[#allocation53_spill] sm:$0xff] %v7787_v10  ;;  %10872 = vst [vmem:[#allocation54_spill] sm:$0xff] %v7789_v11 }
  0x75   :  { %367 = vmatpush1.bf16.msra.mxu0 %v5908_v27  ;;  %440 = vmatpush1.bf16.msra.mxu1 %v5909_v28 }
  0x76   :  { %368 = vmatprep.subr.bf16.mxu0 %v5910_v29  ;;  %441 = vmatprep.subr.bf16.mxu1 %v5912_v30 }
  0x79   :  { %369 = vmatpush1.bf16.msra.mxu0 %v5914_v31  ;;  %442 = vmatpush1.bf16.msra.mxu1 %v5915_v32 }
  0x7a   :  { %728 = vmatprep.subr.bf16.mxu0 %v7447_v33  ;;  %769 = vmatprep.subr.bf16.mxu1 %v7449_v34 }
  0x7c   :  { %387 = vmatmul.mubr.bf16.vlgmr.msra.gmra.mrb[0].mxu0 %v5916_v35  ;;  %460 = vmatmul.mubr.bf16.vlgmr.msra.gmra.mrb[0].mxu1 %v5916_v35 }
  0x7d   :  { %729 = vmatpush1.bf16.msra.mxu0 %v7454_v36  ;;  %770 = vmatpush1.bf16.msra.mxu1 %v7456_v37 }
  0x7e   :  { %730 = vmatprep.subr.bf16.mxu0 %v7460_v38  ;;  %771 = vmatprep.subr.bf16.mxu1 %v7462_v39 }
  0x7f   :  { %396 = vmatprep.mubr.bf16.mxu0 %v10475_v0  ;;  %469 = vmatprep.mubr.bf16.mxu1 %v10475_v0 }
  0x81   :  { %731 = vmatpush1.bf16.msra.mxu0 %v7464_v40  ;;  %772 = vmatpush1.bf16.msra.mxu1 %v7468_v41 }
  0x82   :  { %732 = vmatprep.subr.bf16.mxu0 %v7472_v42  ;;  %773 = vmatprep.subr.bf16.mxu1 %v7474_v43 }
  0x84   :  { %397 = vmatmul.mubr.bf16.gmra.mrb[4].mxu0 %v5929_v44  ;;  %470 = vmatmul.mubr.bf16.gmra.mrb[4].mxu1 %v5929_v44 }
  0x85   :  { %733 = vmatpush1.bf16.msra.mxu0 %v7481_v45  ;;  %774 = vmatpush1.bf16.msra.mxu1 %v7483_v46 }
  0x86   :  { %734 = vmatprep.subr.bf16.mxu0 %v7487_v47  ;;  %775 = vmatprep.subr.bf16.mxu1 %v7491_v48 }
  0x87   :  { %406 = vmatprep.mubr.bf16.mxu0 %v10475_v0  ;;  %479 = vmatprep.mubr.bf16.mxu1 %v10475_v0 }
  0x89   :  { %735 = vmatpush1.bf16.msra.mxu0 %v7493_v49  ;;  %776 = vmatpush1.bf16.msra.mxu1 %v7495_v50 }
  0x8a   :  { %736 = vmatprep.subr.bf16.mxu0 %v7499_v51  ;;  %777 = vmatprep.subr.bf16.mxu1 %v7503_v52 }
  0x8c   :  { %407 = vmatmul.mubr.bf16.gmra.mrb[8].mxu0 %v5942_v53  ;;  %480 = vmatmul.mubr.bf16.gmra.mrb[8].mxu1 %v5942_v53 }
  0x8d   :  { %737 = vmatpush1.bf16.msra.mxu0 %v7510_v54  ;;  %778 = vmatpush1.bf16.msra.mxu1 %v7512_v55 }
  0x8e   :  { %738 = vmatprep.subr.bf16.mxu0 %v7514_v56  ;;  %779 = vmatprep.subr.bf16.mxu1 %v7516_v57 }
  0x8f   :  { %416 = vmatprep.mubr.bf16.mxu0 %v10475_v0  ;;  %489 = vmatprep.mubr.bf16.mxu1 %v10475_v0 }
  0x91   :  { %739 = vmatpush1.bf16.msra.mxu0 %v7522_v58  ;;  %780 = vmatpush1.bf16.msra.mxu1 %v7524_v59 }
  0x92   :  { %740 = vmatprep.subr.bf16.mxu0 %v7526_v60  ;;  %781 = vmatprep.subr.bf16.mxu1 %v7528_v61 }
  0x94   :  { %417 = vmatmul.mubr.bf16.gmra.mrb[12].mxu0 %v5955_v62  ;;  %490 = vmatmul.mubr.bf16.gmra.mrb[12].mxu1 %v5955_v62 }
  0x95   :  { %741 = vmatpush1.bf16.msra.mxu0 %v7539_v63  ;;  %782 = vmatpush1.bf16.msra.mxu1 %v7541_v1 }
  0x96   :  { %742 = vmatprep.subr.bf16.mxu0 %v7543_v2  ;;  %783 = vmatprep.subr.bf16.mxu1 %v7545_v3 }
  0x97   :  { %760 = vmatprep.mubr.bf16.mxu0 %v10475_v0  ;;  %801 = vmatprep.mubr.bf16.mxu1 %v10475_v0 }
  0x99   :  { %743 = vmatpush1.bf16.msra.mxu0 %v7551_v4  ;;  %784 = vmatpush1.bf16.msra.mxu1 %v7553_v5 }
  0x9a   :  { %843 = vmatprep.subr.bf16.mxu0 %v7447_v33  ;;  %884 = vmatprep.subr.bf16.mxu1 %v7449_v34 }
  0x9c   :  { %761 = vmatmul.mubr.bf16.vlgmr.msra.gmra.mrb[16].mxu0 %v10475_v0  ;;  %802 = vmatmul.mubr.bf16.vlgmr.msra.gmra.mrb[16].mxu1 %v10475_v0 }
  0x9d   :  { %844 = vmatpush1.bf16.msra.mxu0 %v7454_v36  ;;  %885 = vmatpush1.bf16.msra.mxu1 %v7456_v37 }
  0x9e   :  { %845 = vmatprep.subr.bf16.mxu0 %v7460_v38  ;;  %886 = vmatprep.subr.bf16.mxu1 %v7462_v39 }
  0x9f   :  { %875 = vmatprep.mubr.bf16.mxu0 %v10475_v0  ;;  %916 = vmatprep.mubr.bf16.mxu1 %v10475_v0 }
  0xa1   :  { %846 = vmatpush1.bf16.msra.mxu0 %v7464_v40  ;;  %887 = vmatpush1.bf16.msra.mxu1 %v7468_v41 }
  0xa2   :  { %847 = vmatprep.subr.bf16.mxu0 %v7472_v42  ;;  %888 = vmatprep.subr.bf16.mxu1 %v7474_v43 }
  0xa5   :  { %848 = vmatpush1.bf16.msra.mxu0 %v7481_v45  ;;  %889 = vmatpush1.bf16.msra.mxu1 %v7483_v46 }
  0xa6   :  { %849 = vmatprep.subr.bf16.mxu0 %v7487_v47  ;;  %890 = vmatprep.subr.bf16.mxu1 %v7491_v48 }
  0xa9   :  { %850 = vmatpush1.bf16.msra.mxu0 %v7493_v49  ;;  %891 = vmatpush1.bf16.msra.mxu1 %v7495_v50 }
  0xaa   :  { %851 = vmatprep.subr.bf16.mxu0 %v7499_v51  ;;  %892 = vmatprep.subr.bf16.mxu1 %v7503_v52 }
  0xad   :  { %852 = vmatpush1.bf16.msra.mxu0 %v7510_v54  ;;  %893 = vmatpush1.bf16.msra.mxu1 %v7512_v55 }
  0xae   :  { %853 = vmatprep.subr.bf16.mxu0 %v7514_v56  ;;  %894 = vmatprep.subr.bf16.mxu1 %v7516_v57 }
  0xb1   :  { %854 = vmatpush1.bf16.msra.mxu0 %v7522_v58  ;;  %895 = vmatpush1.bf16.msra.mxu1 %v7524_v59 }
  0xb2   :  { %855 = vmatprep.subr.bf16.mxu0 %v7526_v60  ;;  %896 = vmatprep.subr.bf16.mxu1 %v7528_v61 }
  0xb5   :  { %856 = vmatpush1.bf16.msra.mxu0 %v7539_v63  ;;  %897 = vmatpush1.bf16.msra.mxu1 %v7541_v1 }
  0xb6   :  { %857 = vmatprep.subr.bf16.mxu0 %v7543_v2  ;;  %898 = vmatprep.subr.bf16.mxu1 %v7545_v3 }
  0xb9   :  { %858 = vmatpush1.bf16.msra.mxu0 %v7551_v4  ;;  %899 = vmatpush1.bf16.msra.mxu1 %v7553_v5 }
  0xba   :  { %1178 = vmatprep.subr.bf16.mxu0 %v7599_v6  ;;  %1219 = vmatprep.subr.bf16.mxu1 %v7601_v7 }
 0x14f   :  { %v7619_v16 = vpop.f32.mrb[0].mxu0  ;;  %v7621_v17 = vpop.f32.mrb[0].mxu1 }
 0x150   :  { %v390_v20 = vpop.f32.mrb[1].mxu0  ;;  %v463_v21 = vpop.f32.mrb[1].mxu1 }
 0x151   :  { %v392_v23 = vpop.f32.mrb[2].mxu0  ;;  %v465_v24 = vpop.f32.mrb[2].mxu1 }
 0x152   :  { %v7628_v25 = vadd.f32 %v392_v23, %v153_v19  ;;  %v394_v26 = vpop.f32.mrb[3].mxu0  ;;  %v7631_v27 = vadd.f32 %v465_v24, %v7617_v15  ;;  %v467_v28 = vpop.f32.mrb[3].mxu1 }
 0x153   :  { %v7633_v29 = vadd.f32 %v394_v26, %v157_v22  ;;  %v7636_v30 = vadd.f32 %v467_v28, %v7624_v18 }
 0x157   :  { %v398_v31 = vpop.f32.mrb[4].mxu0  ;;  %v471_v32 = vpop.f32.mrb[4].mxu1 }
 0x158   :  { %v7638_v33 = vadd.f32 %v398_v31, %v153_v19  ;;  %v400_v34 = vpop.f32.mrb[5].mxu0  ;;  %v7641_v35 = vadd.f32 %v471_v32, %v7617_v15  ;;  %v473_v36 = vpop.f32.mrb[5].mxu1 }
 0x159   :  { %v7643_v37 = vadd.f32 %v400_v34, %v157_v22  ;;  %v402_v38 = vpop.f32.mrb[6].mxu0  ;;  %v7646_v39 = vadd.f32 %v473_v36, %v7624_v18  ;;  %v475_v40 = vpop.f32.mrb[6].mxu1 }
 0x15a   :  { %10839 = vst [vmem:[#allocation22_spill] sm:$0xff] %v7638_v33  ;;  %10840 = vst [vmem:[#allocation23_spill] sm:$0xff] %v7641_v35  ;;  %v7648_v44 = vadd.f32 %v402_v38, %v153_v19  ;;  %v404_v53 = vpop.f32.mrb[7].mxu0  ;;  %v7651_v62 = vadd.f32 %v475_v40, %v7617_v15  ;;  %v477_v8 = vpop.f32.mrb[7].mxu1  ;;  %v7781_v35 = vld [vmem:[#allocation8 + $0xc0] ss:$16 sps:$4 sm:$0xff]  }
 0x15b   :  { %10841 = vst [vmem:[#allocation24_spill] sm:$0xff] %v7643_v37  ;;  %10842 = vst [vmem:[#allocation25_spill] sm:$0xff] %v7646_v39  ;;  %v7653_v9 = vadd.f32 %v404_v53, %v157_v22  ;;  %v7656_v13 = vadd.f32 %v477_v8, %v7624_v18  ;;  %v7775_v39 = vld [vmem:[#allocation8 + $0xc4] ss:$16 sps:$4 sm:$0xff]   ;;  %v7777_v37 = vld [vmem:[#allocation8 + $0xcc] ss:$16 sps:$4 sm:$0xff]  }
 0x15c   :  { %10843 = vst [vmem:[#allocation26_spill] sm:$0xff] %v7648_v44  ;;  %10844 = vst [vmem:[#allocation27_spill] sm:$0xff] %v7651_v62  ;;  %v7783_v33 = vld [vmem:[#allocation8 + $0xc8] ss:$16 sps:$4 sm:$0xff]  }
 0x15d   :  { %10845 = vst [vmem:[#allocation28_spill] sm:$0xff] %v7653_v9  ;;  %10846 = vst [vmem:[#allocation29_spill] sm:$0xff] %v7656_v13 }
 0x15e   :  { %10867 = vst [vmem:[#allocation49_spill] sm:$0xff] %v7775_v39  ;;  %10868 = vst [vmem:[#allocation50_spill] sm:$0xff] %v7777_v37 }
 0x15f   :  { %v408_v23 = vpop.f32.mrb[8].mxu0  ;;  %v481_v24 = vpop.f32.mrb[8].mxu1  ;;  %10869 = vst [vmem:[#allocation51_spill] sm:$0xff] %v7781_v35  ;;  %10870 = vst [vmem:[#allocation52_spill] sm:$0xff] %v7783_v33 }
 0x160   :  { %v7658_v26 = vadd.f32 %v408_v23, %v153_v19  ;;  %v410_v28 = vpop.f32.mrb[9].mxu0  ;;  %v7661_v31 = vadd.f32 %v481_v24, %v7617_v15  ;;  %v483_v32 = vpop.f32.mrb[9].mxu1 }
 0x161   :  { %v7663_v34 = vadd.f32 %v410_v28, %v157_v22  ;;  %v412_v36 = vpop.f32.mrb[10].mxu0  ;;  %v7666_v38 = vadd.f32 %v483_v32, %v7624_v18  ;;  %v485_v40 = vpop.f32.mrb[10].mxu1 }
 0x162   :  { %10847 = vst [vmem:[#allocation30_spill] sm:$0xff] %v7658_v26  ;;  %10848 = vst [vmem:[#allocation31_spill] sm:$0xff] %v7661_v31  ;;  %v7668_v53 = vadd.f32 %v412_v36, %v153_v19  ;;  %v414_v8 = vpop.f32.mrb[11].mxu0  ;;  %v7671_v0 = vadd.f32 %v485_v40, %v7617_v15  ;;  %v487_v23 = vpop.f32.mrb[11].mxu1 }
 0x163   :  { %10849 = vst [vmem:[#allocation32_spill] sm:$0xff] %v7663_v34  ;;  %10850 = vst [vmem:[#allocation33_spill] sm:$0xff] %v7666_v38  ;;  %v7673_v26 = vadd.f32 %v414_v8, %v157_v22  ;;  %v7676_v24 = vadd.f32 %v487_v23, %v7624_v18 }
 0x164   :  { %10851 = vst [vmem:[#allocation34_spill] sm:$0xff] %v7668_v53  ;;  %10852 = vst [vmem:[#allocation35_spill] sm:$0xff] %v7671_v0 }
 0x165   :  { %10853 = vst [vmem:[#allocation36_spill] sm:$0xff] %v7673_v26  ;;  %10854 = vst [vmem:[#allocation37_spill] sm:$0xff] %v7676_v24 }
 0x167   :  { %v418_v31 = vpop.f32.mrb[12].mxu0  ;;  %v491_v28 = vpop.f32.mrb[12].mxu1 }
 0x168   :  { %v7678_v34 = vadd.f32 %v418_v31, %v153_v19  ;;  %v420_v13 = vpop.f32.mrb[13].mxu0  ;;  %v7681_v32 = vadd.f32 %v491_v28, %v7617_v15  ;;  %v493_v36 = vpop.f32.mrb[13].mxu1 }
 0x169   :  { %v7683_v53 = vadd.f32 %v420_v13, %v157_v22  ;;  %v422_v38 = vpop.f32.mrb[14].mxu0  ;;  %v7686_v40 = vadd.f32 %v493_v36, %v7624_v18  ;;  %v495_v8 = vpop.f32.mrb[14].mxu1  ;;  %v389_v13 = vadd.f32 %v7619_v16, %v153_v19  ;;  %v391_v36 = vadd.f32 %v390_v20, %v157_v22 }
 0x16a   :  { %10855 = vst [vmem:[#allocation38_spill] sm:$0xff] %v7678_v34  ;;  %10856 = vst [vmem:[#allocation39_spill] sm:$0xff] %v7681_v32  ;;  %v7688_v26 = vadd.f32 %v422_v38, %v153_v19  ;;  %v424_v23 = vpop.f32.mrb[15].mxu0  ;;  %v7691_v24 = vadd.f32 %v495_v8, %v7617_v15  ;;  %v497_v31 = vpop.f32.mrb[15].mxu1 }
 0x16b   :  { %10857 = vst [vmem:[#allocation40_spill] sm:$0xff] %v7683_v53  ;;  %10858 = vst [vmem:[#allocation41_spill] sm:$0xff] %v7686_v40  ;;  %v7693_v34 = vadd.f32 %v424_v23, %v157_v22  ;;  %v7696_v28 = vadd.f32 %v497_v31, %v7624_v18  ;;  %v462_v53 = vadd.f32 %v7621_v17, %v7617_v15 }
 0x16c   :  { %10859 = vst [vmem:[#allocation42_spill] sm:$0xff] %v7688_v26  ;;  %10860 = vst [vmem:[#allocation43_spill] sm:$0xff] %v7691_v24  ;;  %v464_v40 = vadd.f32 %v463_v21, %v7624_v18 }
 0x16d   :  { %10861 = vst [vmem:[#allocation44_spill] sm:$0xff] %v7693_v34  ;;  %10862 = vst [vmem:[#allocation45_spill] sm:$0xff] %v7696_v28 }
 0x16f   :  { %v762_v38 = vpop.f32.mrb[16].mxu0  ;;  %v803_v26 = vpop.f32.mrb[16].mxu1 }
 0x170   :  { %v810_v32 = vadd.f32 %v762_v38, %v389_v13  ;;  %v812_v0 = vadd.f32 %v803_v26, %v462_v53  ;;  %v764_v8 = vpop.f32.mrb[17].mxu0  ;;  %v805_v24 = vpop.f32.mrb[17].mxu1  ;;  %v7713_v38 = vld [vmem:[#allocation8 + $0x2c] ss:$16 sps:$4 sm:$0xff]  }
 0x171   :  { %v811_v9 = vadd.f32 %v764_v8, %v391_v36  ;;  %v813_v23 = vadd.f32 %v805_v24, %v464_v40  ;;  %v766_v34 = vpop.f32.mrb[18].mxu0  ;;  %v807_v62 = vpop.f32.mrb[18].mxu1  ;;  %v7711_v36 = vld [vmem:[#allocation8 + $0x24] ss:$16 sps:$4 sm:$0xff]   ;;  %v7719_v8 = vld [vmem:[#allocation8 + $0x20] ss:$16 sps:$4 sm:$0xff]  }
 0x172   :  { %v5656_v31 = vmul.f32 -1.442695, %v810_v32  ;;  %v767_v28 = vpop.f32.mrb[19].mxu0  ;;  %v808_v44 = vpop.f32.mrb[19].mxu1 }
 0x173   :  { %v5657_v16 = vmul.f32 -1.442695, %v811_v9  ;;  %v5658_v15 = vmul.f32 -1.442695, %v813_v23  ;;  %v7705_v28 = vld [vmem:[#allocation8] ss:$16 sps:$4 sm:$0xff]  }
 0x174   :  { %6160 = vpow2.f32 %v5656_v31  ;;  %v7721_v23 = vld [vmem:[#allocation8 + $0x28] ss:$16 sps:$4 sm:$0xff]   ;;  %v7725_v31 = vld [vmem:[#allocation8 + $0x44] ss:$16 sps:$4 sm:$0xff]  }
 0x175   :  { %6162 = vpow2.f32 %v5657_v16  ;;  %v7727_v16 = vld [vmem:[#allocation8 + $0x4c] ss:$16 sps:$4 sm:$0xff]  }
 0x176   :  { %6164 = vpow2.f32 %v5658_v15  ;;  %v10863_v15 = vmov 0  }
 0x177   :  { %6166 = vtanh.f32 %v812_v0  ;;  %v7707_v0 = vld [vmem:[#allocation8 + $0x8] ss:$16 sps:$4 sm:$0xff]  }
 0x17e   :  { %v6161_v17 = vpop.eup %6160 }
 0x17f   :  { %v6163_v19 = vpop.eup %6162  ;;  %v817_v18 = vadd.f32 1.0, %v6161_v17  ;;  %v7733_v17 = vld [vmem:[#allocation8 + $0x40] ss:$16 sps:$4 sm:$0xff]  }
 0x180   :  { %v823_v20 = vadd.f32 1.0, %v6163_v19  ;;  %v6165_v21 = vpop.eup %6164  ;;  %v7735_v19 = vld [vmem:[#allocation8 + $0x48] ss:$16 sps:$4 sm:$0xff]  }
 0x181   :  { %6168 = vrcp.f32 %v817_v18  ;;  %v6167_v22 = vpop.eup %6166  ;;  %v830_v53 = vadd.f32 1.0, %v6165_v21  ;;  %v7739_v18 = vld [vmem:[#allocation8 + $0x64] ss:$16 sps:$4 sm:$0xff]   ;;  %v7745_v21 = vld [vmem:[#allocation8 + $0x60] ss:$16 sps:$4 sm:$0xff]  }
 0x182   :  { %6170 = vrcp.f32 %v823_v20  ;;  %v7741_v20 = vld [vmem:[#allocation8 + $0x6c] ss:$16 sps:$4 sm:$0xff]  }
 0x183   :  { %6172 = vrcp.f32 %v830_v53  ;;  %v7759_v53 = vld [vmem:[#allocation8 + $0x88] ss:$16 sps:$4 sm:$0xff]  }
 0x18b   :  { %v6169_v26 = vpop.eup %6168 }
 0x18c   :  { %v6171_v34 = vpop.eup %6170  ;;  %v834_v62 = vmul.f32 %v6169_v26, %v6167_v22  ;;  %v7747_v22 = vld [vmem:[#allocation8 + $0x68] ss:$16 sps:$4 sm:$0xff]   ;;  %v7751_v26 = vld [vmem:[#allocation8 + $0x84] ss:$16 sps:$4 sm:$0xff]  }
 0x18d   :  { %v833_v24 = vmul.f32 0.0, %v6171_v34  ;;  %v6173_v9 = vpop.eup %6172  ;;  %v7753_v34 = vld [vmem:[#allocation8 + $0x8c] ss:$16 sps:$4 sm:$0xff]  }
 0x18f   :  { %v7702_v44 = vadd.f32 %v834_v62, %v833_v24  ;;  %v7757_v62 = vld [vmem:[#allocation8 + $0x80] ss:$16 sps:$4 sm:$0xff]   ;;  %v7763_v24 = vld [vmem:[#allocation8 + $0xa4] ss:$16 sps:$4 sm:$0xff]  }
 0x191   :  { %6174 = vtanh.f32 %v7702_v44 }
 0x19b   :  { %v6175_v32 = vpop.eup %6174 }
 0x19c   :  { %v837_v40 = vmul.f32 %v6175_v32, %v6173_v9  ;;  %v7765_v9 = vld [vmem:[#allocation8 + $0xac] ss:$16 sps:$4 sm:$0xff]   ;;  %v7769_v32 = vld [vmem:[#allocation8 + $0xa0] ss:$16 sps:$4 sm:$0xff]  }
 0x19d   :  { %10864 = vst [vmem:[#allocation46_spill] sm:$0xff] %v7765_v9  ;;  %10865 = vst [vmem:[#allocation47_spill] sm:$0xff] %v7769_v32 }
 0x19e   :  { %v7709_v13 = vpack.c.bf16 %v837_v40, %v837_v40  ;;  %v7771_v40 = vld [vmem:[#allocation8 + $0xa8] ss:$16 sps:$4 sm:$0xff]  }
 0x19f   :  { %10866 = vst [vmem:[#allocation48_spill] sm:$0xff] %v7771_v40 }
 0x1a0   :  { %876 = vmatmul.mubr.bf16.vlgmr.msra.gmra.mrb[20].mxu0 %v7709_v13  ;;  %917 = vmatmul.mubr.bf16.vlgmr.msra.gmra.mrb[20].mxu1 %v7709_v13 }
 0x1a1   :  { %1179 = vmatpush1.bf16.msra.mxu0 %v7705_v28  ;;  %1220 = vmatpush1.bf16.msra.mxu1 %v7707_v0 }
 0x1a2   :  { %1180 = vmatprep.subr.bf16.mxu0 %v7711_v36  ;;  %1221 = vmatprep.subr.bf16.mxu1 %v7713_v38 }
 0x1a3   :  { %1210 = vmatprep.mubr.bf16.mxu0 %v10863_v15  ;;  %1251 = vmatprep.mubr.bf16.mxu1 %v10863_v15 }
 0x1a5   :  { %1181 = vmatpush1.bf16.msra.mxu0 %v7719_v8  ;;  %1222 = vmatpush1.bf16.msra.mxu1 %v7721_v23 }
 0x1a6   :  { %1182 = vmatprep.subr.bf16.mxu0 %v7725_v31  ;;  %1223 = vmatprep.subr.bf16.mxu1 %v7727_v16 }
 0x1a9   :  { %1183 = vmatpush1.bf16.msra.mxu0 %v7733_v17  ;;  %1224 = vmatpush1.bf16.msra.mxu1 %v7735_v19 }
 0x1aa   :  { %1184 = vmatprep.subr.bf16.mxu0 %v7739_v18  ;;  %1225 = vmatprep.subr.bf16.mxu1 %v7741_v20 }
 0x1ad   :  { %1185 = vmatpush1.bf16.msra.mxu0 %v7745_v21  ;;  %1226 = vmatpush1.bf16.msra.mxu1 %v7747_v22 }
 0x1ae   :  { %1186 = vmatprep.subr.bf16.mxu0 %v7751_v26  ;;  %1227 = vmatprep.subr.bf16.mxu1 %v7753_v34 }
 0x1b1   :  { %1187 = vmatpush1.bf16.msra.mxu0 %v7757_v62  ;;  %1228 = vmatpush1.bf16.msra.mxu1 %v7759_v53 }
 0x1b2   :  { %1188 = vmatprep.subr.bf16.mxu0 %v7763_v24  ;;  %1229 = vmatprep.subr.bf16.mxu1 %v7765_v9  ;;  %v7793_v9 = vld [vmem:[#allocation8 + $0xe0] ss:$16 sps:$4 sm:$0xff]  }
 0x1b3   :  { %10873 = vst [vmem:[#allocation55_spill] sm:$0xff] %v7793_v9 }
 0x1b5   :  { %1189 = vmatpush1.bf16.msra.mxu0 %v7769_v32  ;;  %1230 = vmatpush1.bf16.msra.mxu1 %v7771_v40  ;;  %v7795_v32 = vld [vmem:[#allocation8 + $0xe8] ss:$16 sps:$4 sm:$0xff]   ;;  %v7799_v40 = vld [vmem:[#allocation6 + $0x4] ss:$16 sps:$4 sm:$0xff]  }
 0x1b6   :  { %1190 = vmatprep.subr.bf16.mxu0 %v7775_v39  ;;  %1231 = vmatprep.subr.bf16.mxu1 %v7777_v37  ;;  %10874 = vst [vmem:[#allocation56_spill] sm:$0xff] %v7795_v32  ;;  %10875 = vst [vmem:[#allocation57_spill] sm:$0xff] %v7799_v40  ;;  %v7801_v39 = vld [vmem:[#allocation6 + $0xc] ss:$16 sps:$4 sm:$0xff]   ;;  %v7805_v37 = vld [vmem:[#allocation6] ss:$16 sps:$4 sm:$0xff]  }
 0x1b7   :  { %10876 = vst [vmem:[#allocation58_spill] sm:$0xff] %v7801_v39  ;;  %10877 = vst [vmem:[#allocation59_spill] sm:$0xff] %v7805_v37 }
 0x1b9   :  { %1191 = vmatpush1.bf16.msra.mxu0 %v7781_v35  ;;  %1232 = vmatpush1.bf16.msra.mxu1 %v7783_v33  ;;  %v7807_v35 = vld [vmem:[#allocation6 + $0x8] ss:$16 sps:$4 sm:$0xff]   ;;  %v7811_v33 = vld [vmem:[#allocation6 + $0x24] ss:$16 sps:$4 sm:$0xff]  }
 0x1ba   :  { %1192 = vmatprep.subr.bf16.mxu0 %v7787_v10  ;;  %1233 = vmatprep.subr.bf16.mxu1 %v7789_v11  ;;  %10878 = vst [vmem:[#allocation60_spill] sm:$0xff] %v7807_v35  ;;  %10879 = vst [vmem:[#allocation61_spill] sm:$0xff] %v7811_v33  ;;  %v7813_v10 = vld [vmem:[#allocation6 + $0x2c] ss:$16 sps:$4 sm:$0xff]   ;;  %v7845_v11 = vld [vmem:[#allocation6 + $0x60] ss:$16 sps:$4 sm:$0xff]  }
 0x1bb   :  { %10880 = vst [vmem:[#allocation62_spill] sm:$0xff] %v7813_v10  ;;  %10889 = vst [vmem:[#allocation71_spill] sm:$0xff] %v7845_v11 }
 0x1bd   :  { %1193 = vmatpush1.bf16.msra.mxu0 %v7793_v9  ;;  %1234 = vmatpush1.bf16.msra.mxu1 %v7795_v32  ;;  %v7819_v32 = vld [vmem:[#allocation6 + $0x20] ss:$16 sps:$4 sm:$0xff]   ;;  %v7821_v9 = vld [vmem:[#allocation6 + $0x28] ss:$16 sps:$4 sm:$0xff]  }
 0x1be   :  { %1420 = vmatprep.subr.bf16.mxu0 %v7799_v40  ;;  %1461 = vmatprep.subr.bf16.mxu1 %v7801_v39  ;;  %10881 = vst [vmem:[#allocation63_spill] sm:$0xff] %v7819_v32  ;;  %10882 = vst [vmem:[#allocation64_spill] sm:$0xff] %v7821_v9  ;;  %v7825_v39 = vld [vmem:[#allocation6 + $0x44] ss:$16 sps:$4 sm:$0xff]   ;;  %v7827_v40 = vld [vmem:[#allocation6 + $0x4c] ss:$16 sps:$4 sm:$0xff]  }
 0x1bf   :  { %10883 = vst [vmem:[#allocation65_spill] sm:$0xff] %v7825_v39  ;;  %10884 = vst [vmem:[#allocation66_spill] sm:$0xff] %v7827_v40 }
 0x1c0   :  { %1211 = vmatmul.mubr.bf16.vlgmr.msra.gmra.mrb[24].mxu0 %v10863_v15  ;;  %1252 = vmatmul.mubr.bf16.vlgmr.msra.gmra.mrb[24].mxu1 %v10863_v15 }
 0x1c1   :  { %1421 = vmatpush1.bf16.msra.mxu0 %v7805_v37  ;;  %1462 = vmatpush1.bf16.msra.mxu1 %v7807_v35  ;;  %v7833_v35 = vld [vmem:[#allocation6 + $0x40] ss:$16 sps:$4 sm:$0xff]   ;;  %v7835_v37 = vld [vmem:[#allocation6 + $0x48] ss:$16 sps:$4 sm:$0xff]  }
 0x1c2   :  { %1422 = vmatprep.subr.bf16.mxu0 %v7811_v33  ;;  %1463 = vmatprep.subr.bf16.mxu1 %v7813_v10  ;;  %10885 = vst [vmem:[#allocation67_spill] sm:$0xff] %v7833_v35  ;;  %10886 = vst [vmem:[#allocation68_spill] sm:$0xff] %v7835_v37  ;;  %v7839_v10 = vld [vmem:[#allocation6 + $0x64] ss:$16 sps:$4 sm:$0xff]   ;;  %v7841_v33 = vld [vmem:[#allocation6 + $0x6c] ss:$16 sps:$4 sm:$0xff]  }
 0x1c3   :  { %1452 = vmatprep.mubr.bf16.mxu0 %v10863_v15  ;;  %1493 = vmatprep.mubr.bf16.mxu1 %v10863_v15  ;;  %10887 = vst [vmem:[#allocation69_spill] sm:$0xff] %v7839_v10  ;;  %10888 = vst [vmem:[#allocation70_spill] sm:$0xff] %v7841_v33 }
 0x1c5   :  { %1423 = vmatpush1.bf16.msra.mxu0 %v7819_v32  ;;  %1464 = vmatpush1.bf16.msra.mxu1 %v7821_v9  ;;  %v7847_v32 = vld [vmem:[#allocation6 + $0x68] ss:$16 sps:$4 sm:$0xff]   ;;  %v7851_v9 = vld [vmem:[#allocation6 + $0x84] ss:$16 sps:$4 sm:$0xff]  }
 0x1c6   :  { %1424 = vmatprep.subr.bf16.mxu0 %v7825_v39  ;;  %1465 = vmatprep.subr.bf16.mxu1 %v7827_v40  ;;  %10890 = vst [vmem:[#allocation72_spill] sm:$0xff] %v7847_v32  ;;  %10891 = vst [vmem:[#allocation73_spill] sm:$0xff] %v7851_v9  ;;  %v7853_v39 = vld [vmem:[#allocation6 + $0x8c] ss:$16 sps:$4 sm:$0xff]   ;;  %v7857_v40 = vld [vmem:[#allocation6 + $0x80] ss:$16 sps:$4 sm:$0xff]  }
 0x1c7   :  { %10892 = vst [vmem:[#allocation74_spill] sm:$0xff] %v7853_v39  ;;  %10893 = vst [vmem:[#allocation75_spill] sm:$0xff] %v7857_v40 }
 0x1c9   :  { %1425 = vmatpush1.bf16.msra.mxu0 %v7833_v35  ;;  %1466 = vmatpush1.bf16.msra.mxu1 %v7835_v37  ;;  %v7859_v35 = vld [vmem:[#allocation6 + $0x88] ss:$16 sps:$4 sm:$0xff]   ;;  %v7863_v37 = vld [vmem:[#allocation6 + $0xa4] ss:$16 sps:$4 sm:$0xff]  }
 0x1ca   :  { %1426 = vmatprep.subr.bf16.mxu0 %v7839_v10  ;;  %1467 = vmatprep.subr.bf16.mxu1 %v7841_v33  ;;  %10894 = vst [vmem:[#allocation76_spill] sm:$0xff] %v7859_v35  ;;  %10895 = vst [vmem:[#allocation77_spill] sm:$0xff] %v7863_v37  ;;  %v7865_v10 = vld [vmem:[#allocation6 + $0xac] ss:$16 sps:$4 sm:$0xff]   ;;  %v7869_v33 = vld [vmem:[#allocation6 + $0xa0] ss:$16 sps:$4 sm:$0xff]  }
 0x1cb   :  { %10896 = vst [vmem:[#allocation78_spill] sm:$0xff] %v7865_v10  ;;  %10897 = vst [vmem:[#allocation79_spill] sm:$0xff] %v7869_v33 }
 0x1cd   :  { %1427 = vmatpush1.bf16.msra.mxu0 %v7845_v11  ;;  %1468 = vmatpush1.bf16.msra.mxu1 %v7847_v32  ;;  %v7871_v11 = vld [vmem:[#allocation6 + $0xa8] ss:$16 sps:$4 sm:$0xff]   ;;  %v7875_v32 = vld [vmem:[#allocation6 + $0xc4] ss:$16 sps:$4 sm:$0xff]  }
 0x1ce   :  { %1428 = vmatprep.subr.bf16.mxu0 %v7851_v9  ;;  %1469 = vmatprep.subr.bf16.mxu1 %v7853_v39  ;;  %10898 = vst [vmem:[#allocation80_spill] sm:$0xff] %v7875_v32  ;;  %v7877_v9 = vld [vmem:[#allocation6 + $0xcc] ss:$16 sps:$4 sm:$0xff]   ;;  %v7881_v39 = vld [vmem:[#allocation6 + $0xc0] ss:$16 sps:$4 sm:$0xff]  }
 0x1cf   :  { %10899 = vst [vmem:[#allocation81_spill] sm:$0xff] %v7877_v9 }
 0x1d1   :  { %1429 = vmatpush1.bf16.msra.mxu0 %v7857_v40  ;;  %1470 = vmatpush1.bf16.msra.mxu1 %v7859_v35  ;;  %v7883_v40 = vld [vmem:[#allocation6 + $0xc8] ss:$16 sps:$4 sm:$0xff]   ;;  %v7887_v35 = vld [vmem:[#allocation6 + $0xe4] ss:$16 sps:$4 sm:$0xff]  }
 0x1d2   :  { %1430 = vmatprep.subr.bf16.mxu0 %v7863_v37  ;;  %1471 = vmatprep.subr.bf16.mxu1 %v7865_v10  ;;  %10900 = vst [vmem:[#allocation82_spill] sm:$0xff] %v7883_v40  ;;  %v7889_v37 = vld [vmem:[#allocation6 + $0xec] ss:$16 sps:$4 sm:$0xff]   ;;  %v7893_v10 = vld [vmem:[#allocation6 + $0xe0] ss:$16 sps:$4 sm:$0xff]  }
 0x1d3   :  { %10901 = vst [vmem:[#allocation83_spill] sm:$0xff] %v7889_v37 }
 0x1d5   :  { %1431 = vmatpush1.bf16.msra.mxu0 %v7869_v33  ;;  %1472 = vmatpush1.bf16.msra.mxu1 %v7871_v11  ;;  %v7895_v33 = vld [vmem:[#allocation6 + $0xe8] ss:$16 sps:$4 sm:$0xff]  }
 0x1d6   :  { %1432 = vmatprep.subr.bf16.mxu0 %v7875_v32  ;;  %1473 = vmatprep.subr.bf16.mxu1 %v7877_v9  ;;  %10902 = vst [vmem:[#allocation84_spill] sm:$0xff] %v7895_v33  ;;  %v7901_v9 = vld [vmem:[#allocation3 + $0x4] ss:$16 sps:$4 sm:$0xff]   ;;  %v7904_v32 = vld [vmem:[#allocation3 + $0xc] ss:$16 sps:$4 sm:$0xff]  }
 0x1d7   :  { %10903 = vst [vmem:[#allocation85_spill] sm:$0xff] %v7901_v9 }
 0x1d9   :  { %1433 = vmatpush1.bf16.msra.mxu0 %v7881_v39  ;;  %1474 = vmatpush1.bf16.msra.mxu1 %v7883_v40  ;;  %v7909_v40 = vld [vmem:[#allocation3] ss:$16 sps:$4 sm:$0xff]  }
 0x1da   :  { %1434 = vmatprep.subr.bf16.mxu0 %v7887_v35  ;;  %1475 = vmatprep.subr.bf16.mxu1 %v7889_v37  ;;  %v7912_v37 = vld [vmem:[#allocation3 + $0x8] ss:$16 sps:$4 sm:$0xff]  }
 0x1dd   :  { %1435 = vmatpush1.bf16.msra.mxu0 %v7893_v10  ;;  %1476 = vmatpush1.bf16.msra.mxu1 %v7895_v33  ;;  %v7915_v33 = vld [vmem:[#allocation3 + $0x24] ss:$16 sps:$4 sm:$0xff]  }
 0x1de   :  { %1557 = vmatprep.subr.bf16.mxu0 %v7901_v9  ;;  %1598 = vmatprep.subr.bf16.mxu1 %v7904_v32  ;;  %v7918_v9 = vld [vmem:[#allocation3 + $0x2c] ss:$16 sps:$4 sm:$0xff]  }
 0x1e0   :  { %1453 = vmatmul.mubr.bf16.vlgmr.msra.gmra.mrb[28].mxu0 %v7709_v13  ;;  %1494 = vmatmul.mubr.bf16.vlgmr.msra.gmra.mrb[28].mxu1 %v7709_v13  ;;  %v7923_v13 = vld [vmem:[#allocation3 + $0x20] ss:$16 sps:$4 sm:$0xff]  }
 0x1e1   :  { %1558 = vmatpush1.bf16.msra.mxu0 %v7909_v40  ;;  %1599 = vmatpush1.bf16.msra.mxu1 %v7912_v37 }
 0x1e2   :  { %1559 = vmatprep.subr.bf16.mxu0 %v7915_v33  ;;  %1600 = vmatprep.subr.bf16.mxu1 %v7918_v9 }
 0x1e3   :  { %1589 = vmatprep.mubr.bf16.mxu0 %v10863_v15  ;;  %1630 = vmatprep.mubr.bf16.mxu1 %v10863_v15 }
 0x1e5   :  { %1560 = vmatpush1.bf16.msra.mxu0 %v7923_v13  ;;  %1601 = vmatpush1.bf16.msra.mxu1 %v7468_v41 }
 0x1e6   :  { %1561 = vmatprep.subr.bf16.mxu0 %v7472_v42  ;;  %1602 = vmatprep.subr.bf16.mxu1 %v7474_v43 }
 0x1e9   :  { %1562 = vmatpush1.bf16.msra.mxu0 %v7481_v45  ;;  %1603 = vmatpush1.bf16.msra.mxu1 %v7483_v46 }
 0x1ea   :  { %1563 = vmatprep.subr.bf16.mxu0 %v7487_v47  ;;  %1604 = vmatprep.subr.bf16.mxu1 %v7491_v48 }
 0x1ed   :  { %1564 = vmatpush1.bf16.msra.mxu0 %v7493_v49  ;;  %1605 = vmatpush1.bf16.msra.mxu1 %v7495_v50 }
 0x1ee   :  { %1565 = vmatprep.subr.bf16.mxu0 %v7499_v51  ;;  %1606 = vmatprep.subr.bf16.mxu1 %v7503_v52 }
 0x1f1   :  { %1566 = vmatpush1.bf16.msra.mxu0 %v7510_v54  ;;  %1607 = vmatpush1.bf16.msra.mxu1 %v7512_v55 }
 0x1f2   :  { %1567 = vmatprep.subr.bf16.mxu0 %v7514_v56  ;;  %1608 = vmatprep.subr.bf16.mxu1 %v7516_v57 }
 0x1f5   :  { %1568 = vmatpush1.bf16.msra.mxu0 %v7522_v58  ;;  %1609 = vmatpush1.bf16.msra.mxu1 %v7524_v59 }
 0x1f6   :  { %1569 = vmatprep.subr.bf16.mxu0 %v7526_v60  ;;  %1610 = vmatprep.subr.bf16.mxu1 %v7528_v61 }
 0x1f9   :  { %1570 = vmatpush1.bf16.msra.mxu0 %v7539_v63  ;;  %1611 = vmatpush1.bf16.msra.mxu1 %v7541_v1 }
 0x1fa   :  { %1571 = vmatprep.subr.bf16.mxu0 %v7543_v2  ;;  %1612 = vmatprep.subr.bf16.mxu1 %v7545_v3 }
 0x1fd   :  { %1572 = vmatpush1.bf16.msra.mxu0 %v7551_v4  ;;  %1613 = vmatpush1.bf16.msra.mxu1 %v7553_v5 }
 0x1fe   :  { %1668 = vmatprep.subr.bf16.mxu0 %v7599_v6  ;;  %1709 = vmatprep.subr.bf16.mxu1 %v7601_v7 }
 0x273   :  { %v877_v41 = vpop.f32.mrb[20].mxu0  ;;  %v918_v42 = vpop.f32.mrb[20].mxu1 }
 0x274   :  { %v925_v43 = vadd.f32 %v877_v41, %v7628_v25  ;;  %v927_v45 = vadd.f32 %v918_v42, %v7631_v27  ;;  %v879_v46 = vpop.f32.mrb[21].mxu0  ;;  %v920_v47 = vpop.f32.mrb[21].mxu1 }
 0x275   :  { %v926_v48 = vadd.f32 %v879_v46, %v7633_v29  ;;  %v928_v49 = vadd.f32 %v920_v47, %v7636_v30  ;;  %v881_v50 = vpop.f32.mrb[22].mxu0  ;;  %v922_v51 = vpop.f32.mrb[22].mxu1 }
 0x276   :  { %v5659_v52 = vmul.f32 -1.442695, %v925_v43  ;;  %v882_v54 = vpop.f32.mrb[23].mxu0  ;;  %v923_v55 = vpop.f32.mrb[23].mxu1 }
 0x277   :  { %v5660_v56 = vmul.f32 -1.442695, %v926_v48  ;;  %v5661_v57 = vmul.f32 -1.442695, %v928_v49  ;;  %v10905_v54 = vld [vmem:[#allocation21_spill] sm:$0xff] }
 0x278   :  { %6176 = vpow2.f32 %v5659_v52 }
 0x279   :  { %6178 = vpow2.f32 %v5660_v56  ;;  %v10906_v56 = vld [vmem:[#allocation47_spill] sm:$0xff] }
 0x27a   :  { %6180 = vpow2.f32 %v5661_v57  ;;  %v10909_v57 = vld [vmem:[#allocation50_spill] sm:$0xff] }
 0x27b   :  { %6182 = vtanh.f32 %v927_v45 }
 0x282   :  { %v6177_v58 = vpop.eup %6176 }
 0x283   :  { %v6179_v59 = vpop.eup %6178  ;;  %v932_v60 = vadd.f32 1.0, %v6177_v58  ;;  %v10910_v58 = vld [vmem:[#allocation51_spill] sm:$0xff] }
 0x284   :  { %v938_v61 = vadd.f32 1.0, %v6179_v59  ;;  %v6181_v63 = vpop.eup %6180  ;;  %v10911_v59 = vld [vmem:[#allocation52_spill] sm:$0xff] }
 0x285   :  { %6184 = vrcp.f32 %v932_v60  ;;  %v6183_v1 = vpop.eup %6182  ;;  %v945_v5 = vadd.f32 1.0, %v6181_v63  ;;  %v10912_v60 = vld [vmem:[#allocation20_spill] sm:$0xff]  ;;  %v10913_v63 = vld [vmem:[#allocation53_spill] sm:$0xff] }
 0x286   :  { %6186 = vrcp.f32 %v938_v61 }
 0x287   :  { %6188 = vrcp.f32 %v945_v5 }
 0x28f   :  { %v6185_v2 = vpop.eup %6184 }
 0x290   :  { %v6187_v3 = vpop.eup %6186  ;;  %v949_v4 = vmul.f32 %v6185_v2, %v6183_v1  ;;  %v10914_v1 = vld [vmem:[#allocation54_spill] sm:$0xff] }
 0x291   :  { %v948_v6 = vmul.f32 %v6187_v3, %v7702_v44  ;;  %v6189_v46 = vpop.eup %6188  ;;  %v1502_v44 = vld [vmem:[%s10469_s6] sm:$0xf]  ;;  %v10915_v3 = vld [vmem:[#allocation55_spill] sm:$0xff] }
 0x292   :  { %v7999_v55 = vrot.slane %v1502_v44, %v10905_v54  ;;  %v8009_v61 = vrot.slane %v1502_v44, %v10912_v60 }
 0x293   :  { %v7958_v7 = vadd.f32 %v949_v4, %v948_v6  ;;  %v1212_v25 = vpop.f32.mrb[24].mxu0  ;;  %v1253_v27 = vpop.f32.mrb[24].mxu1  ;;  %v10916_v4 = vld [vmem:[#allocation56_spill] sm:$0xff]  ;;  %v10917_v6 = vld [vmem:[#allocation57_spill] sm:$0xff] }
 0x294   :  { %v1214_v29 = vpop.f32.mrb[25].mxu0  ;;  %v1255_v30 = vpop.f32.mrb[25].mxu1 }
 0x295   :  { %v1216_v41 = vpop.f32.mrb[26].mxu0  ;;  %v1257_v42 = vpop.f32.mrb[26].mxu1  ;;  %6190 = vtanh.f32 %v7958_v7 }
 0x296   :  { %v1217_v43 = vpop.f32.mrb[27].mxu0  ;;  %v1258_v45 = vpop.f32.mrb[27].mxu1 }
 0x29f   :  { %v6191_v47 = vpop.eup %6190 }
 0x2a0   :  { %v952_v48 = vmul.f32 %v6191_v47, %v6189_v46 }
 0x2a2   :  { %v7961_v49 = vpack.c.bf16 %v952_v48, %v952_v48 }
 0x2a4   :  { %1590 = vmatmul.mubr.bf16.vlgmr.msra.gmra.mrb[32].mxu0 %v7961_v49  ;;  %1631 = vmatmul.mubr.bf16.vlgmr.msra.gmra.mrb[32].mxu1 %v7961_v49 }
 0x2a5   :  { %1669 = vmatpush1.bf16.msra.mxu0 %v7705_v28  ;;  %1710 = vmatpush1.bf16.msra.mxu1 %v7707_v0  ;;  %v7985_v28 = vrot.slane %v1502_v44, %v7609_v12 }
 0x2a6   :  { %1670 = vmatprep.subr.bf16.mxu0 %v7711_v36  ;;  %1711 = vmatprep.subr.bf16.mxu1 %v7713_v38  ;;  %v7990_v38 = vrot.slane %v1502_v44, %v7614_v14 }
 0x2a7   :  { %1700 = vmatprep.mubr.bf16.mxu0 %v10863_v15  ;;  %1741 = vmatprep.mubr.bf16.mxu1 %v10863_v15 }
 0x2a9   :  { %1671 = vmatpush1.bf16.msra.mxu0 %v7719_v8  ;;  %1712 = vmatpush1.bf16.msra.mxu1 %v7721_v23 }
 0x2aa   :  { %1672 = vmatprep.subr.bf16.mxu0 %v7725_v31  ;;  %1713 = vmatprep.subr.bf16.mxu1 %v7727_v16 }
 0x2ad   :  { %1673 = vmatpush1.bf16.msra.mxu0 %v7733_v17  ;;  %1714 = vmatpush1.bf16.msra.mxu1 %v7735_v19 }
 0x2ae   :  { %1674 = vmatprep.subr.bf16.mxu0 %v7739_v18  ;;  %1715 = vmatprep.subr.bf16.mxu1 %v7741_v20 }
 0x2b1   :  { %1675 = vmatpush1.bf16.msra.mxu0 %v7745_v21  ;;  %1716 = vmatpush1.bf16.msra.mxu1 %v7747_v22 }
 0x2b2   :  { %1676 = vmatprep.subr.bf16.mxu0 %v7751_v26  ;;  %1717 = vmatprep.subr.bf16.mxu1 %v7753_v34  ;;  %v10904_v34 = vld [vmem:[#allocation46_spill] sm:$0xff] }
 0x2b3   :  { %v1454_v0 = vpop.f32.mrb[28].mxu0  ;;  %v1495_v36 = vpop.f32.mrb[28].mxu1 }
 0x2b4   :  { %v1455_v8 = vadd.f32 %v1454_v0, %v1212_v25  ;;  %v1496_v23 = vadd.f32 %v1495_v36, %v1253_v27  ;;  %v1456_v31 = vpop.f32.mrb[29].mxu0  ;;  %v1497_v16 = vpop.f32.mrb[29].mxu1  ;;  %v10918_v25 = vld [vmem:[#allocation58_spill] sm:$0xff] }
 0x2b5   :  { %v1457_v17 = vadd.f32 %v1456_v31, %v1214_v29  ;;  %v1498_v19 = vadd.f32 %v1497_v16, %v1255_v30  ;;  %v1458_v18 = vpop.f32.mrb[30].mxu0  ;;  %v1499_v20 = vpop.f32.mrb[30].mxu1  ;;  %1677 = vmatpush1.bf16.msra.mxu0 %v7757_v62  ;;  %1718 = vmatpush1.bf16.msra.mxu1 %v7759_v53  ;;  %v10907_v62 = vld [vmem:[#allocation48_spill] sm:$0xff]  ;;  %v10908_v53 = vld [vmem:[#allocation49_spill] sm:$0xff]  ;;  %v10919_v16 = vld [vmem:[#allocation59_spill] sm:$0xff] }
 0x2b6   :  { %v1524_v21 = vadd.f32 %v7985_v28, %v1455_v8  ;;  %v1459_v22 = vpop.f32.mrb[31].mxu0  ;;  %v1500_v26 = vpop.f32.mrb[31].mxu1  ;;  %1678 = vmatprep.subr.bf16.mxu0 %v7763_v24  ;;  %1719 = vmatprep.subr.bf16.mxu1 %v10904_v34  ;;  %v1526_v5 = vadd.f32 %v8009_v61, %v1496_v23  ;;  %v10922_v18 = vld [vmem:[#allocation62_spill] sm:$0xff]  ;;  %v10923_v20 = vld [vmem:[#allocation63_spill] sm:$0xff] }
 0x2b7   :  { %v1525_v50 = vadd.f32 %v7990_v38, %v1457_v17  ;;  %v1527_v24 = vadd.f32 %v7999_v55, %v1498_v19  ;;  %v10920_v17 = vld [vmem:[#allocation60_spill] sm:$0xff]  ;;  %v10921_v19 = vld [vmem:[#allocation61_spill] sm:$0xff]  ;;  %v10926_v26 = vld [vmem:[#allocation66_spill] sm:$0xff] }
 0x2b8   :  { %v5726_v51 = vmul.f32 -1.442695, %v1524_v21  ;;  %v10924_v21 = vld [vmem:[#allocation64_spill] sm:$0xff]  ;;  %v10925_v22 = vld [vmem:[#allocation65_spill] sm:$0xff]  ;;  %v10927_v34 = vld [vmem:[#allocation67_spill] sm:$0xff] }
 0x2b9   :  { %v5727_v52 = vmul.f32 -1.442695, %v1525_v50  ;;  %1679 = vmatpush1.bf16.msra.mxu0 %v10906_v56  ;;  %1720 = vmatpush1.bf16.msra.mxu1 %v10907_v62  ;;  %v5728_v2 = vmul.f32 -1.442695, %v1527_v24  ;;  %v10928_v50 = vld [vmem:[#allocation68_spill] sm:$0xff]  ;;  %v10931_v56 = vld [vmem:[#allocation71_spill] sm:$0xff] }
 0x2ba   :  { %6192 = vpow2.f32 %v5726_v51  ;;  %1680 = vmatprep.subr.bf16.mxu0 %v10908_v53  ;;  %1721 = vmatprep.subr.bf16.mxu1 %v10909_v57  ;;  %v10929_v51 = vld [vmem:[#allocation69_spill] sm:$0xff]  ;;  %v10932_v62 = vld [vmem:[#allocation72_spill] sm:$0xff]  ;;  %v10934_v57 = vld [vmem:[#allocation74_spill] sm:$0xff] }
 0x2bb   :  { %6194 = vpow2.f32 %v5727_v52  ;;  %v10930_v52 = vld [vmem:[#allocation70_spill] sm:$0xff]  ;;  %v10933_v53 = vld [vmem:[#allocation73_spill] sm:$0xff]  ;;  %v10935_v24 = vld [vmem:[#allocation75_spill] sm:$0xff] }
 0x2bc   :  { %6196 = vpow2.f32 %v5728_v2  ;;  %v10940_v2 = vld [vmem:[#allocation80_spill] sm:$0xff] }
 0x2bd   :  { %1681 = vmatpush1.bf16.msra.mxu0 %v10910_v58  ;;  %1722 = vmatpush1.bf16.msra.mxu1 %v10911_v59  ;;  %6198 = vtanh.f32 %v1526_v5  ;;  %v10936_v58 = vld [vmem:[#allocation76_spill] sm:$0xff]  ;;  %v10937_v59 = vld [vmem:[#allocation77_spill] sm:$0xff]  ;;  %v10943_v5 = vld [vmem:[#allocation83_spill] sm:$0xff] }
 0x2be   :  { %1682 = vmatprep.subr.bf16.mxu0 %v10913_v63  ;;  %1723 = vmatprep.subr.bf16.mxu1 %v10914_v1  ;;  %v10938_v63 = vld [vmem:[#allocation78_spill] sm:$0xff]  ;;  %v10939_v1 = vld [vmem:[#allocation79_spill] sm:$0xff] }
 0x2c1   :  { %1683 = vmatpush1.bf16.msra.mxu0 %v10915_v3  ;;  %1724 = vmatpush1.bf16.msra.mxu1 %v10916_v4  ;;  %v10941_v3 = vld [vmem:[#allocation81_spill] sm:$0xff]  ;;  %v10942_v4 = vld [vmem:[#allocation82_spill] sm:$0xff] }
 0x2c2   :  { %1750 = vmatprep.subr.bf16.mxu0 %v10917_v6  ;;  %1791 = vmatprep.subr.bf16.mxu1 %v10918_v25  ;;  %v8055_v6 = vld [vmem:[#allocation11 + $0x4] ss:$16 sps:$4 sm:$0xff]   ;;  %v8057_v25 = vld [vmem:[#allocation11 + $0xc] ss:$16 sps:$4 sm:$0xff]  }
 0x2c4   :  { %v6193_v27 = vpop.eup %6192 }
 0x2c5   :  { %v6195_v29 = vpop.eup %6194  ;;  %v1531_v30 = vadd.f32 1.0, %v6193_v27  ;;  %v10944_v27 = vld [vmem:[#allocation84_spill] sm:$0xff] }
 0x2c6   :  { %v1537_v41 = vadd.f32 1.0, %v6195_v29  ;;  %v6197_v42 = vpop.eup %6196  ;;  %v8063_v29 = vld [vmem:[#allocation11 + $0x8] ss:$16 sps:$4 sm:$0xff]  }
 0x2c7   :  { %6200 = vrcp.f32 %v1531_v30  ;;  %v6199_v43 = vpop.eup %6198  ;;  %v1544_v48 = vadd.f32 1.0, %v6197_v42  ;;  %v8077_v30 = vld [vmem:[#allocation11 + $0x28] ss:$16 sps:$4 sm:$0xff]   ;;  %v8083_v42 = vld [vmem:[#allocation11 + $0x4c] ss:$16 sps:$4 sm:$0xff]  }
 0x2c8   :  { %6202 = vrcp.f32 %v1537_v41  ;;  %v8081_v41 = vld [vmem:[#allocation11 + $0x44] ss:$16 sps:$4 sm:$0xff]  }
 0x2c9   :  { %6204 = vrcp.f32 %v1544_v48  ;;  %v8103_v48 = vld [vmem:[#allocation11 + $0x68] ss:$16 sps:$4 sm:$0xff]  }
 0x2d1   :  { %v6201_v45 = vpop.eup %6200 }
 0x2d2   :  { %v6203_v46 = vpop.eup %6202  ;;  %v1548_v47 = vmul.f32 %v6201_v45, %v6199_v43  ;;  %v8091_v43 = vld [vmem:[#allocation11 + $0x48] ss:$16 sps:$4 sm:$0xff]   ;;  %v8095_v45 = vld [vmem:[#allocation11 + $0x64] ss:$16 sps:$4 sm:$0xff]  }
 0x2d3   :  { %v1547_v44 = vmul.f32 0.0, %v6203_v46  ;;  %v6205_v36 = vpop.eup %6204  ;;  %v8097_v46 = vld [vmem:[#allocation11 + $0x6c] ss:$16 sps:$4 sm:$0xff]  }
 0x2d5   :  { %v8018_v0 = vadd.f32 %v1548_v47, %v1547_v44  ;;  %v8101_v47 = vld [vmem:[#allocation11 + $0x60] ss:$16 sps:$4 sm:$0xff]   ;;  %v8107_v44 = vld [vmem:[#allocation11 + $0x84] ss:$16 sps:$4 sm:$0xff]  }
 0x2d7   :  { %6206 = vtanh.f32 %v8018_v0 }
 0x2e1   :  { %v6207_v8 = vpop.eup %6206 }
 0x2e2   :  { %v1551_v23 = vmul.f32 %v6207_v8, %v6205_v36  ;;  %v8109_v36 = vld [vmem:[#allocation11 + $0x8c] ss:$16 sps:$4 sm:$0xff]   ;;  %v8113_v8 = vld [vmem:[#allocation11 + $0x80] ss:$16 sps:$4 sm:$0xff]  }
 0x2e4   :  { %v8021_v31 = vpack.c.bf16 %v1551_v23, %v1551_v23  ;;  %v8115_v23 = vld [vmem:[#allocation11 + $0x88] ss:$16 sps:$4 sm:$0xff]  }
 0x2e6   :  { %1701 = vmatmul.mubr.bf16.vlgmr.msra.gmra.mrb[36].mxu0 %v8021_v31  ;;  %1742 = vmatmul.mubr.bf16.vlgmr.msra.gmra.mrb[36].mxu1 %v8021_v31 }
 0x2e7   :  { %1751 = vmatpush1.bf16.msra.mxu0 %v10919_v16  ;;  %1792 = vmatpush1.bf16.msra.mxu1 %v10920_v17  ;;  %v8119_v16 = vld [vmem:[#allocation11 + $0xa4] ss:$16 sps:$4 sm:$0xff]   ;;  %v8121_v17 = vld [vmem:[#allocation11 + $0xac] ss:$16 sps:$4 sm:$0xff]  }
 0x2e8   :  { %1752 = vmatprep.subr.bf16.mxu0 %v10921_v19  ;;  %1793 = vmatprep.subr.bf16.mxu1 %v10922_v18  ;;  %v8125_v19 = vld [vmem:[#allocation11 + $0xa0] ss:$16 sps:$4 sm:$0xff]   ;;  %v8127_v18 = vld [vmem:[#allocation11 + $0xa8] ss:$16 sps:$4 sm:$0xff]  }
 0x2e9   :  { %1782 = vmatprep.mubr.bf16.mxu0 %v10863_v15  ;;  %1823 = vmatprep.mubr.bf16.mxu1 %v10863_v15 }
 0x2eb   :  { %1753 = vmatpush1.bf16.msra.mxu0 %v10923_v20  ;;  %1794 = vmatpush1.bf16.msra.mxu1 %v10924_v21  ;;  %v8131_v20 = vld [vmem:[#allocation11 + $0xc4] ss:$16 sps:$4 sm:$0xff]   ;;  %v8133_v21 = vld [vmem:[#allocation11 + $0xcc] ss:$16 sps:$4 sm:$0xff]  }
 0x2ec   :  { %1754 = vmatprep.subr.bf16.mxu0 %v10925_v22  ;;  %1795 = vmatprep.subr.bf16.mxu1 %v10926_v26  ;;  %v8137_v22 = vld [vmem:[#allocation11 + $0xc0] ss:$16 sps:$4 sm:$0xff]   ;;  %v8139_v26 = vld [vmem:[#allocation11 + $0xc8] ss:$16 sps:$4 sm:$0xff]  }
 0x2ef   :  { %1755 = vmatpush1.bf16.msra.mxu0 %v10927_v34  ;;  %1796 = vmatpush1.bf16.msra.mxu1 %v10928_v50  ;;  %v8143_v34 = vld [vmem:[#allocation11 + $0xe4] ss:$16 sps:$4 sm:$0xff]   ;;  %v8145_v50 = vld [vmem:[#allocation11 + $0xec] ss:$16 sps:$4 sm:$0xff]  }
 0x2f0   :  { %1756 = vmatprep.subr.bf16.mxu0 %v10929_v51  ;;  %1797 = vmatprep.subr.bf16.mxu1 %v10930_v52  ;;  %v8149_v51 = vld [vmem:[#allocation11 + $0xe0] ss:$16 sps:$4 sm:$0xff]   ;;  %v8151_v52 = vld [vmem:[#allocation11 + $0xe8] ss:$16 sps:$4 sm:$0xff]  }
 0x2f3   :  { %1757 = vmatpush1.bf16.msra.mxu0 %v10931_v56  ;;  %1798 = vmatpush1.bf16.msra.mxu1 %v10932_v62  ;;  %v8155_v56 = vld [vmem:[#allocation9 + $0x4] ss:$16 sps:$4 sm:$0xff]   ;;  %v8157_v62 = vld [vmem:[#allocation9 + $0xc] ss:$16 sps:$4 sm:$0xff]  }
 0x2f4   :  { %1758 = vmatprep.subr.bf16.mxu0 %v10933_v53  ;;  %1799 = vmatprep.subr.bf16.mxu1 %v10934_v57  ;;  %10945 = vst [vmem:[#allocation46_spill] sm:$0xff] %v8155_v56  ;;  %10946 = vst [vmem:[#allocation21_spill] sm:$0xff] %v8157_v62  ;;  %v8161_v53 = vld [vmem:[#allocation9] ss:$16 sps:$4 sm:$0xff]   ;;  %v8163_v57 = vld [vmem:[#allocation9 + $0x8] ss:$16 sps:$4 sm:$0xff]  }
 0x2f5   :  { %10947 = vst [vmem:[#allocation47_spill] sm:$0xff] %v8161_v53  ;;  %10948 = vst [vmem:[#allocation48_spill] sm:$0xff] %v8163_v57 }
 0x2f7   :  { %1759 = vmatpush1.bf16.msra.mxu0 %v10935_v24  ;;  %1800 = vmatpush1.bf16.msra.mxu1 %v10936_v58  ;;  %v8167_v24 = vld [vmem:[#allocation9 + $0x24] ss:$16 sps:$4 sm:$0xff]   ;;  %v8169_v58 = vld [vmem:[#allocation9 + $0x2c] ss:$16 sps:$4 sm:$0xff]  }
 0x2f8   :  { %1760 = vmatprep.subr.bf16.mxu0 %v10937_v59  ;;  %1801 = vmatprep.subr.bf16.mxu1 %v10938_v63  ;;  %10949 = vst [vmem:[#allocation49_spill] sm:$0xff] %v8167_v24  ;;  %10950 = vst [vmem:[#allocation50_spill] sm:$0xff] %v8169_v58  ;;  %v8175_v59 = vld [vmem:[#allocation9 + $0x20] ss:$16 sps:$4 sm:$0xff]   ;;  %v8177_v63 = vld [vmem:[#allocation9 + $0x28] ss:$16 sps:$4 sm:$0xff]  }
 0x2f9   :  { %10951 = vst [vmem:[#allocation51_spill] sm:$0xff] %v8175_v59  ;;  %10952 = vst [vmem:[#allocation52_spill] sm:$0xff] %v8177_v63 }
 0x2fb   :  { %1761 = vmatpush1.bf16.msra.mxu0 %v10939_v1  ;;  %1802 = vmatpush1.bf16.msra.mxu1 %v7871_v11  ;;  %v8061_v11 = vld [vmem:[#allocation11] ss:$16 sps:$4 sm:$0xff]   ;;  %v8181_v1 = vld [vmem:[#allocation9 + $0x44] ss:$16 sps:$4 sm:$0xff]  }
 0x2fc   :  { %1762 = vmatprep.subr.bf16.mxu0 %v10940_v2  ;;  %1803 = vmatprep.subr.bf16.mxu1 %v10941_v3  ;;  %10953 = vst [vmem:[#allocation20_spill] sm:$0xff] %v8181_v1  ;;  %v8183_v2 = vld [vmem:[#allocation9 + $0x4c] ss:$16 sps:$4 sm:$0xff]   ;;  %v8189_v3 = vld [vmem:[#allocation9 + $0x40] ss:$16 sps:$4 sm:$0xff]  }
 0x2fd   :  { %10954 = vst [vmem:[#allocation53_spill] sm:$0xff] %v8183_v2  ;;  %10955 = vst [vmem:[#allocation54_spill] sm:$0xff] %v8189_v3 }
 0x2ff   :  { %1763 = vmatpush1.bf16.msra.mxu0 %v7881_v39  ;;  %1804 = vmatpush1.bf16.msra.mxu1 %v10942_v4  ;;  %v8067_v39 = vld [vmem:[#allocation11 + $0x24] ss:$16 sps:$4 sm:$0xff]   ;;  %v8191_v4 = vld [vmem:[#allocation9 + $0x48] ss:$16 sps:$4 sm:$0xff]  }
 0x300   :  { %1764 = vmatprep.subr.bf16.mxu0 %v7887_v35  ;;  %1805 = vmatprep.subr.bf16.mxu1 %v10943_v5  ;;  %v8069_v35 = vld [vmem:[#allocation11 + $0x2c] ss:$16 sps:$4 sm:$0xff]   ;;  %10956 = vst [vmem:[#allocation55_spill] sm:$0xff] %v8191_v4  ;;  %v8195_v5 = vld [vmem:[#allocation9 + $0x64] ss:$16 sps:$4 sm:$0xff]  }
 0x301   :  { %10957 = vst [vmem:[#allocation56_spill] sm:$0xff] %v8195_v5 }
 0x303   :  { %1765 = vmatpush1.bf16.msra.mxu0 %v7893_v10  ;;  %1806 = vmatpush1.bf16.msra.mxu1 %v10944_v27  ;;  %v8075_v10 = vld [vmem:[#allocation11 + $0x20] ss:$16 sps:$4 sm:$0xff]   ;;  %v8197_v27 = vld [vmem:[#allocation9 + $0x6c] ss:$16 sps:$4 sm:$0xff]  }
 0x304   :  { %2085 = vmatprep.subr.bf16.mxu0 %v8055_v6  ;;  %2126 = vmatprep.subr.bf16.mxu1 %v8057_v25  ;;  %10958 = vst [vmem:[#allocation57_spill] sm:$0xff] %v8197_v27 }
 0x306   :  { %1783 = vmatmul.mubr.bf16.vlgmr.msra.gmra.mrb[40].mxu0 %v7961_v49  ;;  %1824 = vmatmul.mubr.bf16.vlgmr.msra.gmra.mrb[40].mxu1 %v7961_v49  ;;  %v8089_v49 = vld [vmem:[#allocation11 + $0x40] ss:$16 sps:$4 sm:$0xff]  }
 0x307   :  { %2086 = vmatpush1.bf16.msra.mxu0 %v8061_v11  ;;  %2127 = vmatpush1.bf16.msra.mxu1 %v8063_v29 }
 0x308   :  { %2087 = vmatprep.subr.bf16.mxu0 %v8067_v39  ;;  %2128 = vmatprep.subr.bf16.mxu1 %v8069_v35 }
 0x309   :  { %2117 = vmatprep.mubr.bf16.mxu0 %v10863_v15  ;;  %2158 = vmatprep.mubr.bf16.mxu1 %v10863_v15 }
 0x30b   :  { %2088 = vmatpush1.bf16.msra.mxu0 %v8075_v10  ;;  %2129 = vmatpush1.bf16.msra.mxu1 %v8077_v30 }
 0x30c   :  { %2089 = vmatprep.subr.bf16.mxu0 %v8081_v41  ;;  %2130 = vmatprep.subr.bf16.mxu1 %v8083_v42 }
 0x30f   :  { %2090 = vmatpush1.bf16.msra.mxu0 %v8089_v49  ;;  %2131 = vmatpush1.bf16.msra.mxu1 %v8091_v43 }
 0x310   :  { %2091 = vmatprep.subr.bf16.mxu0 %v8095_v45  ;;  %2132 = vmatprep.subr.bf16.mxu1 %v8097_v46 }
 0x313   :  { %2092 = vmatpush1.bf16.msra.mxu0 %v8101_v47  ;;  %2133 = vmatpush1.bf16.msra.mxu1 %v8103_v48 }
 0x314   :  { %2093 = vmatprep.subr.bf16.mxu0 %v8107_v44  ;;  %2134 = vmatprep.subr.bf16.mxu1 %v8109_v36 }
 0x317   :  { %2094 = vmatpush1.bf16.msra.mxu0 %v8113_v8  ;;  %2135 = vmatpush1.bf16.msra.mxu1 %v8115_v23 }
 0x318   :  { %2095 = vmatprep.subr.bf16.mxu0 %v8119_v16  ;;  %2136 = vmatprep.subr.bf16.mxu1 %v8121_v17 }
 0x31b   :  { %2096 = vmatpush1.bf16.msra.mxu0 %v8125_v19  ;;  %2137 = vmatpush1.bf16.msra.mxu1 %v8127_v18 }
 0x31c   :  { %2097 = vmatprep.subr.bf16.mxu0 %v8131_v20  ;;  %2138 = vmatprep.subr.bf16.mxu1 %v8133_v21 }
 0x31f   :  { %2098 = vmatpush1.bf16.msra.mxu0 %v8137_v22  ;;  %2139 = vmatpush1.bf16.msra.mxu1 %v8139_v26 }
 0x320   :  { %2099 = vmatprep.subr.bf16.mxu0 %v8143_v34  ;;  %2140 = vmatprep.subr.bf16.mxu1 %v8145_v50 }
 0x323   :  { %2100 = vmatpush1.bf16.msra.mxu0 %v8149_v51  ;;  %2141 = vmatpush1.bf16.msra.mxu1 %v8151_v52 }
 0x324   :  { %2327 = vmatprep.subr.bf16.mxu0 %v8155_v56  ;;  %2368 = vmatprep.subr.bf16.mxu1 %v8157_v62 }
 0x326   :  { %2118 = vmatmul.mubr.bf16.vlgmr.msra.gmra.mrb[44].mxu0 %v10863_v15  ;;  %2159 = vmatmul.mubr.bf16.vlgmr.msra.gmra.mrb[44].mxu1 %v10863_v15 }
 0x327   :  { %2328 = vmatpush1.bf16.msra.mxu0 %v8161_v53  ;;  %2369 = vmatpush1.bf16.msra.mxu1 %v8163_v57 }
 0x328   :  { %2329 = vmatprep.subr.bf16.mxu0 %v8167_v24  ;;  %2370 = vmatprep.subr.bf16.mxu1 %v8169_v58  ;;  %v8201_v58 = vld [vmem:[#allocation9 + $0x60] ss:$16 sps:$4 sm:$0xff]  }
 0x329   :  { %2359 = vmatprep.mubr.bf16.mxu0 %v10863_v15  ;;  %2400 = vmatprep.mubr.bf16.mxu1 %v10863_v15  ;;  %10959 = vst [vmem:[#allocation58_spill] sm:$0xff] %v8201_v58 }
 0x32b   :  { %2330 = vmatpush1.bf16.msra.mxu0 %v8175_v59  ;;  %2371 = vmatpush1.bf16.msra.mxu1 %v8177_v63  ;;  %v8203_v59 = vld [vmem:[#allocation9 + $0x68] ss:$16 sps:$4 sm:$0xff]   ;;  %v8207_v63 = vld [vmem:[#allocation9 + $0x84] ss:$16 sps:$4 sm:$0xff]  }
 0x32c   :  { %2331 = vmatprep.subr.bf16.mxu0 %v8181_v1  ;;  %2372 = vmatprep.subr.bf16.mxu1 %v8183_v2  ;;  %10960 = vst [vmem:[#allocation59_spill] sm:$0xff] %v8203_v59  ;;  %10961 = vst [vmem:[#allocation60_spill] sm:$0xff] %v8207_v63  ;;  %v8209_v1 = vld [vmem:[#allocation9 + $0x8c] ss:$16 sps:$4 sm:$0xff]   ;;  %v8213_v2 = vld [vmem:[#allocation9 + $0x80] ss:$16 sps:$4 sm:$0xff]  }
 0x32d   :  { %10962 = vst [vmem:[#allocation61_spill] sm:$0xff] %v8209_v1  ;;  %10963 = vst [vmem:[#allocation62_spill] sm:$0xff] %v8213_v2 }
 0x32f   :  { %2332 = vmatpush1.bf16.msra.mxu0 %v8189_v3  ;;  %2373 = vmatpush1.bf16.msra.mxu1 %v8191_v4  ;;  %v8215_v3 = vld [vmem:[#allocation9 + $0x88] ss:$16 sps:$4 sm:$0xff]   ;;  %v8219_v4 = vld [vmem:[#allocation9 + $0xa4] ss:$16 sps:$4 sm:$0xff]  }
 0x330   :  { %2333 = vmatprep.subr.bf16.mxu0 %v8195_v5  ;;  %2374 = vmatprep.subr.bf16.mxu1 %v8197_v27  ;;  %10964 = vst [vmem:[#allocation63_spill] sm:$0xff] %v8215_v3  ;;  %10965 = vst [vmem:[#allocation64_spill] sm:$0xff] %v8219_v4  ;;  %v8221_v5 = vld [vmem:[#allocation9 + $0xac] ss:$16 sps:$4 sm:$0xff]   ;;  %v8225_v27 = vld [vmem:[#allocation9 + $0xa0] ss:$16 sps:$4 sm:$0xff]  }
 0x331   :  { %10966 = vst [vmem:[#allocation65_spill] sm:$0xff] %v8221_v5  ;;  %10967 = vst [vmem:[#allocation66_spill] sm:$0xff] %v8225_v27 }
 0x333   :  { %2334 = vmatpush1.bf16.msra.mxu0 %v8201_v58  ;;  %2375 = vmatpush1.bf16.msra.mxu1 %v8203_v59  ;;  %v8227_v58 = vld [vmem:[#allocation9 + $0xa8] ss:$16 sps:$4 sm:$0xff]   ;;  %v8231_v59 = vld [vmem:[#allocation9 + $0xc4] ss:$16 sps:$4 sm:$0xff]  }
 0x334   :  { %2335 = vmatprep.subr.bf16.mxu0 %v8207_v63  ;;  %2376 = vmatprep.subr.bf16.mxu1 %v8209_v1  ;;  %10968 = vst [vmem:[#allocation67_spill] sm:$0xff] %v8227_v58  ;;  %10969 = vst [vmem:[#allocation68_spill] sm:$0xff] %v8231_v59  ;;  %v8233_v63 = vld [vmem:[#allocation9 + $0xcc] ss:$16 sps:$4 sm:$0xff]   ;;  %v8237_v1 = vld [vmem:[#allocation9 + $0xc0] ss:$16 sps:$4 sm:$0xff]  }
 0x335   :  { %10970 = vst [vmem:[#allocation69_spill] sm:$0xff] %v8233_v63  ;;  %10971 = vst [vmem:[#allocation70_spill] sm:$0xff] %v8237_v1 }
 0x337   :  { %2336 = vmatpush1.bf16.msra.mxu0 %v8213_v2  ;;  %2377 = vmatpush1.bf16.msra.mxu1 %v8215_v3  ;;  %v8239_v2 = vld [vmem:[#allocation9 + $0xc8] ss:$16 sps:$4 sm:$0xff]   ;;  %v8243_v3 = vld [vmem:[#allocation9 + $0xe4] ss:$16 sps:$4 sm:$0xff]  }
 0x338   :  { %2337 = vmatprep.subr.bf16.mxu0 %v8219_v4  ;;  %2378 = vmatprep.subr.bf16.mxu1 %v8221_v5  ;;  %10972 = vst [vmem:[#allocation71_spill] sm:$0xff] %v8239_v2  ;;  %10973 = vst [vmem:[#allocation72_spill] sm:$0xff] %v8243_v3  ;;  %v8245_v4 = vld [vmem:[#allocation9 + $0xec] ss:$16 sps:$4 sm:$0xff]   ;;  %v8249_v5 = vld [vmem:[#allocation9 + $0xe0] ss:$16 sps:$4 sm:$0xff]  }
 0x339   :  { %10974 = vst [vmem:[#allocation73_spill] sm:$0xff] %v8245_v4  ;;  %10975 = vst [vmem:[#allocation74_spill] sm:$0xff] %v8249_v5 }
 0x33b   :  { %2338 = vmatpush1.bf16.msra.mxu0 %v8225_v27  ;;  %2379 = vmatpush1.bf16.msra.mxu1 %v8227_v58  ;;  %v8251_v27 = vld [vmem:[#allocation9 + $0xe8] ss:$16 sps:$4 sm:$0xff]  }
 0x33c   :  { %2339 = vmatprep.subr.bf16.mxu0 %v8231_v59  ;;  %2380 = vmatprep.subr.bf16.mxu1 %v8233_v63  ;;  %10976 = vst [vmem:[#allocation75_spill] sm:$0xff] %v8251_v27  ;;  %v10977_v63 = vld [vmem:[#allocation85_spill] sm:$0xff] }
 0x33f   :  { %2340 = vmatpush1.bf16.msra.mxu0 %v8237_v1  ;;  %2381 = vmatpush1.bf16.msra.mxu1 %v8239_v2  ;;  %v11008_v1 = vld [vmem:[#allocation25_spill] sm:$0xff] }
 0x340   :  { %2341 = vmatprep.subr.bf16.mxu0 %v8243_v3  ;;  %2382 = vmatprep.subr.bf16.mxu1 %v8245_v4  ;;  %v11007_v3 = vld [vmem:[#allocation24_spill] sm:$0xff] }
 0x343   :  { %2342 = vmatpush1.bf16.msra.mxu0 %v8249_v5  ;;  %2383 = vmatpush1.bf16.msra.mxu1 %v8251_v27  ;;  %v11006_v27 = vld [vmem:[#allocation23_spill] sm:$0xff] }
 0x344   :  { %2464 = vmatprep.subr.bf16.mxu0 %v10977_v63  ;;  %2505 = vmatprep.subr.bf16.mxu1 %v7904_v32  ;;  %v8268_v63 = vld [vmem:[#allocation3 + $0x28] ss:$16 sps:$4 sm:$0xff]   ;;  %v8271_v32 = vld [vmem:[#allocation3 + $0x44] ss:$16 sps:$4 sm:$0xff]  }
 0x345   :  { %10978 = vst [vmem:[#allocation76_spill] sm:$0xff] %v8268_v63  ;;  %10979 = vst [vmem:[#allocation77_spill] sm:$0xff] %v8271_v32 }
 0x346   :  { %2360 = vmatmul.mubr.bf16.vlgmr.msra.gmra.mrb[48].mxu0 %v8021_v31  ;;  %2401 = vmatmul.mubr.bf16.vlgmr.msra.gmra.mrb[48].mxu1 %v8021_v31  ;;  %v8289_v31 = vld [vmem:[#allocation3 + $0x60] ss:$16 sps:$4 sm:$0xff]  }
 0x347   :  { %2465 = vmatpush1.bf16.msra.mxu0 %v7909_v40  ;;  %2506 = vmatpush1.bf16.msra.mxu1 %v7912_v37  ;;  %v8274_v40 = vld [vmem:[#allocation3 + $0x4c] ss:$16 sps:$4 sm:$0xff]   ;;  %v8280_v37 = vld [vmem:[#allocation3 + $0x48] ss:$16 sps:$4 sm:$0xff]   ;;  %10985 = vst [vmem:[#allocation83_spill] sm:$0xff] %v8289_v31 }
 0x348   :  { %2466 = vmatprep.subr.bf16.mxu0 %v7915_v33  ;;  %2507 = vmatprep.subr.bf16.mxu1 %v7918_v9  ;;  %10980 = vst [vmem:[#allocation78_spill] sm:$0xff] %v8274_v40  ;;  %v8277_v33 = vld [vmem:[#allocation3 + $0x40] ss:$16 sps:$4 sm:$0xff]   ;;  %10982 = vst [vmem:[#allocation80_spill] sm:$0xff] %v8280_v37  ;;  %v8283_v9 = vld [vmem:[#allocation3 + $0x64] ss:$16 sps:$4 sm:$0xff]  }
 0x349   :  { %2496 = vmatprep.mubr.bf16.mxu0 %v10863_v15  ;;  %2537 = vmatprep.mubr.bf16.mxu1 %v10863_v15  ;;  %10981 = vst [vmem:[#allocation79_spill] sm:$0xff] %v8277_v33  ;;  %10983 = vst [vmem:[#allocation81_spill] sm:$0xff] %v8283_v9 }
 0x34b   :  { %2467 = vmatpush1.bf16.msra.mxu0 %v7923_v13  ;;  %2508 = vmatpush1.bf16.msra.mxu1 %v8268_v63  ;;  %v8286_v13 = vld [vmem:[#allocation3 + $0x6c] ss:$16 sps:$4 sm:$0xff]   ;;  %v11005_v63 = vld [vmem:[#allocation22_spill] sm:$0xff] }
 0x34c   :  { %2468 = vmatprep.subr.bf16.mxu0 %v8271_v32  ;;  %2509 = vmatprep.subr.bf16.mxu1 %v8274_v40  ;;  %10984 = vst [vmem:[#allocation82_spill] sm:$0xff] %v8286_v13  ;;  %v8292_v40 = vld [vmem:[#allocation3 + $0x68] ss:$16 sps:$4 sm:$0xff]  }
 0x34d   :  { %10986 = vst [vmem:[#allocation84_spill] sm:$0xff] %v8292_v40 }
 0x34f   :  { %2469 = vmatpush1.bf16.msra.mxu0 %v8277_v33  ;;  %2510 = vmatpush1.bf16.msra.mxu1 %v8280_v37  ;;  %v8295_v33 = vld [vmem:[#allocation3 + $0x84] ss:$16 sps:$4 sm:$0xff]   ;;  %v8298_v37 = vld [vmem:[#allocation3 + $0x8c] ss:$16 sps:$4 sm:$0xff]  }
 0x350   :  { %2470 = vmatprep.subr.bf16.mxu0 %v8283_v9  ;;  %2511 = vmatprep.subr.bf16.mxu1 %v8286_v13  ;;  %10987 = vst [vmem:[#allocation85_spill] sm:$0xff] %v8295_v33  ;;  %10988 = vst [vmem:[#allocation86_spill] sm:$0xff] %v8298_v37  ;;  %v8301_v9 = vld [vmem:[#allocation3 + $0x80] ss:$16 sps:$4 sm:$0xff]   ;;  %v8304_v13 = vld [vmem:[#allocation3 + $0x88] ss:$16 sps:$4 sm:$0xff]  }
 0x351   :  { %10989 = vst [vmem:[#allocation87_spill] sm:$0xff] %v8301_v9  ;;  %10990 = vst [vmem:[#allocation88_spill] sm:$0xff] %v8304_v13 }
 0x353   :  { %2471 = vmatpush1.bf16.msra.mxu0 %v8289_v31  ;;  %2512 = vmatpush1.bf16.msra.mxu1 %v8292_v40  ;;  %v8307_v31 = vld [vmem:[#allocation3 + $0xa4] ss:$16 sps:$4 sm:$0xff]   ;;  %v8310_v40 = vld [vmem:[#allocation3 + $0xac] ss:$16 sps:$4 sm:$0xff]  }
 0x354   :  { %2472 = vmatprep.subr.bf16.mxu0 %v8295_v33  ;;  %2513 = vmatprep.subr.bf16.mxu1 %v8298_v37  ;;  %10991 = vst [vmem:[#allocation89_spill] sm:$0xff] %v8307_v31  ;;  %10992 = vst [vmem:[#allocation90_spill] sm:$0xff] %v8310_v40  ;;  %v8313_v33 = vld [vmem:[#allocation3 + $0xa0] ss:$16 sps:$4 sm:$0xff]   ;;  %v8316_v37 = vld [vmem:[#allocation3 + $0xa8] ss:$16 sps:$4 sm:$0xff]  }
 0x355   :  { %10993 = vst [vmem:[#allocation91_spill] sm:$0xff] %v8313_v33  ;;  %10994 = vst [vmem:[#allocation92_spill] sm:$0xff] %v8316_v37 }
 0x357   :  { %2473 = vmatpush1.bf16.msra.mxu0 %v8301_v9  ;;  %2514 = vmatpush1.bf16.msra.mxu1 %v8304_v13  ;;  %v8319_v9 = vld [vmem:[#allocation3 + $0xc4] ss:$16 sps:$4 sm:$0xff]   ;;  %v8322_v13 = vld [vmem:[#allocation3 + $0xcc] ss:$16 sps:$4 sm:$0xff]  }
 0x358   :  { %2474 = vmatprep.subr.bf16.mxu0 %v8307_v31  ;;  %2515 = vmatprep.subr.bf16.mxu1 %v8310_v40  ;;  %10995 = vst [vmem:[#allocation93_spill] sm:$0xff] %v8319_v9  ;;  %10996 = vst [vmem:[#allocation94_spill] sm:$0xff] %v8322_v13  ;;  %v8325_v31 = vld [vmem:[#allocation3 + $0xc0] ss:$16 sps:$4 sm:$0xff]   ;;  %v8328_v40 = vld [vmem:[#allocation3 + $0xc8] ss:$16 sps:$4 sm:$0xff]  }
 0x359   :  { %10997 = vst [vmem:[#allocation95_spill] sm:$0xff] %v8325_v31  ;;  %10998 = vst [vmem:[#allocation96_spill] sm:$0xff] %v8328_v40 }
 0x35b   :  { %2475 = vmatpush1.bf16.msra.mxu0 %v8313_v33  ;;  %2516 = vmatpush1.bf16.msra.mxu1 %v8316_v37  ;;  %v8331_v33 = vld [vmem:[#allocation3 + $0xe4] ss:$16 sps:$4 sm:$0xff]   ;;  %v8334_v37 = vld [vmem:[#allocation3 + $0xec] ss:$16 sps:$4 sm:$0xff]  }
 0x35c   :  { %2476 = vmatprep.subr.bf16.mxu0 %v8319_v9  ;;  %2517 = vmatprep.subr.bf16.mxu1 %v8322_v13  ;;  %10999 = vst [vmem:[#allocation97_spill] sm:$0xff] %v8331_v33  ;;  %11000 = vst [vmem:[#allocation98_spill] sm:$0xff] %v8334_v37  ;;  %v8337_v9 = vld [vmem:[#allocation3 + $0xe0] ss:$16 sps:$4 sm:$0xff]   ;;  %v8340_v13 = vld [vmem:[#allocation3 + $0xe8] ss:$16 sps:$4 sm:$0xff]  }
 0x35d   :  { %11001 = vst [vmem:[#allocation99_spill] sm:$0xff] %v8337_v9  ;;  %11002 = vst [vmem:[#allocation100_spill] sm:$0xff] %v8340_v13 }
 0x35f   :  { %2477 = vmatpush1.bf16.msra.mxu0 %v8325_v31  ;;  %2518 = vmatpush1.bf16.msra.mxu1 %v8328_v40  ;;  %v8343_v31 = vld [vmem:[#allocation8 + $0x4] ss:$16 sps:$4 sm:$0xff]   ;;  %v8346_v40 = vld [vmem:[#allocation8 + $0xc] ss:$16 sps:$4 sm:$0xff]  }
 0x360   :  { %2478 = vmatprep.subr.bf16.mxu0 %v8331_v33  ;;  %2519 = vmatprep.subr.bf16.mxu1 %v8334_v37  ;;  %11003 = vst [vmem:[#allocation101_spill] sm:$0xff] %v8343_v31  ;;  %11004 = vst [vmem:[#allocation102_spill] sm:$0xff] %v8346_v40 }
 0x363   :  { %2479 = vmatpush1.bf16.msra.mxu0 %v8337_v9  ;;  %2520 = vmatpush1.bf16.msra.mxu1 %v8340_v13 }
 0x364   :  { %2575 = vmatprep.subr.bf16.mxu0 %v8343_v31  ;;  %2616 = vmatprep.subr.bf16.mxu1 %v8346_v40 }
 0x377   :  { %v1591_v33 = vpop.f32.mrb[32].mxu0  ;;  %v1632_v32 = vpop.f32.mrb[32].mxu1 }
 0x378   :  { %v1639_v37 = vadd.f32 %v1591_v33, %v11005_v63  ;;  %v1641_v5 = vadd.f32 %v1632_v32, %v11006_v27  ;;  %v1593_v4 = vpop.f32.mrb[33].mxu0  ;;  %v1634_v9 = vpop.f32.mrb[33].mxu1  ;;  %v8370_v33 = vld [vmem:[#allocation8 + $0x2c] ss:$16 sps:$4 sm:$0xff]  }
 0x379   :  { %v1640_v2 = vadd.f32 %v1593_v4, %v11007_v3  ;;  %v1642_v13 = vadd.f32 %v1634_v9, %v11008_v1  ;;  %v1595_v59 = vpop.f32.mrb[34].mxu0  ;;  %v1636_v58 = vpop.f32.mrb[34].mxu1  ;;  %11013 = vst [vmem:[#allocation103_spill] sm:$0xff] %v8370_v33  ;;  %v8378_v9 = vld [vmem:[#allocation8 + $0x28] ss:$16 sps:$4 sm:$0xff]  }
 0x37a   :  { %v5729_v24 = vmul.f32 -1.442695, %v1639_v37  ;;  %v1596_v31 = vpop.f32.mrb[35].mxu0  ;;  %v1637_v57 = vpop.f32.mrb[35].mxu1  ;;  %v8375_v37 = vld [vmem:[#allocation8 + $0x20] ss:$16 sps:$4 sm:$0xff]  }
 0x37b   :  { %v5730_v53 = vmul.f32 -1.442695, %v1640_v2  ;;  %v5731_v40 = vmul.f32 -1.442695, %v1642_v13  ;;  %11014 = vst [vmem:[#allocation104_spill] sm:$0xff] %v8375_v37  ;;  %11015 = vst [vmem:[#allocation105_spill] sm:$0xff] %v8378_v9 }
 0x37c   :  { %6208 = vpow2.f32 %v5729_v24  ;;  %v8381_v13 = vld [vmem:[#allocation8 + $0x44] ss:$16 sps:$4 sm:$0xff]   ;;  %v8384_v31 = vld [vmem:[#allocation8 + $0x4c] ss:$16 sps:$4 sm:$0xff]  }
 0x37d   :  { %6210 = vpow2.f32 %v5730_v53  ;;  %11016 = vst [vmem:[#allocation106_spill] sm:$0xff] %v8381_v13  ;;  %11017 = vst [vmem:[#allocation107_spill] sm:$0xff] %v8384_v31 }
 0x37e   :  { %6212 = vpow2.f32 %v5731_v40  ;;  %v8364_v40 = vld [vmem:[#allocation8 + $0x8] ss:$16 sps:$4 sm:$0xff]  }
 0x37f   :  { %6214 = vtanh.f32 %v1641_v5  ;;  %11011 = vst [vmem:[#allocation24_spill] sm:$0xff] %v8364_v40 }
 0x386   :  { %v6209_v62 = vpop.eup %6208 }
 0x387   :  { %v6211_v56 = vpop.eup %6210  ;;  %v1646_v63 = vadd.f32 1.0, %v6209_v62 }
 0x388   :  { %v1652_v27 = vadd.f32 1.0, %v6211_v56  ;;  %v6213_v3 = vpop.eup %6212  ;;  %v8361_v56 = vld [vmem:[#allocation8] ss:$16 sps:$4 sm:$0xff]  }
 0x389   :  { %6216 = vrcp.f32 %v1646_v63  ;;  %v6215_v4 = vpop.eup %6214  ;;  %v1659_v32 = vadd.f32 1.0, %v6213_v3  ;;  %11010 = vst [vmem:[#allocation23_spill] sm:$0xff] %v8361_v56  ;;  %v8387_v63 = vld [vmem:[#allocation8 + $0x40] ss:$16 sps:$4 sm:$0xff]   ;;  %v8393_v3 = vld [vmem:[#allocation8 + $0x64] ss:$16 sps:$4 sm:$0xff]  }
 0x38a   :  { %6218 = vrcp.f32 %v1652_v27  ;;  %11018 = vst [vmem:[#allocation108_spill] sm:$0xff] %v8387_v63  ;;  %v8390_v27 = vld [vmem:[#allocation8 + $0x48] ss:$16 sps:$4 sm:$0xff]   ;;  %11020 = vst [vmem:[#allocation110_spill] sm:$0xff] %v8393_v3 }
 0x38b   :  { %6220 = vrcp.f32 %v1659_v32  ;;  %11019 = vst [vmem:[#allocation109_spill] sm:$0xff] %v8390_v27  ;;  %v8408_v32 = vld [vmem:[#allocation8 + $0x8c] ss:$16 sps:$4 sm:$0xff]  }
 0x38c   :  { %11025 = vst [vmem:[#allocation115_spill] sm:$0xff] %v8408_v32 }
 0x393   :  { %v6217_v1 = vpop.eup %6216 }
 0x394   :  { %v6219_v59 = vpop.eup %6218  ;;  %v1663_v58 = vmul.f32 %v6217_v1, %v6215_v4  ;;  %v8396_v4 = vld [vmem:[#allocation8 + $0x6c] ss:$16 sps:$4 sm:$0xff]   ;;  %v8399_v1 = vld [vmem:[#allocation8 + $0x60] ss:$16 sps:$4 sm:$0xff]  }
 0x395   :  { %v1662_v57 = vmul.f32 %v6219_v59, %v7958_v7  ;;  %v6221_v53 = vpop.eup %6220  ;;  %v8367_v7 = vld [vmem:[#allocation8 + $0x24] ss:$16 sps:$4 sm:$0xff]   ;;  %11021 = vst [vmem:[#allocation111_spill] sm:$0xff] %v8396_v4  ;;  %11022 = vst [vmem:[#allocation112_spill] sm:$0xff] %v8399_v1  ;;  %v8402_v59 = vld [vmem:[#allocation8 + $0x68] ss:$16 sps:$4 sm:$0xff]  }
 0x396   :  { %11012 = vst [vmem:[#allocation25_spill] sm:$0xff] %v8367_v7  ;;  %11023 = vst [vmem:[#allocation113_spill] sm:$0xff] %v8402_v59 }
 0x397   :  { %v8354_v2 = vadd.f32 %v1663_v58, %v1662_v57  ;;  %v8405_v58 = vld [vmem:[#allocation8 + $0x84] ss:$16 sps:$4 sm:$0xff]  }
 0x398   :  { %11024 = vst [vmem:[#allocation114_spill] sm:$0xff] %v8405_v58 }
 0x399   :  { %11009 = vst [vmem:[#allocation22_spill] sm:$0xff] %v8354_v2  ;;  %6222 = vtanh.f32 %v8354_v2 }
 0x3a3   :  { %v6223_v62 = vpop.eup %6222 }
 0x3a4   :  { %v1666_v24 = vmul.f32 %v6223_v62, %v6221_v53  ;;  %v8411_v62 = vld [vmem:[#allocation8 + $0x80] ss:$16 sps:$4 sm:$0xff]  }
 0x3a5   :  { %11026 = vst [vmem:[#allocation116_spill] sm:$0xff] %v8411_v62 }
 0x3a6   :  { %v8357_v5 = vpack.c.bf16 %v1666_v24, %v1666_v24  ;;  %v8414_v24 = vld [vmem:[#allocation8 + $0x88] ss:$16 sps:$4 sm:$0xff]  }
 0x3a7   :  { %11027 = vst [vmem:[#allocation117_spill] sm:$0xff] %v8414_v24 }
 0x3a8   :  { %2497 = vmatmul.mubr.bf16.vlgmr.msra.gmra.mrb[52].mxu0 %v8357_v5  ;;  %2538 = vmatmul.mubr.bf16.vlgmr.msra.gmra.mrb[52].mxu1 %v8357_v5 }
 0x3a9   :  { %2576 = vmatpush1.bf16.msra.mxu0 %v8361_v56  ;;  %2617 = vmatpush1.bf16.msra.mxu1 %v8364_v40 }
 0x3aa   :  { %2577 = vmatprep.subr.bf16.mxu0 %v8367_v7  ;;  %2618 = vmatprep.subr.bf16.mxu1 %v8370_v33 }
 0x3ab   :  { %2607 = vmatprep.mubr.bf16.mxu0 %v10863_v15  ;;  %2648 = vmatprep.mubr.bf16.mxu1 %v10863_v15 }
 0x3ad   :  { %2578 = vmatpush1.bf16.msra.mxu0 %v8375_v37  ;;  %2619 = vmatpush1.bf16.msra.mxu1 %v8378_v9 }
 0x3ae   :  { %2579 = vmatprep.subr.bf16.mxu0 %v8381_v13  ;;  %2620 = vmatprep.subr.bf16.mxu1 %v8384_v31  ;;  %v8423_v31 = vld [vmem:[#allocation8 + $0xa0] ss:$16 sps:$4 sm:$0xff]  }
 0x3af   :  { %11030 = vst [vmem:[#allocation120_spill] sm:$0xff] %v8423_v31 }
 0x3b1   :  { %2580 = vmatpush1.bf16.msra.mxu0 %v8387_v63  ;;  %2621 = vmatpush1.bf16.msra.mxu1 %v8390_v27 }
 0x3b2   :  { %2581 = vmatprep.subr.bf16.mxu0 %v8393_v3  ;;  %2622 = vmatprep.subr.bf16.mxu1 %v8396_v4  ;;  %v8417_v4 = vld [vmem:[#allocation8 + $0xa4] ss:$16 sps:$4 sm:$0xff]  }
 0x3b3   :  { %11028 = vst [vmem:[#allocation118_spill] sm:$0xff] %v8417_v4 }
 0x3b5   :  { %2582 = vmatpush1.bf16.msra.mxu0 %v8399_v1  ;;  %2623 = vmatpush1.bf16.msra.mxu1 %v8402_v59 }
 0x3b6   :  { %2583 = vmatprep.subr.bf16.mxu0 %v8405_v58  ;;  %2624 = vmatprep.subr.bf16.mxu1 %v8408_v32  ;;  %v8420_v58 = vld [vmem:[#allocation8 + $0xac] ss:$16 sps:$4 sm:$0xff]  }
 0x3b7   :  { %11029 = vst [vmem:[#allocation119_spill] sm:$0xff] %v8420_v58 }
 0x3b9   :  { %v1702_v57 = vpop.f32.mrb[36].mxu0  ;;  %v1743_v53 = vpop.f32.mrb[36].mxu1  ;;  %2584 = vmatpush1.bf16.msra.mxu0 %v8411_v62  ;;  %2625 = vmatpush1.bf16.msra.mxu1 %v8414_v24  ;;  %v8426_v62 = vld [vmem:[#allocation8 + $0xa8] ss:$16 sps:$4 sm:$0xff]   ;;  %v8429_v24 = vld [vmem:[#allocation8 + $0xc4] ss:$16 sps:$4 sm:$0xff]  }
 0x3ba   :  { %v1704_v1 = vpop.f32.mrb[37].mxu0  ;;  %v1745_v59 = vpop.f32.mrb[37].mxu1  ;;  %2585 = vmatprep.subr.bf16.mxu0 %v8417_v4  ;;  %2626 = vmatprep.subr.bf16.mxu1 %v8420_v58  ;;  %11031 = vst [vmem:[#allocation121_spill] sm:$0xff] %v8426_v62  ;;  %11032 = vst [vmem:[#allocation122_spill] sm:$0xff] %v8429_v24  ;;  %v8432_v4 = vld [vmem:[#allocation8 + $0xcc] ss:$16 sps:$4 sm:$0xff]  }
 0x3bb   :  { %v1706_v32 = vpop.f32.mrb[38].mxu0  ;;  %v1747_v3 = vpop.f32.mrb[38].mxu1  ;;  %11033 = vst [vmem:[#allocation123_spill] sm:$0xff] %v8432_v4 }
 0x3bc   :  { %v1707_v27 = vpop.f32.mrb[39].mxu0  ;;  %v1748_v63 = vpop.f32.mrb[39].mxu1  ;;  %v8435_v32 = vld [vmem:[#allocation8 + $0xc0] ss:$16 sps:$4 sm:$0xff]   ;;  %v8444_v3 = vld [vmem:[#allocation8 + $0xec] ss:$16 sps:$4 sm:$0xff]  }
 0x3bd   :  { %2586 = vmatpush1.bf16.msra.mxu0 %v8423_v31  ;;  %2627 = vmatpush1.bf16.msra.mxu1 %v8426_v62  ;;  %11034 = vst [vmem:[#allocation124_spill] sm:$0xff] %v8435_v32  ;;  %v8438_v63 = vld [vmem:[#allocation8 + $0xc8] ss:$16 sps:$4 sm:$0xff]   ;;  %v8441_v27 = vld [vmem:[#allocation8 + $0xe4] ss:$16 sps:$4 sm:$0xff]   ;;  %11037 = vst [vmem:[#allocation127_spill] sm:$0xff] %v8444_v3 }
 0x3be   :  { %2587 = vmatprep.subr.bf16.mxu0 %v8429_v24  ;;  %2628 = vmatprep.subr.bf16.mxu1 %v8432_v4  ;;  %11035 = vst [vmem:[#allocation125_spill] sm:$0xff] %v8438_v63  ;;  %11036 = vst [vmem:[#allocation126_spill] sm:$0xff] %v8441_v27  ;;  %v8447_v24 = vld [vmem:[#allocation8 + $0xe0] ss:$16 sps:$4 sm:$0xff]   ;;  %v8450_v4 = vld [vmem:[#allocation8 + $0xe8] ss:$16 sps:$4 sm:$0xff]  }
 0x3bf   :  { %11038 = vst [vmem:[#allocation128_spill] sm:$0xff] %v8447_v24  ;;  %11039 = vst [vmem:[#allocation129_spill] sm:$0xff] %v8450_v4 }
 0x3c1   :  { %2588 = vmatpush1.bf16.msra.mxu0 %v8435_v32  ;;  %2629 = vmatpush1.bf16.msra.mxu1 %v8438_v63  ;;  %v8453_v32 = vld [vmem:[#allocation6 + $0x4] ss:$16 sps:$4 sm:$0xff]   ;;  %v8456_v63 = vld [vmem:[#allocation6 + $0xc] ss:$16 sps:$4 sm:$0xff]  }
 0x3c2   :  { %2589 = vmatprep.subr.bf16.mxu0 %v8441_v27  ;;  %2630 = vmatprep.subr.bf16.mxu1 %v8444_v3  ;;  %11040 = vst [vmem:[#allocation130_spill] sm:$0xff] %v8453_v32  ;;  %11041 = vst [vmem:[#allocation131_spill] sm:$0xff] %v8456_v63 }
 0x3c5   :  { %2590 = vmatpush1.bf16.msra.mxu0 %v8447_v24  ;;  %2631 = vmatpush1.bf16.msra.mxu1 %v8450_v4 }
 0x3c6   :  { %2657 = vmatprep.subr.bf16.mxu0 %v8453_v32  ;;  %2698 = vmatprep.subr.bf16.mxu1 %v8456_v63 }
 0x3d9   :  { %v1784_v27 = vpop.f32.mrb[40].mxu0  ;;  %v1825_v62 = vpop.f32.mrb[40].mxu1 }
 0x3da   :  { %v1785_v31 = vadd.f32 %v1784_v27, %v1702_v57  ;;  %v1826_v3 = vadd.f32 %v1825_v62, %v1743_v53  ;;  %v1786_v58 = vpop.f32.mrb[41].mxu0  ;;  %v1827_v13 = vpop.f32.mrb[41].mxu1 }
 0x3db   :  { %v1787_v9 = vadd.f32 %v1786_v58, %v1704_v1  ;;  %v1828_v24 = vadd.f32 %v1827_v13, %v1745_v59  ;;  %v1788_v37 = vpop.f32.mrb[42].mxu0  ;;  %v1829_v33 = vpop.f32.mrb[42].mxu1 }
 0x3dc   :  { %v1832_v4 = vadd.f32 %v1785_v31, %v7985_v28  ;;  %v1789_v7 = vpop.f32.mrb[43].mxu0  ;;  %v1830_v40 = vpop.f32.mrb[43].mxu1  ;;  %v1834_v53 = vadd.f32 %v1826_v3, %v8009_v61 }
 0x3dd   :  { %v1833_v32 = vadd.f32 %v1787_v9, %v7990_v38  ;;  %v1835_v63 = vadd.f32 %v1828_v24, %v7999_v55 }
 0x3de   :  { %v5732_v56 = vmul.f32 -1.442695, %v1832_v4 }
 0x3df   :  { %v5733_v2 = vmul.f32 -1.442695, %v1833_v32  ;;  %v5734_v57 = vmul.f32 -1.442695, %v1835_v63 }
 0x3e0   :  { %6224 = vpow2.f32 %v5732_v56 }
 0x3e1   :  { %6226 = vpow2.f32 %v5733_v2 }
 0x3e2   :  { %6228 = vpow2.f32 %v5734_v57 }
 0x3e3   :  { %6230 = vtanh.f32 %v1834_v53 }
 0x3ea   :  { %v6225_v62 = vpop.eup %6224 }
 0x3eb   :  { %v6227_v1 = vpop.eup %6226  ;;  %v1839_v13 = vadd.f32 1.0, %v6225_v62 }
 0x3ec   :  { %v1845_v33 = vadd.f32 1.0, %v6227_v1  ;;  %v6229_v40 = vpop.eup %6228 }
 0x3ed   :  { %6232 = vrcp.f32 %v1839_v13  ;;  %v6231_v7 = vpop.eup %6230  ;;  %v1852_v56 = vadd.f32 1.0, %v6229_v40  ;;  %v8477_v40 = vld [vmem:[#allocation6 + $0x24] ss:$16 sps:$4 sm:$0xff]  }
 0x3ee   :  { %6234 = vrcp.f32 %v1845_v33  ;;  %v8474_v33 = vld [vmem:[#allocation6 + $0x8] ss:$16 sps:$4 sm:$0xff]   ;;  %11044 = vst [vmem:[#allocation134_spill] sm:$0xff] %v8477_v40 }
 0x3ef   :  { %6236 = vrcp.f32 %v1852_v56  ;;  %11043 = vst [vmem:[#allocation133_spill] sm:$0xff] %v8474_v33  ;;  %v8494_v56 = vld [vmem:[#allocation6 + $0x4c] ss:$16 sps:$4 sm:$0xff]  }
 0x3f0   :  { %11049 = vst [vmem:[#allocation139_spill] sm:$0xff] %v8494_v56 }
 0x3f7   :  { %v6233_v37 = vpop.eup %6232 }
 0x3f8   :  { %v6235_v9 = vpop.eup %6234  ;;  %v1856_v31 = vmul.f32 %v6233_v37, %v6231_v7  ;;  %v8480_v7 = vld [vmem:[#allocation6 + $0x2c] ss:$16 sps:$4 sm:$0xff]   ;;  %v8485_v37 = vld [vmem:[#allocation6 + $0x20] ss:$16 sps:$4 sm:$0xff]  }
 0x3f9   :  { %v1855_v2 = vmul.f32 %v6235_v9, %v8018_v0  ;;  %v2119_v4 = vpop.f32.mrb[44].mxu0  ;;  %v2160_v59 = vpop.f32.mrb[44].mxu1  ;;  %v8471_v0 = vld [vmem:[#allocation6] ss:$16 sps:$4 sm:$0xff]   ;;  %11045 = vst [vmem:[#allocation135_spill] sm:$0xff] %v8480_v7  ;;  %11046 = vst [vmem:[#allocation136_spill] sm:$0xff] %v8485_v37 }
 0x3fa   :  { %v2121_v58 = vpop.f32.mrb[45].mxu0  ;;  %v2162_v24 = vpop.f32.mrb[45].mxu1  ;;  %11042 = vst [vmem:[#allocation132_spill] sm:$0xff] %v8471_v0  ;;  %v8488_v9 = vld [vmem:[#allocation6 + $0x28] ss:$16 sps:$4 sm:$0xff]  }
 0x3fb   :  { %v8464_v32 = vadd.f32 %v1856_v31, %v1855_v2  ;;  %v2123_v63 = vpop.f32.mrb[46].mxu0  ;;  %v2164_v27 = vpop.f32.mrb[46].mxu1  ;;  %11047 = vst [vmem:[#allocation137_spill] sm:$0xff] %v8488_v9  ;;  %v8491_v31 = vld [vmem:[#allocation6 + $0x44] ss:$16 sps:$4 sm:$0xff]  }
 0x3fc   :  { %v2124_v3 = vpop.f32.mrb[47].mxu0  ;;  %v2165_v57 = vpop.f32.mrb[47].mxu1  ;;  %11048 = vst [vmem:[#allocation138_spill] sm:$0xff] %v8491_v31  ;;  %v8497_v2 = vld [vmem:[#allocation6 + $0x40] ss:$16 sps:$4 sm:$0xff]  }
 0x3fd   :  { %6238 = vtanh.f32 %v8464_v32  ;;  %v6237_v53 = vpop.eup %6236  ;;  %11050 = vst [vmem:[#allocation140_spill] sm:$0xff] %v8497_v2  ;;  %v8500_v63 = vld [vmem:[#allocation6 + $0x48] ss:$16 sps:$4 sm:$0xff]   ;;  %v2409_v27 = vld [vmem:[%s10472_s9] sm:$0xf]  ;;  %s7196_s9 = smov [#allocation13]  }
 0x3fe   :  { %11051 = vst [vmem:[#allocation141_spill] sm:$0xff] %v8500_v63  ;;  %v8506_v3 = vld [vmem:[#allocation6 + $0x64] ss:$16 sps:$4 sm:$0xff]   ;;  %v8509_v57 = vld [vmem:[#allocation6 + $0x6c] ss:$16 sps:$4 sm:$0xff]   ;;  %s5570_s4 = sshll.u32 %s7196_s9, 4  ;;  %s5571_s4 = int_to_ptr.vmem [resolvable:$true] %s5570_s4 }
 0x3ff   :  { %11052 = vst [vmem:[#allocation142_spill] sm:$0xff] %v8506_v3  ;;  %11053 = vst [vmem:[#allocation143_spill] sm:$0xff] %v8509_v57  ;;  %s7134_s18 = scalar_lea.vmem %s5571_s4, 384  ;;  %p7139_p13 = scmp.lt.s32.totalorder %s5571_s4, %s5571_s4 }
 0x400   :  { %p7135_p12 = scmp.ne.s32.totalorder %s5571_s4, %s7134_s18  ;;  %p7140_p0 = scmp.lt.s32.totalorder %s7134_s18, %s7134_s18 }
 0x402   :  { %p7141_p1 = por %p7140_p0, %p7139_p13 }
 0x404   :  { %p7142_p2 = pnand %p7141_p1, %p7135_p12 }
 0x407   :  { %v6239_v62 = vpop.eup %6238 }
 0x408   :  { %v1859_v1 = vmul.f32 %v6239_v62, %v6237_v53  ;;  %v8513_v53 = vrot.slane %v2409_v27, %v7609_v12  ;;  %v8515_v62 = vld [vmem:[#allocation6 + $0x60] ss:$16 sps:$4 sm:$0xff]   ;;  %v8527_v12 = vld [vmem:[#allocation6 + $0x8c] ss:$16 sps:$4 sm:$0xff]  }
 0x409   :  { %11054 = vst [vmem:[#allocation144_spill] sm:$0xff] %v8515_v62  ;;  %11056 = vst [vmem:[#allocation146_spill] sm:$0xff] %v8527_v12 }
 0x40a   :  { %v8467_v13 = vpack.c.bf16 %v1859_v1, %v1859_v1  ;;  %v8518_v1 = vld [vmem:[#allocation6 + $0x68] ss:$16 sps:$4 sm:$0xff]  }
 0x40b   :  { %11055 = vst [vmem:[#allocation145_spill] sm:$0xff] %v8518_v1 }
 0x40c   :  { %2608 = vmatmul.mubr.bf16.vlgmr.msra.gmra.mrb[56].mxu0 %v8467_v13  ;;  %2649 = vmatmul.mubr.bf16.vlgmr.msra.gmra.mrb[56].mxu1 %v8467_v13 }
 0x40d   :  { %2658 = vmatpush1.bf16.msra.mxu0 %v8471_v0  ;;  %2699 = vmatpush1.bf16.msra.mxu1 %v8474_v33 }
 0x40e   :  { %2659 = vmatprep.subr.bf16.mxu0 %v8477_v40  ;;  %2700 = vmatprep.subr.bf16.mxu1 %v8480_v7 }
 0x40f   :  { %2689 = vmatprep.mubr.bf16.mxu0 %v10863_v15  ;;  %2730 = vmatprep.mubr.bf16.mxu1 %v10863_v15 }
 0x411   :  { %2660 = vmatpush1.bf16.msra.mxu0 %v8485_v37  ;;  %2701 = vmatpush1.bf16.msra.mxu1 %v8488_v9  ;;  %v8524_v37 = vld [vmem:[#allocation6 + $0x84] ss:$16 sps:$4 sm:$0xff]  }
 0x412   :  { %2661 = vmatprep.subr.bf16.mxu0 %v8491_v31  ;;  %2702 = vmatprep.subr.bf16.mxu1 %v8494_v56  ;;  %v8522_v56 = vrot.slane %v2409_v27, %v7614_v14 }
 0x415   :  { %2662 = vmatpush1.bf16.msra.mxu0 %v8497_v2  ;;  %2703 = vmatpush1.bf16.msra.mxu1 %v8500_v63 }
 0x416   :  { %2663 = vmatprep.subr.bf16.mxu0 %v8506_v3  ;;  %2704 = vmatprep.subr.bf16.mxu1 %v8509_v57 }
 0x419   :  { %2664 = vmatpush1.bf16.msra.mxu0 %v8515_v62  ;;  %2705 = vmatpush1.bf16.msra.mxu1 %v8518_v1  ;;  %v2361_v63 = vpop.f32.mrb[48].mxu0  ;;  %v2402_v2 = vpop.f32.mrb[48].mxu1 }
 0x41a   :  { %v2362_v3 = vadd.f32 %v2361_v63, %v2119_v4  ;;  %v2403_v31 = vadd.f32 %v2402_v2, %v2160_v59  ;;  %v2363_v9 = vpop.f32.mrb[49].mxu0  ;;  %v2404_v57 = vpop.f32.mrb[49].mxu1  ;;  %2665 = vmatprep.subr.bf16.mxu0 %v8524_v37  ;;  %2706 = vmatprep.subr.bf16.mxu1 %v8527_v12  ;;  %v8532_v59 = vld [vmem:[#allocation6 + $0x80] ss:$16 sps:$4 sm:$0xff]   ;;  %v8535_v2 = vld [vmem:[#allocation6 + $0x88] ss:$16 sps:$4 sm:$0xff]  }
 0x41b   :  { %v2364_v62 = vadd.f32 %v2363_v9, %v2121_v58  ;;  %v2405_v7 = vadd.f32 %v2404_v57, %v2162_v24  ;;  %v2365_v1 = vpop.f32.mrb[50].mxu0  ;;  %v2406_v40 = vpop.f32.mrb[50].mxu1  ;;  %v8538_v12 = vld [vmem:[#allocation6 + $0xa4] ss:$16 sps:$4 sm:$0xff]   ;;  %v8541_v58 = vld [vmem:[#allocation6 + $0xac] ss:$16 sps:$4 sm:$0xff]   ;;  %v8561_v57 = vrot.slane %v2409_v27, %v10912_v60 }
 0x41c   :  { %v2431_v33 = vadd.f32 %v8513_v53, %v2362_v3  ;;  %v2366_v14 = vpop.f32.mrb[51].mxu0  ;;  %v2407_v0 = vpop.f32.mrb[51].mxu1  ;;  %v8547_v40 = vld [vmem:[#allocation6 + $0xa0] ss:$16 sps:$4 sm:$0xff]   ;;  %v8550_v9 = vld [vmem:[#allocation6 + $0xa8] ss:$16 sps:$4 sm:$0xff]  }
 0x41d   :  { %v2432_v4 = vadd.f32 %v8522_v56, %v2364_v62  ;;  %2666 = vmatpush1.bf16.msra.mxu0 %v8532_v59  ;;  %2707 = vmatpush1.bf16.msra.mxu1 %v8535_v2  ;;  %v8545_v0 = vrot.slane %v2409_v27, %v10905_v54  ;;  %v8556_v3 = vld [vmem:[#allocation6 + $0xcc] ss:$16 sps:$4 sm:$0xff]   ;;  %v8563_v62 = vld [vmem:[#allocation6 + $0xc0] ss:$16 sps:$4 sm:$0xff]   ;;  %v8566_v1 = vld [vmem:[#allocation6 + $0xc8] ss:$16 sps:$4 sm:$0xff]   ;;  %v2433_v60 = vadd.f32 %v8561_v57, %v2403_v31 }
 0x41e   :  { %v5799_v63 = vmul.f32 -1.442695, %v2431_v33  ;;  %2667 = vmatprep.subr.bf16.mxu0 %v8538_v12  ;;  %2708 = vmatprep.subr.bf16.mxu1 %v8541_v58  ;;  %v8553_v33 = vld [vmem:[#allocation6 + $0xc4] ss:$16 sps:$4 sm:$0xff]   ;;  %11057 = vst [vmem:[#allocation147_spill] sm:$0xff] %v8566_v1  ;;  %v11080_v31 = vld [vmem:[#allocation65_spill] sm:$0xff] }
 0x41f   :  { %v5800_v24 = vmul.f32 -1.442695, %v2432_v4  ;;  %v2434_v54 = vadd.f32 %v8545_v0, %v2405_v7  ;;  %v8569_v14 = vld [vmem:[#allocation6 + $0xe4] ss:$16 sps:$4 sm:$0xff]   ;;  %v8572_v4 = vld [vmem:[#allocation6 + $0xec] ss:$16 sps:$4 sm:$0xff]  }
 0x420   :  { %6240 = vpow2.f32 %v5799_v63  ;;  %11058 = vst [vmem:[#allocation148_spill] sm:$0xff] %v8569_v14  ;;  %v8576_v27 = vld [vmem:[#allocation6 + $0xe0] ss:$16 sps:$4 sm:$0xff]   ;;  %v8579_v63 = vld [vmem:[#allocation6 + $0xe8] ss:$16 sps:$4 sm:$0xff]  }
 0x421   :  { %6242 = vpow2.f32 %v5800_v24  ;;  %2668 = vmatpush1.bf16.msra.mxu0 %v8547_v40  ;;  %2709 = vmatpush1.bf16.msra.mxu1 %v8550_v9  ;;  %v5801_v7 = vmul.f32 -1.442695, %v2434_v54 }
 0x422   :  { %2669 = vmatprep.subr.bf16.mxu0 %v8553_v33  ;;  %2710 = vmatprep.subr.bf16.mxu1 %v8556_v3 }
 0x423   :  { %6244 = vpow2.f32 %v5801_v7  ;;  %v11083_v7 = vld [vmem:[#allocation68_spill] sm:$0xff] }
 0x424   :  { %6246 = vtanh.f32 %v2433_v60  ;;  %v11084_v60 = vld [vmem:[#allocation69_spill] sm:$0xff] }
 0x425   :  { %2670 = vmatpush1.bf16.msra.mxu0 %v8563_v62  ;;  %2711 = vmatpush1.bf16.msra.mxu1 %v8566_v1 }
 0x426   :  { %2671 = vmatprep.subr.bf16.mxu0 %v8569_v14  ;;  %2712 = vmatprep.subr.bf16.mxu1 %v8572_v4 }
 0x429   :  { %2672 = vmatpush1.bf16.msra.mxu0 %v8576_v27  ;;  %2713 = vmatpush1.bf16.msra.mxu1 %v8579_v63 }
 0x42a   :  { %v6241_v24 = vpop.eup %6240  ;;  %2768 = vmatprep.subr.bf16.mxu0 %v8055_v6  ;;  %2809 = vmatprep.subr.bf16.mxu1 %v8057_v25 }
 0x42b   :  { %v6243_v14 = vpop.eup %6242  ;;  %v2438_v1 = vadd.f32 1.0, %v6241_v24  ;;  %v11085_v24 = vld [vmem:[#allocation70_spill] sm:$0xff] }
 0x42c   :  { %v2444_v54 = vadd.f32 1.0, %v6243_v14  ;;  %2690 = vmatmul.mubr.bf16.vlgmr.msra.gmra.mrb[60].mxu0 %v8357_v5  ;;  %2731 = vmatmul.mubr.bf16.vlgmr.msra.gmra.mrb[60].mxu1 %v8357_v5  ;;  %v11079_v5 = vld [vmem:[#allocation64_spill] sm:$0xff]  ;;  %v11082_v14 = vld [vmem:[#allocation67_spill] sm:$0xff] }
 0x42d   :  { %6248 = vrcp.f32 %v2438_v1  ;;  %2769 = vmatpush1.bf16.msra.mxu0 %v8061_v11  ;;  %2810 = vmatpush1.bf16.msra.mxu1 %v8063_v29  ;;  %v6245_v6 = vpop.eup %6244  ;;  %v11081_v1 = vld [vmem:[#allocation66_spill] sm:$0xff] }
 0x42e   :  { %6250 = vrcp.f32 %v2444_v54  ;;  %2770 = vmatprep.subr.bf16.mxu0 %v8067_v39  ;;  %2811 = vmatprep.subr.bf16.mxu1 %v8069_v35  ;;  %v6247_v25 = vpop.eup %6246  ;;  %v2451_v35 = vadd.f32 1.0, %v6245_v6  ;;  %v11086_v54 = vld [vmem:[#allocation71_spill] sm:$0xff]  ;;  %v11087_v6 = vld [vmem:[#allocation72_spill] sm:$0xff] }
 0x42f   :  { %2800 = vmatprep.mubr.bf16.mxu0 %v10863_v15  ;;  %2841 = vmatprep.mubr.bf16.mxu1 %v10863_v15 }
 0x430   :  { %6252 = vrcp.f32 %v2451_v35  ;;  %v8658_v35 = vld [vmem:[#allocation3 + $0xc] ss:$16 sps:$4 sm:$0xff]  }
 0x431   :  { %2771 = vmatpush1.bf16.msra.mxu0 %v8075_v10  ;;  %2812 = vmatpush1.bf16.msra.mxu1 %v8077_v30 }
 0x432   :  { %2772 = vmatprep.subr.bf16.mxu0 %v8081_v41  ;;  %2813 = vmatprep.subr.bf16.mxu1 %v8083_v42 }
 0x435   :  { %2773 = vmatpush1.bf16.msra.mxu0 %v8089_v49  ;;  %2814 = vmatpush1.bf16.msra.mxu1 %v8091_v43  ;;  %v11059_v43 = vld [vmem:[#allocation46_spill] sm:$0xff] }
 0x436   :  { %2774 = vmatprep.subr.bf16.mxu0 %v8095_v45  ;;  %2815 = vmatprep.subr.bf16.mxu1 %v8097_v46  ;;  %v11060_v45 = vld [vmem:[#allocation21_spill] sm:$0xff] }
 0x437   :  { %v6249_v11 = vpop.eup %6248 }
 0x438   :  { %v6251_v29 = vpop.eup %6250  ;;  %v2455_v39 = vmul.f32 %v6249_v11, %v6247_v25  ;;  %v11088_v25 = vld [vmem:[#allocation73_spill] sm:$0xff]  ;;  %v11089_v11 = vld [vmem:[#allocation74_spill] sm:$0xff] }
 0x439   :  { %v2454_v10 = vmul.f32 0.0, %v6251_v29  ;;  %2775 = vmatpush1.bf16.msra.mxu0 %v8101_v47  ;;  %2816 = vmatpush1.bf16.msra.mxu1 %v8103_v48  ;;  %v11061_v47 = vld [vmem:[#allocation47_spill] sm:$0xff]  ;;  %v11062_v48 = vld [vmem:[#allocation48_spill] sm:$0xff] }
 0x43a   :  { %2776 = vmatprep.subr.bf16.mxu0 %v8107_v44  ;;  %2817 = vmatprep.subr.bf16.mxu1 %v8109_v36  ;;  %v6253_v41 = vpop.eup %6252  ;;  %v11063_v44 = vld [vmem:[#allocation49_spill] sm:$0xff]  ;;  %v11064_v36 = vld [vmem:[#allocation50_spill] sm:$0xff]  ;;  %v11090_v29 = vld [vmem:[#allocation75_spill] sm:$0xff] }
 0x43b   :  { %v8604_v30 = vadd.f32 %v2455_v39, %v2454_v10  ;;  %v8655_v39 = vld [vmem:[#allocation3 + $0x4] ss:$16 sps:$4 sm:$0xff]   ;;  %v8663_v10 = vld [vmem:[#allocation3] ss:$16 sps:$4 sm:$0xff]  }
 0x43d   :  { %6254 = vtanh.f32 %v8604_v30  ;;  %2777 = vmatpush1.bf16.msra.mxu0 %v8113_v8  ;;  %2818 = vmatpush1.bf16.msra.mxu1 %v8115_v23  ;;  %v11065_v8 = vld [vmem:[#allocation51_spill] sm:$0xff]  ;;  %v11066_v23 = vld [vmem:[#allocation52_spill] sm:$0xff] }
 0x43e   :  { %2778 = vmatprep.subr.bf16.mxu0 %v8119_v16  ;;  %2819 = vmatprep.subr.bf16.mxu1 %v8121_v17  ;;  %v11067_v16 = vld [vmem:[#allocation20_spill] sm:$0xff]  ;;  %v11068_v17 = vld [vmem:[#allocation53_spill] sm:$0xff] }
 0x441   :  { %2779 = vmatpush1.bf16.msra.mxu0 %v8125_v19  ;;  %2820 = vmatpush1.bf16.msra.mxu1 %v8127_v18  ;;  %v11069_v19 = vld [vmem:[#allocation54_spill] sm:$0xff]  ;;  %v11070_v18 = vld [vmem:[#allocation55_spill] sm:$0xff] }
 0x442   :  { %2780 = vmatprep.subr.bf16.mxu0 %v8131_v20  ;;  %2821 = vmatprep.subr.bf16.mxu1 %v8133_v21  ;;  %v11071_v20 = vld [vmem:[#allocation56_spill] sm:$0xff]  ;;  %v11072_v21 = vld [vmem:[#allocation57_spill] sm:$0xff] }
 0x445   :  { %2781 = vmatpush1.bf16.msra.mxu0 %v8137_v22  ;;  %2822 = vmatpush1.bf16.msra.mxu1 %v8139_v26  ;;  %v11073_v22 = vld [vmem:[#allocation58_spill] sm:$0xff]  ;;  %v11074_v26 = vld [vmem:[#allocation59_spill] sm:$0xff] }
 0x446   :  { %2782 = vmatprep.subr.bf16.mxu0 %v8143_v34  ;;  %2823 = vmatprep.subr.bf16.mxu1 %v8145_v50  ;;  %v11075_v34 = vld [vmem:[#allocation60_spill] sm:$0xff]  ;;  %v11076_v50 = vld [vmem:[#allocation61_spill] sm:$0xff] }
 0x447   :  { %v6255_v42 = vpop.eup %6254 }
 0x448   :  { %v2458_v49 = vmul.f32 %v6255_v42, %v6253_v41  ;;  %v8666_v41 = vld [vmem:[#allocation3 + $0x8] ss:$16 sps:$4 sm:$0xff]   ;;  %v8669_v42 = vld [vmem:[#allocation3 + $0x24] ss:$16 sps:$4 sm:$0xff]  }
 0x449   :  { %2783 = vmatpush1.bf16.msra.mxu0 %v8149_v51  ;;  %2824 = vmatpush1.bf16.msra.mxu1 %v8151_v52  ;;  %v11077_v51 = vld [vmem:[#allocation62_spill] sm:$0xff]  ;;  %v11078_v52 = vld [vmem:[#allocation63_spill] sm:$0xff] }
 0x44a   :  { %2850 = vmatprep.subr.bf16.mxu0 %v11059_v43  ;;  %2891 = vmatprep.subr.bf16.mxu1 %v11060_v45  ;;  %v2459_v46 = vpack.c.bf16 %v2458_v49, %v2458_v49  ;;  %v8672_v49 = vld [vmem:[#allocation3 + $0x2c] ss:$16 sps:$4 sm:$0xff]   ;;  %v11091_v43 = vld [vmem:[#allocation76_spill] sm:$0xff] }
 0x44b   :  { %v11092_v45 = vld [vmem:[#allocation77_spill] sm:$0xff] }
 0x44c   :  { %2801 = vmatmul.mubr.bf16.vlgmr.msra.gmra.mrb[64].mxu0 %v2459_v46  ;;  %2842 = vmatmul.mubr.bf16.vlgmr.msra.gmra.mrb[64].mxu1 %v2459_v46  ;;  %v11093_v46 = vld [vmem:[#allocation78_spill] sm:$0xff] }
 0x44d   :  { %2851 = vmatpush1.bf16.msra.mxu0 %v11061_v47  ;;  %2892 = vmatpush1.bf16.msra.mxu1 %v11062_v48  ;;  %v11094_v47 = vld [vmem:[#allocation79_spill] sm:$0xff]  ;;  %v11095_v48 = vld [vmem:[#allocation80_spill] sm:$0xff] }
 0x44e   :  { %2852 = vmatprep.subr.bf16.mxu0 %v11063_v44  ;;  %2893 = vmatprep.subr.bf16.mxu1 %v11064_v36  ;;  %v11096_v44 = vld [vmem:[#allocation81_spill] sm:$0xff]  ;;  %v11097_v36 = vld [vmem:[#allocation82_spill] sm:$0xff] }
 0x44f   :  { %2882 = vmatprep.mubr.bf16.mxu0 %v10863_v15  ;;  %2923 = vmatprep.mubr.bf16.mxu1 %v10863_v15 }
 0x451   :  { %2853 = vmatpush1.bf16.msra.mxu0 %v11065_v8  ;;  %2894 = vmatpush1.bf16.msra.mxu1 %v11066_v23  ;;  %v11098_v8 = vld [vmem:[#allocation83_spill] sm:$0xff]  ;;  %v11099_v23 = vld [vmem:[#allocation84_spill] sm:$0xff] }
 0x452   :  { %2854 = vmatprep.subr.bf16.mxu0 %v11067_v16  ;;  %2895 = vmatprep.subr.bf16.mxu1 %v11068_v17  ;;  %v11100_v16 = vld [vmem:[#allocation85_spill] sm:$0xff]  ;;  %v11101_v17 = vld [vmem:[#allocation86_spill] sm:$0xff] }
 0x455   :  { %2855 = vmatpush1.bf16.msra.mxu0 %v11069_v19  ;;  %2896 = vmatpush1.bf16.msra.mxu1 %v11070_v18 }
 0x456   :  { %2856 = vmatprep.subr.bf16.mxu0 %v11071_v20  ;;  %2897 = vmatprep.subr.bf16.mxu1 %v11072_v21  ;;  %v11102_v20 = vld [vmem:[#allocation26_spill] sm:$0xff] }
 0x459   :  { %2857 = vmatpush1.bf16.msra.mxu0 %v11073_v22  ;;  %2898 = vmatpush1.bf16.msra.mxu1 %v11074_v26  ;;  %v11103_v22 = vld [vmem:[#allocation27_spill] sm:$0xff] }
 0x45a   :  { %2858 = vmatprep.subr.bf16.mxu0 %v11075_v34  ;;  %2899 = vmatprep.subr.bf16.mxu1 %v11076_v50 }
 0x45d   :  { %2859 = vmatpush1.bf16.msra.mxu0 %v11077_v51  ;;  %2900 = vmatpush1.bf16.msra.mxu1 %v11078_v52  ;;  %v11104_v51 = vld [vmem:[#allocation28_spill] sm:$0xff] }
 0x45e   :  { %2860 = vmatprep.subr.bf16.mxu0 %v11079_v5  ;;  %2901 = vmatprep.subr.bf16.mxu1 %v11080_v31  ;;  %v11105_v5 = vld [vmem:[#allocation29_spill] sm:$0xff] }
 0x461   :  { %2861 = vmatpush1.bf16.msra.mxu0 %v11081_v1  ;;  %2902 = vmatpush1.bf16.msra.mxu1 %v11082_v14 }
 0x462   :  { %2862 = vmatprep.subr.bf16.mxu0 %v11083_v7  ;;  %2903 = vmatprep.subr.bf16.mxu1 %v11084_v60  ;;  %v11106_v7 = vld [vmem:[#allocation87_spill] sm:$0xff]  ;;  %v11107_v60 = vld [vmem:[#allocation88_spill] sm:$0xff] }
 0x465   :  { %2863 = vmatpush1.bf16.msra.mxu0 %v11085_v24  ;;  %2904 = vmatpush1.bf16.msra.mxu1 %v11086_v54 }
 0x466   :  { %2864 = vmatprep.subr.bf16.mxu0 %v11087_v6  ;;  %2905 = vmatprep.subr.bf16.mxu1 %v11088_v25  ;;  %v11108_v25 = vld [vmem:[#allocation89_spill] sm:$0xff] }
 0x469   :  { %2865 = vmatpush1.bf16.msra.mxu0 %v11089_v11  ;;  %2906 = vmatpush1.bf16.msra.mxu1 %v11090_v29  ;;  %v11109_v11 = vld [vmem:[#allocation90_spill] sm:$0xff] }
 0x46a   :  { %2965 = vmatprep.subr.bf16.mxu0 %v8655_v39  ;;  %3006 = vmatprep.subr.bf16.mxu1 %v8658_v35 }
 0x46c   :  { %2883 = vmatmul.mubr.bf16.vlgmr.msra.gmra.mrb[68].mxu0 %v8467_v13  ;;  %2924 = vmatmul.mubr.bf16.vlgmr.msra.gmra.mrb[68].mxu1 %v8467_v13  ;;  %v8677_v13 = vld [vmem:[#allocation3 + $0x20] ss:$16 sps:$4 sm:$0xff]  }
 0x46d   :  { %2966 = vmatpush1.bf16.msra.mxu0 %v8663_v10  ;;  %3007 = vmatpush1.bf16.msra.mxu1 %v8666_v41 }
 0x46e   :  { %2967 = vmatprep.subr.bf16.mxu0 %v8669_v42  ;;  %3008 = vmatprep.subr.bf16.mxu1 %v8672_v49 }
 0x46f   :  { %2997 = vmatprep.mubr.bf16.mxu0 %v10863_v15  ;;  %3038 = vmatprep.mubr.bf16.mxu1 %v10863_v15 }
 0x471   :  { %2968 = vmatpush1.bf16.msra.mxu0 %v8677_v13  ;;  %3009 = vmatpush1.bf16.msra.mxu1 %v11091_v43  ;;  %v11110_v43 = vld [vmem:[#allocation91_spill] sm:$0xff] }
 0x472   :  { %2969 = vmatprep.subr.bf16.mxu0 %v11092_v45  ;;  %3010 = vmatprep.subr.bf16.mxu1 %v11093_v46  ;;  %v11111_v45 = vld [vmem:[#allocation92_spill] sm:$0xff]  ;;  %v11112_v46 = vld [vmem:[#allocation93_spill] sm:$0xff] }
 0x475   :  { %2970 = vmatpush1.bf16.msra.mxu0 %v11094_v47  ;;  %3011 = vmatpush1.bf16.msra.mxu1 %v11095_v48  ;;  %v11113_v47 = vld [vmem:[#allocation94_spill] sm:$0xff]  ;;  %v11114_v48 = vld [vmem:[#allocation95_spill] sm:$0xff] }
 0x476   :  { %2971 = vmatprep.subr.bf16.mxu0 %v11096_v44  ;;  %3012 = vmatprep.subr.bf16.mxu1 %v11097_v36  ;;  %v11115_v44 = vld [vmem:[#allocation96_spill] sm:$0xff]  ;;  %v11116_v36 = vld [vmem:[#allocation97_spill] sm:$0xff] }
 0x479   :  { %2972 = vmatpush1.bf16.msra.mxu0 %v11098_v8  ;;  %3013 = vmatpush1.bf16.msra.mxu1 %v11099_v23  ;;  %v11117_v8 = vld [vmem:[#allocation98_spill] sm:$0xff] }
 0x47a   :  { %2973 = vmatprep.subr.bf16.mxu0 %v11100_v16  ;;  %3014 = vmatprep.subr.bf16.mxu1 %v11101_v17  ;;  %v11118_v16 = vld [vmem:[#allocation99_spill] sm:$0xff]  ;;  %v11119_v17 = vld [vmem:[#allocation100_spill] sm:$0xff] }
 0x47b   :  { %v2498_v19 = vpop.f32.mrb[52].mxu0  ;;  %v2539_v18 = vpop.f32.mrb[52].mxu1 }
 0x47c   :  { %v2546_v21 = vadd.f32 %v2498_v19, %v11102_v20  ;;  %v2548_v26 = vadd.f32 %v2539_v18, %v11103_v22  ;;  %v2500_v34 = vpop.f32.mrb[53].mxu0  ;;  %v2541_v50 = vpop.f32.mrb[53].mxu1  ;;  %v11120_v18 = vld [vmem:[#allocation101_spill] sm:$0xff]  ;;  %v11121_v20 = vld [vmem:[#allocation102_spill] sm:$0xff] }
 0x47d   :  { %v2547_v52 = vadd.f32 %v2500_v34, %v11104_v51  ;;  %v2549_v31 = vadd.f32 %v2541_v50, %v11105_v5  ;;  %v2502_v1 = vpop.f32.mrb[54].mxu0  ;;  %v2543_v14 = vpop.f32.mrb[54].mxu1  ;;  %2974 = vmatpush1.bf16.msra.mxu0 %v11106_v7  ;;  %3015 = vmatpush1.bf16.msra.mxu1 %v11107_v60 }
 0x47e   :  { %v5802_v24 = vmul.f32 -1.442695, %v2546_v21  ;;  %v2503_v54 = vpop.f32.mrb[55].mxu0  ;;  %v2544_v6 = vpop.f32.mrb[55].mxu1  ;;  %2975 = vmatprep.subr.bf16.mxu0 %v11108_v25  ;;  %3016 = vmatprep.subr.bf16.mxu1 %v11109_v11  ;;  %v11122_v14 = vld [vmem:[#allocation22_spill] sm:$0xff]  ;;  %v11123_v25 = vld [vmem:[#allocation23_spill] sm:$0xff] }
 0x47f   :  { %v5803_v29 = vmul.f32 -1.442695, %v2547_v52  ;;  %v5804_v23 = vmul.f32 -1.442695, %v2549_v31  ;;  %v11124_v11 = vld [vmem:[#allocation24_spill] sm:$0xff] }
 0x480   :  { %6256 = vpow2.f32 %v5802_v24 }
 0x481   :  { %6258 = vpow2.f32 %v5803_v29  ;;  %2976 = vmatpush1.bf16.msra.mxu0 %v11110_v43  ;;  %3017 = vmatpush1.bf16.msra.mxu1 %v11111_v45  ;;  %v11125_v29 = vld [vmem:[#allocation25_spill] sm:$0xff]  ;;  %v11126_v43 = vld [vmem:[#allocation103_spill] sm:$0xff]  ;;  %v11127_v45 = vld [vmem:[#allocation104_spill] sm:$0xff] }
 0x482   :  { %2977 = vmatprep.subr.bf16.mxu0 %v11112_v46  ;;  %3018 = vmatprep.subr.bf16.mxu1 %v11113_v47  ;;  %6260 = vpow2.f32 %v5804_v23  ;;  %v11128_v46 = vld [vmem:[#allocation105_spill] sm:$0xff]  ;;  %v11129_v47 = vld [vmem:[#allocation106_spill] sm:$0xff]  ;;  %v11134_v23 = vld [vmem:[#allocation111_spill] sm:$0xff] }
 0x483   :  { %6262 = vtanh.f32 %v2548_v26 }
 0x485   :  { %2978 = vmatpush1.bf16.msra.mxu0 %v11114_v48  ;;  %3019 = vmatpush1.bf16.msra.mxu1 %v11115_v44  ;;  %v11130_v48 = vld [vmem:[#allocation107_spill] sm:$0xff]  ;;  %v11131_v44 = vld [vmem:[#allocation108_spill] sm:$0xff] }
 0x486   :  { %2979 = vmatprep.subr.bf16.mxu0 %v11116_v36  ;;  %3020 = vmatprep.subr.bf16.mxu1 %v11117_v8  ;;  %v11132_v36 = vld [vmem:[#allocation109_spill] sm:$0xff]  ;;  %v11133_v8 = vld [vmem:[#allocation110_spill] sm:$0xff] }
 0x489   :  { %2980 = vmatpush1.bf16.msra.mxu0 %v11118_v16  ;;  %3021 = vmatpush1.bf16.msra.mxu1 %v11119_v17  ;;  %v11135_v16 = vld [vmem:[#allocation112_spill] sm:$0xff]  ;;  %v11136_v17 = vld [vmem:[#allocation113_spill] sm:$0xff] }
 0x48a   :  { %v6257_v19 = vpop.eup %6256  ;;  %3076 = vmatprep.subr.bf16.mxu0 %v11120_v18  ;;  %3117 = vmatprep.subr.bf16.mxu1 %v11121_v20  ;;  %v11138_v18 = vld [vmem:[#allocation115_spill] sm:$0xff]  ;;  %v11139_v20 = vld [vmem:[#allocation116_spill] sm:$0xff] }
 0x48b   :  { %v6259_v21 = vpop.eup %6258  ;;  %v2553_v22 = vadd.f32 1.0, %v6257_v19  ;;  %v11137_v19 = vld [vmem:[#allocation114_spill] sm:$0xff] }
 0x48c   :  { %v2559_v34 = vadd.f32 1.0, %v6259_v21  ;;  %v6261_v50 = vpop.eup %6260  ;;  %v11140_v21 = vld [vmem:[#allocation117_spill] sm:$0xff] }
 0x48d   :  { %6264 = vrcp.f32 %v2553_v22  ;;  %v6263_v51 = vpop.eup %6262  ;;  %v2566_v1 = vadd.f32 1.0, %v6261_v50  ;;  %v11141_v22 = vld [vmem:[#allocation118_spill] sm:$0xff]  ;;  %v11143_v50 = vld [vmem:[#allocation120_spill] sm:$0xff] }
 0x48e   :  { %6266 = vrcp.f32 %v2559_v34  ;;  %v11142_v34 = vld [vmem:[#allocation119_spill] sm:$0xff] }
 0x48f   :  { %6268 = vrcp.f32 %v2566_v1  ;;  %v11148_v1 = vld [vmem:[#allocation125_spill] sm:$0xff] }
 0x497   :  { %v6265_v52 = vpop.eup %6264 }
 0x498   :  { %v6267_v5 = vpop.eup %6266  ;;  %v2570_v31 = vmul.f32 %v6265_v52, %v6263_v51  ;;  %v11144_v51 = vld [vmem:[#allocation121_spill] sm:$0xff]  ;;  %v11145_v52 = vld [vmem:[#allocation122_spill] sm:$0xff] }
 0x499   :  { %v2569_v7 = vmul.f32 %v6267_v5, %v11122_v14  ;;  %v6269_v24 = vpop.eup %6268  ;;  %v11146_v5 = vld [vmem:[#allocation123_spill] sm:$0xff]  ;;  %v11149_v14 = vld [vmem:[#allocation126_spill] sm:$0xff] }
 0x49b   :  { %v8712_v60 = vadd.f32 %v2570_v31, %v2569_v7  ;;  %v11147_v31 = vld [vmem:[#allocation124_spill] sm:$0xff]  ;;  %v11150_v7 = vld [vmem:[#allocation127_spill] sm:$0xff] }
 0x49d   :  { %6270 = vtanh.f32 %v8712_v60 }
 0x4a7   :  { %v6271_v54 = vpop.eup %6270 }
 0x4a8   :  { %v2573_v6 = vmul.f32 %v6271_v54, %v6269_v24  ;;  %v11151_v24 = vld [vmem:[#allocation128_spill] sm:$0xff]  ;;  %v11152_v54 = vld [vmem:[#allocation129_spill] sm:$0xff] }
 0x4aa   :  { %v8715_v26 = vpack.c.bf16 %v2573_v6, %v2573_v6  ;;  %v11153_v6 = vld [vmem:[#allocation130_spill] sm:$0xff] }
 0x4ac   :  { %2998 = vmatmul.mubr.bf16.vlgmr.msra.gmra.mrb[72].mxu0 %v8715_v26  ;;  %3039 = vmatmul.mubr.bf16.vlgmr.msra.gmra.mrb[72].mxu1 %v8715_v26 }
 0x4ad   :  { %3077 = vmatpush1.bf16.msra.mxu0 %v11123_v25  ;;  %3118 = vmatpush1.bf16.msra.mxu1 %v11124_v11  ;;  %v11154_v25 = vld [vmem:[#allocation131_spill] sm:$0xff] }
 0x4ae   :  { %3078 = vmatprep.subr.bf16.mxu0 %v11125_v29  ;;  %3119 = vmatprep.subr.bf16.mxu1 %v11126_v43 }
 0x4af   :  { %3108 = vmatprep.mubr.bf16.mxu0 %v10863_v15  ;;  %3149 = vmatprep.mubr.bf16.mxu1 %v10863_v15 }
 0x4b1   :  { %3079 = vmatpush1.bf16.msra.mxu0 %v11127_v45  ;;  %3120 = vmatpush1.bf16.msra.mxu1 %v11128_v46 }
 0x4b2   :  { %3080 = vmatprep.subr.bf16.mxu0 %v11129_v47  ;;  %3121 = vmatprep.subr.bf16.mxu1 %v11130_v48 }
 0x4b5   :  { %3081 = vmatpush1.bf16.msra.mxu0 %v11131_v44  ;;  %3122 = vmatpush1.bf16.msra.mxu1 %v11132_v36 }
 0x4b6   :  { %3082 = vmatprep.subr.bf16.mxu0 %v11133_v8  ;;  %3123 = vmatprep.subr.bf16.mxu1 %v11134_v23 }
 0x4b9   :  { %3083 = vmatpush1.bf16.msra.mxu0 %v11135_v16  ;;  %3124 = vmatpush1.bf16.msra.mxu1 %v11136_v17 }
 0x4ba   :  { %3084 = vmatprep.subr.bf16.mxu0 %v11137_v19  ;;  %3125 = vmatprep.subr.bf16.mxu1 %v11138_v18 }
 0x4bd   :  { %3085 = vmatpush1.bf16.msra.mxu0 %v11139_v20  ;;  %3126 = vmatpush1.bf16.msra.mxu1 %v11140_v21 }
 0x4be   :  { %3086 = vmatprep.subr.bf16.mxu0 %v11141_v22  ;;  %3127 = vmatprep.subr.bf16.mxu1 %v11142_v34 }
 0x4c1   :  { %3087 = vmatpush1.bf16.msra.mxu0 %v11143_v50  ;;  %3128 = vmatpush1.bf16.msra.mxu1 %v11144_v51 }
 0x4c2   :  { %3088 = vmatprep.subr.bf16.mxu0 %v11145_v52  ;;  %3129 = vmatprep.subr.bf16.mxu1 %v11146_v5 }
 0x4c5   :  { %3089 = vmatpush1.bf16.msra.mxu0 %v11147_v31  ;;  %3130 = vmatpush1.bf16.msra.mxu1 %v11148_v1 }
 0x4c6   :  { %3090 = vmatprep.subr.bf16.mxu0 %v11149_v14  ;;  %3131 = vmatprep.subr.bf16.mxu1 %v11150_v7 }
 0x4c9   :  { %3091 = vmatpush1.bf16.msra.mxu0 %v11151_v24  ;;  %3132 = vmatpush1.bf16.msra.mxu1 %v11152_v54 }
 0x4ca   :  { %3158 = vmatprep.subr.bf16.mxu0 %v11153_v6  ;;  %3199 = vmatprep.subr.bf16.mxu1 %v11154_v25 }
 0x4df   :  { %v2609_v11 = vpop.f32.mrb[56].mxu0  ;;  %v2650_v29 = vpop.f32.mrb[56].mxu1 }
 0x4e0   :  { %v2611_v43 = vpop.f32.mrb[57].mxu0  ;;  %v2652_v45 = vpop.f32.mrb[57].mxu1 }
 0x4e1   :  { %v2613_v46 = vpop.f32.mrb[58].mxu0  ;;  %v2654_v47 = vpop.f32.mrb[58].mxu1 }
 0x4e2   :  { %v2614_v48 = vpop.f32.mrb[59].mxu0  ;;  %v2655_v44 = vpop.f32.mrb[59].mxu1 }
 0x4ff   :  { %v2691_v36 = vpop.f32.mrb[60].mxu0  ;;  %v2732_v8 = vpop.f32.mrb[60].mxu1 }
 0x500   :  { %v2692_v23 = vadd.f32 %v2691_v36, %v2609_v11  ;;  %v2733_v16 = vadd.f32 %v2732_v8, %v2650_v29  ;;  %v2693_v17 = vpop.f32.mrb[61].mxu0  ;;  %v2734_v19 = vpop.f32.mrb[61].mxu1 }
 0x501   :  { %v2694_v18 = vadd.f32 %v2693_v17, %v2611_v43  ;;  %v2735_v20 = vadd.f32 %v2734_v19, %v2652_v45  ;;  %v2695_v21 = vpop.f32.mrb[62].mxu0  ;;  %v2736_v22 = vpop.f32.mrb[62].mxu1 }
 0x502   :  { %v2739_v34 = vadd.f32 %v2692_v23, %v7985_v28  ;;  %v2696_v50 = vpop.f32.mrb[63].mxu0  ;;  %v2737_v51 = vpop.f32.mrb[63].mxu1  ;;  %v2741_v7 = vadd.f32 %v2733_v16, %v8009_v61 }
 0x503   :  { %v2740_v52 = vadd.f32 %v2694_v18, %v7990_v38  ;;  %v2742_v1 = vadd.f32 %v2735_v20, %v7999_v55  ;;  %v11156_v51 = vld [vmem:[#allocation133_spill] sm:$0xff] }
 0x504   :  { %v5805_v5 = vmul.f32 -1.442695, %v2739_v34 }
 0x505   :  { %v5806_v31 = vmul.f32 -1.442695, %v2740_v52  ;;  %v5807_v14 = vmul.f32 -1.442695, %v2742_v1  ;;  %v11157_v52 = vld [vmem:[#allocation134_spill] sm:$0xff]  ;;  %v11160_v1 = vld [vmem:[#allocation137_spill] sm:$0xff] }
 0x506   :  { %6272 = vpow2.f32 %v5805_v5  ;;  %v11158_v5 = vld [vmem:[#allocation135_spill] sm:$0xff] }
 0x507   :  { %6274 = vpow2.f32 %v5806_v31  ;;  %v11159_v31 = vld [vmem:[#allocation136_spill] sm:$0xff] }
 0x508   :  { %6276 = vpow2.f32 %v5807_v14  ;;  %v11161_v14 = vld [vmem:[#allocation138_spill] sm:$0xff] }
 0x509   :  { %6278 = vtanh.f32 %v2741_v7  ;;  %v11162_v7 = vld [vmem:[#allocation139_spill] sm:$0xff] }
 0x510   :  { %v6273_v24 = vpop.eup %6272 }
 0x511   :  { %v6275_v54 = vpop.eup %6274  ;;  %v2746_v6 = vadd.f32 1.0, %v6273_v24  ;;  %v11163_v24 = vld [vmem:[#allocation140_spill] sm:$0xff] }
 0x512   :  { %v2752_v25 = vadd.f32 1.0, %v6275_v54  ;;  %v6277_v11 = vpop.eup %6276  ;;  %v11164_v54 = vld [vmem:[#allocation141_spill] sm:$0xff] }
 0x513   :  { %6280 = vrcp.f32 %v2746_v6  ;;  %v6279_v29 = vpop.eup %6278  ;;  %v2759_v47 = vadd.f32 1.0, %v6277_v11  ;;  %v11165_v6 = vld [vmem:[#allocation142_spill] sm:$0xff]  ;;  %v11167_v11 = vld [vmem:[#allocation144_spill] sm:$0xff] }
 0x514   :  { %6282 = vrcp.f32 %v2752_v25  ;;  %v11166_v25 = vld [vmem:[#allocation143_spill] sm:$0xff] }
 0x515   :  { %6284 = vrcp.f32 %v2759_v47 }
 0x51d   :  { %v6281_v43 = vpop.eup %6280 }
 0x51e   :  { %v6283_v45 = vpop.eup %6282  ;;  %v2763_v46 = vmul.f32 %v6281_v43, %v6279_v29  ;;  %v11168_v29 = vld [vmem:[#allocation145_spill] sm:$0xff] }
 0x51f   :  { %v2762_v48 = vmul.f32 %v6283_v45, %v8464_v32  ;;  %v2802_v44 = vpop.f32.mrb[64].mxu0  ;;  %v2843_v36 = vpop.f32.mrb[64].mxu1  ;;  %v11155_v32 = vld [vmem:[#allocation132_spill] sm:$0xff] }
 0x520   :  { %v2804_v8 = vpop.f32.mrb[65].mxu0  ;;  %v2845_v23 = vpop.f32.mrb[65].mxu1 }
 0x521   :  { %v8758_v16 = vadd.f32 %v2763_v46, %v2762_v48  ;;  %v2806_v17 = vpop.f32.mrb[66].mxu0  ;;  %v2847_v19 = vpop.f32.mrb[66].mxu1 }
 0x522   :  { %v2807_v18 = vpop.f32.mrb[67].mxu0  ;;  %v2848_v20 = vpop.f32.mrb[67].mxu1  ;;  %v11169_v19 = vld [vmem:[#allocation146_spill] sm:$0xff] }
 0x523   :  { %6286 = vtanh.f32 %v8758_v16  ;;  %v6285_v21 = vpop.eup %6284 }
 0x52d   :  { %v6287_v22 = vpop.eup %6286 }
 0x52e   :  { %v2766_v34 = vmul.f32 %v6287_v22, %v6285_v21 }
 0x530   :  { %v8761_v50 = vpack.c.bf16 %v2766_v34, %v2766_v34 }
 0x532   :  { %3109 = vmatmul.mubr.bf16.vlgmr.msra.gmra.mrb[76].mxu0 %v8761_v50  ;;  %3150 = vmatmul.mubr.bf16.vlgmr.msra.gmra.mrb[76].mxu1 %v8761_v50 }
 0x533   :  { %3159 = vmatpush1.bf16.msra.mxu0 %v11155_v32  ;;  %3200 = vmatpush1.bf16.msra.mxu1 %v11156_v51 }
 0x534   :  { %3160 = vmatprep.subr.bf16.mxu0 %v11157_v52  ;;  %3201 = vmatprep.subr.bf16.mxu1 %v11158_v5  ;;  %v8826_v5 = vld [vmem:[#allocation11 + $0x28] ss:$16 sps:$4 sm:$0xff]  }
 0x535   :  { %3190 = vmatprep.mubr.bf16.mxu0 %v10863_v15  ;;  %3231 = vmatprep.mubr.bf16.mxu1 %v10863_v15 }
 0x537   :  { %3161 = vmatpush1.bf16.msra.mxu0 %v11159_v31  ;;  %3202 = vmatpush1.bf16.msra.mxu1 %v11160_v1  ;;  %v8829_v31 = vld [vmem:[#allocation11 + $0x44] ss:$16 sps:$4 sm:$0xff]   ;;  %v8832_v1 = vld [vmem:[#allocation11 + $0x4c] ss:$16 sps:$4 sm:$0xff]  }
 0x538   :  { %3162 = vmatprep.subr.bf16.mxu0 %v11161_v14  ;;  %3203 = vmatprep.subr.bf16.mxu1 %v11162_v7  ;;  %v8835_v7 = vld [vmem:[#allocation11 + $0x40] ss:$16 sps:$4 sm:$0xff]  }
 0x53b   :  { %3163 = vmatpush1.bf16.msra.mxu0 %v11163_v24  ;;  %3204 = vmatpush1.bf16.msra.mxu1 %v11164_v54  ;;  %v8838_v24 = vld [vmem:[#allocation11 + $0x48] ss:$16 sps:$4 sm:$0xff]  }
 0x53c   :  { %3164 = vmatprep.subr.bf16.mxu0 %v11165_v6  ;;  %3205 = vmatprep.subr.bf16.mxu1 %v11166_v25  ;;  %v8841_v6 = vld [vmem:[#allocation11 + $0x64] ss:$16 sps:$4 sm:$0xff]   ;;  %v8844_v25 = vld [vmem:[#allocation11 + $0x6c] ss:$16 sps:$4 sm:$0xff]  }
 0x53f   :  { %3165 = vmatpush1.bf16.msra.mxu0 %v11167_v11  ;;  %3206 = vmatpush1.bf16.msra.mxu1 %v11168_v29  ;;  %v2884_v43 = vpop.f32.mrb[68].mxu0  ;;  %v2925_v45 = vpop.f32.mrb[68].mxu1 }
 0x540   :  { %v2885_v46 = vadd.f32 %v2884_v43, %v2802_v44  ;;  %v2926_v47 = vadd.f32 %v2925_v45, %v2843_v36  ;;  %v2886_v48 = vpop.f32.mrb[69].mxu0  ;;  %v2927_v17 = vpop.f32.mrb[69].mxu1  ;;  %3166 = vmatprep.subr.bf16.mxu0 %v8524_v37  ;;  %3207 = vmatprep.subr.bf16.mxu1 %v11169_v19  ;;  %v8857_v19 = vld [vmem:[#allocation11 + $0x8c] ss:$16 sps:$4 sm:$0xff]  }
 0x541   :  { %v2887_v18 = vadd.f32 %v2886_v48, %v2804_v8  ;;  %v2928_v20 = vadd.f32 %v2927_v17, %v2845_v23  ;;  %v2888_v21 = vpop.f32.mrb[70].mxu0  ;;  %v2929_v22 = vpop.f32.mrb[70].mxu1  ;;  %v8815_v8 = vld [vmem:[#allocation11 + $0x24] ss:$16 sps:$4 sm:$0xff]   ;;  %v8818_v23 = vld [vmem:[#allocation11 + $0x2c] ss:$16 sps:$4 sm:$0xff]  }
 0x542   :  { %v2932_v34 = vadd.f32 %v2885_v46, %v8513_v53  ;;  %v2889_v32 = vpop.f32.mrb[71].mxu0  ;;  %v2930_v51 = vpop.f32.mrb[71].mxu1  ;;  %v2934_v36 = vadd.f32 %v2926_v47, %v8561_v57  ;;  %v8848_v47 = vld [vmem:[#allocation11 + $0x60] ss:$16 sps:$4 sm:$0xff]   ;;  %v8851_v48 = vld [vmem:[#allocation11 + $0x68] ss:$16 sps:$4 sm:$0xff]  }
 0x543   :  { %v2933_v52 = vadd.f32 %v2887_v18, %v8522_v56  ;;  %3167 = vmatpush1.bf16.msra.mxu0 %v8532_v59  ;;  %3208 = vmatpush1.bf16.msra.mxu1 %v8535_v2  ;;  %v2935_v59 = vadd.f32 %v2928_v20, %v8545_v0  ;;  %v11170_v2 = vld [vmem:[#allocation147_spill] sm:$0xff]  ;;  %v8854_v17 = vld [vmem:[#allocation11 + $0x84] ss:$16 sps:$4 sm:$0xff]  }
 0x544   :  { %v5808_v44 = vmul.f32 -1.442695, %v2932_v34  ;;  %3168 = vmatprep.subr.bf16.mxu0 %v8538_v12  ;;  %3209 = vmatprep.subr.bf16.mxu1 %v8541_v58  ;;  %v11171_v12 = vld [vmem:[#allocation148_spill] sm:$0xff]  ;;  %v8865_v20 = vld [vmem:[#allocation11 + $0x88] ss:$16 sps:$4 sm:$0xff]  }
 0x545   :  { %v5809_v37 = vmul.f32 -1.442695, %v2933_v52  ;;  %v5810_v58 = vmul.f32 -1.442695, %v2935_v59  ;;  %v8869_v21 = vld [vmem:[#allocation11 + $0xa4] ss:$16 sps:$4 sm:$0xff]  }
 0x546   :  { %6288 = vpow2.f32 %v5808_v44  ;;  %v8872_v22 = vld [vmem:[#allocation11 + $0xac] ss:$16 sps:$4 sm:$0xff]   ;;  %v8875_v34 = vld [vmem:[#allocation11 + $0xa0] ss:$16 sps:$4 sm:$0xff]   ;;  %v8878_v32 = vld [vmem:[#allocation11 + $0xa8] ss:$16 sps:$4 sm:$0xff]  }
 0x547   :  { %6290 = vpow2.f32 %v5809_v37  ;;  %3169 = vmatpush1.bf16.msra.mxu0 %v8547_v40  ;;  %3210 = vmatpush1.bf16.msra.mxu1 %v8550_v9  ;;  %v8801_v9 = vld [vmem:[#allocation11 + $0x4] ss:$16 sps:$4 sm:$0xff]   ;;  %v8884_v52 = vld [vmem:[#allocation11 + $0xcc] ss:$16 sps:$4 sm:$0xff]   ;;  %v8887_v44 = vld [vmem:[#allocation11 + $0xc0] ss:$16 sps:$4 sm:$0xff]  }
 0x548   :  { %3170 = vmatprep.subr.bf16.mxu0 %v8553_v33  ;;  %3211 = vmatprep.subr.bf16.mxu1 %v8556_v3  ;;  %v8804_v33 = vld [vmem:[#allocation11 + $0xc] ss:$16 sps:$4 sm:$0xff]   ;;  %6292 = vpow2.f32 %v5810_v58  ;;  %v8881_v51 = vld [vmem:[#allocation11 + $0xc4] ss:$16 sps:$4 sm:$0xff]   ;;  %11172 = vst [vmem:[#allocation46_spill] sm:$0xff] %v8884_v52  ;;  %11173 = vst [vmem:[#allocation21_spill] sm:$0xff] %v8887_v44 }
 0x549   :  { %6294 = vtanh.f32 %v2934_v36  ;;  %v8890_v37 = vld [vmem:[#allocation11 + $0xc8] ss:$16 sps:$4 sm:$0xff]  }
 0x54a   :  { %11174 = vst [vmem:[#allocation47_spill] sm:$0xff] %v8890_v37 }
 0x54b   :  { %3171 = vmatpush1.bf16.msra.mxu0 %v8563_v62  ;;  %3212 = vmatpush1.bf16.msra.mxu1 %v11170_v2  ;;  %v8893_v2 = vld [vmem:[#allocation11 + $0xe4] ss:$16 sps:$4 sm:$0xff]  }
 0x54c   :  { %3172 = vmatprep.subr.bf16.mxu0 %v11171_v12  ;;  %3213 = vmatprep.subr.bf16.mxu1 %v8572_v4  ;;  %11175 = vst [vmem:[#allocation48_spill] sm:$0xff] %v8893_v2  ;;  %v8896_v12 = vld [vmem:[#allocation11 + $0xec] ss:$16 sps:$4 sm:$0xff]  }
 0x54d   :  { %11176 = vst [vmem:[#allocation49_spill] sm:$0xff] %v8896_v12 }
 0x54f   :  { %3173 = vmatpush1.bf16.msra.mxu0 %v8576_v27  ;;  %3214 = vmatpush1.bf16.msra.mxu1 %v8579_v63  ;;  %v8809_v27 = vld [vmem:[#allocation11] ss:$16 sps:$4 sm:$0xff]   ;;  %v8812_v63 = vld [vmem:[#allocation11 + $0x8] ss:$16 sps:$4 sm:$0xff]  }
 0x550   :  { %v6289_v40 = vpop.eup %6288  ;;  %3269 = vmatprep.subr.bf16.mxu0 %v8801_v9  ;;  %3310 = vmatprep.subr.bf16.mxu1 %v8804_v33 }
 0x551   :  { %v6291_v3 = vpop.eup %6290  ;;  %v2939_v62 = vadd.f32 1.0, %v6289_v40  ;;  %v8899_v40 = vld [vmem:[#allocation11 + $0xe0] ss:$16 sps:$4 sm:$0xff]  }
 0x552   :  { %v2945_v4 = vadd.f32 1.0, %v6291_v3  ;;  %3191 = vmatmul.mubr.bf16.vlgmr.msra.gmra.mrb[80].mxu0 %v8715_v26  ;;  %3232 = vmatmul.mubr.bf16.vlgmr.msra.gmra.mrb[80].mxu1 %v8715_v26  ;;  %v8823_v26 = vld [vmem:[#allocation11 + $0x20] ss:$16 sps:$4 sm:$0xff]   ;;  %v6293_v14 = vpop.eup %6292  ;;  %11177 = vst [vmem:[#allocation50_spill] sm:$0xff] %v8899_v40  ;;  %v8902_v3 = vld [vmem:[#allocation11 + $0xe8] ss:$16 sps:$4 sm:$0xff]  }
 0x553   :  { %6296 = vrcp.f32 %v2939_v62  ;;  %3270 = vmatpush1.bf16.msra.mxu0 %v8809_v27  ;;  %3311 = vmatpush1.bf16.msra.mxu1 %v8812_v63  ;;  %v6295_v54 = vpop.eup %6294  ;;  %v2952_v45 = vadd.f32 1.0, %v6293_v14  ;;  %11178 = vst [vmem:[#allocation51_spill] sm:$0xff] %v8902_v3  ;;  %v8905_v62 = vld [vmem:[#allocation9 + $0x4] ss:$16 sps:$4 sm:$0xff]  }
 0x554   :  { %6298 = vrcp.f32 %v2945_v4  ;;  %3271 = vmatprep.subr.bf16.mxu0 %v8815_v8  ;;  %3312 = vmatprep.subr.bf16.mxu1 %v8818_v23  ;;  %11179 = vst [vmem:[#allocation52_spill] sm:$0xff] %v8905_v62  ;;  %v8908_v4 = vld [vmem:[#allocation9 + $0xc] ss:$16 sps:$4 sm:$0xff]  }
 0x555   :  { %3301 = vmatprep.mubr.bf16.mxu0 %v10863_v15  ;;  %3342 = vmatprep.mubr.bf16.mxu1 %v10863_v15  ;;  %6300 = vrcp.f32 %v2952_v45  ;;  %11180 = vst [vmem:[#allocation20_spill] sm:$0xff] %v8908_v4  ;;  %v8925_v45 = vld [vmem:[#allocation9 + $0x20] ss:$16 sps:$4 sm:$0xff]  }
 0x556   :  { %11185 = vst [vmem:[#allocation57_spill] sm:$0xff] %v8925_v45 }
 0x557   :  { %3272 = vmatpush1.bf16.msra.mxu0 %v8823_v26  ;;  %3313 = vmatpush1.bf16.msra.mxu1 %v8826_v5 }
 0x558   :  { %3273 = vmatprep.subr.bf16.mxu0 %v8829_v31  ;;  %3314 = vmatprep.subr.bf16.mxu1 %v8832_v1 }
 0x55b   :  { %3274 = vmatpush1.bf16.msra.mxu0 %v8835_v7  ;;  %3315 = vmatpush1.bf16.msra.mxu1 %v8838_v24 }
 0x55c   :  { %3275 = vmatprep.subr.bf16.mxu0 %v8841_v6  ;;  %3316 = vmatprep.subr.bf16.mxu1 %v8844_v25 }
 0x55d   :  { %v6297_v11 = vpop.eup %6296 }
 0x55e   :  { %v6299_v29 = vpop.eup %6298  ;;  %v2956_v43 = vmul.f32 %v6297_v11, %v6295_v54  ;;  %v8911_v54 = vld [vmem:[#allocation9] ss:$16 sps:$4 sm:$0xff]   ;;  %v8914_v11 = vld [vmem:[#allocation9 + $0x8] ss:$16 sps:$4 sm:$0xff]  }
 0x55f   :  { %v2955_v46 = vmul.f32 %v6299_v29, %v8604_v30  ;;  %3276 = vmatpush1.bf16.msra.mxu0 %v8848_v47  ;;  %3317 = vmatpush1.bf16.msra.mxu1 %v8851_v48  ;;  %v8862_v30 = vld [vmem:[#allocation11 + $0x80] ss:$16 sps:$4 sm:$0xff]   ;;  %v6301_v59 = vpop.eup %6300  ;;  %11181 = vst [vmem:[#allocation53_spill] sm:$0xff] %v8911_v54  ;;  %11182 = vst [vmem:[#allocation54_spill] sm:$0xff] %v8914_v11  ;;  %v8917_v29 = vld [vmem:[#allocation9 + $0x24] ss:$16 sps:$4 sm:$0xff]  }
 0x560   :  { %3277 = vmatprep.subr.bf16.mxu0 %v8854_v17  ;;  %3318 = vmatprep.subr.bf16.mxu1 %v8857_v19  ;;  %11183 = vst [vmem:[#allocation55_spill] sm:$0xff] %v8917_v29 }
 0x561   :  { %v8860_v18 = vadd.f32 %v2956_v43, %v2955_v46  ;;  %v8920_v43 = vld [vmem:[#allocation9 + $0x2c] ss:$16 sps:$4 sm:$0xff]   ;;  %v8928_v46 = vld [vmem:[#allocation9 + $0x28] ss:$16 sps:$4 sm:$0xff]  }
 0x562   :  { %11184 = vst [vmem:[#allocation56_spill] sm:$0xff] %v8920_v43  ;;  %11186 = vst [vmem:[#allocation58_spill] sm:$0xff] %v8928_v46 }
 0x563   :  { %3278 = vmatpush1.bf16.msra.mxu0 %v8862_v30  ;;  %3319 = vmatpush1.bf16.msra.mxu1 %v8865_v20  ;;  %6302 = vtanh.f32 %v8860_v18 }
 0x564   :  { %3279 = vmatprep.subr.bf16.mxu0 %v8869_v21  ;;  %3320 = vmatprep.subr.bf16.mxu1 %v8872_v22 }
 0x567   :  { %3280 = vmatpush1.bf16.msra.mxu0 %v8875_v34  ;;  %3321 = vmatpush1.bf16.msra.mxu1 %v8878_v32 }
 0x568   :  { %3281 = vmatprep.subr.bf16.mxu0 %v8881_v51  ;;  %3322 = vmatprep.subr.bf16.mxu1 %v8884_v52 }
 0x56b   :  { %3282 = vmatpush1.bf16.msra.mxu0 %v8887_v44  ;;  %3323 = vmatpush1.bf16.msra.mxu1 %v8890_v37 }
 0x56c   :  { %3283 = vmatprep.subr.bf16.mxu0 %v8893_v2  ;;  %3324 = vmatprep.subr.bf16.mxu1 %v8896_v12 }
 0x56d   :  { %v6303_v58 = vpop.eup %6302 }
 0x56e   :  { %v2959_v36 = vmul.f32 %v6303_v58, %v6301_v59  ;;  %v8931_v59 = vld [vmem:[#allocation9 + $0x44] ss:$16 sps:$4 sm:$0xff]   ;;  %v8934_v58 = vld [vmem:[#allocation9 + $0x4c] ss:$16 sps:$4 sm:$0xff]  }
 0x56f   :  { %3284 = vmatpush1.bf16.msra.mxu0 %v8899_v40  ;;  %3325 = vmatpush1.bf16.msra.mxu1 %v8902_v3  ;;  %11187 = vst [vmem:[#allocation59_spill] sm:$0xff] %v8931_v59  ;;  %11188 = vst [vmem:[#allocation60_spill] sm:$0xff] %v8934_v58  ;;  %v11200_v40 = vld [vmem:[#allocation33_spill] sm:$0xff] }
 0x570   :  { %3351 = vmatprep.subr.bf16.mxu0 %v8905_v62  ;;  %3392 = vmatprep.subr.bf16.mxu1 %v8908_v4  ;;  %v2960_v14 = vpack.c.bf16 %v2959_v36, %v2959_v36  ;;  %v8937_v36 = vld [vmem:[#allocation9 + $0x40] ss:$16 sps:$4 sm:$0xff]  }
 0x571   :  { %11189 = vst [vmem:[#allocation61_spill] sm:$0xff] %v8937_v36  ;;  %v11199_v62 = vld [vmem:[#allocation32_spill] sm:$0xff] }
 0x572   :  { %3302 = vmatmul.mubr.bf16.vlgmr.msra.gmra.mrb[84].mxu0 %v2960_v14  ;;  %3343 = vmatmul.mubr.bf16.vlgmr.msra.gmra.mrb[84].mxu1 %v2960_v14  ;;  %v8940_v14 = vld [vmem:[#allocation9 + $0x48] ss:$16 sps:$4 sm:$0xff]  }
 0x573   :  { %3352 = vmatpush1.bf16.msra.mxu0 %v8911_v54  ;;  %3393 = vmatpush1.bf16.msra.mxu1 %v8914_v11  ;;  %11190 = vst [vmem:[#allocation62_spill] sm:$0xff] %v8940_v14  ;;  %v11198_v11 = vld [vmem:[#allocation31_spill] sm:$0xff] }
 0x574   :  { %3353 = vmatprep.subr.bf16.mxu0 %v8917_v29  ;;  %3394 = vmatprep.subr.bf16.mxu1 %v8920_v43  ;;  %v8955_v29 = vld [vmem:[#allocation9 + $0x84] ss:$16 sps:$4 sm:$0xff]  }
 0x575   :  { %3383 = vmatprep.mubr.bf16.mxu0 %v10863_v15  ;;  %3424 = vmatprep.mubr.bf16.mxu1 %v10863_v15  ;;  %11195 = vst [vmem:[#allocation67_spill] sm:$0xff] %v8955_v29 }
 0x577   :  { %3354 = vmatpush1.bf16.msra.mxu0 %v8925_v45  ;;  %3395 = vmatpush1.bf16.msra.mxu1 %v8928_v46  ;;  %v8943_v45 = vld [vmem:[#allocation9 + $0x64] ss:$16 sps:$4 sm:$0xff]   ;;  %v8946_v46 = vld [vmem:[#allocation9 + $0x6c] ss:$16 sps:$4 sm:$0xff]  }
 0x578   :  { %3355 = vmatprep.subr.bf16.mxu0 %v8931_v59  ;;  %3396 = vmatprep.subr.bf16.mxu1 %v8934_v58  ;;  %11191 = vst [vmem:[#allocation63_spill] sm:$0xff] %v8943_v45  ;;  %11192 = vst [vmem:[#allocation64_spill] sm:$0xff] %v8946_v46  ;;  %v8949_v59 = vld [vmem:[#allocation9 + $0x60] ss:$16 sps:$4 sm:$0xff]   ;;  %v8952_v58 = vld [vmem:[#allocation9 + $0x68] ss:$16 sps:$4 sm:$0xff]  }
 0x579   :  { %11193 = vst [vmem:[#allocation65_spill] sm:$0xff] %v8949_v59  ;;  %11194 = vst [vmem:[#allocation66_spill] sm:$0xff] %v8952_v58 }
 0x57b   :  { %3356 = vmatpush1.bf16.msra.mxu0 %v8937_v36  ;;  %3397 = vmatpush1.bf16.msra.mxu1 %v8940_v14  ;;  %v8958_v14 = vld [vmem:[#allocation9 + $0x8c] ss:$16 sps:$4 sm:$0xff]  }
 0x57c   :  { %3357 = vmatprep.subr.bf16.mxu0 %v8943_v45  ;;  %3398 = vmatprep.subr.bf16.mxu1 %v8946_v46  ;;  %11196 = vst [vmem:[#allocation68_spill] sm:$0xff] %v8958_v14  ;;  %v11197_v45 = vld [vmem:[#allocation30_spill] sm:$0xff] }
 0x57f   :  { %3358 = vmatpush1.bf16.msra.mxu0 %v8949_v59  ;;  %3399 = vmatpush1.bf16.msra.mxu1 %v8952_v58  ;;  %v2999_v36 = vpop.f32.mrb[72].mxu0  ;;  %v3040_v43 = vpop.f32.mrb[72].mxu1 }
 0x580   :  { %3359 = vmatprep.subr.bf16.mxu0 %v8955_v29  ;;  %3400 = vmatprep.subr.bf16.mxu1 %v8958_v14  ;;  %v3047_v46 = vadd.f32 %v2999_v36, %v11197_v45  ;;  %v3049_v54 = vadd.f32 %v3040_v43, %v11198_v11  ;;  %v3001_v4 = vpop.f32.mrb[73].mxu0  ;;  %v3042_v59 = vpop.f32.mrb[73].mxu1  ;;  %v8965_v29 = vld [vmem:[#allocation9 + $0x80] ss:$16 sps:$4 sm:$0xff]   ;;  %v8968_v14 = vld [vmem:[#allocation9 + $0x88] ss:$16 sps:$4 sm:$0xff]  }
 0x581   :  { %v3048_v3 = vadd.f32 %v3001_v4, %v11199_v62  ;;  %v3050_v58 = vadd.f32 %v3042_v59, %v11200_v40  ;;  %v3003_v12 = vpop.f32.mrb[74].mxu0  ;;  %v3044_v2 = vpop.f32.mrb[74].mxu1  ;;  %v8971_v43 = vld [vmem:[#allocation9 + $0xa4] ss:$16 sps:$4 sm:$0xff]   ;;  %v8974_v40 = vld [vmem:[#allocation9 + $0xac] ss:$16 sps:$4 sm:$0xff]  }
 0x582   :  { %v5811_v37 = vmul.f32 -1.442695, %v3047_v46  ;;  %v3004_v44 = vpop.f32.mrb[75].mxu0  ;;  %v3045_v52 = vpop.f32.mrb[75].mxu1  ;;  %v8983_v2 = vld [vmem:[#allocation9 + $0xc4] ss:$16 sps:$4 sm:$0xff]  }
 0x583   :  { %3360 = vmatpush1.bf16.msra.mxu0 %v8965_v29  ;;  %3401 = vmatpush1.bf16.msra.mxu1 %v8968_v14  ;;  %v5812_v11 = vmul.f32 -1.442695, %v3048_v3  ;;  %v8977_v52 = vld [vmem:[#allocation9 + $0xa0] ss:$16 sps:$4 sm:$0xff]   ;;  %v8980_v44 = vld [vmem:[#allocation9 + $0xa8] ss:$16 sps:$4 sm:$0xff]  }
 0x584   :  { %6304 = vpow2.f32 %v5811_v37  ;;  %3361 = vmatprep.subr.bf16.mxu0 %v8971_v43  ;;  %3402 = vmatprep.subr.bf16.mxu1 %v8974_v40  ;;  %11201 = vst [vmem:[#allocation69_spill] sm:$0xff] %v8977_v52  ;;  %11202 = vst [vmem:[#allocation70_spill] sm:$0xff] %v8980_v44  ;;  %v8986_v37 = vld [vmem:[#allocation9 + $0xcc] ss:$16 sps:$4 sm:$0xff]   ;;  %v5813_v12 = vmul.f32 -1.442695, %v3050_v58 }
 0x585   :  { %6306 = vpow2.f32 %v5812_v11  ;;  %11203 = vst [vmem:[#allocation71_spill] sm:$0xff] %v8983_v2  ;;  %11204 = vst [vmem:[#allocation72_spill] sm:$0xff] %v8986_v37  ;;  %v8989_v3 = vld [vmem:[#allocation9 + $0xc0] ss:$16 sps:$4 sm:$0xff]   ;;  %v8992_v62 = vld [vmem:[#allocation9 + $0xc8] ss:$16 sps:$4 sm:$0xff]  }
 0x586   :  { %11205 = vst [vmem:[#allocation73_spill] sm:$0xff] %v8989_v3  ;;  %11206 = vst [vmem:[#allocation74_spill] sm:$0xff] %v8992_v62  ;;  %v8995_v4 = vld [vmem:[#allocation9 + $0xe4] ss:$16 sps:$4 sm:$0xff]   ;;  %v8998_v45 = vld [vmem:[#allocation9 + $0xec] ss:$16 sps:$4 sm:$0xff]   ;;  %6308 = vpow2.f32 %v5813_v12 }
 0x587   :  { %3362 = vmatpush1.bf16.msra.mxu0 %v8977_v52  ;;  %3403 = vmatpush1.bf16.msra.mxu1 %v8980_v44  ;;  %11207 = vst [vmem:[#allocation75_spill] sm:$0xff] %v8995_v4  ;;  %11208 = vst [vmem:[#allocation76_spill] sm:$0xff] %v8998_v45  ;;  %v9001_v58 = vld [vmem:[#allocation9 + $0xe0] ss:$16 sps:$4 sm:$0xff]   ;;  %v9004_v11 = vld [vmem:[#allocation9 + $0xe8] ss:$16 sps:$4 sm:$0xff]   ;;  %6310 = vtanh.f32 %v3049_v54 }
 0x588   :  { %3363 = vmatprep.subr.bf16.mxu0 %v8983_v2  ;;  %3404 = vmatprep.subr.bf16.mxu1 %v8986_v37  ;;  %11209 = vst [vmem:[#allocation77_spill] sm:$0xff] %v9001_v58  ;;  %11210 = vst [vmem:[#allocation78_spill] sm:$0xff] %v9004_v11 }
 0x58b   :  { %3364 = vmatpush1.bf16.msra.mxu0 %v8989_v3  ;;  %3405 = vmatpush1.bf16.msra.mxu1 %v8992_v62 }
 0x58c   :  { %3365 = vmatprep.subr.bf16.mxu0 %v8995_v4  ;;  %3406 = vmatprep.subr.bf16.mxu1 %v8998_v45 }
 0x58e   :  { %v6305_v46 = vpop.eup %6304 }
 0x58f   :  { %v6307_v59 = vpop.eup %6306  ;;  %v3054_v36 = vadd.f32 1.0, %v6305_v46  ;;  %3366 = vmatpush1.bf16.msra.mxu0 %v9001_v58  ;;  %3407 = vmatpush1.bf16.msra.mxu1 %v9004_v11  ;;  %v9033_v46 = vld [vmem:[#allocation3 + $0x64] ss:$16 sps:$4 sm:$0xff]  }
 0x590   :  { %v3060_v62 = vadd.f32 1.0, %v6307_v59  ;;  %3466 = vmatprep.subr.bf16.mxu0 %v8655_v39  ;;  %3507 = vmatprep.subr.bf16.mxu1 %v8658_v35  ;;  %v9018_v39 = vld [vmem:[#allocation3 + $0x28] ss:$16 sps:$4 sm:$0xff]   ;;  %v9021_v35 = vld [vmem:[#allocation3 + $0x44] ss:$16 sps:$4 sm:$0xff]   ;;  %11216 = vst [vmem:[#allocation84_spill] sm:$0xff] %v9033_v46 }
 0x591   :  { %6312 = vrcp.f32 %v3054_v36  ;;  %11211 = vst [vmem:[#allocation79_spill] sm:$0xff] %v9018_v39  ;;  %11212 = vst [vmem:[#allocation80_spill] sm:$0xff] %v9021_v35  ;;  %v9036_v59 = vld [vmem:[#allocation3 + $0x6c] ss:$16 sps:$4 sm:$0xff]  }
 0x592   :  { %6314 = vrcp.f32 %v3060_v62  ;;  %3384 = vmatmul.mubr.bf16.vlgmr.msra.gmra.mrb[88].mxu0 %v8761_v50  ;;  %3425 = vmatmul.mubr.bf16.vlgmr.msra.gmra.mrb[88].mxu1 %v8761_v50  ;;  %v9027_v50 = vld [vmem:[#allocation3 + $0x40] ss:$16 sps:$4 sm:$0xff]   ;;  %11217 = vst [vmem:[#allocation85_spill] sm:$0xff] %v9036_v59 }
 0x593   :  { %3467 = vmatpush1.bf16.msra.mxu0 %v8663_v10  ;;  %3508 = vmatpush1.bf16.msra.mxu1 %v8666_v41  ;;  %v9024_v10 = vld [vmem:[#allocation3 + $0x4c] ss:$16 sps:$4 sm:$0xff]   ;;  %v6309_v41 = vpop.eup %6308  ;;  %11214 = vst [vmem:[#allocation82_spill] sm:$0xff] %v9027_v50 }
 0x594   :  { %3468 = vmatprep.subr.bf16.mxu0 %v8669_v42  ;;  %3509 = vmatprep.subr.bf16.mxu1 %v8672_v49  ;;  %11213 = vst [vmem:[#allocation81_spill] sm:$0xff] %v9024_v10  ;;  %v6311_v42 = vpop.eup %6310  ;;  %v3067_v62 = vadd.f32 1.0, %v6309_v41  ;;  %v9048_v41 = vld [vmem:[#allocation3 + $0x84] ss:$16 sps:$4 sm:$0xff]  }
 0x595   :  { %3498 = vmatprep.mubr.bf16.mxu0 %v10863_v15  ;;  %3539 = vmatprep.mubr.bf16.mxu1 %v10863_v15  ;;  %11220 = vst [vmem:[#allocation27_spill] sm:$0xff] %v9048_v41 }
 0x596   :  { %6316 = vrcp.f32 %v3067_v62  ;;  %v9067_v62 = vld [vmem:[#allocation3 + $0xa0] ss:$16 sps:$4 sm:$0xff]  }
 0x597   :  { %3469 = vmatpush1.bf16.msra.mxu0 %v8677_v13  ;;  %3510 = vmatpush1.bf16.msra.mxu1 %v9018_v39  ;;  %v9030_v13 = vld [vmem:[#allocation3 + $0x48] ss:$16 sps:$4 sm:$0xff]   ;;  %11226 = vst [vmem:[#allocation90_spill] sm:$0xff] %v9067_v62 }
 0x598   :  { %3470 = vmatprep.subr.bf16.mxu0 %v9021_v35  ;;  %3511 = vmatprep.subr.bf16.mxu1 %v9024_v10  ;;  %11215 = vst [vmem:[#allocation83_spill] sm:$0xff] %v9030_v13 }
 0x59b   :  { %v6313_v49 = vpop.eup %6312  ;;  %3471 = vmatpush1.bf16.msra.mxu0 %v9027_v50  ;;  %3512 = vmatpush1.bf16.msra.mxu1 %v9030_v13  ;;  %v9042_v50 = vld [vmem:[#allocation3 + $0x60] ss:$16 sps:$4 sm:$0xff]   ;;  %v9045_v13 = vld [vmem:[#allocation3 + $0x68] ss:$16 sps:$4 sm:$0xff]  }
 0x59c   :  { %v6315_v54 = vpop.eup %6314  ;;  %v3071_v12 = vmul.f32 %v6313_v49, %v6311_v42  ;;  %3472 = vmatprep.subr.bf16.mxu0 %v9033_v46  ;;  %3513 = vmatprep.subr.bf16.mxu1 %v9036_v59  ;;  %11218 = vst [vmem:[#allocation86_spill] sm:$0xff] %v9042_v50  ;;  %11219 = vst [vmem:[#allocation26_spill] sm:$0xff] %v9045_v13  ;;  %v9051_v42 = vld [vmem:[#allocation3 + $0x8c] ss:$16 sps:$4 sm:$0xff]   ;;  %v9058_v49 = vld [vmem:[#allocation3 + $0x88] ss:$16 sps:$4 sm:$0xff]  }
 0x59d   :  { %v3070_v36 = vmul.f32 %v6315_v54, %v8712_v60  ;;  %11221 = vst [vmem:[#allocation28_spill] sm:$0xff] %v9051_v42  ;;  %v9055_v60 = vld [vmem:[#allocation3 + $0x80] ss:$16 sps:$4 sm:$0xff]   ;;  %11223 = vst [vmem:[#allocation87_spill] sm:$0xff] %v9058_v49  ;;  %v9061_v54 = vld [vmem:[#allocation3 + $0xa4] ss:$16 sps:$4 sm:$0xff]  }
 0x59e   :  { %11222 = vst [vmem:[#allocation29_spill] sm:$0xff] %v9055_v60  ;;  %11224 = vst [vmem:[#allocation88_spill] sm:$0xff] %v9061_v54 }
 0x59f   :  { %v9040_v10 = vadd.f32 %v3071_v12, %v3070_v36  ;;  %3473 = vmatpush1.bf16.msra.mxu0 %v9042_v50  ;;  %3514 = vmatpush1.bf16.msra.mxu1 %v9045_v13  ;;  %v9064_v12 = vld [vmem:[#allocation3 + $0xac] ss:$16 sps:$4 sm:$0xff]   ;;  %v9070_v36 = vld [vmem:[#allocation3 + $0xa8] ss:$16 sps:$4 sm:$0xff]   ;;  %v9093_v13 = vld [vmem:[#allocation3 + $0xe0] ss:$16 sps:$4 sm:$0xff]  }
 0x5a0   :  { %3474 = vmatprep.subr.bf16.mxu0 %v9048_v41  ;;  %3515 = vmatprep.subr.bf16.mxu1 %v9051_v42  ;;  %11225 = vst [vmem:[#allocation89_spill] sm:$0xff] %v9064_v12  ;;  %11227 = vst [vmem:[#allocation91_spill] sm:$0xff] %v9070_v36  ;;  %v9079_v41 = vld [vmem:[#allocation3 + $0xc0] ss:$16 sps:$4 sm:$0xff]  }
 0x5a1   :  { %6318 = vtanh.f32 %v9040_v10  ;;  %11230 = vst [vmem:[#allocation94_spill] sm:$0xff] %v9079_v41  ;;  %11234 = vst [vmem:[#allocation98_spill] sm:$0xff] %v9093_v13 }
 0x5a3   :  { %3475 = vmatpush1.bf16.msra.mxu0 %v9055_v60  ;;  %3516 = vmatpush1.bf16.msra.mxu1 %v9058_v49  ;;  %v9073_v60 = vld [vmem:[#allocation3 + $0xc4] ss:$16 sps:$4 sm:$0xff]   ;;  %v9076_v49 = vld [vmem:[#allocation3 + $0xcc] ss:$16 sps:$4 sm:$0xff]  }
 0x5a4   :  { %3476 = vmatprep.subr.bf16.mxu0 %v9061_v54  ;;  %3517 = vmatprep.subr.bf16.mxu1 %v9064_v12  ;;  %11228 = vst [vmem:[#allocation92_spill] sm:$0xff] %v9073_v60  ;;  %11229 = vst [vmem:[#allocation93_spill] sm:$0xff] %v9076_v49  ;;  %v6317_v54 = vpop.eup %6316  ;;  %v9082_v12 = vld [vmem:[#allocation3 + $0xc8] ss:$16 sps:$4 sm:$0xff]  }
 0x5a5   :  { %11231 = vst [vmem:[#allocation95_spill] sm:$0xff] %v9082_v12 }
 0x5a7   :  { %3477 = vmatpush1.bf16.msra.mxu0 %v9067_v62  ;;  %3518 = vmatpush1.bf16.msra.mxu1 %v9070_v36  ;;  %v9085_v62 = vld [vmem:[#allocation3 + $0xe4] ss:$16 sps:$4 sm:$0xff]   ;;  %v9088_v36 = vld [vmem:[#allocation3 + $0xec] ss:$16 sps:$4 sm:$0xff]  }
 0x5a8   :  { %3478 = vmatprep.subr.bf16.mxu0 %v9073_v60  ;;  %3519 = vmatprep.subr.bf16.mxu1 %v9076_v49  ;;  %11232 = vst [vmem:[#allocation96_spill] sm:$0xff] %v9085_v62  ;;  %11233 = vst [vmem:[#allocation97_spill] sm:$0xff] %v9088_v36 }
 0x5ab   :  { %v6319_v42 = vpop.eup %6318  ;;  %3479 = vmatpush1.bf16.msra.mxu0 %v9079_v41  ;;  %3520 = vmatpush1.bf16.msra.mxu1 %v9082_v12  ;;  %v9096_v41 = vld [vmem:[#allocation3 + $0xe8] ss:$16 sps:$4 sm:$0xff]   ;;  %v9099_v12 = vld [vmem:[#allocation8 + $0x4] ss:$16 sps:$4 sm:$0xff]  }
 0x5ac   :  { %3480 = vmatprep.subr.bf16.mxu0 %v9085_v62  ;;  %3521 = vmatprep.subr.bf16.mxu1 %v9088_v36  ;;  %v3074_v60 = vmul.f32 %v6319_v42, %v6317_v54  ;;  %11235 = vst [vmem:[#allocation99_spill] sm:$0xff] %v9096_v41  ;;  %11236 = vst [vmem:[#allocation100_spill] sm:$0xff] %v9099_v12  ;;  %v9102_v62 = vld [vmem:[#allocation8 + $0xc] ss:$16 sps:$4 sm:$0xff]   ;;  %v9107_v42 = vld [vmem:[#allocation8] ss:$16 sps:$4 sm:$0xff]  }
 0x5ad   :  { %11237 = vst [vmem:[#allocation101_spill] sm:$0xff] %v9102_v62  ;;  %11238 = vst [vmem:[#allocation102_spill] sm:$0xff] %v9107_v42  ;;  %v9113_v54 = vld [vmem:[#allocation8 + $0x24] ss:$16 sps:$4 sm:$0xff]  }
 0x5ae   :  { %v9091_v49 = vpack.c.bf16 %v3074_v60, %v3074_v60  ;;  %v9110_v60 = vld [vmem:[#allocation8 + $0x8] ss:$16 sps:$4 sm:$0xff]   ;;  %11240 = vst [vmem:[#allocation23_spill] sm:$0xff] %v9113_v54 }
 0x5af   :  { %3481 = vmatpush1.bf16.msra.mxu0 %v9093_v13  ;;  %3522 = vmatpush1.bf16.msra.mxu1 %v9096_v41  ;;  %11239 = vst [vmem:[#allocation22_spill] sm:$0xff] %v9110_v60  ;;  %v9136_v41 = vld [vmem:[#allocation8 + $0x48] ss:$16 sps:$4 sm:$0xff]  }
 0x5b0   :  { %3577 = vmatprep.subr.bf16.mxu0 %v9099_v12  ;;  %3618 = vmatprep.subr.bf16.mxu1 %v9102_v62  ;;  %v9116_v12 = vld [vmem:[#allocation8 + $0x2c] ss:$16 sps:$4 sm:$0xff]   ;;  %v9121_v62 = vld [vmem:[#allocation8 + $0x20] ss:$16 sps:$4 sm:$0xff]   ;;  %11247 = vst [vmem:[#allocation107_spill] sm:$0xff] %v9136_v41 }
 0x5b1   :  { %11241 = vst [vmem:[#allocation24_spill] sm:$0xff] %v9116_v12  ;;  %11242 = vst [vmem:[#allocation25_spill] sm:$0xff] %v9121_v62 }
 0x5b2   :  { %3499 = vmatmul.mubr.bf16.vlgmr.msra.gmra.mrb[92].mxu0 %v9091_v49  ;;  %3540 = vmatmul.mubr.bf16.vlgmr.msra.gmra.mrb[92].mxu1 %v9091_v49 }
 0x5b3   :  { %3578 = vmatpush1.bf16.msra.mxu0 %v9107_v42  ;;  %3619 = vmatpush1.bf16.msra.mxu1 %v9110_v60  ;;  %v9124_v42 = vld [vmem:[#allocation8 + $0x28] ss:$16 sps:$4 sm:$0xff]   ;;  %v9127_v60 = vld [vmem:[#allocation8 + $0x44] ss:$16 sps:$4 sm:$0xff]  }
 0x5b4   :  { %3579 = vmatprep.subr.bf16.mxu0 %v9113_v54  ;;  %3620 = vmatprep.subr.bf16.mxu1 %v9116_v12  ;;  %11243 = vst [vmem:[#allocation103_spill] sm:$0xff] %v9124_v42  ;;  %11244 = vst [vmem:[#allocation104_spill] sm:$0xff] %v9127_v60  ;;  %v9130_v54 = vld [vmem:[#allocation8 + $0x4c] ss:$16 sps:$4 sm:$0xff]   ;;  %v9133_v12 = vld [vmem:[#allocation8 + $0x40] ss:$16 sps:$4 sm:$0xff]  }
 0x5b5   :  { %3609 = vmatprep.mubr.bf16.mxu0 %v10863_v15  ;;  %3650 = vmatprep.mubr.bf16.mxu1 %v10863_v15  ;;  %11245 = vst [vmem:[#allocation105_spill] sm:$0xff] %v9130_v54  ;;  %11246 = vst [vmem:[#allocation106_spill] sm:$0xff] %v9133_v12 }
 0x5b7   :  { %3580 = vmatpush1.bf16.msra.mxu0 %v9121_v62  ;;  %3621 = vmatpush1.bf16.msra.mxu1 %v9124_v42  ;;  %v9139_v62 = vld [vmem:[#allocation8 + $0x64] ss:$16 sps:$4 sm:$0xff]   ;;  %v9142_v42 = vld [vmem:[#allocation8 + $0x6c] ss:$16 sps:$4 sm:$0xff]  }
 0x5b8   :  { %3581 = vmatprep.subr.bf16.mxu0 %v9127_v60  ;;  %3622 = vmatprep.subr.bf16.mxu1 %v9130_v54  ;;  %11248 = vst [vmem:[#allocation108_spill] sm:$0xff] %v9139_v62  ;;  %11249 = vst [vmem:[#allocation109_spill] sm:$0xff] %v9142_v42  ;;  %v9145_v60 = vld [vmem:[#allocation8 + $0x60] ss:$16 sps:$4 sm:$0xff]   ;;  %v9148_v54 = vld [vmem:[#allocation8 + $0x68] ss:$16 sps:$4 sm:$0xff]  }
 0x5b9   :  { %11250 = vst [vmem:[#allocation110_spill] sm:$0xff] %v9145_v60  ;;  %11251 = vst [vmem:[#allocation111_spill] sm:$0xff] %v9148_v54 }
 0x5bb   :  { %3582 = vmatpush1.bf16.msra.mxu0 %v9133_v12  ;;  %3623 = vmatpush1.bf16.msra.mxu1 %v9136_v41  ;;  %v9151_v12 = vld [vmem:[#allocation8 + $0x84] ss:$16 sps:$4 sm:$0xff]   ;;  %v9154_v41 = vld [vmem:[#allocation8 + $0x8c] ss:$16 sps:$4 sm:$0xff]  }
 0x5bc   :  { %3583 = vmatprep.subr.bf16.mxu0 %v9139_v62  ;;  %3624 = vmatprep.subr.bf16.mxu1 %v9142_v42  ;;  %11252 = vst [vmem:[#allocation112_spill] sm:$0xff] %v9151_v12  ;;  %11253 = vst [vmem:[#allocation113_spill] sm:$0xff] %v9154_v41  ;;  %v9157_v62 = vld [vmem:[#allocation8 + $0x80] ss:$16 sps:$4 sm:$0xff]   ;;  %v9160_v42 = vld [vmem:[#allocation8 + $0x88] ss:$16 sps:$4 sm:$0xff]  }
 0x5bd   :  { %11254 = vst [vmem:[#allocation114_spill] sm:$0xff] %v9157_v62  ;;  %11255 = vst [vmem:[#allocation115_spill] sm:$0xff] %v9160_v42 }
 0x5bf   :  { %3584 = vmatpush1.bf16.msra.mxu0 %v9145_v60  ;;  %3625 = vmatpush1.bf16.msra.mxu1 %v9148_v54  ;;  %v9163_v60 = vld [vmem:[#allocation8 + $0xa4] ss:$16 sps:$4 sm:$0xff]   ;;  %v9166_v54 = vld [vmem:[#allocation8 + $0xac] ss:$16 sps:$4 sm:$0xff]  }
 0x5c0   :  { %3585 = vmatprep.subr.bf16.mxu0 %v9151_v12  ;;  %3626 = vmatprep.subr.bf16.mxu1 %v9154_v41  ;;  %11256 = vst [vmem:[#allocation116_spill] sm:$0xff] %v9163_v60  ;;  %11257 = vst [vmem:[#allocation117_spill] sm:$0xff] %v9166_v54  ;;  %v9169_v12 = vld [vmem:[#allocation8 + $0xa0] ss:$16 sps:$4 sm:$0xff]   ;;  %v9172_v41 = vld [vmem:[#allocation8 + $0xa8] ss:$16 sps:$4 sm:$0xff]  }
 0x5c1   :  { %11258 = vst [vmem:[#allocation118_spill] sm:$0xff] %v9169_v12  ;;  %11259 = vst [vmem:[#allocation119_spill] sm:$0xff] %v9172_v41 }
 0x5c3   :  { %3586 = vmatpush1.bf16.msra.mxu0 %v9157_v62  ;;  %3627 = vmatpush1.bf16.msra.mxu1 %v9160_v42  ;;  %v9175_v62 = vld [vmem:[#allocation8 + $0xc4] ss:$16 sps:$4 sm:$0xff]   ;;  %v9178_v42 = vld [vmem:[#allocation8 + $0xcc] ss:$16 sps:$4 sm:$0xff]  }
 0x5c4   :  { %3587 = vmatprep.subr.bf16.mxu0 %v9163_v60  ;;  %3628 = vmatprep.subr.bf16.mxu1 %v9166_v54  ;;  %11260 = vst [vmem:[#allocation120_spill] sm:$0xff] %v9175_v62  ;;  %11261 = vst [vmem:[#allocation121_spill] sm:$0xff] %v9178_v42  ;;  %v9181_v60 = vld [vmem:[#allocation8 + $0xc0] ss:$16 sps:$4 sm:$0xff]   ;;  %v9184_v54 = vld [vmem:[#allocation8 + $0xc8] ss:$16 sps:$4 sm:$0xff]  }
 0x5c5   :  { %11262 = vst [vmem:[#allocation122_spill] sm:$0xff] %v9181_v60  ;;  %11263 = vst [vmem:[#allocation123_spill] sm:$0xff] %v9184_v54 }
 0x5c7   :  { %3588 = vmatpush1.bf16.msra.mxu0 %v9169_v12  ;;  %3629 = vmatpush1.bf16.msra.mxu1 %v9172_v41  ;;  %v9187_v12 = vld [vmem:[#allocation8 + $0xe4] ss:$16 sps:$4 sm:$0xff]   ;;  %v9190_v41 = vld [vmem:[#allocation8 + $0xec] ss:$16 sps:$4 sm:$0xff]  }
 0x5c8   :  { %3589 = vmatprep.subr.bf16.mxu0 %v9175_v62  ;;  %3630 = vmatprep.subr.bf16.mxu1 %v9178_v42  ;;  %11264 = vst [vmem:[#allocation124_spill] sm:$0xff] %v9187_v12  ;;  %11265 = vst [vmem:[#allocation125_spill] sm:$0xff] %v9190_v41  ;;  %v9193_v62 = vld [vmem:[#allocation8 + $0xe0] ss:$16 sps:$4 sm:$0xff]   ;;  %v9196_v42 = vld [vmem:[#allocation8 + $0xe8] ss:$16 sps:$4 sm:$0xff]  }
 0x5c9   :  { %11266 = vst [vmem:[#allocation126_spill] sm:$0xff] %v9193_v62  ;;  %11267 = vst [vmem:[#allocation127_spill] sm:$0xff] %v9196_v42 }
 0x5cb   :  { %3590 = vmatpush1.bf16.msra.mxu0 %v9181_v60  ;;  %3631 = vmatpush1.bf16.msra.mxu1 %v9184_v54  ;;  %v9199_v60 = vld [vmem:[#allocation6 + $0x4] ss:$16 sps:$4 sm:$0xff]   ;;  %v9202_v54 = vld [vmem:[#allocation6 + $0xc] ss:$16 sps:$4 sm:$0xff]  }
 0x5cc   :  { %3591 = vmatprep.subr.bf16.mxu0 %v9187_v12  ;;  %3632 = vmatprep.subr.bf16.mxu1 %v9190_v41  ;;  %11268 = vst [vmem:[#allocation128_spill] sm:$0xff] %v9199_v60  ;;  %11269 = vst [vmem:[#allocation129_spill] sm:$0xff] %v9202_v54 }
 0x5cf   :  { %3592 = vmatpush1.bf16.msra.mxu0 %v9193_v62  ;;  %3633 = vmatpush1.bf16.msra.mxu1 %v9196_v42 }
 0x5d0   :  { %3659 = vmatprep.subr.bf16.mxu0 %v9199_v60  ;;  %3700 = vmatprep.subr.bf16.mxu1 %v9202_v54 }
 0x605   :  { %v3110_v12 = vpop.f32.mrb[76].mxu0  ;;  %v3151_v13 = vpop.f32.mrb[76].mxu1 }
 0x606   :  { %v3112_v36 = vpop.f32.mrb[77].mxu0  ;;  %v3153_v41 = vpop.f32.mrb[77].mxu1 }
 0x607   :  { %v3114_v50 = vpop.f32.mrb[78].mxu0  ;;  %v3155_v59 = vpop.f32.mrb[78].mxu1 }
 0x608   :  { %v3115_v46 = vpop.f32.mrb[79].mxu0  ;;  %v3156_v62 = vpop.f32.mrb[79].mxu1 }
 0x625   :  { %v3192_v35 = vpop.f32.mrb[80].mxu0  ;;  %v3233_v39 = vpop.f32.mrb[80].mxu1 }
 0x626   :  { %v3193_v11 = vadd.f32 %v3192_v35, %v3110_v12  ;;  %v3234_v42 = vadd.f32 %v3233_v39, %v3151_v13  ;;  %v3194_v58 = vpop.f32.mrb[81].mxu0  ;;  %v3235_v45 = vpop.f32.mrb[81].mxu1 }
 0x627   :  { %v3195_v4 = vadd.f32 %v3194_v58, %v3112_v36  ;;  %v3236_v60 = vadd.f32 %v3235_v45, %v3153_v41  ;;  %v3196_v3 = vpop.f32.mrb[82].mxu0  ;;  %v3237_v37 = vpop.f32.mrb[82].mxu1 }
 0x628   :  { %v3240_v54 = vadd.f32 %v3193_v11, %v7985_v28  ;;  %v3197_v2 = vpop.f32.mrb[83].mxu0  ;;  %v3238_v44 = vpop.f32.mrb[83].mxu1  ;;  %v3242_v39 = vadd.f32 %v3234_v42, %v8009_v61 }
 0x629   :  { %v3241_v52 = vadd.f32 %v3195_v4, %v7990_v38  ;;  %v3243_v46 = vadd.f32 %v3236_v60, %v7999_v55 }
 0x62a   :  { %v5814_v50 = vmul.f32 -1.442695, %v3240_v54 }
 0x62b   :  { %v5815_v59 = vmul.f32 -1.442695, %v3241_v52  ;;  %v5816_v35 = vmul.f32 -1.442695, %v3243_v46 }
 0x62c   :  { %6320 = vpow2.f32 %v5814_v50 }
 0x62d   :  { %6322 = vpow2.f32 %v5815_v59 }
 0x62e   :  { %6324 = vpow2.f32 %v5816_v35 }
 0x62f   :  { %6326 = vtanh.f32 %v3242_v39 }
 0x636   :  { %v6321_v13 = vpop.eup %6320 }
 0x637   :  { %v6323_v58 = vpop.eup %6322  ;;  %v3247_v45 = vadd.f32 1.0, %v6321_v13 }
 0x638   :  { %v3253_v37 = vadd.f32 1.0, %v6323_v58  ;;  %v6325_v44 = vpop.eup %6324 }
 0x639   :  { %6328 = vrcp.f32 %v3247_v45  ;;  %v6327_v2 = vpop.eup %6326  ;;  %v3260_v11 = vadd.f32 1.0, %v6325_v44  ;;  %v9220_v45 = vld [vmem:[#allocation6 + $0x8] ss:$16 sps:$4 sm:$0xff]   ;;  %v9226_v44 = vld [vmem:[#allocation6 + $0x2c] ss:$16 sps:$4 sm:$0xff]  }
 0x63a   :  { %6330 = vrcp.f32 %v3253_v37  ;;  %v9223_v37 = vld [vmem:[#allocation6 + $0x24] ss:$16 sps:$4 sm:$0xff]   ;;  %11271 = vst [vmem:[#allocation131_spill] sm:$0xff] %v9226_v44 }
 0x63b   :  { %6332 = vrcp.f32 %v3260_v11  ;;  %11270 = vst [vmem:[#allocation130_spill] sm:$0xff] %v9223_v37  ;;  %v9243_v11 = vld [vmem:[#allocation6 + $0x40] ss:$16 sps:$4 sm:$0xff]  }
 0x63c   :  { %11276 = vst [vmem:[#allocation136_spill] sm:$0xff] %v9243_v11 }
 0x643   :  { %v6329_v3 = vpop.eup %6328 }
 0x644   :  { %v6331_v4 = vpop.eup %6330  ;;  %v3264_v52 = vmul.f32 %v6329_v3, %v6327_v2  ;;  %v9231_v2 = vld [vmem:[#allocation6 + $0x20] ss:$16 sps:$4 sm:$0xff]   ;;  %v9234_v3 = vld [vmem:[#allocation6 + $0x28] ss:$16 sps:$4 sm:$0xff]  }
 0x645   :  { %v3263_v41 = vmul.f32 %v6331_v4, %v8758_v16  ;;  %v3303_v12 = vpop.f32.mrb[84].mxu0  ;;  %v3344_v62 = vpop.f32.mrb[84].mxu1  ;;  %v9217_v16 = vld [vmem:[#allocation6] ss:$16 sps:$4 sm:$0xff]   ;;  %11272 = vst [vmem:[#allocation132_spill] sm:$0xff] %v9231_v2  ;;  %11273 = vst [vmem:[#allocation133_spill] sm:$0xff] %v9234_v3 }
 0x646   :  { %v3305_v36 = vpop.f32.mrb[85].mxu0  ;;  %v3346_v42 = vpop.f32.mrb[85].mxu1  ;;  %v9237_v4 = vld [vmem:[#allocation6 + $0x44] ss:$16 sps:$4 sm:$0xff]  }
 0x647   :  { %v9210_v60 = vadd.f32 %v3264_v52, %v3263_v41  ;;  %v3307_v54 = vpop.f32.mrb[86].mxu0  ;;  %v3348_v50 = vpop.f32.mrb[86].mxu1  ;;  %11274 = vst [vmem:[#allocation134_spill] sm:$0xff] %v9237_v4  ;;  %v9240_v52 = vld [vmem:[#allocation6 + $0x4c] ss:$16 sps:$4 sm:$0xff]  }
 0x648   :  { %v3308_v59 = vpop.f32.mrb[87].mxu0  ;;  %v3349_v46 = vpop.f32.mrb[87].mxu1  ;;  %11275 = vst [vmem:[#allocation135_spill] sm:$0xff] %v9240_v52  ;;  %v9246_v41 = vld [vmem:[#allocation6 + $0x48] ss:$16 sps:$4 sm:$0xff]  }
 0x649   :  { %6334 = vtanh.f32 %v9210_v60  ;;  %v6333_v35 = vpop.eup %6332  ;;  %11277 = vst [vmem:[#allocation137_spill] sm:$0xff] %v9246_v41  ;;  %v9249_v54 = vld [vmem:[#allocation6 + $0x64] ss:$16 sps:$4 sm:$0xff]   ;;  %v9252_v50 = vld [vmem:[#allocation6 + $0x6c] ss:$16 sps:$4 sm:$0xff]  }
 0x64a   :  { %11278 = vst [vmem:[#allocation138_spill] sm:$0xff] %v9249_v54  ;;  %11279 = vst [vmem:[#allocation139_spill] sm:$0xff] %v9252_v50  ;;  %v9255_v59 = vld [vmem:[#allocation6 + $0x60] ss:$16 sps:$4 sm:$0xff]   ;;  %v9258_v46 = vld [vmem:[#allocation6 + $0x68] ss:$16 sps:$4 sm:$0xff]  }
 0x64b   :  { %11280 = vst [vmem:[#allocation140_spill] sm:$0xff] %v9255_v59  ;;  %11281 = vst [vmem:[#allocation141_spill] sm:$0xff] %v9258_v46 }
 0x653   :  { %v6335_v39 = vpop.eup %6334 }
 0x654   :  { %v3267_v13 = vmul.f32 %v6335_v39, %v6333_v35 }
 0x656   :  { %v9213_v58 = vpack.c.bf16 %v3267_v13, %v3267_v13 }
 0x658   :  { %3610 = vmatmul.mubr.bf16.vlgmr.msra.gmra.mrb[96].mxu0 %v9213_v58  ;;  %3651 = vmatmul.mubr.bf16.vlgmr.msra.gmra.mrb[96].mxu1 %v9213_v58 }
 0x659   :  { %3660 = vmatpush1.bf16.msra.mxu0 %v9217_v16  ;;  %3701 = vmatpush1.bf16.msra.mxu1 %v9220_v45 }
 0x65a   :  { %3661 = vmatprep.subr.bf16.mxu0 %v9223_v37  ;;  %3702 = vmatprep.subr.bf16.mxu1 %v9226_v44 }
 0x65b   :  { %3691 = vmatprep.mubr.bf16.mxu0 %v10863_v15  ;;  %3732 = vmatprep.mubr.bf16.mxu1 %v10863_v15 }
 0x65d   :  { %3662 = vmatpush1.bf16.msra.mxu0 %v9231_v2  ;;  %3703 = vmatpush1.bf16.msra.mxu1 %v9234_v3 }
 0x65e   :  { %3663 = vmatprep.subr.bf16.mxu0 %v9237_v4  ;;  %3704 = vmatprep.subr.bf16.mxu1 %v9240_v52  ;;  %v9261_v4 = vld [vmem:[#allocation6 + $0x84] ss:$16 sps:$4 sm:$0xff]  }
 0x661   :  { %3664 = vmatpush1.bf16.msra.mxu0 %v9243_v11  ;;  %3705 = vmatpush1.bf16.msra.mxu1 %v9246_v41 }
 0x662   :  { %3665 = vmatprep.subr.bf16.mxu0 %v9249_v54  ;;  %3706 = vmatprep.subr.bf16.mxu1 %v9252_v50  ;;  %v9264_v54 = vld [vmem:[#allocation6 + $0x8c] ss:$16 sps:$4 sm:$0xff]  }
 0x663   :  { %11282 = vst [vmem:[#allocation142_spill] sm:$0xff] %v9264_v54 }
 0x665   :  { %3666 = vmatpush1.bf16.msra.mxu0 %v9255_v59  ;;  %3707 = vmatpush1.bf16.msra.mxu1 %v9258_v46  ;;  %v3385_v35 = vpop.f32.mrb[88].mxu0  ;;  %v3426_v39 = vpop.f32.mrb[88].mxu1 }
 0x666   :  { %v3386_v13 = vadd.f32 %v3385_v35, %v3303_v12  ;;  %v3427_v41 = vadd.f32 %v3426_v39, %v3344_v62  ;;  %v3387_v11 = vpop.f32.mrb[89].mxu0  ;;  %v3428_v52 = vpop.f32.mrb[89].mxu1  ;;  %3667 = vmatprep.subr.bf16.mxu0 %v9261_v4  ;;  %3708 = vmatprep.subr.bf16.mxu1 %v9264_v54  ;;  %v9269_v62 = vld [vmem:[#allocation6 + $0x80] ss:$16 sps:$4 sm:$0xff]   ;;  %v9272_v35 = vld [vmem:[#allocation6 + $0x88] ss:$16 sps:$4 sm:$0xff]  }
 0x667   :  { %v3388_v50 = vadd.f32 %v3387_v11, %v3305_v36  ;;  %v3429_v59 = vadd.f32 %v3428_v52, %v3346_v42  ;;  %v3389_v3 = vpop.f32.mrb[90].mxu0  ;;  %v3430_v2 = vpop.f32.mrb[90].mxu1  ;;  %v9275_v54 = vld [vmem:[#allocation6 + $0xa4] ss:$16 sps:$4 sm:$0xff]   ;;  %v9278_v36 = vld [vmem:[#allocation6 + $0xac] ss:$16 sps:$4 sm:$0xff]  }
 0x668   :  { %v3433_v46 = vadd.f32 %v3386_v13, %v8513_v53  ;;  %v3390_v44 = vpop.f32.mrb[91].mxu0  ;;  %v3431_v37 = vpop.f32.mrb[91].mxu1  ;;  %v9287_v2 = vld [vmem:[#allocation6 + $0xc4] ss:$16 sps:$4 sm:$0xff]   ;;  %v9290_v3 = vld [vmem:[#allocation6 + $0xcc] ss:$16 sps:$4 sm:$0xff]  }
 0x669   :  { %v3434_v12 = vadd.f32 %v3388_v50, %v8522_v56  ;;  %3668 = vmatpush1.bf16.msra.mxu0 %v9269_v62  ;;  %3709 = vmatpush1.bf16.msra.mxu1 %v9272_v35  ;;  %v9281_v37 = vld [vmem:[#allocation6 + $0xa0] ss:$16 sps:$4 sm:$0xff]   ;;  %v9284_v44 = vld [vmem:[#allocation6 + $0xa8] ss:$16 sps:$4 sm:$0xff]   ;;  %v3436_v52 = vadd.f32 %v3429_v59, %v8545_v0  ;;  %v9303_v13 = vld [vmem:[#allocation6 + $0xec] ss:$16 sps:$4 sm:$0xff]  }
 0x66a   :  { %v5817_v39 = vmul.f32 -1.442695, %v3433_v46  ;;  %3669 = vmatprep.subr.bf16.mxu0 %v9275_v54  ;;  %3710 = vmatprep.subr.bf16.mxu1 %v9278_v36  ;;  %v9294_v11 = vld [vmem:[#allocation6 + $0xc0] ss:$16 sps:$4 sm:$0xff]   ;;  %v9297_v50 = vld [vmem:[#allocation6 + $0xc8] ss:$16 sps:$4 sm:$0xff]  }
 0x66b   :  { %v5818_v42 = vmul.f32 -1.442695, %v3434_v12  ;;  %11283 = vst [vmem:[#allocation143_spill] sm:$0xff] %v9294_v11  ;;  %11284 = vst [vmem:[#allocation144_spill] sm:$0xff] %v9297_v50  ;;  %v9300_v46 = vld [vmem:[#allocation6 + $0xe4] ss:$16 sps:$4 sm:$0xff]  }
 0x66c   :  { %6336 = vpow2.f32 %v5817_v39  ;;  %11285 = vst [vmem:[#allocation145_spill] sm:$0xff] %v9300_v46  ;;  %v5819_v12 = vmul.f32 -1.442695, %v3436_v52  ;;  %v3435_v39 = vadd.f32 %v3427_v41, %v8561_v57  ;;  %v9307_v59 = vld [vmem:[#allocation6 + $0xe0] ss:$16 sps:$4 sm:$0xff]  }
 0x66d   :  { %6338 = vpow2.f32 %v5818_v42  ;;  %3670 = vmatpush1.bf16.msra.mxu0 %v9281_v37  ;;  %3711 = vmatpush1.bf16.msra.mxu1 %v9284_v44  ;;  %v9310_v42 = vld [vmem:[#allocation6 + $0xe8] ss:$16 sps:$4 sm:$0xff]  }
 0x66e   :  { %3671 = vmatprep.subr.bf16.mxu0 %v9287_v2  ;;  %3712 = vmatprep.subr.bf16.mxu1 %v9290_v3  ;;  %6340 = vpow2.f32 %v5819_v12 }
 0x66f   :  { %6342 = vtanh.f32 %v3435_v39 }
 0x671   :  { %3672 = vmatpush1.bf16.msra.mxu0 %v9294_v11  ;;  %3713 = vmatpush1.bf16.msra.mxu1 %v9297_v50 }
 0x672   :  { %3673 = vmatprep.subr.bf16.mxu0 %v9300_v46  ;;  %3714 = vmatprep.subr.bf16.mxu1 %v9303_v13 }
 0x675   :  { %3674 = vmatpush1.bf16.msra.mxu0 %v9307_v59  ;;  %3715 = vmatpush1.bf16.msra.mxu1 %v9310_v42 }
 0x676   :  { %v6337_v50 = vpop.eup %6336  ;;  %3770 = vmatprep.subr.bf16.mxu0 %v8801_v9  ;;  %3811 = vmatprep.subr.bf16.mxu1 %v8804_v33 }
 0x677   :  { %v6339_v46 = vpop.eup %6338  ;;  %v3440_v11 = vadd.f32 1.0, %v6337_v50  ;;  %v11289_v50 = vld [vmem:[#allocation37_spill] sm:$0xff] }
 0x678   :  { %v3446_v52 = vadd.f32 1.0, %v6339_v46  ;;  %3692 = vmatmul.mubr.bf16.vlgmr.msra.gmra.mrb[100].mxu0 %v9091_v49  ;;  %3733 = vmatmul.mubr.bf16.vlgmr.msra.gmra.mrb[100].mxu1 %v9091_v49  ;;  %v6341_v9 = vpop.eup %6340 }
 0x679   :  { %6344 = vrcp.f32 %v3440_v11  ;;  %3771 = vmatpush1.bf16.msra.mxu0 %v8809_v27  ;;  %3812 = vmatpush1.bf16.msra.mxu1 %v8812_v63  ;;  %v6343_v33 = vpop.eup %6342  ;;  %v11288_v11 = vld [vmem:[#allocation36_spill] sm:$0xff] }
 0x67a   :  { %6346 = vrcp.f32 %v3446_v52  ;;  %3772 = vmatprep.subr.bf16.mxu0 %v8815_v8  ;;  %3813 = vmatprep.subr.bf16.mxu1 %v8818_v23  ;;  %v3453_v23 = vadd.f32 1.0, %v6341_v9 }
 0x67b   :  { %3802 = vmatprep.mubr.bf16.mxu0 %v10863_v15  ;;  %3843 = vmatprep.mubr.bf16.mxu1 %v10863_v15 }
 0x67c   :  { %6348 = vrcp.f32 %v3453_v23  ;;  %v11295_v23 = vld [vmem:[#allocation50_spill] sm:$0xff] }
 0x67d   :  { %3773 = vmatpush1.bf16.msra.mxu0 %v8823_v26  ;;  %3814 = vmatpush1.bf16.msra.mxu1 %v8826_v5 }
 0x67e   :  { %3774 = vmatprep.subr.bf16.mxu0 %v8829_v31  ;;  %3815 = vmatprep.subr.bf16.mxu1 %v8832_v1  ;;  %v11286_v1 = vld [vmem:[#allocation34_spill] sm:$0xff] }
 0x681   :  { %3775 = vmatpush1.bf16.msra.mxu0 %v8835_v7  ;;  %3816 = vmatpush1.bf16.msra.mxu1 %v8838_v24  ;;  %v11287_v24 = vld [vmem:[#allocation35_spill] sm:$0xff] }
 0x682   :  { %3776 = vmatprep.subr.bf16.mxu0 %v8841_v6  ;;  %3817 = vmatprep.subr.bf16.mxu1 %v8844_v25 }
 0x683   :  { %v6345_v27 = vpop.eup %6344 }
 0x684   :  { %v6347_v63 = vpop.eup %6346  ;;  %v3457_v8 = vmul.f32 %v6345_v27, %v6343_v33  ;;  %v11293_v33 = vld [vmem:[#allocation48_spill] sm:$0xff]  ;;  %v11294_v27 = vld [vmem:[#allocation49_spill] sm:$0xff] }
 0x685   :  { %v3456_v26 = vmul.f32 %v6347_v63, %v8860_v18  ;;  %3777 = vmatpush1.bf16.msra.mxu0 %v8848_v47  ;;  %3818 = vmatpush1.bf16.msra.mxu1 %v8851_v48  ;;  %v3500_v5 = vpop.f32.mrb[92].mxu0  ;;  %v3541_v31 = vpop.f32.mrb[92].mxu1 }
 0x686   :  { %v3548_v7 = vadd.f32 %v3500_v5, %v11286_v1  ;;  %v3550_v49 = vadd.f32 %v3541_v31, %v11287_v24  ;;  %3778 = vmatprep.subr.bf16.mxu0 %v8854_v17  ;;  %3819 = vmatprep.subr.bf16.mxu1 %v8857_v19  ;;  %v3502_v6 = vpop.f32.mrb[93].mxu0  ;;  %v3543_v25 = vpop.f32.mrb[93].mxu1  ;;  %v11290_v17 = vld [vmem:[#allocation46_spill] sm:$0xff]  ;;  %v11291_v19 = vld [vmem:[#allocation21_spill] sm:$0xff]  ;;  %v11298_v5 = vld [vmem:[#allocation20_spill] sm:$0xff] }
 0x687   :  { %v9338_v41 = vadd.f32 %v3457_v8, %v3456_v26  ;;  %v3549_v18 = vadd.f32 %v3502_v6, %v11288_v11  ;;  %v9342_v47 = vadd.f32 %v3543_v25, %v11289_v50  ;;  %v3504_v48 = vpop.f32.mrb[94].mxu0  ;;  %v3545_v46 = vpop.f32.mrb[94].mxu1  ;;  %v11297_v26 = vld [vmem:[#allocation52_spill] sm:$0xff]  ;;  %v11299_v1 = vld [vmem:[#allocation53_spill] sm:$0xff]  ;;  %v11301_v24 = vld [vmem:[#allocation55_spill] sm:$0xff] }
 0x688   :  { %v5820_v12 = vmul.f32 -1.442695, %v3548_v7  ;;  %v3505_v39 = vpop.f32.mrb[95].mxu0  ;;  %v3546_v52 = vpop.f32.mrb[95].mxu1  ;;  %v11300_v7 = vld [vmem:[#allocation54_spill] sm:$0xff]  ;;  %v11302_v6 = vld [vmem:[#allocation56_spill] sm:$0xff] }
 0x689   :  { %v5821_v9 = vmul.f32 -1.442695, %v3549_v18  ;;  %3779 = vmatpush1.bf16.msra.mxu0 %v8862_v30  ;;  %3820 = vmatpush1.bf16.msra.mxu1 %v8865_v20  ;;  %6350 = vtanh.f32 %v9338_v41  ;;  %v11292_v30 = vld [vmem:[#allocation47_spill] sm:$0xff]  ;;  %v6349_v20 = vpop.eup %6348  ;;  %v11304_v25 = vld [vmem:[#allocation58_spill] sm:$0xff]  ;;  %v11306_v18 = vld [vmem:[#allocation60_spill] sm:$0xff] }
 0x68a   :  { %6352 = vpow2.f32 %v5820_v12  ;;  %3780 = vmatprep.subr.bf16.mxu0 %v8869_v21  ;;  %3821 = vmatprep.subr.bf16.mxu1 %v8872_v22  ;;  %v11305_v11 = vld [vmem:[#allocation59_spill] sm:$0xff]  ;;  %v11307_v46 = vld [vmem:[#allocation61_spill] sm:$0xff]  ;;  %v11308_v12 = vld [vmem:[#allocation62_spill] sm:$0xff] }
 0x68b   :  { %6354 = vpow2.f32 %v5821_v9  ;;  %v11309_v9 = vld [vmem:[#allocation63_spill] sm:$0xff] }
 0x68c   :  { %6356 = vtanh.f32 %v3550_v49  ;;  %v11303_v49 = vld [vmem:[#allocation57_spill] sm:$0xff] }
 0x68d   :  { %3781 = vmatpush1.bf16.msra.mxu0 %v8875_v34  ;;  %3822 = vmatpush1.bf16.msra.mxu1 %v8878_v32  ;;  %v11296_v32 = vld [vmem:[#allocation51_spill] sm:$0xff] }
 0x68e   :  { %3782 = vmatprep.subr.bf16.mxu0 %v8881_v51  ;;  %3823 = vmatprep.subr.bf16.mxu1 %v11290_v17  ;;  %v11310_v17 = vld [vmem:[#allocation64_spill] sm:$0xff] }
 0x691   :  { %3783 = vmatpush1.bf16.msra.mxu0 %v11291_v19  ;;  %3824 = vmatpush1.bf16.msra.mxu1 %v11292_v30 }
 0x692   :  { %3784 = vmatprep.subr.bf16.mxu0 %v11293_v33  ;;  %3825 = vmatprep.subr.bf16.mxu1 %v11294_v27  ;;  %v11312_v33 = vld [vmem:[#allocation66_spill] sm:$0xff]  ;;  %v11313_v27 = vld [vmem:[#allocation67_spill] sm:$0xff] }
 0x693   :  { %v6351_v21 = vpop.eup %6350 }
 0x694   :  { %v6353_v22 = vpop.eup %6352  ;;  %v3460_v63 = vmul.f32 %v6351_v21, %v6349_v20  ;;  %v11311_v20 = vld [vmem:[#allocation65_spill] sm:$0xff]  ;;  %v11314_v21 = vld [vmem:[#allocation68_spill] sm:$0xff] }
 0x695   :  { %v6355_v8 = vpop.eup %6354  ;;  %v3555_v34 = vadd.f32 1.0, %v6353_v22  ;;  %3785 = vmatpush1.bf16.msra.mxu0 %v11295_v23  ;;  %3826 = vmatpush1.bf16.msra.mxu1 %v11296_v32  ;;  %v11315_v22 = vld [vmem:[#allocation69_spill] sm:$0xff]  ;;  %v11320_v23 = vld [vmem:[#allocation74_spill] sm:$0xff]  ;;  %v11321_v32 = vld [vmem:[#allocation75_spill] sm:$0xff] }
 0x696   :  { %v3561_v51 = vadd.f32 1.0, %v6355_v8  ;;  %3852 = vmatprep.subr.bf16.mxu0 %v11297_v26  ;;  %3893 = vmatprep.subr.bf16.mxu1 %v11298_v5  ;;  %v3461_v31 = vpack.c.bf16 %v3460_v63, %v3460_v63  ;;  %v6357_v50 = vpop.eup %6356  ;;  %v11317_v63 = vld [vmem:[#allocation71_spill] sm:$0xff]  ;;  %v11318_v8 = vld [vmem:[#allocation72_spill] sm:$0xff] }
 0x697   :  { %6358 = vrcp.f32 %v3555_v34  ;;  %v11319_v34 = vld [vmem:[#allocation73_spill] sm:$0xff] }
 0x698   :  { %6360 = vrcp.f32 %v3561_v51  ;;  %3803 = vmatmul.mubr.bf16.vlgmr.msra.gmra.mrb[104].mxu0 %v3461_v31  ;;  %3844 = vmatmul.mubr.bf16.vlgmr.msra.gmra.mrb[104].mxu1 %v3461_v31  ;;  %v9397_v51 = vld [vmem:[#allocation3 + $0x4] ss:$16 sps:$4 sm:$0xff]   ;;  %v9400_v26 = vld [vmem:[#allocation3 + $0xc] ss:$16 sps:$4 sm:$0xff]   ;;  %v9408_v5 = vld [vmem:[#allocation3 + $0x8] ss:$16 sps:$4 sm:$0xff]  }
 0x699   :  { %3853 = vmatpush1.bf16.msra.mxu0 %v11299_v1  ;;  %3894 = vmatpush1.bf16.msra.mxu1 %v11300_v7  ;;  %v9411_v31 = vld [vmem:[#allocation3 + $0x24] ss:$16 sps:$4 sm:$0xff]   ;;  %v9414_v1 = vld [vmem:[#allocation3 + $0x2c] ss:$16 sps:$4 sm:$0xff]  }
 0x69a   :  { %3854 = vmatprep.subr.bf16.mxu0 %v11301_v24  ;;  %3895 = vmatprep.subr.bf16.mxu1 %v11302_v6  ;;  %v11325_v7 = vld [vmem:[#allocation79_spill] sm:$0xff]  ;;  %v11326_v24 = vld [vmem:[#allocation80_spill] sm:$0xff]  ;;  %v11327_v6 = vld [vmem:[#allocation81_spill] sm:$0xff] }
 0x69b   :  { %3884 = vmatprep.mubr.bf16.mxu0 %v10863_v15  ;;  %3925 = vmatprep.mubr.bf16.mxu1 %v10863_v15 }
 0x69d   :  { %3855 = vmatpush1.bf16.msra.mxu0 %v11303_v49  ;;  %3896 = vmatpush1.bf16.msra.mxu1 %v11304_v25  ;;  %v11328_v25 = vld [vmem:[#allocation82_spill] sm:$0xff] }
 0x69e   :  { %3856 = vmatprep.subr.bf16.mxu0 %v11305_v11  ;;  %3897 = vmatprep.subr.bf16.mxu1 %v11306_v18  ;;  %v11329_v11 = vld [vmem:[#allocation83_spill] sm:$0xff]  ;;  %v11330_v18 = vld [vmem:[#allocation84_spill] sm:$0xff] }
 0x6a1   :  { %v6359_v48 = vpop.eup %6358  ;;  %3857 = vmatpush1.bf16.msra.mxu0 %v11307_v46  ;;  %3898 = vmatpush1.bf16.msra.mxu1 %v11308_v12  ;;  %v11332_v46 = vld [vmem:[#allocation86_spill] sm:$0xff] }
 0x6a2   :  { %v6361_v39 = vpop.eup %6360  ;;  %v3572_v52 = vmul.f32 %v6359_v48, %v6357_v50  ;;  %3858 = vmatprep.subr.bf16.mxu0 %v11309_v9  ;;  %3899 = vmatprep.subr.bf16.mxu1 %v11310_v17  ;;  %v11331_v50 = vld [vmem:[#allocation85_spill] sm:$0xff]  ;;  %v11333_v12 = vld [vmem:[#allocation26_spill] sm:$0xff]  ;;  %v11337_v17 = vld [vmem:[#allocation87_spill] sm:$0xff] }
 0x6a3   :  { %v3571_v19 = vmul.f32 %v6361_v39, %v9040_v10  ;;  %v11316_v10 = vld [vmem:[#allocation70_spill] sm:$0xff]  ;;  %v11334_v39 = vld [vmem:[#allocation27_spill] sm:$0xff]  ;;  %v11336_v9 = vld [vmem:[#allocation29_spill] sm:$0xff] }
 0x6a5   :  { %v9376_v30 = vadd.f32 %v3572_v52, %v3571_v19  ;;  %3859 = vmatpush1.bf16.msra.mxu0 %v11311_v20  ;;  %3900 = vmatpush1.bf16.msra.mxu1 %v11312_v33  ;;  %v11335_v52 = vld [vmem:[#allocation28_spill] sm:$0xff]  ;;  %v11339_v20 = vld [vmem:[#allocation89_spill] sm:$0xff]  ;;  %v11340_v33 = vld [vmem:[#allocation90_spill] sm:$0xff] }
 0x6a6   :  { %3860 = vmatprep.subr.bf16.mxu0 %v11313_v27  ;;  %3901 = vmatprep.subr.bf16.mxu1 %v11314_v21  ;;  %v11338_v19 = vld [vmem:[#allocation88_spill] sm:$0xff]  ;;  %v11341_v27 = vld [vmem:[#allocation91_spill] sm:$0xff] }
 0x6a7   :  { %v11342_v21 = vld [vmem:[#allocation92_spill] sm:$0xff] }
 0x6a9   :  { %3861 = vmatpush1.bf16.msra.mxu0 %v8965_v29  ;;  %3902 = vmatpush1.bf16.msra.mxu1 %v8968_v14  ;;  %v5822_v29 = vmul.f32 -1.442695, %v9342_v47  ;;  %v11322_v14 = vld [vmem:[#allocation76_spill] sm:$0xff] }
 0x6aa   :  { %3862 = vmatprep.subr.bf16.mxu0 %v8971_v43  ;;  %3903 = vmatprep.subr.bf16.mxu1 %v8974_v40  ;;  %v11323_v43 = vld [vmem:[#allocation77_spill] sm:$0xff]  ;;  %v11324_v40 = vld [vmem:[#allocation78_spill] sm:$0xff] }
 0x6ab   :  { %6362 = vpow2.f32 %v5822_v29  ;;  %v9405_v47 = vld [vmem:[#allocation3] ss:$16 sps:$4 sm:$0xff]   ;;  %v11347_v29 = vld [vmem:[#allocation97_spill] sm:$0xff] }
 0x6ac   :  { %6364 = vtanh.f32 %v9376_v30 }
 0x6ad   :  { %3863 = vmatpush1.bf16.msra.mxu0 %v11315_v22  ;;  %3904 = vmatpush1.bf16.msra.mxu1 %v11316_v10  ;;  %v11343_v22 = vld [vmem:[#allocation93_spill] sm:$0xff] }
 0x6ae   :  { %3864 = vmatprep.subr.bf16.mxu0 %v11317_v63  ;;  %3905 = vmatprep.subr.bf16.mxu1 %v11318_v8  ;;  %v11344_v8 = vld [vmem:[#allocation94_spill] sm:$0xff] }
 0x6b1   :  { %3865 = vmatpush1.bf16.msra.mxu0 %v11319_v34  ;;  %3906 = vmatpush1.bf16.msra.mxu1 %v11320_v23  ;;  %v11345_v34 = vld [vmem:[#allocation95_spill] sm:$0xff]  ;;  %v11346_v23 = vld [vmem:[#allocation96_spill] sm:$0xff] }
 0x6b2   :  { %3866 = vmatprep.subr.bf16.mxu0 %v11321_v32  ;;  %3907 = vmatprep.subr.bf16.mxu1 %v11322_v14  ;;  %v11348_v14 = vld [vmem:[#allocation98_spill] sm:$0xff] }
 0x6b5   :  { %3867 = vmatpush1.bf16.msra.mxu0 %v11323_v43  ;;  %3908 = vmatpush1.bf16.msra.mxu1 %v11324_v40  ;;  %v6363_v49 = vpop.eup %6362  ;;  %v11349_v43 = vld [vmem:[#allocation99_spill] sm:$0xff] }
 0x6b6   :  { %3967 = vmatprep.subr.bf16.mxu0 %v9397_v51  ;;  %4008 = vmatprep.subr.bf16.mxu1 %v9400_v26  ;;  %v3568_v48 = vadd.f32 1.0, %v6363_v49  ;;  %v6365_v10 = vpop.eup %6364  ;;  %v11353_v49 = vld [vmem:[#allocation22_spill] sm:$0xff] }
 0x6b8   :  { %3885 = vmatmul.mubr.bf16.vlgmr.msra.gmra.mrb[108].mxu0 %v9213_v58  ;;  %3926 = vmatmul.mubr.bf16.vlgmr.msra.gmra.mrb[108].mxu1 %v9213_v58  ;;  %v9419_v58 = vld [vmem:[#allocation3 + $0x20] ss:$16 sps:$4 sm:$0xff]   ;;  %6366 = vrcp.f32 %v3568_v48 }
 0x6b9   :  { %3968 = vmatpush1.bf16.msra.mxu0 %v9405_v47  ;;  %4009 = vmatpush1.bf16.msra.mxu1 %v9408_v5  ;;  %v11358_v48 = vld [vmem:[#allocation104_spill] sm:$0xff] }
 0x6ba   :  { %3969 = vmatprep.subr.bf16.mxu0 %v9411_v31  ;;  %4010 = vmatprep.subr.bf16.mxu1 %v9414_v1 }
 0x6bb   :  { %3999 = vmatprep.mubr.bf16.mxu0 %v10863_v15  ;;  %4040 = vmatprep.mubr.bf16.mxu1 %v10863_v15 }
 0x6bd   :  { %3970 = vmatpush1.bf16.msra.mxu0 %v9419_v58  ;;  %4011 = vmatpush1.bf16.msra.mxu1 %v11325_v7  ;;  %v11350_v7 = vld [vmem:[#allocation100_spill] sm:$0xff] }
 0x6be   :  { %3971 = vmatprep.subr.bf16.mxu0 %v11326_v24  ;;  %4012 = vmatprep.subr.bf16.mxu1 %v11327_v6  ;;  %v11351_v24 = vld [vmem:[#allocation101_spill] sm:$0xff]  ;;  %v11352_v6 = vld [vmem:[#allocation102_spill] sm:$0xff] }
 0x6c1   :  { %3972 = vmatpush1.bf16.msra.mxu0 %v11328_v25  ;;  %4013 = vmatpush1.bf16.msra.mxu1 %v11329_v11  ;;  %v11354_v25 = vld [vmem:[#allocation23_spill] sm:$0xff]  ;;  %v11355_v11 = vld [vmem:[#allocation24_spill] sm:$0xff] }
 0x6c2   :  { %3973 = vmatprep.subr.bf16.mxu0 %v11330_v18  ;;  %4014 = vmatprep.subr.bf16.mxu1 %v11331_v50  ;;  %v6367_v63 = vpop.eup %6366  ;;  %v11356_v18 = vld [vmem:[#allocation25_spill] sm:$0xff]  ;;  %v11357_v50 = vld [vmem:[#allocation103_spill] sm:$0xff] }
 0x6c3   :  { %v3575_v32 = vmul.f32 %v6367_v63, %v6365_v10  ;;  %v11371_v10 = vld [vmem:[#allocation117_spill] sm:$0xff]  ;;  %v11372_v63 = vld [vmem:[#allocation118_spill] sm:$0xff] }
 0x6c5   :  { %3974 = vmatpush1.bf16.msra.mxu0 %v11332_v46  ;;  %4015 = vmatpush1.bf16.msra.mxu1 %v11333_v12  ;;  %v9448_v40 = vpack.c.bf16 %v3575_v32, %v3575_v32  ;;  %v11359_v46 = vld [vmem:[#allocation105_spill] sm:$0xff]  ;;  %v11360_v12 = vld [vmem:[#allocation106_spill] sm:$0xff]  ;;  %v11377_v32 = vld [vmem:[#allocation123_spill] sm:$0xff] }
 0x6c6   :  { %3975 = vmatprep.subr.bf16.mxu0 %v11334_v39  ;;  %4016 = vmatprep.subr.bf16.mxu1 %v11335_v52  ;;  %v11361_v39 = vld [vmem:[#allocation107_spill] sm:$0xff]  ;;  %v11362_v52 = vld [vmem:[#allocation108_spill] sm:$0xff] }
 0x6c9   :  { %3976 = vmatpush1.bf16.msra.mxu0 %v11336_v9  ;;  %4017 = vmatpush1.bf16.msra.mxu1 %v11337_v17  ;;  %v11363_v9 = vld [vmem:[#allocation109_spill] sm:$0xff]  ;;  %v11364_v17 = vld [vmem:[#allocation110_spill] sm:$0xff] }
 0x6ca   :  { %3977 = vmatprep.subr.bf16.mxu0 %v11338_v19  ;;  %4018 = vmatprep.subr.bf16.mxu1 %v11339_v20  ;;  %v11365_v19 = vld [vmem:[#allocation111_spill] sm:$0xff]  ;;  %v11366_v20 = vld [vmem:[#allocation112_spill] sm:$0xff] }
 0x6cd   :  { %3978 = vmatpush1.bf16.msra.mxu0 %v11340_v33  ;;  %4019 = vmatpush1.bf16.msra.mxu1 %v11341_v27  ;;  %v11367_v33 = vld [vmem:[#allocation113_spill] sm:$0xff]  ;;  %v11368_v27 = vld [vmem:[#allocation114_spill] sm:$0xff] }
 0x6ce   :  { %3979 = vmatprep.subr.bf16.mxu0 %v11342_v21  ;;  %4020 = vmatprep.subr.bf16.mxu1 %v11343_v22  ;;  %v11369_v21 = vld [vmem:[#allocation115_spill] sm:$0xff]  ;;  %v11370_v22 = vld [vmem:[#allocation116_spill] sm:$0xff] }
 0x6d1   :  { %3980 = vmatpush1.bf16.msra.mxu0 %v11344_v8  ;;  %4021 = vmatpush1.bf16.msra.mxu1 %v11345_v34  ;;  %v11373_v8 = vld [vmem:[#allocation119_spill] sm:$0xff]  ;;  %v11374_v34 = vld [vmem:[#allocation120_spill] sm:$0xff] }
 0x6d2   :  { %3981 = vmatprep.subr.bf16.mxu0 %v11346_v23  ;;  %4022 = vmatprep.subr.bf16.mxu1 %v11347_v29  ;;  %v11375_v23 = vld [vmem:[#allocation121_spill] sm:$0xff]  ;;  %v11376_v29 = vld [vmem:[#allocation122_spill] sm:$0xff] }
 0x6d5   :  { %3982 = vmatpush1.bf16.msra.mxu0 %v11348_v14  ;;  %4023 = vmatpush1.bf16.msra.mxu1 %v11349_v43  ;;  %v11378_v14 = vld [vmem:[#allocation124_spill] sm:$0xff]  ;;  %v11379_v43 = vld [vmem:[#allocation125_spill] sm:$0xff] }
 0x6d6   :  { %4078 = vmatprep.subr.bf16.mxu0 %v11350_v7  ;;  %4119 = vmatprep.subr.bf16.mxu1 %v11351_v24  ;;  %v11380_v7 = vld [vmem:[#allocation126_spill] sm:$0xff]  ;;  %v11381_v24 = vld [vmem:[#allocation127_spill] sm:$0xff] }
 0x6d8   :  { %4000 = vmatmul.mubr.bf16.vlgmr.msra.gmra.mrb[112].mxu0 %v9448_v40  ;;  %4041 = vmatmul.mubr.bf16.vlgmr.msra.gmra.mrb[112].mxu1 %v9448_v40 }
 0x6d9   :  { %4079 = vmatpush1.bf16.msra.mxu0 %v11352_v6  ;;  %4120 = vmatpush1.bf16.msra.mxu1 %v11353_v49  ;;  %v11382_v6 = vld [vmem:[#allocation128_spill] sm:$0xff]  ;;  %v11383_v49 = vld [vmem:[#allocation129_spill] sm:$0xff] }
 0x6da   :  { %4080 = vmatprep.subr.bf16.mxu0 %v11354_v25  ;;  %4121 = vmatprep.subr.bf16.mxu1 %v11355_v11 }
 0x6db   :  { %4110 = vmatprep.mubr.bf16.mxu0 %v10863_v15  ;;  %4151 = vmatprep.mubr.bf16.mxu1 %v10863_v15 }
 0x6dd   :  { %4081 = vmatpush1.bf16.msra.mxu0 %v11356_v18  ;;  %4122 = vmatpush1.bf16.msra.mxu1 %v11357_v50 }
 0x6de   :  { %4082 = vmatprep.subr.bf16.mxu0 %v11358_v48  ;;  %4123 = vmatprep.subr.bf16.mxu1 %v11359_v46 }
 0x6e1   :  { %4083 = vmatpush1.bf16.msra.mxu0 %v11360_v12  ;;  %4124 = vmatpush1.bf16.msra.mxu1 %v11361_v39 }
 0x6e2   :  { %4084 = vmatprep.subr.bf16.mxu0 %v11362_v52  ;;  %4125 = vmatprep.subr.bf16.mxu1 %v11363_v9 }
 0x6e5   :  { %4085 = vmatpush1.bf16.msra.mxu0 %v11364_v17  ;;  %4126 = vmatpush1.bf16.msra.mxu1 %v11365_v19 }
 0x6e6   :  { %4086 = vmatprep.subr.bf16.mxu0 %v11366_v20  ;;  %4127 = vmatprep.subr.bf16.mxu1 %v11367_v33 }
 0x6e9   :  { %4087 = vmatpush1.bf16.msra.mxu0 %v11368_v27  ;;  %4128 = vmatpush1.bf16.msra.mxu1 %v11369_v21 }
 0x6ea   :  { %4088 = vmatprep.subr.bf16.mxu0 %v11370_v22  ;;  %4129 = vmatprep.subr.bf16.mxu1 %v11371_v10 }
 0x6ed   :  { %4089 = vmatpush1.bf16.msra.mxu0 %v11372_v63  ;;  %4130 = vmatpush1.bf16.msra.mxu1 %v11373_v8 }
 0x6ee   :  { %4090 = vmatprep.subr.bf16.mxu0 %v11374_v34  ;;  %4131 = vmatprep.subr.bf16.mxu1 %v11375_v23 }
 0x6f1   :  { %4091 = vmatpush1.bf16.msra.mxu0 %v11376_v29  ;;  %4132 = vmatpush1.bf16.msra.mxu1 %v11377_v32 }
 0x6f2   :  { %4092 = vmatprep.subr.bf16.mxu0 %v11378_v14  ;;  %4133 = vmatprep.subr.bf16.mxu1 %v11379_v43 }
 0x6f5   :  { %4093 = vmatpush1.bf16.msra.mxu0 %v11380_v7  ;;  %4134 = vmatpush1.bf16.msra.mxu1 %v11381_v24 }
 0x6f6   :  { %4160 = vmatprep.subr.bf16.mxu0 %v11382_v6  ;;  %4201 = vmatprep.subr.bf16.mxu1 %v11383_v49 }
 0x72b   :  { %v3611_v25 = vpop.f32.mrb[96].mxu0  ;;  %v3652_v11 = vpop.f32.mrb[96].mxu1 }
 0x72c   :  { %v3613_v18 = vpop.f32.mrb[97].mxu0  ;;  %v3654_v50 = vpop.f32.mrb[97].mxu1 }
 0x72d   :  { %v3615_v48 = vpop.f32.mrb[98].mxu0  ;;  %v3656_v46 = vpop.f32.mrb[98].mxu1 }
 0x72e   :  { %v3616_v12 = vpop.f32.mrb[99].mxu0  ;;  %v3657_v39 = vpop.f32.mrb[99].mxu1 }
 0x74b   :  { %v3693_v52 = vpop.f32.mrb[100].mxu0  ;;  %v3734_v9 = vpop.f32.mrb[100].mxu1 }
 0x74c   :  { %v3694_v17 = vadd.f32 %v3693_v52, %v3611_v25  ;;  %v3735_v19 = vadd.f32 %v3734_v9, %v3652_v11  ;;  %v3695_v20 = vpop.f32.mrb[101].mxu0  ;;  %v3736_v33 = vpop.f32.mrb[101].mxu1 }
 0x74d   :  { %v3696_v27 = vadd.f32 %v3695_v20, %v3613_v18  ;;  %v3737_v21 = vadd.f32 %v3736_v33, %v3654_v50  ;;  %v3697_v22 = vpop.f32.mrb[102].mxu0  ;;  %v3738_v10 = vpop.f32.mrb[102].mxu1 }
 0x74e   :  { %v3741_v63 = vadd.f32 %v3694_v17, %v7985_v28  ;;  %v3698_v8 = vpop.f32.mrb[103].mxu0  ;;  %v3739_v34 = vpop.f32.mrb[103].mxu1  ;;  %v3743_v7 = vadd.f32 %v3735_v19, %v8009_v61 }
 0x74f   :  { %v3742_v23 = vadd.f32 %v3696_v27, %v7990_v38  ;;  %v3744_v14 = vadd.f32 %v3737_v21, %v7999_v55 }
 0x750   :  { %v5823_v29 = vmul.f32 -1.442695, %v3741_v63 }
 0x751   :  { %v5824_v32 = vmul.f32 -1.442695, %v3742_v23  ;;  %v5825_v43 = vmul.f32 -1.442695, %v3744_v14  ;;  %v11385_v23 = vld [vmem:[#allocation131_spill] sm:$0xff]  ;;  %v11388_v14 = vld [vmem:[#allocation134_spill] sm:$0xff] }
 0x752   :  { %6368 = vpow2.f32 %v5823_v29  ;;  %v11386_v29 = vld [vmem:[#allocation132_spill] sm:$0xff] }
 0x753   :  { %6370 = vpow2.f32 %v5824_v32  ;;  %v11387_v32 = vld [vmem:[#allocation133_spill] sm:$0xff] }
 0x754   :  { %6372 = vpow2.f32 %v5825_v43  ;;  %v11389_v43 = vld [vmem:[#allocation135_spill] sm:$0xff] }
 0x755   :  { %6374 = vtanh.f32 %v3743_v7  ;;  %v11390_v7 = vld [vmem:[#allocation136_spill] sm:$0xff] }
 0x75c   :  { %v6369_v24 = vpop.eup %6368 }
 0x75d   :  { %v6371_v6 = vpop.eup %6370  ;;  %v3748_v49 = vadd.f32 1.0, %v6369_v24  ;;  %v11393_v24 = vld [vmem:[#allocation139_spill] sm:$0xff] }
 0x75e   :  { %v3754_v25 = vadd.f32 1.0, %v6371_v6  ;;  %v6373_v11 = vpop.eup %6372  ;;  %v11394_v6 = vld [vmem:[#allocation140_spill] sm:$0xff] }
 0x75f   :  { %6376 = vrcp.f32 %v3748_v49  ;;  %v6375_v18 = vpop.eup %6374  ;;  %v3761_v12 = vadd.f32 1.0, %v6373_v11  ;;  %v11395_v49 = vld [vmem:[#allocation141_spill] sm:$0xff] }
 0x760   :  { %6378 = vrcp.f32 %v3754_v25 }
 0x761   :  { %6380 = vrcp.f32 %v3761_v12  ;;  %v11396_v12 = vld [vmem:[#allocation142_spill] sm:$0xff] }
 0x769   :  { %v6377_v50 = vpop.eup %6376 }
 0x76a   :  { %v6379_v48 = vpop.eup %6378  ;;  %v3765_v46 = vmul.f32 %v6377_v50, %v6375_v18 }
 0x76b   :  { %v3764_v39 = vmul.f32 %v6379_v48, %v9210_v60  ;;  %v3804_v52 = vpop.f32.mrb[104].mxu0  ;;  %v3845_v9 = vpop.f32.mrb[104].mxu1  ;;  %v11384_v60 = vld [vmem:[#allocation130_spill] sm:$0xff] }
 0x76c   :  { %v3806_v17 = vpop.f32.mrb[105].mxu0  ;;  %v3847_v19 = vpop.f32.mrb[105].mxu1 }
 0x76d   :  { %v9493_v20 = vadd.f32 %v3765_v46, %v3764_v39  ;;  %v3808_v33 = vpop.f32.mrb[106].mxu0  ;;  %v3849_v27 = vpop.f32.mrb[106].mxu1 }
 0x76e   :  { %v3809_v21 = vpop.f32.mrb[107].mxu0  ;;  %v3850_v22 = vpop.f32.mrb[107].mxu1 }
 0x76f   :  { %6382 = vtanh.f32 %v9493_v20  ;;  %v6381_v10 = vpop.eup %6380 }
 0x779   :  { %v6383_v63 = vpop.eup %6382 }
 0x77a   :  { %v3768_v8 = vmul.f32 %v6383_v63, %v6381_v10 }
 0x77c   :  { %v9496_v34 = vpack.c.bf16 %v3768_v8, %v3768_v8 }
 0x77e   :  { %4111 = vmatmul.mubr.bf16.vlgmr.msra.gmra.mrb[116].mxu0 %v9496_v34  ;;  %4152 = vmatmul.mubr.bf16.vlgmr.msra.gmra.mrb[116].mxu1 %v9496_v34 }
 0x77f   :  { %4161 = vmatpush1.bf16.msra.mxu0 %v9217_v16  ;;  %4202 = vmatpush1.bf16.msra.mxu1 %v9220_v45  ;;  %v11391_v16 = vld [vmem:[#allocation137_spill] sm:$0xff]  ;;  %v11392_v45 = vld [vmem:[#allocation138_spill] sm:$0xff] }
 0x780   :  { %4162 = vmatprep.subr.bf16.mxu0 %v11384_v60  ;;  %4203 = vmatprep.subr.bf16.mxu1 %v11385_v23  ;;  %v9550_v60 = vld [vmem:[#allocation11 + $0x24] ss:$16 sps:$4 sm:$0xff]   ;;  %v9553_v23 = vld [vmem:[#allocation11 + $0x2c] ss:$16 sps:$4 sm:$0xff]  }
 0x781   :  { %4192 = vmatprep.mubr.bf16.mxu0 %v10863_v15  ;;  %4233 = vmatprep.mubr.bf16.mxu1 %v10863_v15 }
 0x783   :  { %4163 = vmatpush1.bf16.msra.mxu0 %v11386_v29  ;;  %4204 = vmatpush1.bf16.msra.mxu1 %v11387_v32  ;;  %v9561_v29 = vld [vmem:[#allocation11 + $0x28] ss:$16 sps:$4 sm:$0xff]   ;;  %v9564_v32 = vld [vmem:[#allocation11 + $0x44] ss:$16 sps:$4 sm:$0xff]  }
 0x784   :  { %4164 = vmatprep.subr.bf16.mxu0 %v11388_v14  ;;  %4205 = vmatprep.subr.bf16.mxu1 %v11389_v43  ;;  %v9567_v14 = vld [vmem:[#allocation11 + $0x4c] ss:$16 sps:$4 sm:$0xff]  }
 0x787   :  { %4165 = vmatpush1.bf16.msra.mxu0 %v11390_v7  ;;  %4206 = vmatpush1.bf16.msra.mxu1 %v11391_v16  ;;  %v9570_v7 = vld [vmem:[#allocation11 + $0x40] ss:$16 sps:$4 sm:$0xff]   ;;  %v9573_v16 = vld [vmem:[#allocation11 + $0x48] ss:$16 sps:$4 sm:$0xff]  }
 0x788   :  { %4166 = vmatprep.subr.bf16.mxu0 %v11392_v45  ;;  %4207 = vmatprep.subr.bf16.mxu1 %v11393_v24  ;;  %v9576_v24 = vld [vmem:[#allocation11 + $0x64] ss:$16 sps:$4 sm:$0xff]  }
 0x78b   :  { %4167 = vmatpush1.bf16.msra.mxu0 %v11394_v6  ;;  %4208 = vmatpush1.bf16.msra.mxu1 %v11395_v49  ;;  %v3886_v25 = vpop.f32.mrb[108].mxu0  ;;  %v3927_v11 = vpop.f32.mrb[108].mxu1  ;;  %v9579_v6 = vld [vmem:[#allocation11 + $0x6c] ss:$16 sps:$4 sm:$0xff]  }
 0x78c   :  { %v3887_v18 = vadd.f32 %v3886_v25, %v3804_v52  ;;  %v3928_v50 = vadd.f32 %v3927_v11, %v3845_v9  ;;  %v3888_v48 = vpop.f32.mrb[109].mxu0  ;;  %v3929_v46 = vpop.f32.mrb[109].mxu1  ;;  %4168 = vmatprep.subr.bf16.mxu0 %v9261_v4  ;;  %4209 = vmatprep.subr.bf16.mxu1 %v11396_v12  ;;  %v11397_v9 = vld [vmem:[#allocation143_spill] sm:$0xff] }
 0x78d   :  { %v3889_v39 = vadd.f32 %v3888_v48, %v3806_v17  ;;  %v3930_v33 = vadd.f32 %v3929_v46, %v3847_v19  ;;  %v3890_v27 = vpop.f32.mrb[110].mxu0  ;;  %v3931_v21 = vpop.f32.mrb[110].mxu1  ;;  %v9583_v48 = vld [vmem:[#allocation11 + $0x60] ss:$16 sps:$4 sm:$0xff]   ;;  %v9586_v46 = vld [vmem:[#allocation11 + $0x68] ss:$16 sps:$4 sm:$0xff]  }
 0x78e   :  { %v3934_v22 = vadd.f32 %v3887_v18, %v8513_v53  ;;  %v3891_v10 = vpop.f32.mrb[111].mxu0  ;;  %v3932_v63 = vpop.f32.mrb[111].mxu1  ;;  %v3936_v17 = vadd.f32 %v3928_v50, %v8561_v57  ;;  %v11401_v21 = vld [vmem:[#allocation39_spill] sm:$0xff] }
 0x78f   :  { %v3935_v8 = vadd.f32 %v3889_v39, %v8522_v56  ;;  %4169 = vmatpush1.bf16.msra.mxu0 %v9269_v62  ;;  %4210 = vmatpush1.bf16.msra.mxu1 %v9272_v35  ;;  %v3937_v62 = vadd.f32 %v3930_v33, %v8545_v0  ;;  %v11398_v35 = vld [vmem:[#allocation144_spill] sm:$0xff]  ;;  %v11400_v33 = vld [vmem:[#allocation38_spill] sm:$0xff] }
 0x790   :  { %v5826_v52 = vmul.f32 -1.442695, %v3934_v22  ;;  %4170 = vmatprep.subr.bf16.mxu0 %v9275_v54  ;;  %4211 = vmatprep.subr.bf16.mxu1 %v9278_v36  ;;  %v11399_v54 = vld [vmem:[#allocation145_spill] sm:$0xff] }
 0x791   :  { %v5827_v4 = vmul.f32 -1.442695, %v3935_v8  ;;  %v5828_v36 = vmul.f32 -1.442695, %v3937_v62  ;;  %v9591_v8 = vld [vmem:[#allocation11 + $0x84] ss:$16 sps:$4 sm:$0xff]  }
 0x792   :  { %6384 = vpow2.f32 %v5826_v52 }
 0x793   :  { %6386 = vpow2.f32 %v5827_v4  ;;  %4171 = vmatpush1.bf16.msra.mxu0 %v9281_v37  ;;  %4212 = vmatpush1.bf16.msra.mxu1 %v9284_v44  ;;  %v9536_v44 = vld [vmem:[#allocation11 + $0x4] ss:$16 sps:$4 sm:$0xff]  }
 0x794   :  { %4172 = vmatprep.subr.bf16.mxu0 %v9287_v2  ;;  %4213 = vmatprep.subr.bf16.mxu1 %v9290_v3  ;;  %v9539_v2 = vld [vmem:[#allocation11 + $0xc] ss:$16 sps:$4 sm:$0xff]   ;;  %6388 = vpow2.f32 %v5828_v36  ;;  %v11402_v4 = vld [vmem:[#allocation40_spill] sm:$0xff] }
 0x795   :  { %6390 = vtanh.f32 %v3936_v17 }
 0x797   :  { %4173 = vmatpush1.bf16.msra.mxu0 %v11397_v9  ;;  %4214 = vmatpush1.bf16.msra.mxu1 %v11398_v35  ;;  %v11403_v9 = vld [vmem:[#allocation41_spill] sm:$0xff] }
 0x798   :  { %4174 = vmatprep.subr.bf16.mxu0 %v11399_v54  ;;  %4215 = vmatprep.subr.bf16.mxu1 %v9303_v13 }
 0x79b   :  { %4175 = vmatpush1.bf16.msra.mxu0 %v9307_v59  ;;  %4216 = vmatpush1.bf16.msra.mxu1 %v9310_v42  ;;  %v9544_v59 = vld [vmem:[#allocation11] ss:$16 sps:$4 sm:$0xff]   ;;  %v9547_v42 = vld [vmem:[#allocation11 + $0x8] ss:$16 sps:$4 sm:$0xff]  }
 0x79c   :  { %v6385_v37 = vpop.eup %6384  ;;  %4271 = vmatprep.subr.bf16.mxu0 %v9536_v44  ;;  %4312 = vmatprep.subr.bf16.mxu1 %v9539_v2 }
 0x79d   :  { %v6387_v3 = vpop.eup %6386  ;;  %v3941_v19 = vadd.f32 1.0, %v6385_v37 }
 0x79e   :  { %v3947_v13 = vadd.f32 1.0, %v6387_v3  ;;  %4193 = vmatmul.mubr.bf16.vlgmr.msra.gmra.mrb[120].mxu0 %v9448_v40  ;;  %4234 = vmatmul.mubr.bf16.vlgmr.msra.gmra.mrb[120].mxu1 %v9448_v40  ;;  %v9558_v40 = vld [vmem:[#allocation11 + $0x20] ss:$16 sps:$4 sm:$0xff]   ;;  %v6389_v43 = vpop.eup %6388 }
 0x79f   :  { %6392 = vrcp.f32 %v3941_v19  ;;  %4272 = vmatpush1.bf16.msra.mxu0 %v9544_v59  ;;  %4313 = vmatpush1.bf16.msra.mxu1 %v9547_v42  ;;  %v6391_v45 = vpop.eup %6390  ;;  %v3954_v18 = vadd.f32 1.0, %v6389_v43  ;;  %v9606_v43 = vld [vmem:[#allocation11 + $0x88] ss:$16 sps:$4 sm:$0xff]  }
 0x7a0   :  { %6394 = vrcp.f32 %v3947_v13  ;;  %4273 = vmatprep.subr.bf16.mxu0 %v9550_v60  ;;  %4314 = vmatprep.subr.bf16.mxu1 %v9553_v23  ;;  %v9603_v13 = vld [vmem:[#allocation11 + $0x80] ss:$16 sps:$4 sm:$0xff]  }
 0x7a1   :  { %4303 = vmatprep.mubr.bf16.mxu0 %v10863_v15  ;;  %4344 = vmatprep.mubr.bf16.mxu1 %v10863_v15  ;;  %6396 = vrcp.f32 %v3954_v18  ;;  %v9622_v18 = vld [vmem:[#allocation11 + $0xc4] ss:$16 sps:$4 sm:$0xff]  }
 0x7a3   :  { %4274 = vmatpush1.bf16.msra.mxu0 %v9558_v40  ;;  %4315 = vmatpush1.bf16.msra.mxu1 %v9561_v29 }
 0x7a4   :  { %4275 = vmatprep.subr.bf16.mxu0 %v9564_v32  ;;  %4316 = vmatprep.subr.bf16.mxu1 %v9567_v14 }
 0x7a7   :  { %4276 = vmatpush1.bf16.msra.mxu0 %v9570_v7  ;;  %4317 = vmatpush1.bf16.msra.mxu1 %v9573_v16 }
 0x7a8   :  { %4277 = vmatprep.subr.bf16.mxu0 %v9576_v24  ;;  %4318 = vmatprep.subr.bf16.mxu1 %v9579_v6 }
 0x7a9   :  { %v6393_v49 = vpop.eup %6392 }
 0x7aa   :  { %v6395_v25 = vpop.eup %6394  ;;  %v3958_v11 = vmul.f32 %v6393_v49, %v6391_v45  ;;  %v9610_v45 = vld [vmem:[#allocation11 + $0xa4] ss:$16 sps:$4 sm:$0xff]   ;;  %v9613_v49 = vld [vmem:[#allocation11 + $0xac] ss:$16 sps:$4 sm:$0xff]  }
 0x7ab   :  { %v3957_v50 = vmul.f32 %v6395_v25, %v9338_v41  ;;  %4278 = vmatpush1.bf16.msra.mxu0 %v9583_v48  ;;  %4319 = vmatpush1.bf16.msra.mxu1 %v9586_v46  ;;  %v4001_v12 = vpop.f32.mrb[112].mxu0  ;;  %v4042_v39 = vpop.f32.mrb[112].mxu1  ;;  %v9594_v41 = vld [vmem:[#allocation11 + $0x8c] ss:$16 sps:$4 sm:$0xff]   ;;  %v9616_v25 = vld [vmem:[#allocation11 + $0xa0] ss:$16 sps:$4 sm:$0xff]  }
 0x7ac   :  { %v4049_v27 = vadd.f32 %v4001_v12, %v11400_v33  ;;  %v4051_v22 = vadd.f32 %v4042_v39, %v11401_v21  ;;  %v4003_v10 = vpop.f32.mrb[113].mxu0  ;;  %v4044_v63 = vpop.f32.mrb[113].mxu1  ;;  %4279 = vmatprep.subr.bf16.mxu0 %v9591_v8  ;;  %4320 = vmatprep.subr.bf16.mxu1 %v9594_v41  ;;  %v9628_v12 = vld [vmem:[#allocation11 + $0xc0] ss:$16 sps:$4 sm:$0xff]   ;;  %v9631_v39 = vld [vmem:[#allocation11 + $0xc8] ss:$16 sps:$4 sm:$0xff]  }
 0x7ad   :  { %v9597_v52 = vadd.f32 %v3958_v11, %v3957_v50  ;;  %v4050_v62 = vadd.f32 %v4003_v10, %v11402_v4  ;;  %v9601_v35 = vadd.f32 %v4044_v63, %v11403_v9  ;;  %v4005_v54 = vpop.f32.mrb[114].mxu0  ;;  %v4046_v36 = vpop.f32.mrb[114].mxu1  ;;  %v9619_v11 = vld [vmem:[#allocation11 + $0xa8] ss:$16 sps:$4 sm:$0xff]   ;;  %v9625_v50 = vld [vmem:[#allocation11 + $0xcc] ss:$16 sps:$4 sm:$0xff]  }
 0x7ae   :  { %v5829_v17 = vmul.f32 -1.442695, %v4049_v27  ;;  %v4006_v37 = vpop.f32.mrb[115].mxu0  ;;  %v4047_v3 = vpop.f32.mrb[115].mxu1  ;;  %v9634_v27 = vld [vmem:[#allocation11 + $0xe4] ss:$16 sps:$4 sm:$0xff]  }
 0x7af   :  { %v5830_v19 = vmul.f32 -1.442695, %v4050_v62  ;;  %4280 = vmatpush1.bf16.msra.mxu0 %v9603_v13  ;;  %4321 = vmatpush1.bf16.msra.mxu1 %v9606_v43  ;;  %6398 = vtanh.f32 %v9597_v52  ;;  %v6397_v33 = vpop.eup %6396  ;;  %v9637_v21 = vld [vmem:[#allocation11 + $0xec] ss:$16 sps:$4 sm:$0xff]   ;;  %v9640_v54 = vld [vmem:[#allocation11 + $0xe0] ss:$16 sps:$4 sm:$0xff]  }
 0x7b0   :  { %6400 = vpow2.f32 %v5829_v17  ;;  %4281 = vmatprep.subr.bf16.mxu0 %v9610_v45  ;;  %4322 = vmatprep.subr.bf16.mxu1 %v9613_v49  ;;  %11404 = vst [vmem:[#allocation146_spill] sm:$0xff] %v9640_v54  ;;  %v9643_v36 = vld [vmem:[#allocation11 + $0xe8] ss:$16 sps:$4 sm:$0xff]   ;;  %v9646_v37 = vld [vmem:[#allocation9 + $0x4] ss:$16 sps:$4 sm:$0xff]  }
 0x7b1   :  { %6402 = vpow2.f32 %v5830_v19  ;;  %11405 = vst [vmem:[#allocation147_spill] sm:$0xff] %v9643_v36  ;;  %11406 = vst [vmem:[#allocation148_spill] sm:$0xff] %v9646_v37  ;;  %v9649_v3 = vld [vmem:[#allocation9 + $0xc] ss:$16 sps:$4 sm:$0xff]  }
 0x7b2   :  { %6404 = vtanh.f32 %v4051_v22  ;;  %11407 = vst [vmem:[#allocation30_spill] sm:$0xff] %v9649_v3  ;;  %v9658_v22 = vld [vmem:[#allocation9 + $0x24] ss:$16 sps:$4 sm:$0xff]  }
 0x7b3   :  { %4282 = vmatpush1.bf16.msra.mxu0 %v9616_v25  ;;  %4323 = vmatpush1.bf16.msra.mxu1 %v9619_v11  ;;  %11410 = vst [vmem:[#allocation33_spill] sm:$0xff] %v9658_v22 }
 0x7b4   :  { %4283 = vmatprep.subr.bf16.mxu0 %v9622_v18  ;;  %4324 = vmatprep.subr.bf16.mxu1 %v9625_v50 }
 0x7b7   :  { %4284 = vmatpush1.bf16.msra.mxu0 %v9628_v12  ;;  %4325 = vmatpush1.bf16.msra.mxu1 %v9631_v39 }
 0x7b8   :  { %4285 = vmatprep.subr.bf16.mxu0 %v9634_v27  ;;  %4326 = vmatprep.subr.bf16.mxu1 %v9637_v21 }
 0x7b9   :  { %v6399_v10 = vpop.eup %6398 }
 0x7ba   :  { %v6401_v63 = vpop.eup %6400  ;;  %v3961_v4 = vmul.f32 %v6399_v10, %v6397_v33  ;;  %v9652_v33 = vld [vmem:[#allocation9] ss:$16 sps:$4 sm:$0xff]   ;;  %v9655_v10 = vld [vmem:[#allocation9 + $0x8] ss:$16 sps:$4 sm:$0xff]  }
 0x7bb   :  { %v6403_v62 = vpop.eup %6402  ;;  %v4056_v9 = vadd.f32 1.0, %v6401_v63  ;;  %4286 = vmatpush1.bf16.msra.mxu0 %v9640_v54  ;;  %4327 = vmatpush1.bf16.msra.mxu1 %v9643_v36  ;;  %11408 = vst [vmem:[#allocation31_spill] sm:$0xff] %v9652_v33  ;;  %11409 = vst [vmem:[#allocation32_spill] sm:$0xff] %v9655_v10  ;;  %v9661_v63 = vld [vmem:[#allocation9 + $0x2c] ss:$16 sps:$4 sm:$0xff]  }
 0x7bc   :  { %v4062_v17 = vadd.f32 1.0, %v6403_v62  ;;  %4353 = vmatprep.subr.bf16.mxu0 %v9646_v37  ;;  %4394 = vmatprep.subr.bf16.mxu1 %v9649_v3  ;;  %v3962_v19 = vpack.c.bf16 %v3961_v4, %v3961_v4  ;;  %11411 = vst [vmem:[#allocation34_spill] sm:$0xff] %v9661_v63  ;;  %v9666_v4 = vld [vmem:[#allocation9 + $0x20] ss:$16 sps:$4 sm:$0xff]   ;;  %v9669_v62 = vld [vmem:[#allocation9 + $0x28] ss:$16 sps:$4 sm:$0xff]  }
 0x7bd   :  { %6406 = vrcp.f32 %v4056_v9  ;;  %11412 = vst [vmem:[#allocation35_spill] sm:$0xff] %v9666_v4  ;;  %11413 = vst [vmem:[#allocation36_spill] sm:$0xff] %v9669_v62  ;;  %v9672_v9 = vld [vmem:[#allocation9 + $0x44] ss:$16 sps:$4 sm:$0xff]   ;;  %v9693_v37 = vld [vmem:[#allocation9 + $0x60] ss:$16 sps:$4 sm:$0xff]  }
 0x7be   :  { %6408 = vrcp.f32 %v4062_v17  ;;  %4304 = vmatmul.mubr.bf16.vlgmr.msra.gmra.mrb[124].mxu0 %v3962_v19  ;;  %4345 = vmatmul.mubr.bf16.vlgmr.msra.gmra.mrb[124].mxu1 %v3962_v19  ;;  %11414 = vst [vmem:[#allocation37_spill] sm:$0xff] %v9672_v9  ;;  %v9675_v17 = vld [vmem:[#allocation9 + $0x4c] ss:$16 sps:$4 sm:$0xff]   ;;  %v6405_v19 = vpop.eup %6404  ;;  %11421 = vst [vmem:[#allocation51_spill] sm:$0xff] %v9693_v37 }
 0x7bf   :  { %4354 = vmatpush1.bf16.msra.mxu0 %v9652_v33  ;;  %4395 = vmatpush1.bf16.msra.mxu1 %v9655_v10  ;;  %11415 = vst [vmem:[#allocation46_spill] sm:$0xff] %v9675_v17  ;;  %v9681_v10 = vld [vmem:[#allocation9 + $0x48] ss:$16 sps:$4 sm:$0xff]   ;;  %v9684_v33 = vld [vmem:[#allocation9 + $0x64] ss:$16 sps:$4 sm:$0xff]  }
 0x7c0   :  { %4355 = vmatprep.subr.bf16.mxu0 %v9658_v22  ;;  %4396 = vmatprep.subr.bf16.mxu1 %v9661_v63  ;;  %v9678_v22 = vld [vmem:[#allocation9 + $0x40] ss:$16 sps:$4 sm:$0xff]   ;;  %11417 = vst [vmem:[#allocation47_spill] sm:$0xff] %v9681_v10  ;;  %11418 = vst [vmem:[#allocation48_spill] sm:$0xff] %v9684_v33 }
 0x7c1   :  { %4385 = vmatprep.mubr.bf16.mxu0 %v10863_v15  ;;  %4426 = vmatprep.mubr.bf16.mxu1 %v10863_v15  ;;  %11416 = vst [vmem:[#allocation21_spill] sm:$0xff] %v9678_v22 }
 0x7c3   :  { %4356 = vmatpush1.bf16.msra.mxu0 %v9666_v4  ;;  %4397 = vmatpush1.bf16.msra.mxu1 %v9669_v62 }
 0x7c4   :  { %4357 = vmatprep.subr.bf16.mxu0 %v9672_v9  ;;  %4398 = vmatprep.subr.bf16.mxu1 %v9675_v17  ;;  %v9687_v9 = vld [vmem:[#allocation9 + $0x6c] ss:$16 sps:$4 sm:$0xff]  }
 0x7c5   :  { %11419 = vst [vmem:[#allocation49_spill] sm:$0xff] %v9687_v9 }
 0x7c7   :  { %v6407_v63 = vpop.eup %6406  ;;  %4358 = vmatpush1.bf16.msra.mxu0 %v9678_v22  ;;  %4399 = vmatpush1.bf16.msra.mxu1 %v9681_v10  ;;  %v9696_v22 = vld [vmem:[#allocation9 + $0x68] ss:$16 sps:$4 sm:$0xff]  }
 0x7c8   :  { %v6409_v4 = vpop.eup %6408  ;;  %v4073_v62 = vmul.f32 %v6407_v63, %v6405_v19  ;;  %4359 = vmatprep.subr.bf16.mxu0 %v9684_v33  ;;  %4400 = vmatprep.subr.bf16.mxu1 %v9687_v9  ;;  %11422 = vst [vmem:[#allocation52_spill] sm:$0xff] %v9696_v22  ;;  %v9699_v63 = vld [vmem:[#allocation9 + $0x84] ss:$16 sps:$4 sm:$0xff]   ;;  %v9702_v19 = vld [vmem:[#allocation9 + $0x8c] ss:$16 sps:$4 sm:$0xff]  }
 0x7c9   :  { %v4072_v17 = vmul.f32 %v6409_v4, %v9376_v30  ;;  %11423 = vst [vmem:[#allocation20_spill] sm:$0xff] %v9699_v63  ;;  %11424 = vst [vmem:[#allocation53_spill] sm:$0xff] %v9702_v19  ;;  %v9705_v9 = vld [vmem:[#allocation9 + $0x80] ss:$16 sps:$4 sm:$0xff]   ;;  %v9708_v30 = vld [vmem:[#allocation9 + $0x88] ss:$16 sps:$4 sm:$0xff]  }
 0x7ca   :  { %11425 = vst [vmem:[#allocation54_spill] sm:$0xff] %v9705_v9  ;;  %11426 = vst [vmem:[#allocation55_spill] sm:$0xff] %v9708_v30  ;;  %v9711_v4 = vld [vmem:[#allocation9 + $0xa4] ss:$16 sps:$4 sm:$0xff]  }
 0x7cb   :  { %v9691_v3 = vadd.f32 %v4073_v62, %v4072_v17  ;;  %4360 = vmatpush1.bf16.msra.mxu0 %v9693_v37  ;;  %4401 = vmatpush1.bf16.msra.mxu1 %v9696_v22  ;;  %11427 = vst [vmem:[#allocation56_spill] sm:$0xff] %v9711_v4  ;;  %v9714_v62 = vld [vmem:[#allocation9 + $0xac] ss:$16 sps:$4 sm:$0xff]   ;;  %v9717_v17 = vld [vmem:[#allocation9 + $0xa0] ss:$16 sps:$4 sm:$0xff]  }
 0x7cc   :  { %4361 = vmatprep.subr.bf16.mxu0 %v9699_v63  ;;  %4402 = vmatprep.subr.bf16.mxu1 %v9702_v19  ;;  %11428 = vst [vmem:[#allocation57_spill] sm:$0xff] %v9714_v62  ;;  %11429 = vst [vmem:[#allocation58_spill] sm:$0xff] %v9717_v17  ;;  %v9720_v19 = vld [vmem:[#allocation9 + $0xa8] ss:$16 sps:$4 sm:$0xff]   ;;  %v9736_v63 = vld [vmem:[#allocation9 + $0xe4] ss:$16 sps:$4 sm:$0xff]  }
 0x7cd   :  { %11420 = vst [vmem:[#allocation50_spill] sm:$0xff] %v9691_v3  ;;  %11430 = vst [vmem:[#allocation59_spill] sm:$0xff] %v9720_v19 }
 0x7ce   :  { %11435 = vst [vmem:[#allocation64_spill] sm:$0xff] %v9736_v63 }
 0x7cf   :  { %4362 = vmatpush1.bf16.msra.mxu0 %v9705_v9  ;;  %4403 = vmatpush1.bf16.msra.mxu1 %v9708_v30  ;;  %v9723_v9 = vld [vmem:[#allocation9 + $0xc4] ss:$16 sps:$4 sm:$0xff]   ;;  %v9726_v30 = vld [vmem:[#allocation9 + $0xcc] ss:$16 sps:$4 sm:$0xff]  }
 0x7d0   :  { %4363 = vmatprep.subr.bf16.mxu0 %v9711_v4  ;;  %4404 = vmatprep.subr.bf16.mxu1 %v9714_v62  ;;  %11431 = vst [vmem:[#allocation60_spill] sm:$0xff] %v9723_v9  ;;  %11432 = vst [vmem:[#allocation61_spill] sm:$0xff] %v9726_v30  ;;  %v9729_v4 = vld [vmem:[#allocation9 + $0xc0] ss:$16 sps:$4 sm:$0xff]   ;;  %v9732_v62 = vld [vmem:[#allocation9 + $0xc8] ss:$16 sps:$4 sm:$0xff]  }
 0x7d1   :  { %11433 = vst [vmem:[#allocation62_spill] sm:$0xff] %v9729_v4  ;;  %11434 = vst [vmem:[#allocation63_spill] sm:$0xff] %v9732_v62 }
 0x7d3   :  { %4364 = vmatpush1.bf16.msra.mxu0 %v9717_v17  ;;  %4405 = vmatpush1.bf16.msra.mxu1 %v9720_v19  ;;  %v5831_v17 = vmul.f32 -1.442695, %v9601_v35  ;;  %v9739_v19 = vld [vmem:[#allocation9 + $0xec] ss:$16 sps:$4 sm:$0xff]  }
 0x7d4   :  { %4365 = vmatprep.subr.bf16.mxu0 %v9723_v9  ;;  %4406 = vmatprep.subr.bf16.mxu1 %v9726_v30  ;;  %11436 = vst [vmem:[#allocation65_spill] sm:$0xff] %v9739_v19  ;;  %v9742_v9 = vld [vmem:[#allocation9 + $0xe0] ss:$16 sps:$4 sm:$0xff]   ;;  %v9745_v30 = vld [vmem:[#allocation9 + $0xe8] ss:$16 sps:$4 sm:$0xff]  }
 0x7d5   :  { %11437 = vst [vmem:[#allocation66_spill] sm:$0xff] %v9742_v9  ;;  %11438 = vst [vmem:[#allocation67_spill] sm:$0xff] %v9745_v30  ;;  %6410 = vpow2.f32 %v5831_v17  ;;  %v6873_v35 = vld [vmem:[#allocation3 + $0x4c] ss:$16 sps:$4 sm:$0xff]  }
 0x7d6   :  { %6412 = vtanh.f32 %v9691_v3 }
 0x7d7   :  { %4366 = vmatpush1.bf16.msra.mxu0 %v9729_v4  ;;  %4407 = vmatpush1.bf16.msra.mxu1 %v9732_v62 }
 0x7d8   :  { %4367 = vmatprep.subr.bf16.mxu0 %v9736_v63  ;;  %4408 = vmatprep.subr.bf16.mxu1 %v9739_v19 }
 0x7db   :  { %4368 = vmatpush1.bf16.msra.mxu0 %v9742_v9  ;;  %4409 = vmatpush1.bf16.msra.mxu1 %v9745_v30  ;;  %v6878_v30 = vld [vmem:[#allocation3 + $0x60] ss:$16 sps:$4 sm:$0xff]   ;;  %v6879_v9 = vld [vmem:[#allocation3 + $0x68] ss:$16 sps:$4 sm:$0xff]  }
 0x7dc   :  { %4468 = vmatprep.subr.bf16.mxu0 %v9397_v51  ;;  %4509 = vmatprep.subr.bf16.mxu1 %v9400_v26  ;;  %v6871_v51 = vld [vmem:[#allocation3 + $0x28] ss:$16 sps:$4 sm:$0xff]   ;;  %v6872_v26 = vld [vmem:[#allocation3 + $0x44] ss:$16 sps:$4 sm:$0xff]  }
 0x7de   :  { %4386 = vmatmul.mubr.bf16.vlgmr.msra.gmra.mrb[128].mxu0 %v9496_v34  ;;  %4427 = vmatmul.mubr.bf16.vlgmr.msra.gmra.mrb[128].mxu1 %v9496_v34 }
 0x7df   :  { %4469 = vmatpush1.bf16.msra.mxu0 %v9405_v47  ;;  %4510 = vmatpush1.bf16.msra.mxu1 %v9408_v5  ;;  %v6411_v34 = vpop.eup %6410  ;;  %v6874_v47 = vld [vmem:[#allocation3 + $0x40] ss:$16 sps:$4 sm:$0xff]   ;;  %v6875_v5 = vld [vmem:[#allocation3 + $0x48] ss:$16 sps:$4 sm:$0xff]  }
 0x7e0   :  { %4470 = vmatprep.subr.bf16.mxu0 %v9411_v31  ;;  %4511 = vmatprep.subr.bf16.mxu1 %v9414_v1  ;;  %v6876_v31 = vld [vmem:[#allocation3 + $0x64] ss:$16 sps:$4 sm:$0xff]   ;;  %v6877_v1 = vld [vmem:[#allocation3 + $0x6c] ss:$16 sps:$4 sm:$0xff]   ;;  %v4069_v17 = vadd.f32 1.0, %v6411_v34 }
 0x7e1   :  { %4500 = vmatprep.mubr.bf16.mxu0 %v10863_v15  ;;  %4541 = vmatprep.mubr.bf16.mxu1 %v10863_v15  ;;  %v6886_v34 = vld [vmem:[#allocation3 + $0xa0] ss:$16 sps:$4 sm:$0xff]  }
 0x7e2   :  { %6414 = vrcp.f32 %v4069_v17  ;;  %v6891_v17 = vld [vmem:[#allocation3 + $0xc8] ss:$16 sps:$4 sm:$0xff]  }
 0x7e3   :  { %4471 = vmatpush1.bf16.msra.mxu0 %v9419_v58  ;;  %4512 = vmatpush1.bf16.msra.mxu1 %v6871_v51  ;;  %v6880_v58 = vld [vmem:[#allocation3 + $0x84] ss:$16 sps:$4 sm:$0xff]   ;;  %v6881_v51 = vld [vmem:[#allocation3 + $0x8c] ss:$16 sps:$4 sm:$0xff]  }
 0x7e4   :  { %4472 = vmatprep.subr.bf16.mxu0 %v6872_v26  ;;  %4513 = vmatprep.subr.bf16.mxu1 %v6873_v35  ;;  %v6882_v26 = vld [vmem:[#allocation3 + $0x80] ss:$16 sps:$4 sm:$0xff]   ;;  %v6883_v35 = vld [vmem:[#allocation3 + $0x88] ss:$16 sps:$4 sm:$0xff]  }
 0x7e7   :  { %4473 = vmatpush1.bf16.msra.mxu0 %v6874_v47  ;;  %4514 = vmatpush1.bf16.msra.mxu1 %v6875_v5  ;;  %v6884_v47 = vld [vmem:[#allocation3 + $0xa4] ss:$16 sps:$4 sm:$0xff]   ;;  %v6885_v5 = vld [vmem:[#allocation3 + $0xac] ss:$16 sps:$4 sm:$0xff]  }
 0x7e8   :  { %4474 = vmatprep.subr.bf16.mxu0 %v6876_v31  ;;  %4515 = vmatprep.subr.bf16.mxu1 %v6877_v1  ;;  %v6889_v31 = vld [vmem:[#allocation3 + $0xcc] ss:$16 sps:$4 sm:$0xff]   ;;  %v6413_v1 = vpop.eup %6412 }
 0x7eb   :  { %4475 = vmatpush1.bf16.msra.mxu0 %v6878_v30  ;;  %4516 = vmatpush1.bf16.msra.mxu1 %v6879_v9  ;;  %v6887_v30 = vld [vmem:[#allocation3 + $0xa8] ss:$16 sps:$4 sm:$0xff]   ;;  %v6888_v9 = vld [vmem:[#allocation3 + $0xc4] ss:$16 sps:$4 sm:$0xff]  }
 0x7ec   :  { %4476 = vmatprep.subr.bf16.mxu0 %v6880_v58  ;;  %4517 = vmatprep.subr.bf16.mxu1 %v6881_v51  ;;  %v6415_v58 = vpop.eup %6414  ;;  %v6890_v51 = vld [vmem:[#allocation3 + $0xc0] ss:$16 sps:$4 sm:$0xff]  }
 0x7ef   :  { %4477 = vmatpush1.bf16.msra.mxu0 %v6882_v26  ;;  %4518 = vmatpush1.bf16.msra.mxu1 %v6883_v35  ;;  %v6892_v26 = vld [vmem:[#allocation3 + $0xe4] ss:$16 sps:$4 sm:$0xff]   ;;  %v6893_v35 = vld [vmem:[#allocation3 + $0xec] ss:$16 sps:$4 sm:$0xff]  }
 0x7f0   :  { %4478 = vmatprep.subr.bf16.mxu0 %v6884_v47  ;;  %4519 = vmatprep.subr.bf16.mxu1 %v6885_v5  ;;  %v4076_v47 = vmul.f32 %v6415_v58, %v6413_v1  ;;  %v6894_v5 = vld [vmem:[#allocation3 + $0xe0] ss:$16 sps:$4 sm:$0xff]   ;;  %v9773_v1 = vld [vmem:[#allocation8 + $0x8] ss:$16 sps:$4 sm:$0xff]   ;;  %v9776_v58 = vld [vmem:[#allocation8 + $0x24] ss:$16 sps:$4 sm:$0xff]  }
 0x7f1   :  { %11442 = vst [vmem:[#allocation71_spill] sm:$0xff] %v9773_v1  ;;  %11443 = vst [vmem:[#allocation72_spill] sm:$0xff] %v9776_v58 }
 0x7f3   :  { %4479 = vmatpush1.bf16.msra.mxu0 %v6886_v34  ;;  %4520 = vmatpush1.bf16.msra.mxu1 %v6887_v30  ;;  %v6895_v34 = vld [vmem:[#allocation3 + $0xe8] ss:$16 sps:$4 sm:$0xff]   ;;  %v9760_v30 = vpack.c.bf16 %v4076_v47, %v4076_v47  ;;  %v9790_v47 = vld [vmem:[#allocation8 + $0x44] ss:$16 sps:$4 sm:$0xff]  }
 0x7f4   :  { %4480 = vmatprep.subr.bf16.mxu0 %v6888_v9  ;;  %4521 = vmatprep.subr.bf16.mxu1 %v6889_v31  ;;  %v9762_v9 = vld [vmem:[#allocation8 + $0x4] ss:$16 sps:$4 sm:$0xff]   ;;  %v9765_v31 = vld [vmem:[#allocation8 + $0xc] ss:$16 sps:$4 sm:$0xff]   ;;  %11447 = vst [vmem:[#allocation76_spill] sm:$0xff] %v9790_v47 }
 0x7f5   :  { %11439 = vst [vmem:[#allocation68_spill] sm:$0xff] %v9762_v9  ;;  %11440 = vst [vmem:[#allocation69_spill] sm:$0xff] %v9765_v31 }
 0x7f7   :  { %4481 = vmatpush1.bf16.msra.mxu0 %v6890_v51  ;;  %4522 = vmatpush1.bf16.msra.mxu1 %v6891_v17  ;;  %v9770_v51 = vld [vmem:[#allocation8] ss:$16 sps:$4 sm:$0xff]   ;;  %v9779_v17 = vld [vmem:[#allocation8 + $0x2c] ss:$16 sps:$4 sm:$0xff]  }
 0x7f8   :  { %4482 = vmatprep.subr.bf16.mxu0 %v6892_v26  ;;  %4523 = vmatprep.subr.bf16.mxu1 %v6893_v35  ;;  %11441 = vst [vmem:[#allocation70_spill] sm:$0xff] %v9770_v51  ;;  %11444 = vst [vmem:[#allocation73_spill] sm:$0xff] %v9779_v17  ;;  %v9784_v26 = vld [vmem:[#allocation8 + $0x20] ss:$16 sps:$4 sm:$0xff]   ;;  %v9787_v35 = vld [vmem:[#allocation8 + $0x28] ss:$16 sps:$4 sm:$0xff]  }
 0x7f9   :  { %11445 = vst [vmem:[#allocation74_spill] sm:$0xff] %v9784_v26  ;;  %11446 = vst [vmem:[#allocation75_spill] sm:$0xff] %v9787_v35 }
 0x7fb   :  { %4483 = vmatpush1.bf16.msra.mxu0 %v6894_v5  ;;  %4524 = vmatpush1.bf16.msra.mxu1 %v6895_v34  ;;  %v9793_v5 = vld [vmem:[#allocation8 + $0x4c] ss:$16 sps:$4 sm:$0xff]   ;;  %v9796_v34 = vld [vmem:[#allocation8 + $0x40] ss:$16 sps:$4 sm:$0xff]  }
 0x7fc   :  { %4579 = vmatprep.subr.bf16.mxu0 %v9762_v9  ;;  %4620 = vmatprep.subr.bf16.mxu1 %v9765_v31  ;;  %11448 = vst [vmem:[#allocation77_spill] sm:$0xff] %v9793_v5  ;;  %11449 = vst [vmem:[#allocation78_spill] sm:$0xff] %v9796_v34 }
 0x7fe   :  { %4501 = vmatmul.mubr.bf16.vlgmr.msra.gmra.mrb[132].mxu0 %v9760_v30  ;;  %4542 = vmatmul.mubr.bf16.vlgmr.msra.gmra.mrb[132].mxu1 %v9760_v30 }
 0x7ff   :  { %4580 = vmatpush1.bf16.msra.mxu0 %v9770_v51  ;;  %4621 = vmatpush1.bf16.msra.mxu1 %v9773_v1 }
 0x800   :  { %4581 = vmatprep.subr.bf16.mxu0 %v9776_v58  ;;  %4622 = vmatprep.subr.bf16.mxu1 %v9779_v17  ;;  %v9799_v17 = vld [vmem:[#allocation8 + $0x48] ss:$16 sps:$4 sm:$0xff]  }
 0x801   :  { %4611 = vmatprep.mubr.bf16.mxu0 %v10863_v15  ;;  %4652 = vmatprep.mubr.bf16.mxu1 %v10863_v15  ;;  %11450 = vst [vmem:[#allocation79_spill] sm:$0xff] %v9799_v17 }
 0x803   :  { %4582 = vmatpush1.bf16.msra.mxu0 %v9784_v26  ;;  %4623 = vmatpush1.bf16.msra.mxu1 %v9787_v35  ;;  %v9802_v26 = vld [vmem:[#allocation8 + $0x64] ss:$16 sps:$4 sm:$0xff]   ;;  %v9805_v35 = vld [vmem:[#allocation8 + $0x6c] ss:$16 sps:$4 sm:$0xff]  }
 0x804   :  { %4583 = vmatprep.subr.bf16.mxu0 %v9790_v47  ;;  %4624 = vmatprep.subr.bf16.mxu1 %v9793_v5  ;;  %11451 = vst [vmem:[#allocation80_spill] sm:$0xff] %v9802_v26  ;;  %11452 = vst [vmem:[#allocation81_spill] sm:$0xff] %v9805_v35  ;;  %v9808_v47 = vld [vmem:[#allocation8 + $0x60] ss:$16 sps:$4 sm:$0xff]   ;;  %v9811_v5 = vld [vmem:[#allocation8 + $0x68] ss:$16 sps:$4 sm:$0xff]  }
 0x805   :  { %11453 = vst [vmem:[#allocation82_spill] sm:$0xff] %v9808_v47  ;;  %11454 = vst [vmem:[#allocation83_spill] sm:$0xff] %v9811_v5 }
 0x807   :  { %4584 = vmatpush1.bf16.msra.mxu0 %v9796_v34  ;;  %4625 = vmatpush1.bf16.msra.mxu1 %v9799_v17  ;;  %v9814_v34 = vld [vmem:[#allocation8 + $0x84] ss:$16 sps:$4 sm:$0xff]   ;;  %v9817_v17 = vld [vmem:[#allocation8 + $0x8c] ss:$16 sps:$4 sm:$0xff]  }
 0x808   :  { %4585 = vmatprep.subr.bf16.mxu0 %v9802_v26  ;;  %4626 = vmatprep.subr.bf16.mxu1 %v9805_v35  ;;  %11455 = vst [vmem:[#allocation84_spill] sm:$0xff] %v9814_v34  ;;  %11456 = vst [vmem:[#allocation85_spill] sm:$0xff] %v9817_v17  ;;  %v9820_v26 = vld [vmem:[#allocation8 + $0x80] ss:$16 sps:$4 sm:$0xff]   ;;  %v9823_v35 = vld [vmem:[#allocation8 + $0x88] ss:$16 sps:$4 sm:$0xff]  }
 0x809   :  { %11457 = vst [vmem:[#allocation86_spill] sm:$0xff] %v9820_v26  ;;  %11458 = vst [vmem:[#allocation26_spill] sm:$0xff] %v9823_v35 }
 0x80b   :  { %4586 = vmatpush1.bf16.msra.mxu0 %v9808_v47  ;;  %4627 = vmatpush1.bf16.msra.mxu1 %v9811_v5  ;;  %v9826_v47 = vld [vmem:[#allocation8 + $0xa4] ss:$16 sps:$4 sm:$0xff]   ;;  %v9829_v5 = vld [vmem:[#allocation8 + $0xac] ss:$16 sps:$4 sm:$0xff]  }
 0x80c   :  { %4587 = vmatprep.subr.bf16.mxu0 %v9814_v34  ;;  %4628 = vmatprep.subr.bf16.mxu1 %v9817_v17  ;;  %11459 = vst [vmem:[#allocation27_spill] sm:$0xff] %v9826_v47  ;;  %11460 = vst [vmem:[#allocation28_spill] sm:$0xff] %v9829_v5  ;;  %v9832_v34 = vld [vmem:[#allocation8 + $0xa0] ss:$16 sps:$4 sm:$0xff]   ;;  %v9835_v17 = vld [vmem:[#allocation8 + $0xa8] ss:$16 sps:$4 sm:$0xff]  }
 0x80d   :  { %11461 = vst [vmem:[#allocation29_spill] sm:$0xff] %v9832_v34  ;;  %11462 = vst [vmem:[#allocation87_spill] sm:$0xff] %v9835_v17 }
 0x80f   :  { %4588 = vmatpush1.bf16.msra.mxu0 %v9820_v26  ;;  %4629 = vmatpush1.bf16.msra.mxu1 %v9823_v35  ;;  %v9838_v26 = vld [vmem:[#allocation8 + $0xc4] ss:$16 sps:$4 sm:$0xff]   ;;  %v9841_v35 = vld [vmem:[#allocation8 + $0xcc] ss:$16 sps:$4 sm:$0xff]  }
 0x810   :  { %4589 = vmatprep.subr.bf16.mxu0 %v9826_v47  ;;  %4630 = vmatprep.subr.bf16.mxu1 %v9829_v5  ;;  %11463 = vst [vmem:[#allocation88_spill] sm:$0xff] %v9838_v26  ;;  %11464 = vst [vmem:[#allocation89_spill] sm:$0xff] %v9841_v35  ;;  %v9844_v47 = vld [vmem:[#allocation8 + $0xc0] ss:$16 sps:$4 sm:$0xff]   ;;  %v9847_v5 = vld [vmem:[#allocation8 + $0xc8] ss:$16 sps:$4 sm:$0xff]  }
 0x811   :  { %11465 = vst [vmem:[#allocation90_spill] sm:$0xff] %v9844_v47  ;;  %11466 = vst [vmem:[#allocation91_spill] sm:$0xff] %v9847_v5 }
 0x813   :  { %4590 = vmatpush1.bf16.msra.mxu0 %v9832_v34  ;;  %4631 = vmatpush1.bf16.msra.mxu1 %v9835_v17  ;;  %v9850_v34 = vld [vmem:[#allocation8 + $0xe4] ss:$16 sps:$4 sm:$0xff]   ;;  %v9853_v17 = vld [vmem:[#allocation8 + $0xec] ss:$16 sps:$4 sm:$0xff]  }
 0x814   :  { %4591 = vmatprep.subr.bf16.mxu0 %v9838_v26  ;;  %4632 = vmatprep.subr.bf16.mxu1 %v9841_v35  ;;  %11467 = vst [vmem:[#allocation92_spill] sm:$0xff] %v9850_v34  ;;  %11468 = vst [vmem:[#allocation93_spill] sm:$0xff] %v9853_v17  ;;  %v9856_v26 = vld [vmem:[#allocation8 + $0xe0] ss:$16 sps:$4 sm:$0xff]   ;;  %v9859_v35 = vld [vmem:[#allocation8 + $0xe8] ss:$16 sps:$4 sm:$0xff]  }
 0x815   :  { %11469 = vst [vmem:[#allocation94_spill] sm:$0xff] %v9856_v26  ;;  %11470 = vst [vmem:[#allocation95_spill] sm:$0xff] %v9859_v35 }
 0x817   :  { %4592 = vmatpush1.bf16.msra.mxu0 %v9844_v47  ;;  %4633 = vmatpush1.bf16.msra.mxu1 %v9847_v5  ;;  %v9862_v47 = vld [vmem:[#allocation6 + $0x4] ss:$16 sps:$4 sm:$0xff]   ;;  %v9865_v5 = vld [vmem:[#allocation6 + $0xc] ss:$16 sps:$4 sm:$0xff]  }
 0x818   :  { %4593 = vmatprep.subr.bf16.mxu0 %v9850_v34  ;;  %4634 = vmatprep.subr.bf16.mxu1 %v9853_v17  ;;  %11471 = vst [vmem:[#allocation96_spill] sm:$0xff] %v9862_v47  ;;  %11472 = vst [vmem:[#allocation97_spill] sm:$0xff] %v9865_v5 }
 0x81b   :  { %4594 = vmatpush1.bf16.msra.mxu0 %v9856_v26  ;;  %4635 = vmatpush1.bf16.msra.mxu1 %v9859_v35 }
 0x81c   :  { %4661 = vmatprep.subr.bf16.mxu0 %v9862_v47  ;;  %4702 = vmatprep.subr.bf16.mxu1 %v9865_v5 }
 0x851   :  { %v4112_v34 = vpop.f32.mrb[116].mxu0  ;;  %v4153_v58 = vpop.f32.mrb[116].mxu1 }
 0x852   :  { %v4114_v1 = vpop.f32.mrb[117].mxu0  ;;  %v4155_v17 = vpop.f32.mrb[117].mxu1 }
 0x853   :  { %v4116_v51 = vpop.f32.mrb[118].mxu0  ;;  %v4157_v31 = vpop.f32.mrb[118].mxu1 }
 0x854   :  { %v4117_v9 = vpop.f32.mrb[119].mxu0  ;;  %v4158_v26 = vpop.f32.mrb[119].mxu1 }
 0x871   :  { %v4194_v19 = vpop.f32.mrb[120].mxu0  ;;  %v4235_v63 = vpop.f32.mrb[120].mxu1 }
 0x872   :  { %v4195_v62 = vadd.f32 %v4194_v19, %v4112_v34  ;;  %v4236_v35 = vadd.f32 %v4235_v63, %v4153_v58  ;;  %v4196_v4 = vpop.f32.mrb[121].mxu0  ;;  %v4237_v22 = vpop.f32.mrb[121].mxu1 }
 0x873   :  { %v4197_v37 = vadd.f32 %v4196_v4, %v4114_v1  ;;  %v4238_v47 = vadd.f32 %v4237_v22, %v4155_v17  ;;  %v4198_v3 = vpop.f32.mrb[122].mxu0  ;;  %v4239_v33 = vpop.f32.mrb[122].mxu1 }
 0x874   :  { %v4242_v5 = vadd.f32 %v4195_v62, %v7985_v28  ;;  %v4199_v10 = vpop.f32.mrb[123].mxu0  ;;  %v4240_v36 = vpop.f32.mrb[123].mxu1  ;;  %v4244_v63 = vadd.f32 %v4236_v35, %v8009_v61 }
 0x875   :  { %v4243_v54 = vadd.f32 %v4197_v37, %v7990_v38  ;;  %v4245_v9 = vadd.f32 %v4238_v47, %v7999_v55 }
 0x876   :  { %v5832_v51 = vmul.f32 -1.442695, %v4242_v5 }
 0x877   :  { %v5833_v31 = vmul.f32 -1.442695, %v4243_v54  ;;  %v5834_v19 = vmul.f32 -1.442695, %v4245_v9 }
 0x878   :  { %6416 = vpow2.f32 %v5832_v51 }
 0x879   :  { %6418 = vpow2.f32 %v5833_v31 }
 0x87a   :  { %6420 = vpow2.f32 %v5834_v19 }
 0x87b   :  { %6422 = vtanh.f32 %v4244_v63 }
 0x882   :  { %v6417_v58 = vpop.eup %6416 }
 0x883   :  { %v6419_v4 = vpop.eup %6418  ;;  %v4249_v22 = vadd.f32 1.0, %v6417_v58 }
 0x884   :  { %v4255_v3 = vadd.f32 1.0, %v6419_v4  ;;  %v6421_v36 = vpop.eup %6420 }
 0x885   :  { %6424 = vrcp.f32 %v4249_v22  ;;  %v6423_v33 = vpop.eup %6422  ;;  %v4262_v62 = vadd.f32 1.0, %v6421_v36  ;;  %v9883_v22 = vld [vmem:[#allocation6 + $0x8] ss:$16 sps:$4 sm:$0xff]   ;;  %v9889_v36 = vld [vmem:[#allocation6 + $0x2c] ss:$16 sps:$4 sm:$0xff]  }
 0x886   :  { %6426 = vrcp.f32 %v4255_v3  ;;  %v9886_v3 = vld [vmem:[#allocation6 + $0x24] ss:$16 sps:$4 sm:$0xff]   ;;  %11474 = vst [vmem:[#allocation99_spill] sm:$0xff] %v9889_v36 }
 0x887   :  { %6428 = vrcp.f32 %v4262_v62  ;;  %11473 = vst [vmem:[#allocation98_spill] sm:$0xff] %v9886_v3  ;;  %v9906_v62 = vld [vmem:[#allocation6 + $0x40] ss:$16 sps:$4 sm:$0xff]  }
 0x888   :  { %11479 = vst [vmem:[#allocation23_spill] sm:$0xff] %v9906_v62 }
 0x88f   :  { %v6425_v37 = vpop.eup %6424 }
 0x890   :  { %v6427_v10 = vpop.eup %6426  ;;  %v4266_v54 = vmul.f32 %v6425_v37, %v6423_v33  ;;  %v9894_v33 = vld [vmem:[#allocation6 + $0x20] ss:$16 sps:$4 sm:$0xff]   ;;  %v9897_v37 = vld [vmem:[#allocation6 + $0x28] ss:$16 sps:$4 sm:$0xff]  }
 0x891   :  { %v4265_v1 = vmul.f32 %v6427_v10, %v9493_v20  ;;  %v4305_v17 = vpop.f32.mrb[124].mxu0  ;;  %v4346_v26 = vpop.f32.mrb[124].mxu1  ;;  %v9880_v20 = vld [vmem:[#allocation6] ss:$16 sps:$4 sm:$0xff]   ;;  %11475 = vst [vmem:[#allocation100_spill] sm:$0xff] %v9894_v33  ;;  %11476 = vst [vmem:[#allocation101_spill] sm:$0xff] %v9897_v37 }
 0x892   :  { %v4307_v47 = vpop.f32.mrb[125].mxu0  ;;  %v4348_v35 = vpop.f32.mrb[125].mxu1  ;;  %v9900_v10 = vld [vmem:[#allocation6 + $0x44] ss:$16 sps:$4 sm:$0xff]  }
 0x893   :  { %v9873_v5 = vadd.f32 %v4266_v54, %v4265_v1  ;;  %v4309_v34 = vpop.f32.mrb[126].mxu0  ;;  %v4350_v51 = vpop.f32.mrb[126].mxu1  ;;  %11477 = vst [vmem:[#allocation102_spill] sm:$0xff] %v9900_v10  ;;  %v9903_v54 = vld [vmem:[#allocation6 + $0x4c] ss:$16 sps:$4 sm:$0xff]  }
 0x894   :  { %v4310_v31 = vpop.f32.mrb[127].mxu0  ;;  %v4351_v9 = vpop.f32.mrb[127].mxu1  ;;  %11478 = vst [vmem:[#allocation22_spill] sm:$0xff] %v9903_v54  ;;  %v9909_v1 = vld [vmem:[#allocation6 + $0x48] ss:$16 sps:$4 sm:$0xff]  }
 0x895   :  { %6430 = vtanh.f32 %v9873_v5  ;;  %v6429_v19 = vpop.eup %6428  ;;  %11480 = vst [vmem:[#allocation24_spill] sm:$0xff] %v9909_v1  ;;  %v9912_v34 = vld [vmem:[#allocation6 + $0x64] ss:$16 sps:$4 sm:$0xff]   ;;  %v9915_v51 = vld [vmem:[#allocation6 + $0x6c] ss:$16 sps:$4 sm:$0xff]  }
 0x896   :  { %11481 = vst [vmem:[#allocation25_spill] sm:$0xff] %v9912_v34  ;;  %11482 = vst [vmem:[#allocation103_spill] sm:$0xff] %v9915_v51  ;;  %v9918_v31 = vld [vmem:[#allocation6 + $0x60] ss:$16 sps:$4 sm:$0xff]   ;;  %v9921_v9 = vld [vmem:[#allocation6 + $0x68] ss:$16 sps:$4 sm:$0xff]  }
 0x897   :  { %11483 = vst [vmem:[#allocation104_spill] sm:$0xff] %v9918_v31  ;;  %11484 = vst [vmem:[#allocation105_spill] sm:$0xff] %v9921_v9 }
 0x89f   :  { %v6431_v63 = vpop.eup %6430 }
 0x8a0   :  { %v4269_v58 = vmul.f32 %v6431_v63, %v6429_v19 }
 0x8a2   :  { %v9876_v4 = vpack.c.bf16 %v4269_v58, %v4269_v58 }
 0x8a4   :  { %4612 = vmatmul.mubr.bf16.vlgmr.msra.gmra.mrb[136].mxu0 %v9876_v4  ;;  %4653 = vmatmul.mubr.bf16.vlgmr.msra.gmra.mrb[136].mxu1 %v9876_v4 }
 0x8a5   :  { %4662 = vmatpush1.bf16.msra.mxu0 %v9880_v20  ;;  %4703 = vmatpush1.bf16.msra.mxu1 %v9883_v22 }
 0x8a6   :  { %4663 = vmatprep.subr.bf16.mxu0 %v9886_v3  ;;  %4704 = vmatprep.subr.bf16.mxu1 %v9889_v36 }
 0x8a7   :  { %4693 = vmatprep.mubr.bf16.mxu0 %v10863_v15  ;;  %4734 = vmatprep.mubr.bf16.mxu1 %v10863_v15 }
 0x8a9   :  { %4664 = vmatpush1.bf16.msra.mxu0 %v9894_v33  ;;  %4705 = vmatpush1.bf16.msra.mxu1 %v9897_v37 }
 0x8aa   :  { %4665 = vmatprep.subr.bf16.mxu0 %v9900_v10  ;;  %4706 = vmatprep.subr.bf16.mxu1 %v9903_v54  ;;  %v9924_v10 = vld [vmem:[#allocation6 + $0x84] ss:$16 sps:$4 sm:$0xff]  }
 0x8ad   :  { %4666 = vmatpush1.bf16.msra.mxu0 %v9906_v62  ;;  %4707 = vmatpush1.bf16.msra.mxu1 %v9909_v1 }
 0x8ae   :  { %4667 = vmatprep.subr.bf16.mxu0 %v9912_v34  ;;  %4708 = vmatprep.subr.bf16.mxu1 %v9915_v51  ;;  %v9927_v34 = vld [vmem:[#allocation6 + $0x8c] ss:$16 sps:$4 sm:$0xff]  }
 0x8af   :  { %11485 = vst [vmem:[#allocation106_spill] sm:$0xff] %v9927_v34 }
 0x8b1   :  { %4668 = vmatpush1.bf16.msra.mxu0 %v9918_v31  ;;  %4709 = vmatpush1.bf16.msra.mxu1 %v9921_v9  ;;  %v4387_v19 = vpop.f32.mrb[128].mxu0  ;;  %v4428_v63 = vpop.f32.mrb[128].mxu1 }
 0x8b2   :  { %v4388_v58 = vadd.f32 %v4387_v19, %v4305_v17  ;;  %v4429_v1 = vadd.f32 %v4428_v63, %v4346_v26  ;;  %v4389_v62 = vpop.f32.mrb[129].mxu0  ;;  %v4430_v54 = vpop.f32.mrb[129].mxu1  ;;  %4669 = vmatprep.subr.bf16.mxu0 %v9924_v10  ;;  %4710 = vmatprep.subr.bf16.mxu1 %v9927_v34  ;;  %v9932_v26 = vld [vmem:[#allocation6 + $0x80] ss:$16 sps:$4 sm:$0xff]   ;;  %v9935_v19 = vld [vmem:[#allocation6 + $0x88] ss:$16 sps:$4 sm:$0xff]  }
 0x8b3   :  { %v4390_v51 = vadd.f32 %v4389_v62, %v4307_v47  ;;  %v4431_v31 = vadd.f32 %v4430_v54, %v4348_v35  ;;  %v4391_v37 = vpop.f32.mrb[130].mxu0  ;;  %v4432_v33 = vpop.f32.mrb[130].mxu1  ;;  %v9938_v34 = vld [vmem:[#allocation6 + $0xa4] ss:$16 sps:$4 sm:$0xff]   ;;  %v9941_v47 = vld [vmem:[#allocation6 + $0xac] ss:$16 sps:$4 sm:$0xff]  }
 0x8b4   :  { %v4435_v9 = vadd.f32 %v4388_v58, %v8513_v53  ;;  %v4392_v36 = vpop.f32.mrb[131].mxu0  ;;  %v4433_v3 = vpop.f32.mrb[131].mxu1  ;;  %v9950_v33 = vld [vmem:[#allocation6 + $0xc4] ss:$16 sps:$4 sm:$0xff]   ;;  %v9953_v37 = vld [vmem:[#allocation6 + $0xcc] ss:$16 sps:$4 sm:$0xff]  }
 0x8b5   :  { %v4436_v17 = vadd.f32 %v4390_v51, %v8522_v56  ;;  %4670 = vmatpush1.bf16.msra.mxu0 %v9932_v26  ;;  %4711 = vmatpush1.bf16.msra.mxu1 %v9935_v19  ;;  %v9944_v3 = vld [vmem:[#allocation6 + $0xa0] ss:$16 sps:$4 sm:$0xff]   ;;  %v9947_v36 = vld [vmem:[#allocation6 + $0xa8] ss:$16 sps:$4 sm:$0xff]   ;;  %v4438_v54 = vadd.f32 %v4431_v31, %v8545_v0  ;;  %v9966_v58 = vld [vmem:[#allocation6 + $0xec] ss:$16 sps:$4 sm:$0xff]  }
 0x8b6   :  { %v5835_v63 = vmul.f32 -1.442695, %v4435_v9  ;;  %4671 = vmatprep.subr.bf16.mxu0 %v9938_v34  ;;  %4712 = vmatprep.subr.bf16.mxu1 %v9941_v47  ;;  %v9957_v62 = vld [vmem:[#allocation6 + $0xc0] ss:$16 sps:$4 sm:$0xff]   ;;  %v9960_v51 = vld [vmem:[#allocation6 + $0xc8] ss:$16 sps:$4 sm:$0xff]  }
 0x8b7   :  { %v5836_v35 = vmul.f32 -1.442695, %v4436_v17  ;;  %11486 = vst [vmem:[#allocation107_spill] sm:$0xff] %v9957_v62  ;;  %11487 = vst [vmem:[#allocation108_spill] sm:$0xff] %v9960_v51  ;;  %v9963_v9 = vld [vmem:[#allocation6 + $0xe4] ss:$16 sps:$4 sm:$0xff]  }
 0x8b8   :  { %6432 = vpow2.f32 %v5835_v63  ;;  %11488 = vst [vmem:[#allocation109_spill] sm:$0xff] %v9963_v9  ;;  %v5837_v17 = vmul.f32 -1.442695, %v4438_v54  ;;  %v4437_v63 = vadd.f32 %v4429_v1, %v8561_v57  ;;  %v9970_v31 = vld [vmem:[#allocation6 + $0xe0] ss:$16 sps:$4 sm:$0xff]  }
 0x8b9   :  { %6434 = vpow2.f32 %v5836_v35  ;;  %4672 = vmatpush1.bf16.msra.mxu0 %v9944_v3  ;;  %4713 = vmatpush1.bf16.msra.mxu1 %v9947_v36  ;;  %v9973_v35 = vld [vmem:[#allocation6 + $0xe8] ss:$16 sps:$4 sm:$0xff]  }
 0x8ba   :  { %4673 = vmatprep.subr.bf16.mxu0 %v9950_v33  ;;  %4714 = vmatprep.subr.bf16.mxu1 %v9953_v37  ;;  %6436 = vpow2.f32 %v5837_v17 }
 0x8bb   :  { %6438 = vtanh.f32 %v4437_v63 }
 0x8bd   :  { %4674 = vmatpush1.bf16.msra.mxu0 %v9957_v62  ;;  %4715 = vmatpush1.bf16.msra.mxu1 %v9960_v51 }
 0x8be   :  { %4675 = vmatprep.subr.bf16.mxu0 %v9963_v9  ;;  %4716 = vmatprep.subr.bf16.mxu1 %v9966_v58 }
 0x8c1   :  { %4676 = vmatpush1.bf16.msra.mxu0 %v9970_v31  ;;  %4717 = vmatpush1.bf16.msra.mxu1 %v9973_v35 }
 0x8c2   :  { %v6433_v51 = vpop.eup %6432  ;;  %4772 = vmatprep.subr.bf16.mxu0 %v9536_v44  ;;  %4813 = vmatprep.subr.bf16.mxu1 %v9539_v2 }
 0x8c3   :  { %v6435_v9 = vpop.eup %6434  ;;  %v4442_v62 = vadd.f32 1.0, %v6433_v51  ;;  %v11492_v51 = vld [vmem:[#allocation45_spill] sm:$0xff] }
 0x8c4   :  { %v4448_v54 = vadd.f32 1.0, %v6435_v9  ;;  %4694 = vmatmul.mubr.bf16.vlgmr.msra.gmra.mrb[140].mxu0 %v9760_v30  ;;  %4735 = vmatmul.mubr.bf16.vlgmr.msra.gmra.mrb[140].mxu1 %v9760_v30  ;;  %v6437_v44 = vpop.eup %6436 }
 0x8c5   :  { %6440 = vrcp.f32 %v4442_v62  ;;  %4773 = vmatpush1.bf16.msra.mxu0 %v9544_v59  ;;  %4814 = vmatpush1.bf16.msra.mxu1 %v9547_v42  ;;  %v6439_v2 = vpop.eup %6438  ;;  %v11491_v62 = vld [vmem:[#allocation44_spill] sm:$0xff] }
 0x8c6   :  { %6442 = vrcp.f32 %v4448_v54  ;;  %4774 = vmatprep.subr.bf16.mxu0 %v9550_v60  ;;  %4815 = vmatprep.subr.bf16.mxu1 %v9553_v23  ;;  %v4455_v23 = vadd.f32 1.0, %v6437_v44 }
 0x8c7   :  { %4804 = vmatprep.mubr.bf16.mxu0 %v10863_v15  ;;  %4845 = vmatprep.mubr.bf16.mxu1 %v10863_v15 }
 0x8c8   :  { %6444 = vrcp.f32 %v4455_v23  ;;  %v11502_v23 = vld [vmem:[#allocation36_spill] sm:$0xff] }
 0x8c9   :  { %4775 = vmatpush1.bf16.msra.mxu0 %v9558_v40  ;;  %4816 = vmatpush1.bf16.msra.mxu1 %v9561_v29 }
 0x8ca   :  { %4776 = vmatprep.subr.bf16.mxu0 %v9564_v32  ;;  %4817 = vmatprep.subr.bf16.mxu1 %v9567_v14  ;;  %v11489_v14 = vld [vmem:[#allocation42_spill] sm:$0xff] }
 0x8cd   :  { %4777 = vmatpush1.bf16.msra.mxu0 %v9570_v7  ;;  %4818 = vmatpush1.bf16.msra.mxu1 %v9573_v16  ;;  %v11490_v16 = vld [vmem:[#allocation43_spill] sm:$0xff] }
 0x8ce   :  { %4778 = vmatprep.subr.bf16.mxu0 %v9576_v24  ;;  %4819 = vmatprep.subr.bf16.mxu1 %v9579_v6 }
 0x8cf   :  { %v6441_v59 = vpop.eup %6440 }
 0x8d0   :  { %v6443_v42 = vpop.eup %6442  ;;  %v4459_v60 = vmul.f32 %v6441_v59, %v6439_v2  ;;  %v11499_v59 = vld [vmem:[#allocation33_spill] sm:$0xff] }
 0x8d1   :  { %v4458_v40 = vmul.f32 %v6443_v42, %v9597_v52  ;;  %4779 = vmatpush1.bf16.msra.mxu0 %v9583_v48  ;;  %4820 = vmatpush1.bf16.msra.mxu1 %v9586_v46  ;;  %v4502_v29 = vpop.f32.mrb[132].mxu0  ;;  %v4543_v32 = vpop.f32.mrb[132].mxu1  ;;  %v11500_v42 = vld [vmem:[#allocation34_spill] sm:$0xff] }
 0x8d2   :  { %v4550_v7 = vadd.f32 %v4502_v29, %v11489_v14  ;;  %v4552_v30 = vadd.f32 %v4543_v32, %v11490_v16  ;;  %v4504_v1 = vpop.f32.mrb[133].mxu0  ;;  %v4545_v24 = vpop.f32.mrb[133].mxu1  ;;  %4780 = vmatprep.subr.bf16.mxu0 %v9591_v8  ;;  %4821 = vmatprep.subr.bf16.mxu1 %v9594_v41  ;;  %v11504_v29 = vld [vmem:[#allocation46_spill] sm:$0xff]  ;;  %v11505_v16 = vld [vmem:[#allocation21_spill] sm:$0xff] }
 0x8d3   :  { %v10001_v6 = vadd.f32 %v4459_v60, %v4458_v40  ;;  %v4551_v52 = vadd.f32 %v4504_v1, %v11491_v62  ;;  %v4553_v48 = vadd.f32 %v4545_v24, %v11492_v51  ;;  %v4506_v9 = vpop.f32.mrb[134].mxu0  ;;  %v4547_v46 = vpop.f32.mrb[134].mxu1  ;;  %v11501_v60 = vld [vmem:[#allocation35_spill] sm:$0xff]  ;;  %v11503_v40 = vld [vmem:[#allocation37_spill] sm:$0xff] }
 0x8d4   :  { %v5838_v17 = vmul.f32 -1.442695, %v4550_v7  ;;  %v4507_v63 = vpop.f32.mrb[135].mxu0  ;;  %v4548_v54 = vpop.f32.mrb[135].mxu1  ;;  %v11508_v51 = vld [vmem:[#allocation49_spill] sm:$0xff] }
 0x8d5   :  { %v5839_v44 = vmul.f32 -1.442695, %v4551_v52  ;;  %4781 = vmatpush1.bf16.msra.mxu0 %v9603_v13  ;;  %4822 = vmatpush1.bf16.msra.mxu1 %v9606_v43  ;;  %6446 = vtanh.f32 %v10001_v6  ;;  %v5840_v8 = vmul.f32 -1.442695, %v4553_v48  ;;  %v6445_v41 = vpop.eup %6444  ;;  %v11507_v52 = vld [vmem:[#allocation48_spill] sm:$0xff]  ;;  %v11509_v48 = vld [vmem:[#allocation50_spill] sm:$0xff] }
 0x8d6   :  { %6448 = vpow2.f32 %v5838_v17  ;;  %4782 = vmatprep.subr.bf16.mxu0 %v9610_v45  ;;  %4823 = vmatprep.subr.bf16.mxu1 %v9613_v49  ;;  %v11510_v17 = vld [vmem:[#allocation51_spill] sm:$0xff]  ;;  %v11511_v63 = vld [vmem:[#allocation52_spill] sm:$0xff] }
 0x8d7   :  { %6450 = vpow2.f32 %v5839_v44  ;;  %v11512_v54 = vld [vmem:[#allocation20_spill] sm:$0xff]  ;;  %v11513_v44 = vld [vmem:[#allocation53_spill] sm:$0xff] }
 0x8d8   :  { %6452 = vpow2.f32 %v5840_v8  ;;  %v11514_v8 = vld [vmem:[#allocation54_spill] sm:$0xff] }
 0x8d9   :  { %4783 = vmatpush1.bf16.msra.mxu0 %v9616_v25  ;;  %4824 = vmatpush1.bf16.msra.mxu1 %v9619_v11  ;;  %v11493_v11 = vld [vmem:[#allocation146_spill] sm:$0xff]  ;;  %6454 = vtanh.f32 %v4552_v30  ;;  %v11506_v30 = vld [vmem:[#allocation47_spill] sm:$0xff] }
 0x8da   :  { %4784 = vmatprep.subr.bf16.mxu0 %v9622_v18  ;;  %4825 = vmatprep.subr.bf16.mxu1 %v9625_v50  ;;  %v11494_v18 = vld [vmem:[#allocation147_spill] sm:$0xff] }
 0x8dd   :  { %4785 = vmatpush1.bf16.msra.mxu0 %v9628_v12  ;;  %4826 = vmatpush1.bf16.msra.mxu1 %v9631_v39  ;;  %v11495_v12 = vld [vmem:[#allocation148_spill] sm:$0xff]  ;;  %v11496_v39 = vld [vmem:[#allocation30_spill] sm:$0xff] }
 0x8de   :  { %4786 = vmatprep.subr.bf16.mxu0 %v9634_v27  ;;  %4827 = vmatprep.subr.bf16.mxu1 %v9637_v21  ;;  %v11497_v27 = vld [vmem:[#allocation31_spill] sm:$0xff]  ;;  %v11498_v21 = vld [vmem:[#allocation32_spill] sm:$0xff] }
 0x8df   :  { %v6447_v13 = vpop.eup %6446 }
 0x8e0   :  { %v6449_v43 = vpop.eup %6448  ;;  %v4462_v45 = vmul.f32 %v6447_v13, %v6445_v41  ;;  %v11515_v41 = vld [vmem:[#allocation55_spill] sm:$0xff]  ;;  %v11516_v13 = vld [vmem:[#allocation56_spill] sm:$0xff] }
 0x8e1   :  { %v6451_v49 = vpop.eup %6450  ;;  %v4557_v25 = vadd.f32 1.0, %v6449_v43  ;;  %4787 = vmatpush1.bf16.msra.mxu0 %v11493_v11  ;;  %4828 = vmatpush1.bf16.msra.mxu1 %v11494_v18  ;;  %v11517_v43 = vld [vmem:[#allocation57_spill] sm:$0xff] }
 0x8e2   :  { %v4563_v50 = vadd.f32 1.0, %v6451_v49  ;;  %4854 = vmatprep.subr.bf16.mxu0 %v11495_v12  ;;  %4895 = vmatprep.subr.bf16.mxu1 %v11496_v39  ;;  %v4463_v2 = vpack.c.bf16 %v4462_v45, %v4462_v45  ;;  %v6453_v32 = vpop.eup %6452  ;;  %v11518_v45 = vld [vmem:[#allocation58_spill] sm:$0xff]  ;;  %v11519_v49 = vld [vmem:[#allocation59_spill] sm:$0xff]  ;;  %v11521_v11 = vld [vmem:[#allocation61_spill] sm:$0xff] }
 0x8e3   :  { %6456 = vrcp.f32 %v4557_v25  ;;  %v6455_v14 = vpop.eup %6454  ;;  %v4570_v62 = vadd.f32 1.0, %v6453_v32  ;;  %v11520_v25 = vld [vmem:[#allocation60_spill] sm:$0xff]  ;;  %v11522_v12 = vld [vmem:[#allocation62_spill] sm:$0xff]  ;;  %v11523_v39 = vld [vmem:[#allocation63_spill] sm:$0xff] }
 0x8e4   :  { %6458 = vrcp.f32 %v4563_v50  ;;  %4805 = vmatmul.mubr.bf16.vlgmr.msra.gmra.mrb[144].mxu0 %v4463_v2  ;;  %4846 = vmatmul.mubr.bf16.vlgmr.msra.gmra.mrb[144].mxu1 %v4463_v2  ;;  %v11524_v2 = vld [vmem:[#allocation64_spill] sm:$0xff] }
 0x8e5   :  { %4855 = vmatpush1.bf16.msra.mxu0 %v11497_v27  ;;  %4896 = vmatpush1.bf16.msra.mxu1 %v11498_v21  ;;  %6460 = vrcp.f32 %v4570_v62  ;;  %v11525_v27 = vld [vmem:[#allocation65_spill] sm:$0xff]  ;;  %v11532_v32 = vld [vmem:[#allocation72_spill] sm:$0xff] }
 0x8e6   :  { %4856 = vmatprep.subr.bf16.mxu0 %v11499_v59  ;;  %4897 = vmatprep.subr.bf16.mxu1 %v11500_v42  ;;  %v11526_v59 = vld [vmem:[#allocation66_spill] sm:$0xff]  ;;  %v11527_v42 = vld [vmem:[#allocation67_spill] sm:$0xff]  ;;  %v11540_v62 = vld [vmem:[#allocation80_spill] sm:$0xff] }
 0x8e7   :  { %4886 = vmatprep.mubr.bf16.mxu0 %v10863_v15  ;;  %4927 = vmatprep.mubr.bf16.mxu1 %v10863_v15 }
 0x8e9   :  { %4857 = vmatpush1.bf16.msra.mxu0 %v11501_v60  ;;  %4898 = vmatpush1.bf16.msra.mxu1 %v11502_v23  ;;  %v11528_v60 = vld [vmem:[#allocation68_spill] sm:$0xff]  ;;  %v11529_v23 = vld [vmem:[#allocation69_spill] sm:$0xff] }
 0x8ea   :  { %4858 = vmatprep.subr.bf16.mxu0 %v11503_v40  ;;  %4899 = vmatprep.subr.bf16.mxu1 %v11504_v29  ;;  %v11530_v40 = vld [vmem:[#allocation70_spill] sm:$0xff]  ;;  %v11531_v29 = vld [vmem:[#allocation71_spill] sm:$0xff] }
 0x8ed   :  { %v6457_v7 = vpop.eup %6456  ;;  %4859 = vmatpush1.bf16.msra.mxu0 %v11505_v16  ;;  %4900 = vmatpush1.bf16.msra.mxu1 %v11506_v30  ;;  %v11535_v16 = vld [vmem:[#allocation75_spill] sm:$0xff]  ;;  %v11536_v30 = vld [vmem:[#allocation76_spill] sm:$0xff] }
 0x8ee   :  { %v6459_v1 = vpop.eup %6458  ;;  %v4574_v24 = vmul.f32 %v6457_v7, %v6455_v14  ;;  %4860 = vmatprep.subr.bf16.mxu0 %v11507_v52  ;;  %4901 = vmatprep.subr.bf16.mxu1 %v11508_v51  ;;  %v11533_v14 = vld [vmem:[#allocation73_spill] sm:$0xff]  ;;  %v11534_v7 = vld [vmem:[#allocation74_spill] sm:$0xff] }
 0x8ef   :  { %v4573_v9 = vmul.f32 %v6459_v1, %v11509_v48  ;;  %v6461_v18 = vpop.eup %6460  ;;  %v11537_v1 = vld [vmem:[#allocation77_spill] sm:$0xff]  ;;  %v11542_v51 = vld [vmem:[#allocation82_spill] sm:$0xff]  ;;  %v11543_v48 = vld [vmem:[#allocation83_spill] sm:$0xff] }
 0x8f0   :  { %v11541_v52 = vld [vmem:[#allocation81_spill] sm:$0xff] }
 0x8f1   :  { %v4575_v46 = vadd.f32 %v4574_v24, %v4573_v9  ;;  %4861 = vmatpush1.bf16.msra.mxu0 %v11510_v17  ;;  %4902 = vmatpush1.bf16.msra.mxu1 %v11511_v63  ;;  %v11539_v24 = vld [vmem:[#allocation79_spill] sm:$0xff]  ;;  %v11544_v9 = vld [vmem:[#allocation84_spill] sm:$0xff]  ;;  %v11546_v17 = vld [vmem:[#allocation86_spill] sm:$0xff] }
 0x8f2   :  { %4862 = vmatprep.subr.bf16.mxu0 %v11512_v54  ;;  %4903 = vmatprep.subr.bf16.mxu1 %v11513_v44  ;;  %v11547_v63 = vld [vmem:[#allocation26_spill] sm:$0xff]  ;;  %v11548_v54 = vld [vmem:[#allocation27_spill] sm:$0xff]  ;;  %v11549_v44 = vld [vmem:[#allocation28_spill] sm:$0xff] }
 0x8f3   :  { %6462 = vtanh.f32 %v4575_v46  ;;  %5544 = vst [vmem:[#allocation13] sm:$0xff] %v4575_v46  ;;  %v11545_v46 = vld [vmem:[#allocation85_spill] sm:$0xff] }
 0x8f5   :  { %4863 = vmatpush1.bf16.msra.mxu0 %v11514_v8  ;;  %4904 = vmatpush1.bf16.msra.mxu1 %v11515_v41  ;;  %v11550_v8 = vld [vmem:[#allocation29_spill] sm:$0xff]  ;;  %v11551_v41 = vld [vmem:[#allocation87_spill] sm:$0xff] }
 0x8f6   :  { %4864 = vmatprep.subr.bf16.mxu0 %v11516_v13  ;;  %4905 = vmatprep.subr.bf16.mxu1 %v11517_v43  ;;  %v11552_v13 = vld [vmem:[#allocation88_spill] sm:$0xff]  ;;  %v11553_v43 = vld [vmem:[#allocation89_spill] sm:$0xff] }
 0x8f9   :  { %4865 = vmatpush1.bf16.msra.mxu0 %v11518_v45  ;;  %4906 = vmatpush1.bf16.msra.mxu1 %v11519_v49  ;;  %v11554_v45 = vld [vmem:[#allocation90_spill] sm:$0xff]  ;;  %v11555_v49 = vld [vmem:[#allocation91_spill] sm:$0xff] }
 0x8fa   :  { %4866 = vmatprep.subr.bf16.mxu0 %v11520_v25  ;;  %4907 = vmatprep.subr.bf16.mxu1 %v11521_v11  ;;  %v11556_v25 = vld [vmem:[#allocation92_spill] sm:$0xff]  ;;  %v11557_v11 = vld [vmem:[#allocation93_spill] sm:$0xff] }
 0x8fd   :  { %v6463_v50 = vpop.eup %6462  ;;  %4867 = vmatpush1.bf16.msra.mxu0 %v11522_v12  ;;  %4908 = vmatpush1.bf16.msra.mxu1 %v11523_v39  ;;  %v11560_v12 = vld [vmem:[#allocation96_spill] sm:$0xff]  ;;  %v11561_v39 = vld [vmem:[#allocation97_spill] sm:$0xff] }
 0x8fe   :  { %4868 = vmatprep.subr.bf16.mxu0 %v11524_v2  ;;  %4909 = vmatprep.subr.bf16.mxu1 %v11525_v27  ;;  %v10053_v21 = vmul.f32 %v6463_v50, %v6461_v18  ;;  %v11558_v18 = vld [vmem:[#allocation94_spill] sm:$0xff]  ;;  %v11559_v50 = vld [vmem:[#allocation95_spill] sm:$0xff] }
 0x900   :  { %5543 = vst [vmem:[#allocation12] sm:$0xff] %v10053_v21 }
 0x901   :  { %4869 = vmatpush1.bf16.msra.mxu0 %v11526_v59  ;;  %4910 = vmatpush1.bf16.msra.mxu1 %v11527_v42 }
 0x902   :  { %4965 = vmatprep.subr.bf16.mxu0 %v11528_v60  ;;  %5006 = vmatprep.subr.bf16.mxu1 %v11529_v23 }
 0x904   :  { %4887 = vmatmul.mubr.bf16.vlgmr.msra.gmra.mrb[148].mxu0 %v9876_v4  ;;  %4928 = vmatmul.mubr.bf16.vlgmr.msra.gmra.mrb[148].mxu1 %v9876_v4  ;;  %v11538_v4 = vld [vmem:[#allocation78_spill] sm:$0xff] }
 0x905   :  { %4966 = vmatpush1.bf16.msra.mxu0 %v11530_v40  ;;  %5007 = vmatpush1.bf16.msra.mxu1 %v11531_v29 }
 0x906   :  { %4967 = vmatprep.subr.bf16.mxu0 %v11532_v32  ;;  %5008 = vmatprep.subr.bf16.mxu1 %v11533_v14 }
 0x907   :  { %4997 = vmatprep.mubr.bf16.mxu0 %v10863_v15  ;;  %5038 = vmatprep.mubr.bf16.mxu1 %v10863_v15 }
 0x909   :  { %4968 = vmatpush1.bf16.msra.mxu0 %v11534_v7  ;;  %5009 = vmatpush1.bf16.msra.mxu1 %v11535_v16 }
 0x90a   :  { %4969 = vmatprep.subr.bf16.mxu0 %v11536_v30  ;;  %5010 = vmatprep.subr.bf16.mxu1 %v11537_v1 }
 0x90d   :  { %4970 = vmatpush1.bf16.msra.mxu0 %v11538_v4  ;;  %5011 = vmatpush1.bf16.msra.mxu1 %v11539_v24 }
 0x90e   :  { %4971 = vmatprep.subr.bf16.mxu0 %v11540_v62  ;;  %5012 = vmatprep.subr.bf16.mxu1 %v11541_v52 }
 0x911   :  { %4972 = vmatpush1.bf16.msra.mxu0 %v11542_v51  ;;  %5013 = vmatpush1.bf16.msra.mxu1 %v11543_v48 }
 0x912   :  { %4973 = vmatprep.subr.bf16.mxu0 %v11544_v9  ;;  %5014 = vmatprep.subr.bf16.mxu1 %v11545_v46 }
 0x915   :  { %4974 = vmatpush1.bf16.msra.mxu0 %v11546_v17  ;;  %5015 = vmatpush1.bf16.msra.mxu1 %v11547_v63 }
 0x916   :  { %4975 = vmatprep.subr.bf16.mxu0 %v11548_v54  ;;  %5016 = vmatprep.subr.bf16.mxu1 %v11549_v44 }
 0x919   :  { %4976 = vmatpush1.bf16.msra.mxu0 %v11550_v8  ;;  %5017 = vmatpush1.bf16.msra.mxu1 %v11551_v41 }
 0x91a   :  { %4977 = vmatprep.subr.bf16.mxu0 %v11552_v13  ;;  %5018 = vmatprep.subr.bf16.mxu1 %v11553_v43 }
 0x91d   :  { %4978 = vmatpush1.bf16.msra.mxu0 %v11554_v45  ;;  %5019 = vmatpush1.bf16.msra.mxu1 %v11555_v49 }
 0x91e   :  { %4979 = vmatprep.subr.bf16.mxu0 %v11556_v25  ;;  %5020 = vmatprep.subr.bf16.mxu1 %v11557_v11 }
 0x921   :  { %4980 = vmatpush1.bf16.msra.mxu0 %v11558_v18  ;;  %5021 = vmatpush1.bf16.msra.mxu1 %v11559_v50 }
 0x922   :  { %5047 = vmatprep.subr.bf16.mxu0 %v11560_v12  ;;  %5088 = vmatprep.subr.bf16.mxu1 %v11561_v39 }
 0x977   :  { %v4613_v2 = vpop.f32.mrb[136].mxu0  ;;  %v4654_v27 = vpop.f32.mrb[136].mxu1 }
 0x978   :  { %v4615_v59 = vpop.f32.mrb[137].mxu0  ;;  %v4656_v42 = vpop.f32.mrb[137].mxu1 }
 0x979   :  { %v4617_v60 = vpop.f32.mrb[138].mxu0  ;;  %v4658_v23 = vpop.f32.mrb[138].mxu1 }
 0x97a   :  { %v4618_v40 = vpop.f32.mrb[139].mxu0  ;;  %v4659_v29 = vpop.f32.mrb[139].mxu1 }
 0x997   :  { %v4695_v32 = vpop.f32.mrb[140].mxu0  ;;  %v4736_v14 = vpop.f32.mrb[140].mxu1 }
 0x998   :  { %v4696_v7 = vadd.f32 %v4695_v32, %v4613_v2  ;;  %v4737_v16 = vadd.f32 %v4736_v14, %v4654_v27  ;;  %v4697_v30 = vpop.f32.mrb[141].mxu0  ;;  %v4738_v1 = vpop.f32.mrb[141].mxu1 }
 0x999   :  { %v4698_v4 = vadd.f32 %v4697_v30, %v4615_v59  ;;  %v4739_v24 = vadd.f32 %v4738_v1, %v4656_v42  ;;  %v4699_v62 = vpop.f32.mrb[142].mxu0  ;;  %v4740_v52 = vpop.f32.mrb[142].mxu1  ;;  %v11563_v1 = vld [vmem:[#allocation99_spill] sm:$0xff] }
 0x99a   :  { %v4743_v51 = vadd.f32 %v4696_v7, %v7985_v28  ;;  %v4700_v48 = vpop.f32.mrb[143].mxu0  ;;  %v4741_v9 = vpop.f32.mrb[143].mxu1  ;;  %v4745_v8 = vadd.f32 %v4737_v16, %v8009_v61  ;;  %v11566_v62 = vld [vmem:[#allocation102_spill] sm:$0xff] }
 0x99b   :  { %v4744_v46 = vadd.f32 %v4698_v4, %v7990_v38  ;;  %v4746_v54 = vadd.f32 %v4739_v24, %v7999_v55  ;;  %v11564_v4 = vld [vmem:[#allocation100_spill] sm:$0xff]  ;;  %v11565_v24 = vld [vmem:[#allocation101_spill] sm:$0xff]  ;;  %v11567_v52 = vld [vmem:[#allocation22_spill] sm:$0xff] }
 0x99c   :  { %v5841_v17 = vmul.f32 -1.442695, %v4743_v51  ;;  %v11568_v51 = vld [vmem:[#allocation23_spill] sm:$0xff]  ;;  %v11572_v9 = vld [vmem:[#allocation104_spill] sm:$0xff] }
 0x99d   :  { %v5842_v63 = vmul.f32 -1.442695, %v4744_v46  ;;  %v5843_v44 = vmul.f32 -1.442695, %v4746_v54  ;;  %v11571_v48 = vld [vmem:[#allocation103_spill] sm:$0xff]  ;;  %v11573_v46 = vld [vmem:[#allocation105_spill] sm:$0xff] }
 0x99e   :  { %6464 = vpow2.f32 %v5841_v17 }
 0x99f   :  { %6466 = vpow2.f32 %v5842_v63 }
 0x9a0   :  { %6468 = vpow2.f32 %v5843_v44 }
 0x9a1   :  { %6470 = vtanh.f32 %v4745_v8 }
 0x9a8   :  { %v6465_v41 = vpop.eup %6464 }
 0x9a9   :  { %v6467_v13 = vpop.eup %6466  ;;  %v4750_v43 = vadd.f32 1.0, %v6465_v41 }
 0x9aa   :  { %v4756_v45 = vadd.f32 1.0, %v6467_v13  ;;  %v6469_v49 = vpop.eup %6468  ;;  %v11574_v13 = vld [vmem:[#allocation106_spill] sm:$0xff] }
 0x9ab   :  { %6472 = vrcp.f32 %v4750_v43  ;;  %v6471_v25 = vpop.eup %6470  ;;  %v4763_v12 = vadd.f32 1.0, %v6469_v49 }
 0x9ac   :  { %6474 = vrcp.f32 %v4756_v45 }
 0x9ad   :  { %6476 = vrcp.f32 %v4763_v12 }
 0x9b5   :  { %v6473_v11 = vpop.eup %6472 }
 0x9b6   :  { %v6475_v18 = vpop.eup %6474  ;;  %v4767_v50 = vmul.f32 %v6473_v11, %v6471_v25 }
 0x9b7   :  { %v4766_v39 = vmul.f32 %v6475_v18, %v9873_v5  ;;  %v4806_v2 = vpop.f32.mrb[144].mxu0  ;;  %v4847_v27 = vpop.f32.mrb[144].mxu1  ;;  %v11562_v5 = vld [vmem:[#allocation98_spill] sm:$0xff] }
 0x9b8   :  { %v4808_v59 = vpop.f32.mrb[145].mxu0  ;;  %v4849_v42 = vpop.f32.mrb[145].mxu1 }
 0x9b9   :  { %v10101_v60 = vadd.f32 %v4767_v50, %v4766_v39  ;;  %v4810_v23 = vpop.f32.mrb[146].mxu0  ;;  %v4851_v40 = vpop.f32.mrb[146].mxu1 }
 0x9ba   :  { %v4811_v29 = vpop.f32.mrb[147].mxu0  ;;  %v4852_v32 = vpop.f32.mrb[147].mxu1  ;;  %v10161_v23 = vld [vmem:[#allocation11 + $0x2c] ss:$16 sps:$4 sm:$0xff]   ;;  %v10166_v40 = vld [vmem:[#allocation11 + $0x20] ss:$16 sps:$4 sm:$0xff]  }
 0x9bb   :  { %6478 = vtanh.f32 %v10101_v60  ;;  %v6477_v14 = vpop.eup %6476  ;;  %v10169_v29 = vld [vmem:[#allocation11 + $0x28] ss:$16 sps:$4 sm:$0xff]   ;;  %v10172_v32 = vld [vmem:[#allocation11 + $0x44] ss:$16 sps:$4 sm:$0xff]  }
 0x9c5   :  { %v6479_v7 = vpop.eup %6478 }
 0x9c6   :  { %v4770_v16 = vmul.f32 %v6479_v7, %v6477_v14  ;;  %v10175_v14 = vld [vmem:[#allocation11 + $0x4c] ss:$16 sps:$4 sm:$0xff]  }
 0x9c8   :  { %v10104_v30 = vpack.c.bf16 %v4770_v16, %v4770_v16  ;;  %v10178_v16 = vld [vmem:[#allocation11 + $0x40] ss:$16 sps:$4 sm:$0xff]  }
 0x9ca   :  { %4998 = vmatmul.mubr.bf16.vlgmr.msra.gmra.mrb[152].mxu0 %v10104_v30  ;;  %5039 = vmatmul.mubr.bf16.vlgmr.msra.gmra.mrb[152].mxu1 %v10104_v30 }
 0x9cb   :  { %5048 = vmatpush1.bf16.msra.mxu0 %v9880_v20  ;;  %5089 = vmatpush1.bf16.msra.mxu1 %v9883_v22  ;;  %v11569_v20 = vld [vmem:[#allocation24_spill] sm:$0xff]  ;;  %v11570_v22 = vld [vmem:[#allocation25_spill] sm:$0xff] }
 0x9cc   :  { %5049 = vmatprep.subr.bf16.mxu0 %v11562_v5  ;;  %5090 = vmatprep.subr.bf16.mxu1 %v11563_v1  ;;  %v10181_v5 = vld [vmem:[#allocation11 + $0x48] ss:$16 sps:$4 sm:$0xff]  }
 0x9cd   :  { %5079 = vmatprep.mubr.bf16.mxu0 %v10863_v15  ;;  %5120 = vmatprep.mubr.bf16.mxu1 %v10863_v15 }
 0x9cf   :  { %5050 = vmatpush1.bf16.msra.mxu0 %v11564_v4  ;;  %5091 = vmatpush1.bf16.msra.mxu1 %v11565_v24  ;;  %v10184_v4 = vld [vmem:[#allocation11 + $0x64] ss:$16 sps:$4 sm:$0xff]   ;;  %v10187_v24 = vld [vmem:[#allocation11 + $0x6c] ss:$16 sps:$4 sm:$0xff]  }
 0x9d0   :  { %5051 = vmatprep.subr.bf16.mxu0 %v11566_v62  ;;  %5092 = vmatprep.subr.bf16.mxu1 %v11567_v52 }
 0x9d3   :  { %5052 = vmatpush1.bf16.msra.mxu0 %v11568_v51  ;;  %5093 = vmatpush1.bf16.msra.mxu1 %v11569_v20 }
 0x9d4   :  { %5053 = vmatprep.subr.bf16.mxu0 %v11570_v22  ;;  %5094 = vmatprep.subr.bf16.mxu1 %v11571_v48  ;;  %v10191_v48 = vld [vmem:[#allocation11 + $0x60] ss:$16 sps:$4 sm:$0xff]  }
 0x9d7   :  { %5054 = vmatpush1.bf16.msra.mxu0 %v11572_v9  ;;  %5095 = vmatpush1.bf16.msra.mxu1 %v11573_v46  ;;  %v4888_v17 = vpop.f32.mrb[148].mxu0  ;;  %v4929_v63 = vpop.f32.mrb[148].mxu1  ;;  %v10194_v9 = vld [vmem:[#allocation11 + $0x68] ss:$16 sps:$4 sm:$0xff]   ;;  %v10197_v46 = vld [vmem:[#allocation11 + $0x84] ss:$16 sps:$4 sm:$0xff]  }
 0x9d8   :  { %v4889_v54 = vadd.f32 %v4888_v17, %v4806_v2  ;;  %v4930_v44 = vadd.f32 %v4929_v63, %v4847_v27  ;;  %v4890_v8 = vpop.f32.mrb[149].mxu0  ;;  %v4931_v41 = vpop.f32.mrb[149].mxu1  ;;  %5055 = vmatprep.subr.bf16.mxu0 %v9924_v10  ;;  %5096 = vmatprep.subr.bf16.mxu1 %v11574_v13  ;;  %v11575_v2 = vld [vmem:[#allocation107_spill] sm:$0xff] }
 0x9d9   :  { %v4891_v43 = vadd.f32 %v4890_v8, %v4808_v59  ;;  %v4932_v45 = vadd.f32 %v4931_v41, %v4849_v42  ;;  %v4892_v49 = vpop.f32.mrb[150].mxu0  ;;  %v4933_v25 = vpop.f32.mrb[150].mxu1  ;;  %v10200_v17 = vld [vmem:[#allocation11 + $0x8c] ss:$16 sps:$4 sm:$0xff]   ;;  %v10218_v41 = vld [vmem:[#allocation11 + $0xa0] ss:$16 sps:$4 sm:$0xff]  }
 0x9da   :  { %v4936_v11 = vadd.f32 %v4889_v54, %v8513_v53  ;;  %v4893_v18 = vpop.f32.mrb[151].mxu0  ;;  %v4934_v50 = vpop.f32.mrb[151].mxu1  ;;  %v4938_v27 = vadd.f32 %v4930_v44, %v8561_v57  ;;  %v10208_v54 = vld [vmem:[#allocation11 + $0x88] ss:$16 sps:$4 sm:$0xff]   ;;  %v10212_v44 = vld [vmem:[#allocation11 + $0xa4] ss:$16 sps:$4 sm:$0xff]  }
 0x9db   :  { %v4937_v12 = vadd.f32 %v4891_v43, %v8522_v56  ;;  %5056 = vmatpush1.bf16.msra.mxu0 %v9932_v26  ;;  %5097 = vmatpush1.bf16.msra.mxu1 %v9935_v19  ;;  %v4939_v26 = vadd.f32 %v4932_v45, %v8545_v0  ;;  %v11576_v19 = vld [vmem:[#allocation108_spill] sm:$0xff]  ;;  %v10215_v8 = vld [vmem:[#allocation11 + $0xac] ss:$16 sps:$4 sm:$0xff]   ;;  %v10221_v13 = vld [vmem:[#allocation11 + $0xa8] ss:$16 sps:$4 sm:$0xff]  }
 0x9dc   :  { %v5844_v39 = vmul.f32 -1.442695, %v4936_v11  ;;  %5057 = vmatprep.subr.bf16.mxu0 %v9938_v34  ;;  %5098 = vmatprep.subr.bf16.mxu1 %v9941_v47  ;;  %v11577_v34 = vld [vmem:[#allocation109_spill] sm:$0xff]  ;;  %v10224_v43 = vld [vmem:[#allocation11 + $0xc4] ss:$16 sps:$4 sm:$0xff]  }
 0x9dd   :  { %v5845_v10 = vmul.f32 -1.442695, %v4937_v12  ;;  %v5846_v47 = vmul.f32 -1.442695, %v4939_v26  ;;  %v10227_v45 = vld [vmem:[#allocation11 + $0xcc] ss:$16 sps:$4 sm:$0xff]  }
 0x9de   :  { %6480 = vpow2.f32 %v5844_v39  ;;  %v10230_v49 = vld [vmem:[#allocation11 + $0xc0] ss:$16 sps:$4 sm:$0xff]   ;;  %v10233_v25 = vld [vmem:[#allocation11 + $0xc8] ss:$16 sps:$4 sm:$0xff]   ;;  %v10236_v18 = vld [vmem:[#allocation11 + $0xe4] ss:$16 sps:$4 sm:$0xff]  }
 0x9df   :  { %6482 = vpow2.f32 %v5845_v10  ;;  %5058 = vmatpush1.bf16.msra.mxu0 %v9944_v3  ;;  %5099 = vmatpush1.bf16.msra.mxu1 %v9947_v36  ;;  %v4578_v36 = vpack.c.bf16 %v10053_v21, %v10053_v21  ;;  %v10158_v21 = vld [vmem:[#allocation11 + $0x24] ss:$16 sps:$4 sm:$0xff]   ;;  %v10239_v50 = vld [vmem:[#allocation11 + $0xec] ss:$16 sps:$4 sm:$0xff]   ;;  %v10242_v10 = vld [vmem:[#allocation11 + $0xe0] ss:$16 sps:$4 sm:$0xff]  }
 0x9e0   :  { %5059 = vmatprep.subr.bf16.mxu0 %v9950_v33  ;;  %5100 = vmatprep.subr.bf16.mxu1 %v9953_v37  ;;  %v10146_v33 = vld [vmem:[#allocation11 + $0x4] ss:$16 sps:$4 sm:$0xff]   ;;  %v10149_v37 = vld [vmem:[#allocation11 + $0xc] ss:$16 sps:$4 sm:$0xff]   ;;  %6484 = vpow2.f32 %v5846_v47  ;;  %v10245_v26 = vld [vmem:[#allocation11 + $0xe8] ss:$16 sps:$4 sm:$0xff]  }
 0x9e1   :  { %6486 = vtanh.f32 %v4938_v27  ;;  %v10254_v47 = vld [vmem:[#allocation9] ss:$16 sps:$4 sm:$0xff]   ;;  %v10257_v27 = vld [vmem:[#allocation9 + $0x8] ss:$16 sps:$4 sm:$0xff]  }
 0x9e3   :  { %5060 = vmatpush1.bf16.msra.mxu0 %v11575_v2  ;;  %5101 = vmatpush1.bf16.msra.mxu1 %v11576_v19  ;;  %v10248_v2 = vld [vmem:[#allocation9 + $0x4] ss:$16 sps:$4 sm:$0xff]   ;;  %v10251_v19 = vld [vmem:[#allocation9 + $0xc] ss:$16 sps:$4 sm:$0xff]  }
 0x9e4   :  { %5061 = vmatprep.subr.bf16.mxu0 %v11577_v34  ;;  %5102 = vmatprep.subr.bf16.mxu1 %v9966_v58 }
 0x9e7   :  { %5062 = vmatpush1.bf16.msra.mxu0 %v9970_v31  ;;  %5103 = vmatpush1.bf16.msra.mxu1 %v9973_v35  ;;  %v10152_v31 = vld [vmem:[#allocation11] ss:$16 sps:$4 sm:$0xff]   ;;  %v10155_v35 = vld [vmem:[#allocation11 + $0x8] ss:$16 sps:$4 sm:$0xff]  }
 0x9e8   :  { %v6481_v3 = vpop.eup %6480  ;;  %5158 = vmatprep.subr.bf16.mxu0 %v10146_v33  ;;  %5199 = vmatprep.subr.bf16.mxu1 %v10149_v37 }
 0x9e9   :  { %v6483_v58 = vpop.eup %6482  ;;  %v4943_v59 = vadd.f32 1.0, %v6481_v3  ;;  %v10260_v3 = vld [vmem:[#allocation9 + $0x24] ss:$16 sps:$4 sm:$0xff]  }
 0x9ea   :  { %v4949_v42 = vadd.f32 1.0, %v6483_v58  ;;  %5080 = vmatmul.mubr.bf16.vlgmr.msra.gmra.mrb[156].mxu0 %v4578_v36  ;;  %5121 = vmatmul.mubr.bf16.vlgmr.msra.gmra.mrb[156].mxu1 %v4578_v36  ;;  %v6485_v7 = vpop.eup %6484  ;;  %v10263_v36 = vld [vmem:[#allocation9 + $0x2c] ss:$16 sps:$4 sm:$0xff]   ;;  %v10268_v58 = vld [vmem:[#allocation9 + $0x20] ss:$16 sps:$4 sm:$0xff]  }
 0x9eb   :  { %6488 = vrcp.f32 %v4943_v59  ;;  %5159 = vmatpush1.bf16.msra.mxu0 %v10152_v31  ;;  %5200 = vmatpush1.bf16.msra.mxu1 %v10155_v35  ;;  %v6487_v1 = vpop.eup %6486  ;;  %v4956_v20 = vadd.f32 1.0, %v6485_v7  ;;  %v10271_v59 = vld [vmem:[#allocation9 + $0x28] ss:$16 sps:$4 sm:$0xff]   ;;  %v10277_v7 = vld [vmem:[#allocation9 + $0x4c] ss:$16 sps:$4 sm:$0xff]  }
 0x9ec   :  { %6490 = vrcp.f32 %v4949_v42  ;;  %5160 = vmatprep.subr.bf16.mxu0 %v10158_v21  ;;  %5201 = vmatprep.subr.bf16.mxu1 %v10161_v23  ;;  %v10274_v42 = vld [vmem:[#allocation9 + $0x44] ss:$16 sps:$4 sm:$0xff]  }
 0x9ed   :  { %5190 = vmatprep.mubr.bf16.mxu0 %v10863_v15  ;;  %5231 = vmatprep.mubr.bf16.mxu1 %v10863_v15  ;;  %6492 = vrcp.f32 %v4956_v20  ;;  %v10292_v20 = vld [vmem:[#allocation9 + $0x60] ss:$16 sps:$4 sm:$0xff]  }
 0x9ee   :  { %11578 = vst [vmem:[#allocation110_spill] sm:$0xff] %v10292_v20 }
 0x9ef   :  { %5161 = vmatpush1.bf16.msra.mxu0 %v10166_v40  ;;  %5202 = vmatpush1.bf16.msra.mxu1 %v10169_v29 }
 0x9f0   :  { %5162 = vmatprep.subr.bf16.mxu0 %v10172_v32  ;;  %5203 = vmatprep.subr.bf16.mxu1 %v10175_v14 }
 0x9f3   :  { %5163 = vmatpush1.bf16.msra.mxu0 %v10178_v16  ;;  %5204 = vmatpush1.bf16.msra.mxu1 %v10181_v5 }
 0x9f4   :  { %5164 = vmatprep.subr.bf16.mxu0 %v10184_v4  ;;  %5205 = vmatprep.subr.bf16.mxu1 %v10187_v24 }
 0x9f5   :  { %v6489_v62 = vpop.eup %6488 }
 0x9f6   :  { %v6491_v52 = vpop.eup %6490  ;;  %v4960_v51 = vmul.f32 %v6489_v62, %v6487_v1  ;;  %v10280_v1 = vld [vmem:[#allocation9 + $0x40] ss:$16 sps:$4 sm:$0xff]   ;;  %v10283_v62 = vld [vmem:[#allocation9 + $0x48] ss:$16 sps:$4 sm:$0xff]  }
 0x9f7   :  { %v4959_v22 = vmul.f32 %v6491_v52, %v10001_v6  ;;  %5165 = vmatpush1.bf16.msra.mxu0 %v10191_v48  ;;  %5206 = vmatpush1.bf16.msra.mxu1 %v10194_v9  ;;  %v10205_v6 = vld [vmem:[#allocation11 + $0x80] ss:$16 sps:$4 sm:$0xff]   ;;  %v6493_v11 = vpop.eup %6492  ;;  %v10286_v52 = vld [vmem:[#allocation9 + $0x64] ss:$16 sps:$4 sm:$0xff]  }
 0x9f8   :  { %5166 = vmatprep.subr.bf16.mxu0 %v10197_v46  ;;  %5207 = vmatprep.subr.bf16.mxu1 %v10200_v17 }
 0x9f9   :  { %v10203_v63 = vadd.f32 %v4960_v51, %v4959_v22  ;;  %v10289_v51 = vld [vmem:[#allocation9 + $0x6c] ss:$16 sps:$4 sm:$0xff]   ;;  %v10295_v22 = vld [vmem:[#allocation9 + $0x68] ss:$16 sps:$4 sm:$0xff]  }
 0x9fa   :  { %11579 = vst [vmem:[#allocation111_spill] sm:$0xff] %v10295_v22 }
 0x9fb   :  { %5167 = vmatpush1.bf16.msra.mxu0 %v10205_v6  ;;  %5208 = vmatpush1.bf16.msra.mxu1 %v10208_v54  ;;  %6494 = vtanh.f32 %v10203_v63 }
 0x9fc   :  { %5168 = vmatprep.subr.bf16.mxu0 %v10212_v44  ;;  %5209 = vmatprep.subr.bf16.mxu1 %v10215_v8 }
 0x9ff   :  { %5169 = vmatpush1.bf16.msra.mxu0 %v10218_v41  ;;  %5210 = vmatpush1.bf16.msra.mxu1 %v10221_v13 }
 0xa00   :  { %5170 = vmatprep.subr.bf16.mxu0 %v10224_v43  ;;  %5211 = vmatprep.subr.bf16.mxu1 %v10227_v45 }
 0xa03   :  { %5171 = vmatpush1.bf16.msra.mxu0 %v10230_v49  ;;  %5212 = vmatpush1.bf16.msra.mxu1 %v10233_v25 }
 0xa04   :  { %5172 = vmatprep.subr.bf16.mxu0 %v10236_v18  ;;  %5213 = vmatprep.subr.bf16.mxu1 %v10239_v50 }
 0xa05   :  { %v6495_v12 = vpop.eup %6494 }
 0xa06   :  { %v4963_v39 = vmul.f32 %v6495_v12, %v6493_v11  ;;  %v10298_v11 = vld [vmem:[#allocation9 + $0x84] ss:$16 sps:$4 sm:$0xff]   ;;  %v10301_v12 = vld [vmem:[#allocation9 + $0x8c] ss:$16 sps:$4 sm:$0xff]  }
 0xa07   :  { %5173 = vmatpush1.bf16.msra.mxu0 %v10242_v10  ;;  %5214 = vmatpush1.bf16.msra.mxu1 %v10245_v26  ;;  %11580 = vst [vmem:[#allocation112_spill] sm:$0xff] %v10298_v11  ;;  %11581 = vst [vmem:[#allocation113_spill] sm:$0xff] %v10301_v12 }
 0xa08   :  { %5240 = vmatprep.subr.bf16.mxu0 %v10248_v2  ;;  %5281 = vmatprep.subr.bf16.mxu1 %v10251_v19  ;;  %v4964_v34 = vpack.c.bf16 %v4963_v39, %v4963_v39  ;;  %v10304_v39 = vld [vmem:[#allocation9 + $0x80] ss:$16 sps:$4 sm:$0xff]  }
 0xa09   :  { %11582 = vst [vmem:[#allocation114_spill] sm:$0xff] %v10304_v39 }
 0xa0a   :  { %5191 = vmatmul.mubr.bf16.vlgmr.msra.gmra.mrb[160].mxu0 %v4964_v34  ;;  %5232 = vmatmul.mubr.bf16.vlgmr.msra.gmra.mrb[160].mxu1 %v4964_v34  ;;  %v10307_v34 = vld [vmem:[#allocation9 + $0x88] ss:$16 sps:$4 sm:$0xff]  }
 0xa0b   :  { %5241 = vmatpush1.bf16.msra.mxu0 %v10254_v47  ;;  %5282 = vmatpush1.bf16.msra.mxu1 %v10257_v27  ;;  %11583 = vst [vmem:[#allocation115_spill] sm:$0xff] %v10307_v34 }
 0xa0c   :  { %5242 = vmatprep.subr.bf16.mxu0 %v10260_v3  ;;  %5283 = vmatprep.subr.bf16.mxu1 %v10263_v36 }
 0xa0d   :  { %5272 = vmatprep.mubr.bf16.mxu0 %v10863_v15  ;;  %5313 = vmatprep.mubr.bf16.mxu1 %v10863_v15 }
 0xa0f   :  { %5243 = vmatpush1.bf16.msra.mxu0 %v10268_v58  ;;  %5284 = vmatpush1.bf16.msra.mxu1 %v10271_v59 }
 0xa10   :  { %5244 = vmatprep.subr.bf16.mxu0 %v10274_v42  ;;  %5285 = vmatprep.subr.bf16.mxu1 %v10277_v7 }
 0xa13   :  { %5245 = vmatpush1.bf16.msra.mxu0 %v10280_v1  ;;  %5286 = vmatpush1.bf16.msra.mxu1 %v10283_v62 }
 0xa14   :  { %5246 = vmatprep.subr.bf16.mxu0 %v10286_v52  ;;  %5287 = vmatprep.subr.bf16.mxu1 %v10289_v51 }
 0xa17   :  { %5247 = vmatpush1.bf16.msra.mxu0 %v10292_v20  ;;  %5288 = vmatpush1.bf16.msra.mxu1 %v10295_v22  ;;  %v10310_v20 = vld [vmem:[#allocation9 + $0xa4] ss:$16 sps:$4 sm:$0xff]   ;;  %v10313_v22 = vld [vmem:[#allocation9 + $0xac] ss:$16 sps:$4 sm:$0xff]  }
 0xa18   :  { %5248 = vmatprep.subr.bf16.mxu0 %v10298_v11  ;;  %5289 = vmatprep.subr.bf16.mxu1 %v10301_v12  ;;  %11584 = vst [vmem:[#allocation116_spill] sm:$0xff] %v10310_v20  ;;  %11585 = vst [vmem:[#allocation117_spill] sm:$0xff] %v10313_v22  ;;  %v10316_v11 = vld [vmem:[#allocation9 + $0xa0] ss:$16 sps:$4 sm:$0xff]   ;;  %v10319_v12 = vld [vmem:[#allocation9 + $0xa8] ss:$16 sps:$4 sm:$0xff]  }
 0xa19   :  { %11586 = vst [vmem:[#allocation118_spill] sm:$0xff] %v10316_v11  ;;  %11587 = vst [vmem:[#allocation119_spill] sm:$0xff] %v10319_v12 }
 0xa1b   :  { %5249 = vmatpush1.bf16.msra.mxu0 %v10304_v39  ;;  %5290 = vmatpush1.bf16.msra.mxu1 %v10307_v34  ;;  %v10322_v39 = vld [vmem:[#allocation9 + $0xc4] ss:$16 sps:$4 sm:$0xff]   ;;  %v10325_v34 = vld [vmem:[#allocation9 + $0xcc] ss:$16 sps:$4 sm:$0xff]  }
 0xa1c   :  { %5250 = vmatprep.subr.bf16.mxu0 %v10310_v20  ;;  %5291 = vmatprep.subr.bf16.mxu1 %v10313_v22  ;;  %11588 = vst [vmem:[#allocation120_spill] sm:$0xff] %v10322_v39  ;;  %11589 = vst [vmem:[#allocation121_spill] sm:$0xff] %v10325_v34  ;;  %v10328_v20 = vld [vmem:[#allocation9 + $0xc0] ss:$16 sps:$4 sm:$0xff]   ;;  %v10331_v22 = vld [vmem:[#allocation9 + $0xc8] ss:$16 sps:$4 sm:$0xff]  }
 0xa1f   :  { %5251 = vmatpush1.bf16.msra.mxu0 %v10316_v11  ;;  %5292 = vmatpush1.bf16.msra.mxu1 %v10319_v12  ;;  %v10334_v11 = vld [vmem:[#allocation9 + $0xe4] ss:$16 sps:$4 sm:$0xff]   ;;  %v10337_v12 = vld [vmem:[#allocation9 + $0xec] ss:$16 sps:$4 sm:$0xff]  }
 0xa20   :  { %5252 = vmatprep.subr.bf16.mxu0 %v10322_v39  ;;  %5293 = vmatprep.subr.bf16.mxu1 %v10325_v34  ;;  %v10340_v39 = vld [vmem:[#allocation9 + $0xe0] ss:$16 sps:$4 sm:$0xff]   ;;  %v10343_v34 = vld [vmem:[#allocation9 + $0xe8] ss:$16 sps:$4 sm:$0xff]  }
 0xa23   :  { %5253 = vmatpush1.bf16.msra.mxu0 %v10328_v20  ;;  %5294 = vmatpush1.bf16.msra.mxu1 %v10331_v22 }
 0xa24   :  { %5254 = vmatprep.subr.bf16.mxu0 %v10334_v11  ;;  %5295 = vmatprep.subr.bf16.mxu1 %v10337_v12 }
 0xa27   :  { %5255 = vmatpush1.bf16.msra.mxu0 %v10340_v39  ;;  %5296 = vmatpush1.bf16.msra.mxu1 %v10343_v34 }
 0xa28   :  { %5351 = vmatprep.subr.bf16.mxu0 %v10146_v33  ;;  %5392 = vmatprep.subr.bf16.mxu1 %v10149_v37 }
 0xa2a   :  { %5273 = vmatmul.mubr.bf16.vlgmr.msra.gmra.mrb[164].mxu0 %v10104_v30  ;;  %5314 = vmatmul.mubr.bf16.vlgmr.msra.gmra.mrb[164].mxu1 %v10104_v30 }
 0xa2b   :  { %5352 = vmatpush1.bf16.msra.mxu0 %v10152_v31  ;;  %5393 = vmatpush1.bf16.msra.mxu1 %v10155_v35 }
 0xa2c   :  { %5353 = vmatprep.subr.bf16.mxu0 %v10158_v21  ;;  %5394 = vmatprep.subr.bf16.mxu1 %v10161_v23 }
 0xa2d   :  { %5383 = vmatprep.mubr.bf16.mxu0 %v10863_v15  ;;  %5424 = vmatprep.mubr.bf16.mxu1 %v10863_v15 }
 0xa2f   :  { %5354 = vmatpush1.bf16.msra.mxu0 %v10166_v40  ;;  %5395 = vmatpush1.bf16.msra.mxu1 %v10169_v29 }
 0xa30   :  { %5355 = vmatprep.subr.bf16.mxu0 %v10172_v32  ;;  %5396 = vmatprep.subr.bf16.mxu1 %v10175_v14 }
 0xa33   :  { %5356 = vmatpush1.bf16.msra.mxu0 %v10178_v16  ;;  %5397 = vmatpush1.bf16.msra.mxu1 %v10181_v5 }
 0xa34   :  { %5357 = vmatprep.subr.bf16.mxu0 %v10184_v4  ;;  %5398 = vmatprep.subr.bf16.mxu1 %v10187_v24 }
 0xa37   :  { %5358 = vmatpush1.bf16.msra.mxu0 %v10191_v48  ;;  %5399 = vmatpush1.bf16.msra.mxu1 %v10194_v9 }
 0xa38   :  { %5359 = vmatprep.subr.bf16.mxu0 %v10197_v46  ;;  %5400 = vmatprep.subr.bf16.mxu1 %v10200_v17 }
 0xa3b   :  { %5360 = vmatpush1.bf16.msra.mxu0 %v10205_v6  ;;  %5401 = vmatpush1.bf16.msra.mxu1 %v10208_v54 }
 0xa3c   :  { %5361 = vmatprep.subr.bf16.mxu0 %v10212_v44  ;;  %5402 = vmatprep.subr.bf16.mxu1 %v10215_v8 }
 0xa3f   :  { %5362 = vmatpush1.bf16.msra.mxu0 %v10218_v41  ;;  %5403 = vmatpush1.bf16.msra.mxu1 %v10221_v13 }
 0xa40   :  { %5363 = vmatprep.subr.bf16.mxu0 %v10224_v43  ;;  %5404 = vmatprep.subr.bf16.mxu1 %v10227_v45 }
 0xa43   :  { %5364 = vmatpush1.bf16.msra.mxu0 %v10230_v49  ;;  %5405 = vmatpush1.bf16.msra.mxu1 %v10233_v25 }
 0xa44   :  { %5365 = vmatprep.subr.bf16.mxu0 %v10236_v18  ;;  %5406 = vmatprep.subr.bf16.mxu1 %v10239_v50 }
 0xa47   :  { %5366 = vmatpush1.bf16.msra.mxu0 %v10242_v10  ;;  %5407 = vmatpush1.bf16.msra.mxu1 %v10245_v26 }
 0xa48   :  { %5433 = vmatprep.subr.bf16.mxu0 %v10248_v2  ;;  %5474 = vmatprep.subr.bf16.mxu1 %v10251_v19 }
 0xa9d   :  { %v4999_v30 = vpop.f32.mrb[152].mxu0  ;;  %v5040_v33 = vpop.f32.mrb[152].mxu1 }
 0xa9e   :  { %v5001_v37 = vpop.f32.mrb[153].mxu0  ;;  %v5042_v31 = vpop.f32.mrb[153].mxu1 }
 0xa9f   :  { %v5003_v35 = vpop.f32.mrb[154].mxu0  ;;  %v5044_v21 = vpop.f32.mrb[154].mxu1 }
 0xaa0   :  { %v5004_v23 = vpop.f32.mrb[155].mxu0  ;;  %v5045_v40 = vpop.f32.mrb[155].mxu1 }
 0xabd   :  { %v5081_v29 = vpop.f32.mrb[156].mxu0  ;;  %v5122_v32 = vpop.f32.mrb[156].mxu1 }
 0xabe   :  { %v5082_v14 = vadd.f32 %v5081_v29, %v4999_v30  ;;  %v5123_v16 = vadd.f32 %v5122_v32, %v5040_v33  ;;  %v5083_v5 = vpop.f32.mrb[157].mxu0  ;;  %v5124_v4 = vpop.f32.mrb[157].mxu1 }
 0xabf   :  { %v5084_v24 = vadd.f32 %v5083_v5, %v5001_v37  ;;  %v5125_v48 = vadd.f32 %v5124_v4, %v5042_v31  ;;  %v5085_v9 = vpop.f32.mrb[158].mxu0  ;;  %v5126_v46 = vpop.f32.mrb[158].mxu1 }
 0xac0   :  { %v5129_v17 = vadd.f32 %v5082_v14, %v7985_v28  ;;  %v5086_v6 = vpop.f32.mrb[159].mxu0  ;;  %v5127_v54 = vpop.f32.mrb[159].mxu1  ;;  %v5131_v45 = vadd.f32 %v5123_v16, %v8009_v61 }
 0xac1   :  { %v5130_v44 = vadd.f32 %v5084_v24, %v7990_v38  ;;  %v5132_v13 = vadd.f32 %v5125_v48, %v7999_v55 }
 0xac2   :  { %v5847_v8 = vmul.f32 -1.442695, %v5129_v17 }
 0xac3   :  { %v5848_v41 = vmul.f32 -1.442695, %v5130_v44  ;;  %v5849_v43 = vmul.f32 -1.442695, %v5132_v13 }
 0xac4   :  { %6496 = vpow2.f32 %v5847_v8 }
 0xac5   :  { %6498 = vpow2.f32 %v5848_v41 }
 0xac6   :  { %6500 = vpow2.f32 %v5849_v43 }
 0xac7   :  { %6502 = vtanh.f32 %v5131_v45 }
 0xace   :  { %v6497_v49 = vpop.eup %6496 }
 0xacf   :  { %v6499_v25 = vpop.eup %6498  ;;  %v5136_v18 = vadd.f32 1.0, %v6497_v49 }
 0xad0   :  { %v5142_v50 = vadd.f32 1.0, %v6499_v25  ;;  %v6501_v28 = vpop.eup %6500 }
 0xad1   :  { %6504 = vrcp.f32 %v5136_v18  ;;  %v6503_v10 = vpop.eup %6502  ;;  %v5149_v19 = vadd.f32 1.0, %v6501_v28 }
 0xad2   :  { %6506 = vrcp.f32 %v5142_v50 }
 0xad3   :  { %6508 = vrcp.f32 %v5149_v19 }
 0xadb   :  { %v6505_v38 = vpop.eup %6504 }
 0xadc   :  { %v6507_v26 = vpop.eup %6506  ;;  %v5153_v2 = vmul.f32 %v6505_v38, %v6503_v10 }
 0xadd   :  { %v5152_v30 = vmul.f32 %v6507_v26, %v10101_v60  ;;  %v5192_v55 = vpop.f32.mrb[160].mxu0  ;;  %v5233_v33 = vpop.f32.mrb[160].mxu1 }
 0xade   :  { %v5194_v37 = vpop.f32.mrb[161].mxu0  ;;  %v5235_v61 = vpop.f32.mrb[161].mxu1 }
 0xadf   :  { %v5154_v31 = vadd.f32 %v5153_v2, %v5152_v30  ;;  %v5196_v35 = vpop.f32.mrb[162].mxu0  ;;  %v5237_v21 = vpop.f32.mrb[162].mxu1 }
 0xae0   :  { %v5197_v23 = vpop.f32.mrb[163].mxu0  ;;  %v5238_v40 = vpop.f32.mrb[163].mxu1 }
 0xae1   :  { %5548 = vst [vmem:[#allocation13 + $0x8] sm:$0xff] %v5154_v31  ;;  %6510 = vtanh.f32 %v5154_v31  ;;  %v6509_v29 = vpop.eup %6508 }
 0xaeb   :  { %v6511_v32 = vpop.eup %6510 }
 0xaec   :  { %v10389_v14 = vmul.f32 %v6511_v32, %v6509_v29 }
 0xaee   :  { %5546 = vst [vmem:[#allocation12 + $0x8] sm:$0xff] %v10389_v14 }
 0xafd   :  { %v5274_v16 = vpop.f32.mrb[164].mxu0  ;;  %v5315_v60 = vpop.f32.mrb[164].mxu1 }
 0xafe   :  { %v5275_v5 = vadd.f32 %v5274_v16, %v5192_v55  ;;  %v5316_v4 = vadd.f32 %v5315_v60, %v5233_v33  ;;  %v5276_v24 = vpop.f32.mrb[165].mxu0  ;;  %v5317_v48 = vpop.f32.mrb[165].mxu1 }
 0xaff   :  { %v5277_v9 = vadd.f32 %v5276_v24, %v5194_v37  ;;  %v5318_v46 = vadd.f32 %v5317_v48, %v5235_v61  ;;  %v5278_v17 = vpop.f32.mrb[166].mxu0  ;;  %v5319_v6 = vpop.f32.mrb[166].mxu1 }
 0xb00   :  { %v5322_v54 = vadd.f32 %v5275_v5, %v8513_v53  ;;  %v5279_v44 = vpop.f32.mrb[167].mxu0  ;;  %v5320_v8 = vpop.f32.mrb[167].mxu1  ;;  %v5324_v25 = vadd.f32 %v5316_v4, %v8561_v57 }
 0xb01   :  { %v5323_v41 = vadd.f32 %v5277_v9, %v8522_v56  ;;  %v5325_v45 = vadd.f32 %v5318_v46, %v8545_v0 }
 0xb02   :  { %v5850_v13 = vmul.f32 -1.442695, %v5322_v54 }
 0xb03   :  { %v5851_v43 = vmul.f32 -1.442695, %v5323_v41  ;;  %v5852_v49 = vmul.f32 -1.442695, %v5325_v45 }
 0xb04   :  { %6512 = vpow2.f32 %v5850_v13 }
 0xb05   :  { %6514 = vpow2.f32 %v5851_v43 }
 0xb06   :  { %6516 = vpow2.f32 %v5852_v49 }
 0xb07   :  { %6518 = vtanh.f32 %v5324_v25 }
 0xb0e   :  { %v6513_v18 = vpop.eup %6512 }
 0xb0f   :  { %v6515_v50 = vpop.eup %6514  ;;  %v5329_v28 = vadd.f32 1.0, %v6513_v18 }
 0xb10   :  { %v5335_v10 = vadd.f32 1.0, %v6515_v50  ;;  %v6517_v38 = vpop.eup %6516 }
 0xb11   :  { %6520 = vrcp.f32 %v5329_v28  ;;  %v6519_v26 = vpop.eup %6518  ;;  %v5342_v55 = vadd.f32 1.0, %v6517_v38 }
 0xb12   :  { %6522 = vrcp.f32 %v5335_v10 }
 0xb13   :  { %6524 = vrcp.f32 %v5342_v55 }
 0xb1b   :  { %v6521_v2 = vpop.eup %6520 }
 0xb1c   :  { %v6523_v19 = vpop.eup %6522  ;;  %v5346_v30 = vmul.f32 %v6521_v2, %v6519_v26 }
 0xb1d   :  { %v5345_v33 = vmul.f32 %v6523_v19, %v10203_v63  ;;  %v6525_v61 = vpop.eup %6524  ;;  %v11590_v63 = vld [vmem:[#allocation110_spill] sm:$0xff] }
 0xb1f   :  { %v10397_v37 = vadd.f32 %v5346_v30, %v5345_v33 }
 0xb21   :  { %6526 = vtanh.f32 %v10397_v37 }
 0xb2b   :  { %v6527_v31 = vpop.eup %6526 }
 0xb2c   :  { %v5349_v35 = vmul.f32 %v6527_v31, %v6525_v61 }
 0xb2e   :  { %v5350_v21 = vpack.c.bf16 %v5349_v35, %v5349_v35 }
 0xb30   :  { %5384 = vmatmul.mubr.bf16.vlgmr.msra.gmra.mrb[168].mxu0 %v5350_v21  ;;  %5425 = vmatmul.mubr.bf16.vlgmr.msra.gmra.mrb[168].mxu1 %v5350_v21 }
 0xb31   :  { %5434 = vmatpush1.bf16.msra.mxu0 %v10254_v47  ;;  %5475 = vmatpush1.bf16.msra.mxu1 %v10257_v27  ;;  %v11591_v47 = vld [vmem:[#allocation111_spill] sm:$0xff]  ;;  %v11593_v27 = vld [vmem:[#allocation113_spill] sm:$0xff] }
 0xb32   :  { %5435 = vmatprep.subr.bf16.mxu0 %v10260_v3  ;;  %5476 = vmatprep.subr.bf16.mxu1 %v10263_v36  ;;  %v11594_v3 = vld [vmem:[#allocation114_spill] sm:$0xff]  ;;  %v11595_v36 = vld [vmem:[#allocation115_spill] sm:$0xff] }
 0xb33   :  { %5465 = vmatprep.mubr.bf16.mxu0 %v10863_v15  ;;  %5506 = vmatprep.mubr.bf16.mxu1 %v10863_v15  ;;  %v11592_v15 = vld [vmem:[#allocation112_spill] sm:$0xff] }
 0xb35   :  { %5436 = vmatpush1.bf16.msra.mxu0 %v10268_v58  ;;  %5477 = vmatpush1.bf16.msra.mxu1 %v10271_v59  ;;  %v11596_v58 = vld [vmem:[#allocation116_spill] sm:$0xff]  ;;  %v11597_v59 = vld [vmem:[#allocation117_spill] sm:$0xff] }
 0xb36   :  { %5437 = vmatprep.subr.bf16.mxu0 %v10274_v42  ;;  %5478 = vmatprep.subr.bf16.mxu1 %v10277_v7  ;;  %v11598_v42 = vld [vmem:[#allocation118_spill] sm:$0xff]  ;;  %v11599_v7 = vld [vmem:[#allocation119_spill] sm:$0xff] }
 0xb39   :  { %5438 = vmatpush1.bf16.msra.mxu0 %v10280_v1  ;;  %5479 = vmatpush1.bf16.msra.mxu1 %v10283_v62  ;;  %v11600_v1 = vld [vmem:[#allocation120_spill] sm:$0xff]  ;;  %v11601_v62 = vld [vmem:[#allocation121_spill] sm:$0xff] }
 0xb3a   :  { %5439 = vmatprep.subr.bf16.mxu0 %v10286_v52  ;;  %5480 = vmatprep.subr.bf16.mxu1 %v10289_v51  ;;  %v5157_v52 = vpack.c.bf16 %v10389_v14, %v10389_v14 }
 0xb3d   :  { %5440 = vmatpush1.bf16.msra.mxu0 %v11590_v63  ;;  %5481 = vmatpush1.bf16.msra.mxu1 %v11591_v47 }
 0xb3e   :  { %5441 = vmatprep.subr.bf16.mxu0 %v11592_v15  ;;  %5482 = vmatprep.subr.bf16.mxu1 %v11593_v27 }
 0xb41   :  { %5442 = vmatpush1.bf16.msra.mxu0 %v11594_v3  ;;  %5483 = vmatpush1.bf16.msra.mxu1 %v11595_v36 }
 0xb42   :  { %5443 = vmatprep.subr.bf16.mxu0 %v11596_v58  ;;  %5484 = vmatprep.subr.bf16.mxu1 %v11597_v59 }
 0xb45   :  { %5444 = vmatpush1.bf16.msra.mxu0 %v11598_v42  ;;  %5485 = vmatpush1.bf16.msra.mxu1 %v11599_v7 }
 0xb46   :  { %5445 = vmatprep.subr.bf16.mxu0 %v11600_v1  ;;  %5486 = vmatprep.subr.bf16.mxu1 %v11601_v62 }
 0xb49   :  { %5446 = vmatpush1.bf16.msra.mxu0 %v10328_v20  ;;  %5487 = vmatpush1.bf16.msra.mxu1 %v10331_v22 }
 0xb4a   :  { %5447 = vmatprep.subr.bf16.mxu0 %v10334_v11  ;;  %5488 = vmatprep.subr.bf16.mxu1 %v10337_v12 }
 0xb4d   :  { %5448 = vmatpush1.bf16.msra.mxu0 %v10340_v39  ;;  %5489 = vmatpush1.bf16.msra.mxu1 %v10343_v34 }
 0xb50   :  { %5466 = vmatmul.mubr.bf16.vlgmr.msra.gmra.mrb[172].mxu0 %v5157_v52  ;;  %5507 = vmatmul.mubr.bf16.vlgmr.msra.gmra.mrb[172].mxu1 %v5157_v52 }
 0xc03   :  { %v5385_v51 = vpop.f32.mrb[168].mxu0  ;;  %v5426_v23 = vpop.f32.mrb[168].mxu1 }
 0xc04   :  { %v5387_v40 = vpop.f32.mrb[169].mxu0  ;;  %v5428_v29 = vpop.f32.mrb[169].mxu1 }
 0xc05   :  { %v5389_v20 = vpop.f32.mrb[170].mxu0  ;;  %v5430_v32 = vpop.f32.mrb[170].mxu1 }
 0xc06   :  { %v5390_v22 = vpop.f32.mrb[171].mxu0  ;;  %v5431_v16 = vpop.f32.mrb[171].mxu1 }
 0xc23   :  { %v5467_v11 = vpop.f32.mrb[172].mxu0  ;;  %v5508_v60 = vpop.f32.mrb[172].mxu1 }
 0xc24   :  { %v5468_v12 = vadd.f32 %v5467_v11, %v5385_v51  ;;  %v5509_v5 = vadd.f32 %v5508_v60, %v5426_v23  ;;  %v5469_v39 = vpop.f32.mrb[173].mxu0  ;;  %v5510_v4 = vpop.f32.mrb[173].mxu1 }
 0xc25   :  { %v5470_v34 = vadd.f32 %v5469_v39, %v5387_v40  ;;  %v5511_v24 = vadd.f32 %v5510_v4, %v5428_v29  ;;  %v5471_v48 = vpop.f32.mrb[174].mxu0  ;;  %v5512_v14 = vpop.f32.mrb[174].mxu1 }
 0xc26   :  { %v5515_v9 = vadd.f32 %v5468_v12, %v8513_v53  ;;  %v5472_v46 = vpop.f32.mrb[175].mxu0  ;;  %v5513_v17 = vpop.f32.mrb[175].mxu1  ;;  %v5517_v13 = vadd.f32 %v5509_v5, %v8561_v57 }
 0xc27   :  { %v5516_v6 = vadd.f32 %v5470_v34, %v8522_v56  ;;  %v5518_v8 = vadd.f32 %v5511_v24, %v8545_v0 }
 0xc28   :  { %v5853_v54 = vmul.f32 -1.442695, %v5515_v9 }
 0xc29   :  { %v5854_v44 = vmul.f32 -1.442695, %v5516_v6  ;;  %v5855_v41 = vmul.f32 -1.442695, %v5518_v8 }
 0xc2a   :  { %6528 = vpow2.f32 %v5853_v54 }
 0xc2b   :  { %6530 = vpow2.f32 %v5854_v44 }
 0xc2c   :  { %6532 = vpow2.f32 %v5855_v41 }
 0xc2d   :  { %6534 = vtanh.f32 %v5517_v13 }
 0xc34   :  { %v6529_v43 = vpop.eup %6528 }
 0xc35   :  { %v6531_v45 = vpop.eup %6530  ;;  %v5522_v49 = vadd.f32 1.0, %v6529_v43 }
 0xc36   :  { %v5528_v25 = vadd.f32 1.0, %v6531_v45  ;;  %v6533_v53 = vpop.eup %6532 }
 0xc37   :  { %6536 = vrcp.f32 %v5522_v49  ;;  %v6535_v18 = vpop.eup %6534  ;;  %v5535_v10 = vadd.f32 1.0, %v6533_v53 }
 0xc38   :  { %6538 = vrcp.f32 %v5528_v25 }
 0xc39   :  { %6540 = vrcp.f32 %v5535_v10 }
 0xc41   :  { %v6537_v56 = vpop.eup %6536 }
 0xc42   :  { %v6539_v50 = vpop.eup %6538  ;;  %v5539_v28 = vmul.f32 %v6537_v56, %v6535_v18 }
 0xc43   :  { %v5538_v0 = vmul.f32 %v6539_v50, %v10397_v37 }
 0xc45   :  { %v5540_v38 = vadd.f32 %v5539_v28, %v5538_v0 }
 0xc47   :  { %6542 = vtanh.f32 %v5540_v38  ;;  %5552 = vst [vmem:[#allocation13 + $0x10] sm:$0xff] %v5540_v38 }
 0xc48   :  { %7145 = shalt.err (!%p7142_p2)
}
 0xc49   :  { %s7146_s30 = scalar_lea.hbm %s10474_s11, 384 }
 0xc4a   :  { %p7147_p3 = scmp.ne.s32.totalorder %s10474_s11, %s7146_s30  ;;  %p7150_p4 = scmp.lt.u32.totalorder %s7146_s30, %s10474_s11 }
 0xc4c   :  { %p7152_p5 = pnand %p7150_p4, %p7147_p3 }
 0xc4e   :  { %7155 = shalt.err (!%p7152_p5)
}
 0xc4f   :  { %s7197_s25 = smov 128   ;;  %s7198_s12 = smov 8   ;;  %v6541_v57 = vpop.eup %6540 }
 0xc50   :  { %5576 = dma.vmem_to_hbm [thread:$0]  %s5571_s4, 384, %s10474_s11, [#allocation14], %s7197_s25, %s7197_s25, %s7198_s12  }
 0xc51   :  { %s7199_s15 = smov [#allocation12]   ;;  %v6543_v26 = vpop.eup %6542 }
 0xc52   :  { %s5558_s16 = sshll.u32 %s7199_s15, 4  ;;  %v5542_v2 = vmul.f32 %v6543_v26, %v6541_v57  ;;  %s5559_s16 = int_to_ptr.vmem [resolvable:$true] %s5558_s16 }
 0xc53   :  { %s7156_s17 = scalar_lea.vmem %s5559_s16, 384  ;;  %p7161_p7 = scmp.lt.s32.totalorder %s5559_s16, %s5559_s16 }
 0xc54   :  { %5550 = vst [vmem:[#allocation12 + $0x10] sm:$0xff] %v5542_v2  ;;  %p7157_p6 = scmp.ne.s32.totalorder %s5559_s16, %s7156_s17  ;;  %p7162_p8 = scmp.lt.s32.totalorder %s7156_s17, %s7156_s17 }
 0xc56   :  { %p7163_p9 = por %p7162_p8, %p7161_p7 }
 0xc58   :  { %p7164_p10 = pnand %p7163_p9, %p7157_p6 }
 0xc5a   :  { %7167 = shalt.err (!%p7164_p10)
}
 0xc5b   :  { %s7168_s20 = scalar_lea.hbm %s10473_s10, 384 }
 0xc5c   :  { %p7169_p11 = scmp.ne.s32.totalorder %s10473_s10, %s7168_s20  ;;  %p7172_p12 = scmp.lt.u32.totalorder %s7168_s20, %s10473_s10 }
 0xc5e   :  { %p7174_p13 = pnand %p7172_p12, %p7169_p11 }
 0xc60   :  { %7177 = shalt.err (!%p7174_p13)
}
 0xc61   :  { %5564 = dma.vmem_to_hbm [thread:$0]  %s5559_s16, 384, %s10473_s10, [#allocation5], %s7197_s25, %s7197_s25, %s7198_s12  }
 0xc62   :  { %7184 = dma.done.wait [#allocation5], 384  }
 0xc63   :  { %7185 = vsyncadd [#allocation5], 4294966912 }
 0xc64   :  { %7186 = dma.done.wait [#allocation14], 384  }
 0xc65   :  { %7187 = vsyncadd [#allocation14], 4294966912 }
 0xc66   :  { %5583 = vsyncpa [#allocation4], 1 }
 0xc67   :  { %5584 = vsyncpa [#allocation7], 1 }
 0xc68   :  { %5585 = vsyncpa [#allocation10], 1 }
 0xc69   :  { %5586 = vsyncpa [#allocation5], 1 }
 0xc6a   :  { %5587 = vsyncpa [#allocation14], 1 }

</bundles_post_ra>
